<compile_context>
chip_gen: v6e
topology: v6e:2x2x1
jax: 0.10.0
libtpu: 0.0.40
codegen_flags: <defaults>
</compile_context>

<pallas_src>
import jax
import jax.numpy as jnp
from jax.experimental import pallas as pl
from jax.experimental.pallas import tpu as pltpu


def _round_up(x, m):
    return (x + m - 1) // m * m


# ----------------------------- Pallas kernels ------------------------------ #

def _conv_bn_relu_kernel(p_ref, w_ref, b_ref, o_ref):
    """One (tm, K) @ (K, tn) tile of an im2col'ed conv, fused bias + ReLU.

    p_ref : (tm, K)   bf16 im2col patches (K = kh*kw*cin)
    w_ref : (K, tn)   bf16 weights with the BN scale folded in
    b_ref : (1, tn)   f32 folded BN bias
    o_ref : (tm, tn)  output tile
    """
    acc = jnp.dot(p_ref[...], w_ref[...], preferred_element_type=jnp.float32)
    o_ref[...] = jnp.maximum(acc + b_ref[...], 0.0).astype(o_ref.dtype)


def _maxpool_rows_kernel(r0_ref, r1_ref, r2_ref, o_ref):
    """Row part of the 3x3 / stride-2 max pool.

    Each r*_ref is a (1, 1, Wo, C) block of the column-pooled activation taken
    at input rows 2*oh, 2*oh+1, 2*oh+2 — the stride-2 selection is done by the
    BlockSpec index_maps, so the body is a plain element-wise max.
    """
    o_ref[...] = jnp.maximum(jnp.maximum(r0_ref[...], r1_ref[...]), r2_ref[...])


# ------------------------------- host glue --------------------------------- #

def conv_bn_relu(x_nhwc, weight_oihw, bn_scale, bn_bias, *, stride=1,
                 padding=0, out_dtype=jnp.float32, tm_max=1024,
                 vmem_budget=40 * 1024 * 1024):
    """BasicConv2d: conv(bias=False) + BatchNorm(eps=1e-3, eval, folded) + ReLU."""
    cout, cin, kh, kw = weight_oihw.shape
    if padding:
        x_nhwc = jnp.pad(
            x_nhwc, ((0, 0), (padding, padding), (padding, padding), (0, 0)))
    x_nhwc = x_nhwc.astype(jnp.bfloat16)
    n, h, w, _ = x_nhwc.shape
    ho = (h - kh) // stride + 1
    wo = (w - kw) // stride + 1
    m = n * ho * wo
    k_dim = kh * kw * cin

    # im2col with the kh*kw taps folded into the contraction dimension.
    if kh == 1 and kw == 1 and stride == 1:
        patches = x_nhwc.reshape(m, k_dim)
    else:
        taps = []
        for i in range(kh):
            for j in range(kw):
                taps.append(x_nhwc[:, i:i + stride * (ho - 1) + 1:stride,
                                      j:j + stride * (wo - 1) + 1:stride, :])
        # (N, Ho, Wo, kh*kw, cin) -> (M, kh*kw*cin); matches the (kh, kw, cin)
        # ordering of the reshaped weights below.
        patches = jnp.stack(taps, axis=3).reshape(m, k_dim)
    # TODO(synk): stride-1 3x3 convs still materialise a ~9x im2col copy here;
    # reading halo row-blocks of the activation in-kernel would remove it.

    # Weights (Cout, Cin, KH, KW) -> (KH*KW*Cin, Cout) with BN scale folded in.
    w_mat = jnp.transpose(weight_oihw, (2, 3, 1, 0)).reshape(k_dim, cout)
    w_mat = (w_mat * bn_scale[None, :]).astype(jnp.bfloat16)
    bias = bn_bias.reshape(1, cout).astype(jnp.float32)

    # Lane-dense outputs: pad Cout to a multiple of 128; tile it at <=256 so
    # the cout axis also gives v7x's second TensorCore work at small batch.
    cout_p = _round_up(cout, 128)
    if cout_p != cout:
        w_mat = jnp.pad(w_mat, ((0, 0), (0, cout_p - cout)))
        bias = jnp.pad(bias, ((0, 0), (0, cout_p - cout)))
    tn = min(cout_p, 256)

    # Row tile: as large as the VMEM budget allows (multiple of 16 so bf16
    # outputs stay tile-aligned).
    out_bytes = jnp.dtype(out_dtype).itemsize

    def working_set(tm_):
        return (2 * tm_ * k_dim * 2          # double-buffered bf16 patches
                + 2 * k_dim * tn * 2         # bf16 weight block
                + 2 * tn * 4                 # bias block
                + 2 * tm_ * tn * out_bytes)  # output block

    tm = min(tm_max, _round_up(m, 16))
    while tm > 16 and working_set(tm) > vmem_budget:
        tm = max(16, _round_up(tm // 2, 16))

    m_p = _round_up(m, tm)
    if m_p != m:
        patches = jnp.pad(patches, ((0, m_p - m), (0, 0)))

    # cout tiles innermost: weight/bias blocks stay resident across the sweep
    # and the patches block is fetched once per row tile.
    grid = (m_p // tm, cout_p // tn)
    vmem_limit = int(min(48 * 1024 * 1024,
                         max(32 * 1024 * 1024, working_set(tm) + (4 << 20))))
    cost = pl.CostEstimate(
        flops=2 * m * k_dim * cout,
        transcendentals=0,
        bytes_accessed=int(patches.size * 2 + w_mat.size * 2 + bias.size * 4
                           + m_p * cout_p * out_bytes))

    out = pl.pallas_call(
        _conv_bn_relu_kernel,
        out_shape=jax.ShapeDtypeStruct((m_p, cout_p), out_dtype),
        grid=grid,
        in_specs=[
            pl.BlockSpec((tm, k_dim), lambda mi, ni: (mi, 0)),
            pl.BlockSpec((k_dim, tn), lambda mi, ni: (0, ni)),
            pl.BlockSpec((1, tn), lambda mi, ni: (0, ni)),
        ],
        out_specs=pl.BlockSpec((tm, tn), lambda mi, ni: (mi, ni)),
        compiler_params=pltpu.CompilerParams(
            dimension_semantics=("parallel", "parallel"),
            vmem_limit_bytes=vmem_limit,
        ),
        cost_estimate=cost,
    )(patches, w_mat, bias)

    return out[:m, :cout].reshape(n, ho, wo, cout)


def max_pool_3x3_s2(x_nhwc):
    n, h, w, c = x_nhwc.shape
    ho = (h - 3) // 2 + 1
    wo = (w - 3) // 2 + 1
    # Column (W) part on the host: element-wise max of three stride-2,
    # column-shifted views (XLA fuses the strided slices into the max, so no
    # stacked patch tensor is materialised).
    cols = [x_nhwc[:, :, j:j + 2 * (wo - 1) + 1:2, :] for j in range(3)]
    colmax = jnp.maximum(jnp.maximum(cols[0], cols[1]), cols[2])  # (n,h,wo,c)

    def row_spec(k):
        return pl.BlockSpec((1, 1, wo, c),
                            lambda b, oh, k=k: (b, 2 * oh + k, 0, 0))

    # TODO(synk): the pool output could be written straight into the concat
    # buffer (channel-offset out_spec) to skip one copy; kept separate here.
    return pl.pallas_call(
        _maxpool_rows_kernel,
        out_shape=jax.ShapeDtypeStruct((n, ho, wo, c), x_nhwc.dtype),
        grid=(n, ho),
        in_specs=[row_spec(0), row_spec(1), row_spec(2)],
        out_specs=pl.BlockSpec((1, 1, wo, c), lambda b, oh: (b, oh, 0, 0)),
        compiler_params=pltpu.CompilerParams(
            dimension_semantics=("parallel", "parallel")),
    )(colmax, colmax, colmax)


# ------------------------------ parameters --------------------------------- #

def _init_basic_conv(key, cin, cout, k):
    kw_, kg, kb, km, kv = jax.random.split(key, 5)
    fan_in = cin * k * k
    weight = jax.random.normal(kw_, (cout, cin, k, k), jnp.float32) / jnp.sqrt(
        jnp.float32(fan_in))
    gamma = jax.random.uniform(kg, (cout,), jnp.float32, 0.5, 1.5)
    beta = 0.1 * jax.random.normal(kb, (cout,), jnp.float32)
    running_mean = 0.1 * jax.random.normal(km, (cout,), jnp.float32)
    running_var = jax.random.uniform(kv, (cout,), jnp.float32, 0.5, 1.5)
    # Fold BN (eval mode, eps=0.001) into per-channel scale/bias.
    scale = gamma / jnp.sqrt(running_var + 1e-3)
    bias = beta - running_mean * scale
    return weight, scale, bias


def init_reduction_a_params(key, in_channels):
    k1, k2, k3, k4 = jax.random.split(key, 4)
    return {
        "branch3x3": _init_basic_conv(k1, in_channels, 384, 3),
        "branch5x5_1": _init_basic_conv(k2, in_channels, 192, 1),
        "branch5x5_2": _init_basic_conv(k3, 192, 224, 3),
        "branch5x5_3": _init_basic_conv(k4, 224, 256, 3),
    }


# ------------------------------ forward pass -------------------------------- #

def reduction_a_forward(x_nchw, params):
    x = jnp.transpose(x_nchw, (0, 2, 3, 1))  # NCHW -> NHWC

    w, s, b = params["branch3x3"]
    branch3x3 = conv_bn_relu(x, w, s, b, stride=2, padding=0)

    # Chained-branch intermediates kept in bf16 to halve inter-stage HBM
    # traffic; accumulation inside the kernels stays f32.
    w, s, b = params["branch5x5_1"]
    branch5x5 = conv_bn_relu(x, w, s, b, stride=1, padding=0,
                             out_dtype=jnp.bfloat16)
    w, s, b = params["branch5x5_2"]
    branch5x5 = conv_bn_relu(branch5x5, w, s, b, stride=1, padding=1,
                             out_dtype=jnp.bfloat16)
    w, s, b = params["branch5x5_3"]
    branch5x5 = conv_bn_relu(branch5x5, w, s, b, stride=2, padding=0)

    branch_pool = max_pool_3x3_s2(x)

    # TODO(synk): branches could write directly into channel offsets of one
    # lane-aligned output buffer to skip this concat pass.
    out = jnp.concatenate([branch3x3, branch5x5, branch_pool], axis=-1)
    return jnp.transpose(out, (0, 3, 1, 2))  # NHWC -> NCHW (== torch.cat dim=1)


if __name__ == "__main__":
    key = jax.random.PRNGKey(0)
    k_x, k_p = jax.random.split(key)

    batch, in_channels, spatial = 2, 4, 16
    x = jax.random.normal(k_x, (batch, in_channels, spatial, spatial),
                          jnp.float32)
    params = init_reduction_a_params(k_p, in_channels)

    fwd = jax.jit(reduction_a_forward)
    out = fwd(x, params)
    jax.block_until_ready(out)

    expected_c = 384 + 256 + in_channels
    expected_hw = (spatial - 3) // 2 + 1
    assert out.shape == (batch, expected_c, expected_hw, expected_hw), out.shape
    assert out.dtype == jnp.float32

    print("KERNEL_OK")
</pallas_src>

<mosaic_0001>
module attributes {stable_mosaic.version = 11 : i64} {
  func.func @_maxpool_rows_kernel(%arg0: i32, %arg1: i32, %arg2: memref<1x1x7x4xf32, #tpu.memory_space<vmem>>, %arg3: memref<1x1x7x4xf32, #tpu.memory_space<vmem>>, %arg4: memref<1x1x7x4xf32, #tpu.memory_space<vmem>>, %arg5: memref<1x1x7x4xf32, #tpu.memory_space<vmem>>) attributes {dimension_semantics = [#tpu.dimension_semantics<parallel>, #tpu.dimension_semantics<parallel>], iteration_bounds = array<i64: 2, 7>, scalar_prefetch = 0 : i64, scratch_operands = 0 : i64, tpu.core_type = #tpu.core_type<tc>, window_params = [{transform_indices = @transform_0, window_bounds = array<i64: 1, 1, 7, 4>}, {transform_indices = @transform_1, window_bounds = array<i64: 1, 1, 7, 4>}, {transform_indices = @transform_2, window_bounds = array<i64: 1, 1, 7, 4>}, {transform_indices = @transform_3, window_bounds = array<i64: 1, 1, 7, 4>}]} {
    %c0 = arith.constant 0 : index
    %c0_0 = arith.constant 0 : index
    %c0_1 = arith.constant 0 : index
    %c0_2 = arith.constant 0 : index
    %0 = vector.load %arg2[%c0, %c0_0, %c0_1, %c0_2] : memref<1x1x7x4xf32, #tpu.memory_space<vmem>>, vector<1x1x7x4xf32>
    %c0_3 = arith.constant 0 : index
    %c0_4 = arith.constant 0 : index
    %c0_5 = arith.constant 0 : index
    %c0_6 = arith.constant 0 : index
    %1 = vector.load %arg3[%c0_3, %c0_4, %c0_5, %c0_6] : memref<1x1x7x4xf32, #tpu.memory_space<vmem>>, vector<1x1x7x4xf32>
    %2 = arith.maximumf %0, %1 : vector<1x1x7x4xf32>
    %c0_7 = arith.constant 0 : index
    %c0_8 = arith.constant 0 : index
    %c0_9 = arith.constant 0 : index
    %c0_10 = arith.constant 0 : index
    %3 = vector.load %arg4[%c0_7, %c0_8, %c0_9, %c0_10] : memref<1x1x7x4xf32, #tpu.memory_space<vmem>>, vector<1x1x7x4xf32>
    %4 = arith.maximumf %2, %3 : vector<1x1x7x4xf32>
    %c0_11 = arith.constant 0 : index
    %c0_12 = arith.constant 0 : index
    %c0_13 = arith.constant 0 : index
    %c0_14 = arith.constant 0 : index
    %5 = vector.load %arg5[%c0_11, %c0_12, %c0_13, %c0_14] : memref<1x1x7x4xf32, #tpu.memory_space<vmem>>, vector<1x1x7x4xf32>
    tpu.vector_store %arg5[%c0_11, %c0_12, %c0_13, %c0_14], %4 {strides = array<i32>} : memref<1x1x7x4xf32, #tpu.memory_space<vmem>>, vector<1x1x7x4xf32>,
    return
  }
  func.func @transform_0(%arg0: i32, %arg1: i32) -> (i32, i32, i32, i32) {
    %c2_i32 = arith.constant 2 : i32
    %0 = arith.muli %c2_i32, %arg1 : i32
    %c0_i32 = arith.constant 0 : i32
    %1 = arith.addi %0, %c0_i32 : i32
    %c0_i32_0 = arith.constant 0 : i32
    %c0_i32_1 = arith.constant 0 : i32
    %c0_i32_2 = arith.constant 0 : i32
    return %arg0, %1, %c0_i32_0, %c0_i32_1 : i32, i32, i32, i32
  }
  func.func @transform_1(%arg0: i32, %arg1: i32) -> (i32, i32, i32, i32) {
    %c2_i32 = arith.constant 2 : i32
    %0 = arith.muli %c2_i32, %arg1 : i32
    %c1_i32 = arith.constant 1 : i32
    %1 = arith.addi %0, %c1_i32 : i32
    %c0_i32 = arith.constant 0 : i32
    %c0_i32_0 = arith.constant 0 : i32
    %c0_i32_1 = arith.constant 0 : i32
    return %arg0, %1, %c0_i32, %c0_i32_0 : i32, i32, i32, i32
  }
  func.func @transform_2(%arg0: i32, %arg1: i32) -> (i32, i32, i32, i32) {
    %c2_i32 = arith.constant 2 : i32
    %0 = arith.muli %c2_i32, %arg1 : i32
    %c2_i32_0 = arith.constant 2 : i32
    %1 = arith.addi %0, %c2_i32_0 : i32
    %c0_i32 = arith.constant 0 : i32
    %c0_i32_1 = arith.constant 0 : i32
    %c0_i32_2 = arith.constant 0 : i32
    return %arg0, %1, %c0_i32, %c0_i32_1 : i32, i32, i32, i32
  }
  func.func @transform_3(%arg0: i32, %arg1: i32) -> (i32, i32, i32, i32) {
    %c0_i32 = arith.constant 0 : i32
    %c0_i32_0 = arith.constant 0 : i32
    %c0_i32_1 = arith.constant 0 : i32
    return %arg0, %arg1, %c0_i32, %c0_i32_0 : i32, i32, i32, i32
  }
}

module attributes {stable_mosaic.version = 11 : i64} {
  func.func @_conv_bn_relu_kernel(%arg0: i32, %arg1: i32, %arg2: memref<512x4xbf16, #tpu.memory_space<vmem>>, %arg3: memref<4x256xbf16, #tpu.memory_space<vmem>>, %arg4: memref<1x256xf32, #tpu.memory_space<vmem>>, %arg5: memref<512x256xbf16, #tpu.memory_space<vmem>>) attributes {dimension_semantics = [#tpu.dimension_semantics<parallel>, #tpu.dimension_semantics<parallel>], iteration_bounds = array<i64: 1, 1>, scalar_prefetch = 0 : i64, scratch_operands = 0 : i64, tpu.core_type = #tpu.core_type<tc>, window_params = [{transform_indices = @transform_0, window_bounds = array<i64: 512, 4>}, {transform_indices = @transform_1, window_bounds = array<i64: 4, 256>}, {transform_indices = @transform_2, window_bounds = array<i64: 1, 256>}, {transform_indices = @transform_3, window_bounds = array<i64: 512, 256>}]} {
    %c0 = arith.constant 0 : index
    %c0_0 = arith.constant 0 : index
    %0 = vector.load %arg2[%c0, %c0_0] : memref<512x4xbf16, #tpu.memory_space<vmem>>, vector<512x4xbf16>
    %c0_1 = arith.constant 0 : index
    %c0_2 = arith.constant 0 : index
    %1 = vector.load %arg3[%c0_1, %c0_2] : memref<4x256xbf16, #tpu.memory_space<vmem>>, vector<4x256xbf16>
    %cst = arith.constant dense<0.000000e+00> : vector<512x256xf32>
    %2 = tpu.matmul %0, %1, %cst {dimension_numbers = #tpu.dot_dimension_numbers<[1], [0], [0], [1], [0, 0, 1, 1], [], []>} : vector<512x4xbf16>, vector<4x256xbf16>, vector<512x256xf32> -> vector<512x256xf32>
    %c0_3 = arith.constant 0 : index
    %c0_4 = arith.constant 0 : index
    %3 = vector.load %arg4[%c0_3, %c0_4] : memref<1x256xf32, #tpu.memory_space<vmem>>, vector<1x256xf32>
    %4 = vector.broadcast %3 : vector<1x256xf32> to vector<512x256xf32>
    %5 = arith.addf %2, %4 : vector<512x256xf32>
    %cst_5 = arith.constant 0.000000e+00 : f32
    %6 = vector.broadcast %cst_5 : f32 to vector<512x256xf32>
    %7 = arith.maximumf %5, %6 : vector<512x256xf32>
    %8 = arith.truncf %7 : vector<512x256xf32> to vector<512x256xbf16>
    %c0_6 = arith.constant 0 : index
    %c0_7 = arith.constant 0 : index
    %9 = vector.load %arg5[%c0_6, %c0_7] : memref<512x256xbf16, #tpu.memory_space<vmem>>, vector<512x256xbf16>
    tpu.vector_store %arg5[%c0_6, %c0_7], %8 {strides = array<i32>} : memref<512x256xbf16, #tpu.memory_space<vmem>>, vector<512x256xbf16>,
    return
  }
  func.func @transform_0(%arg0: i32, %arg1: i32) -> (i32, i32) {
    %c0_i32 = arith.constant 0 : i32
    %c0_i32_0 = arith.constant 0 : i32
    return %arg0, %c0_i32 : i32, i32
  }
  func.func @transform_1(%arg0: i32, %arg1: i32) -> (i32, i32) {
    %c0_i32 = arith.constant 0 : i32
    %c0_i32_0 = arith.constant 0 : i32
    return %c0_i32, %arg1 : i32, i32
  }
  func.func @transform_2(%arg0: i32, %arg1: i32) -> (i32, i32) {
    %c0_i32 = arith.constant 0 : i32
    %c0_i32_0 = arith.constant 0 : i32
    return %c0_i32, %arg1 : i32, i32
  }
  func.func @transform_3(%arg0: i32, %arg1: i32) -> (i32, i32) {
    %c0_i32 = arith.constant 0 : i32
    return %arg0, %arg1 : i32, i32
  }
}

module attributes {stable_mosaic.version = 11 : i64} {
  func.func @_conv_bn_relu_kernel(%arg0: i32, %arg1: i32, %arg2: memref<512x1728xbf16, #tpu.memory_space<vmem>>, %arg3: memref<1728x256xbf16, #tpu.memory_space<vmem>>, %arg4: memref<1x256xf32, #tpu.memory_space<vmem>>, %arg5: memref<512x256xbf16, #tpu.memory_space<vmem>>) attributes {dimension_semantics = [#tpu.dimension_semantics<parallel>, #tpu.dimension_semantics<parallel>], iteration_bounds = array<i64: 1, 1>, scalar_prefetch = 0 : i64, scratch_operands = 0 : i64, tpu.core_type = #tpu.core_type<tc>, window_params = [{transform_indices = @transform_0, window_bounds = array<i64: 512, 1728>}, {transform_indices = @transform_1, window_bounds = array<i64: 1728, 256>}, {transform_indices = @transform_2, window_bounds = array<i64: 1, 256>}, {transform_indices = @transform_3, window_bounds = array<i64: 512, 256>}]} {
    %c0 = arith.constant 0 : index
    %c0_0 = arith.constant 0 : index
    %0 = vector.load %arg2[%c0, %c0_0] : memref<512x1728xbf16, #tpu.memory_space<vmem>>, vector<512x1728xbf16>
    %c0_1 = arith.constant 0 : index
    %c0_2 = arith.constant 0 : index
    %1 = vector.load %arg3[%c0_1, %c0_2] : memref<1728x256xbf16, #tpu.memory_space<vmem>>, vector<1728x256xbf16>
    %cst = arith.constant dense<0.000000e+00> : vector<512x256xf32>
    %2 = tpu.matmul %0, %1, %cst {dimension_numbers = #tpu.dot_dimension_numbers<[1], [0], [0], [1], [0, 0, 1, 1], [], []>} : vector<512x1728xbf16>, vector<1728x256xbf16>, vector<512x256xf32> -> vector<512x256xf32>
    %c0_3 = arith.constant 0 : index
    %c0_4 = arith.constant 0 : index
    %3 = vector.load %arg4[%c0_3, %c0_4] : memref<1x256xf32, #tpu.memory_space<vmem>>, vector<1x256xf32>
    %4 = vector.broadcast %3 : vector<1x256xf32> to vector<512x256xf32>
    %5 = arith.addf %2, %4 : vector<512x256xf32>
    %cst_5 = arith.constant 0.000000e+00 : f32
    %6 = vector.broadcast %cst_5 : f32 to vector<512x256xf32>
    %7 = arith.maximumf %5, %6 : vector<512x256xf32>
    %8 = arith.truncf %7 : vector<512x256xf32> to vector<512x256xbf16>
    %c0_6 = arith.constant 0 : index
    %c0_7 = arith.constant 0 : index
    %9 = vector.load %arg5[%c0_6, %c0_7] : memref<512x256xbf16, #tpu.memory_space<vmem>>, vector<512x256xbf16>
    tpu.vector_store %arg5[%c0_6, %c0_7], %8 {strides = array<i32>} : memref<512x256xbf16, #tpu.memory_space<vmem>>, vector<512x256xbf16>,
    return
  }
  func.func @transform_0(%arg0: i32, %arg1: i32) -> (i32, i32) {
    %c0_i32 = arith.constant 0 : i32
    %c0_i32_0 = arith.constant 0 : i32
    return %arg0, %c0_i32 : i32, i32
  }
  func.func @transform_1(%arg0: i32, %arg1: i32) -> (i32, i32) {
    %c0_i32 = arith.constant 0 : i32
    %c0_i32_0 = arith.constant 0 : i32
    return %c0_i32, %arg1 : i32, i32
  }
  func.func @transform_2(%arg0: i32, %arg1: i32) -> (i32, i32) {
    %c0_i32 = arith.constant 0 : i32
    %c0_i32_0 = arith.constant 0 : i32
    return %c0_i32, %arg1 : i32, i32
  }
  func.func @transform_3(%arg0: i32, %arg1: i32) -> (i32, i32) {
    %c0_i32 = arith.constant 0 : i32
    return %arg0, %arg1 : i32, i32
  }
}

module attributes {stable_mosaic.version = 11 : i64} {
  func.func @_conv_bn_relu_kernel(%arg0: i32, %arg1: i32, %arg2: memref<112x2016xbf16, #tpu.memory_space<vmem>>, %arg3: memref<2016x256xbf16, #tpu.memory_space<vmem>>, %arg4: memref<1x256xf32, #tpu.memory_space<vmem>>, %arg5: memref<112x256xf32, #tpu.memory_space<vmem>>) attributes {dimension_semantics = [#tpu.dimension_semantics<parallel>, #tpu.dimension_semantics<parallel>], iteration_bounds = array<i64: 1, 1>, scalar_prefetch = 0 : i64, scratch_operands = 0 : i64, tpu.core_type = #tpu.core_type<tc>, window_params = [{transform_indices = @transform_0, window_bounds = array<i64: 112, 2016>}, {transform_indices = @transform_1, window_bounds = array<i64: 2016, 256>}, {transform_indices = @transform_2, window_bounds = array<i64: 1, 256>}, {transform_indices = @transform_3, window_bounds = array<i64: 112, 256>}]} {
    %c0 = arith.constant 0 : index
    %c0_0 = arith.constant 0 : index
    %0 = vector.load %arg2[%c0, %c0_0] : memref<112x2016xbf16, #tpu.memory_space<vmem>>, vector<112x2016xbf16>
    %c0_1 = arith.constant 0 : index
    %c0_2 = arith.constant 0 : index
    %1 = vector.load %arg3[%c0_1, %c0_2] : memref<2016x256xbf16, #tpu.memory_space<vmem>>, vector<2016x256xbf16>
    %cst = arith.constant dense<0.000000e+00> : vector<112x256xf32>
    %2 = tpu.matmul %0, %1, %cst {dimension_numbers = #tpu.dot_dimension_numbers<[1], [0], [0], [1], [0, 0, 1, 1], [], []>} : vector<112x2016xbf16>, vector<2016x256xbf16>, vector<112x256xf32> -> vector<112x256xf32>
    %c0_3 = arith.constant 0 : index
    %c0_4 = arith.constant 0 : index
    %3 = vector.load %arg4[%c0_3, %c0_4] : memref<1x256xf32, #tpu.memory_space<vmem>>, vector<1x256xf32>
    %4 = vector.broadcast %3 : vector<1x256xf32> to vector<112x256xf32>
    %5 = arith.addf %2, %4 : vector<112x256xf32>
    %cst_5 = arith.constant 0.000000e+00 : f32
    %6 = vector.broadcast %cst_5 : f32 to vector<112x256xf32>
    %7 = arith.maximumf %5, %6 : vector<112x256xf32>
    %c0_6 = arith.constant 0 : index
    %c0_7 = arith.constant 0 : index
    %8 = vector.load %arg5[%c0_6, %c0_7] : memref<112x256xf32, #tpu.memory_space<vmem>>, vector<112x256xf32>
    tpu.vector_store %arg5[%c0_6, %c0_7], %7 {strides = array<i32>} : memref<112x256xf32, #tpu.memory_space<vmem>>, vector<112x256xf32>,
    return
  }
  func.func @transform_0(%arg0: i32, %arg1: i32) -> (i32, i32) {
    %c0_i32 = arith.constant 0 : i32
    %c0_i32_0 = arith.constant 0 : i32
    return %arg0, %c0_i32 : i32, i32
  }
  func.func @transform_1(%arg0: i32, %arg1: i32) -> (i32, i32) {
    %c0_i32 = arith.constant 0 : i32
    %c0_i32_0 = arith.constant 0 : i32
    return %c0_i32, %arg1 : i32, i32
  }
  func.func @transform_2(%arg0: i32, %arg1: i32) -> (i32, i32) {
    %c0_i32 = arith.constant 0 : i32
    %c0_i32_0 = arith.constant 0 : i32
    return %c0_i32, %arg1 : i32, i32
  }
  func.func @transform_3(%arg0: i32, %arg1: i32) -> (i32, i32) {
    %c0_i32 = arith.constant 0 : i32
    return %arg0, %arg1 : i32, i32
  }
}

module attributes {stable_mosaic.version = 11 : i64} {
  func.func @_conv_bn_relu_kernel(%arg0: i32, %arg1: i32, %arg2: memref<112x36xbf16, #tpu.memory_space<vmem>>, %arg3: memref<36x256xbf16, #tpu.memory_space<vmem>>, %arg4: memref<1x256xf32, #tpu.memory_space<vmem>>, %arg5: memref<112x256xf32, #tpu.memory_space<vmem>>) attributes {dimension_semantics = [#tpu.dimension_semantics<parallel>, #tpu.dimension_semantics<parallel>], iteration_bounds = array<i64: 1, 1>, scalar_prefetch = 0 : i64, scratch_operands = 0 : i64, tpu.core_type = #tpu.core_type<tc>, window_params = [{transform_indices = @transform_0, window_bounds = array<i64: 112, 36>}, {transform_indices = @transform_1, window_bounds = array<i64: 36, 256>}, {transform_indices = @transform_2, window_bounds = array<i64: 1, 256>}, {transform_indices = @transform_3, window_bounds = array<i64: 112, 256>}]} {
    %c0 = arith.constant 0 : index
    %c0_0 = arith.constant 0 : index
    %0 = vector.load %arg2[%c0, %c0_0] : memref<112x36xbf16, #tpu.memory_space<vmem>>, vector<112x36xbf16>
    %c0_1 = arith.constant 0 : index
    %c0_2 = arith.constant 0 : index
    %1 = vector.load %arg3[%c0_1, %c0_2] : memref<36x256xbf16, #tpu.memory_space<vmem>>, vector<36x256xbf16>
    %cst = arith.constant dense<0.000000e+00> : vector<112x256xf32>
    %2 = tpu.matmul %0, %1, %cst {dimension_numbers = #tpu.dot_dimension_numbers<[1], [0], [0], [1], [0, 0, 1, 1], [], []>} : vector<112x36xbf16>, vector<36x256xbf16>, vector<112x256xf32> -> vector<112x256xf32>
    %c0_3 = arith.constant 0 : index
    %c0_4 = arith.constant 0 : index
    %3 = vector.load %arg4[%c0_3, %c0_4] : memref<1x256xf32, #tpu.memory_space<vmem>>, vector<1x256xf32>
    %4 = vector.broadcast %3 : vector<1x256xf32> to vector<112x256xf32>
    %5 = arith.addf %2, %4 : vector<112x256xf32>
    %cst_5 = arith.constant 0.000000e+00 : f32
    %6 = vector.broadcast %cst_5 : f32 to vector<112x256xf32>
    %7 = arith.maximumf %5, %6 : vector<112x256xf32>
    %c0_6 = arith.constant 0 : index
    %c0_7 = arith.constant 0 : index
    %8 = vector.load %arg5[%c0_6, %c0_7] : memref<112x256xf32, #tpu.memory_space<vmem>>, vector<112x256xf32>
    tpu.vector_store %arg5[%c0_6, %c0_7], %7 {strides = array<i32>} : memref<112x256xf32, #tpu.memory_space<vmem>>, vector<112x256xf32>,
    return
  }
  func.func @transform_0(%arg0: i32, %arg1: i32) -> (i32, i32) {
    %c0_i32 = arith.constant 0 : i32
    %c0_i32_0 = arith.constant 0 : i32
    return %arg0, %c0_i32 : i32, i32
  }
  func.func @transform_1(%arg0: i32, %arg1: i32) -> (i32, i32) {
    %c0_i32 = arith.constant 0 : i32
    %c0_i32_0 = arith.constant 0 : i32
    return %c0_i32, %arg1 : i32, i32
  }
  func.func @transform_2(%arg0: i32, %arg1: i32) -> (i32, i32) {
    %c0_i32 = arith.constant 0 : i32
    %c0_i32_0 = arith.constant 0 : i32
    return %c0_i32, %arg1 : i32, i32
  }
  func.func @transform_3(%arg0: i32, %arg1: i32) -> (i32, i32) {
    %c0_i32 = arith.constant 0 : i32
    return %arg0, %arg1 : i32, i32
  }
}

</mosaic_0001>

<bundles_post_ra>
// kernel: reduction_a_forward.9
= control target key start
LH: loop header
LB: loop body
LE: loop exit
PB: predicated region body
PF: predicated region fallthrough
CT: control target
= control target key end

     0   :  { %s552_s12 = smov 0   ;;  %s554_s13 = smov 0   ;;  %s614_s0 = inlined_call_operand.vmem [shape: f32[2,16,7,4], index: 0, kind: input, shape index: {}, may-alias: {0,1,2}]   ;;  %s615_s1 = inlined_call_operand.vmem [shape: f32[2,16,7,4], index: 1, kind: input, shape index: {}, may-alias: {0,1,2}]   ;;  %s616_s2 = inlined_call_operand.vmem [shape: f32[2,16,7,4], index: 2, kind: input, shape index: {}, may-alias: {0,1,2}]   ;;  %s617_s3 = inlined_call_operand.vmem [shape: f32[2,7,7,4], index: 3, kind: output, shape index: {}]  }
   0x1   :  { %s556_s14 = smov 0   ;;  %s558_s15 = smov 0  }
   0x2   :  { %s560_s16 = smov 0  }
   0x3 LB: > { %s22_s17 = sadd.s32 1, %s522_s14  ;;  %s25_s18 = sadd.s32 1, %s526_s15  ;;  %s530_s16 = sphi %s560_s16, %s13_s16   ;;  %s526_s15 = sphi %s558_s15, %s621_s15   ;;  %s522_s14 = sphi %s556_s14, %s620_s14   ;;  %s518_s13 = sphi %s554_s13, %s619_s13   ;;  %s514_s12 = sphi %s552_s12, %s618_s12  }
   0x4   : > { %p23_p0 = scmp.ge.s32.totalorder %s22_s17, 7  ;;  %p438_p1 = scmp.ge.s32.totalorder %s530_s16, 1 }
   0x5   : > { %p206_p2 = scmp.lt.s32.totalorder %s530_s16, 15 }
   0x6   : > { %s623_s17 = smov (%p23_p0, %s22_s17), 0  ;;  %s625_s18 = smov (!%p23_p0, %s25_s18), %s526_s15 }
   0x7   : > { %p207_p3 = pnand %p438_p1, %p206_p2  ;;  %p27_p4 = scmp.ge.s32.totalorder %s625_s18, 2 }
   0x8   : > { %s439_s19 = sshll.u32 (!%p207_p3), %s514_s12, 1  ;;  %p258_p5 = scmp.lt.s32.totalorder (!%p207_p3), %s518_s13, 1 }
   0x9   : > { %s627_s18 = smov (%p27_p4, %s625_s18), 0  ;;  %210 = sbr.rel (%p207_p3) target bundleno = 27 (0x1b), region = 32 }
   0xa   : > { %p260_p6 = scmp.lt.s32.totalorder (!%p207_p3), %s439_s19, 15  ;;  %s268_s20 = sadd.s32 (!%p207_p3), 1, %s439_s19 }
   0xb   : > { %p271_p7 = scmp.lt.s32.totalorder (!%p207_p3), %s268_s20, 15  ;;  %s280_s24 = sadd.s32 (!%p207_p3), 2, %s439_s19 }
   0xc   : > { %p283_p8 = scmp.lt.s32.totalorder (!%p207_p3), %s280_s24, 15  ;;  %p293_p9 = scmp.lt.s32.totalorder (!%p207_p3), %s514_s12, 6 }
   0xe   : > { %s629_s13 = smov (!%p258_p5, %s518_s13), 1  ;;  %s631_s20 = smov (!%p271_p7, %s268_s20), 15  ;;  %vm304_vm0 = vcmask 30720  }
   0xf   : > { %s261_s21 = scalar_select %p260_p6, %s439_s19, 15 }
  0x10   : > { %s440_s22 = sshll.u32 %s629_s13, 4  ;;  %s633_s24 = smov (!%p283_p8, %s280_s24), 15 }
  0x11   : > { %s263_s23 = sadd.s32 %s440_s22, %s261_s21  ;;  %s274_s29 = sadd.s32 %s440_s22, %s631_s20 }
  0x12   : > { %s441_s25 = sshll.u32 %s263_s23, 3  ;;  %s451_s30 = smul.u32 7, %s629_s13 }
  0x13   : > { %s265_s28 = scalar_lea.vmem %s614_s0, %s441_s25  ;;  %s444_s4 = sshll.u32 %s274_s29, 3 }
  0x14   : > { %s286_s5 = sadd.s32 %s440_s22, %s633_s24  ;;  %v299_v0 = vld [vmem:[%s265_s28] sm:$0x7f]  ;;  %s276_s8 = scalar_lea.vmem %s615_s1, %s444_s4 }
  0x15   : > { %s447_s9 = sshll.u32 %s286_s5, 3  ;;  %v300_v1 = vld [vmem:[%s276_s8] sm:$0x7f]  ;;  %s635_s12 = smov (!%p293_p9, %s514_s12), 6 }
  0x16   : > { %s288_s19 = scalar_lea.vmem %s616_s2, %s447_s9  ;;  %v301_v2 = vmax.f32 %v299_v0, %v300_v1  ;;  %s296_s21 = sadd.s32 %s451_s30, %s635_s12 }
  0x17   : > { %v302_v3 = vld [vmem:[%s288_s19] sm:$0x7f]  ;;  %s448_s13 = sshll.u32 %s296_s21, 3 }
  0x18   : > { %v303_v4 = vmax.f32 %v301_v2, %v302_v3  ;;  %s298_s23 = scalar_lea.vmem %s617_s3, %s448_s13 }
  0x1a   : > { %305 = vst.msk [vmem:[%s298_s23] sm:$0x7f] %vm304_vm0, %v303_v4 }
  0x1b PF: > { %s13_s16 = sadd.s32 1, %s530_s16   ;;  %s618_s12 = smov %s522_s14 }
  0x1c   : > { %p10_p10 = scmp.ge.s32.totalorder %s13_s16, 16   ;;  %s619_s13 = smov %s526_s15 }
  0x1d   : > { %s620_s14 = smov %s623_s17  ;;  %s621_s15 = smov %s627_s18 }
  0x1e   :  { %12 = sbr.rel (!%p10_p10) target bundleno = 3 (0x3), region = 68 }

// kernel: reduction_a_forward.6
= control target key start
LH: loop header
LB: loop body
LE: loop exit
PB: predicated region body
PF: predicated region fallthrough
CT: control target
= control target key end

     0   :  { %vm358_vm0 = vcmask 1041408   ;;  %v1527_v1 = vmov 0   ;;  %vm261_vm1 = vcmask 31744   ;;  %v82_v36 = vlaneseq  ;;  %s2038_s1 = inlined_call_operand.vmem [shape: bf16[4,256], index: 1, kind: input, shape index: {}]   ;;  %s2039_s0 = inlined_call_operand.vmem [shape: bf16[512,4], index: 0, kind: input, shape index: {}]   ;;  %s2040_s2 = inlined_call_operand.vmem [shape: f32[1,256], index: 2, kind: input, shape index: {}]   ;;  %s2041_s3 = inlined_call_operand.vmem [shape: bf16[512,256], index: 3, kind: output, shape index: {}]  }
   0x1   :  { %v1330_v0 = vld.sshfl [vmem:[%s2038_s1] sm:$0x33 pattern:$0x76325410]  ;;  %397 = vmatprep.mubr.bf16.mxu0 %v1527_v1  ;;  %557 = vmatprep.mubr.bf16.mxu1 %v1527_v1  ;;  %v1497_v6 = vld [vmem:[%s2039_s0 + $0x8] sm:$0xff]   ;;  %v1499_v8 = vld [vmem:[%s2039_s0 + $0x10] sm:$0xff]  }
   0x2   :  { %v260_v2 = vcombine.high %v1330_v0, %v1330_v0  ;;  %v360_v3 = vsel %vm358_vm0, %v1330_v0, 0  ;;  %v1495_v4 = vld [vmem:[%s2039_s0] sm:$0xff]   ;;  %v1498_v7 = vld [vmem:[%s2039_s0 + $0x88] sm:$0xff]   ;;  %v1500_v9 = vld [vmem:[%s2039_s0 + $0x90] sm:$0xff]   ;;  %v83_v37 = vshrl.u32 %v82_v36, 7 }
   0x3   :  { %v1496_v5 = vld [vmem:[%s2039_s0 + $0x80] sm:$0xff]   ;;  %v1501_v10 = vld [vmem:[%s2039_s0 + $0x18] sm:$0xff]   ;;  %v1505_v14 = vld [vmem:[%s2039_s0 + $0x28] sm:$0xff]  }
   0x4   :  { %1331 = vmatprep.subr.msk.bf16.mxu0 %vm358_vm0, %v260_v2  ;;  %1492 = vmatprep.subr.msk.bf16.mxu1 %vm358_vm0, %v260_v2  ;;  %v1502_v11 = vld [vmem:[%s2039_s0 + $0x98] sm:$0xff]   ;;  %v1503_v12 = vld [vmem:[%s2039_s0 + $0x20] sm:$0xff]   ;;  %v1506_v15 = vld [vmem:[%s2039_s0 + $0xa8] sm:$0xff]   ;;  %v84_v38 = vsub.s32 0, %v83_v37  ;;  %v88_v40 = vsub.s32 1, %v83_v37 }
   0x5   :  { %380 = vmatpush1.bf16.msra.mxu0 %v360_v3  ;;  %1493 = vmatpush1.bf16.msra.mxu1 %v360_v3  ;;  %v1504_v13 = vld [vmem:[%s2039_s0 + $0xa0] sm:$0xff]   ;;  %v1507_v16 = vld [vmem:[%s2039_s0 + $0x30] sm:$0xff]   ;;  %v1509_v18 = vld [vmem:[%s2039_s0 + $0x38] sm:$0xff]  }
   0x6   :  { %v1508_v17 = vld [vmem:[%s2039_s0 + $0xb0] sm:$0xff]   ;;  %v1510_v19 = vld [vmem:[%s2039_s0 + $0xb8] sm:$0xff]   ;;  %v1511_v20 = vld [vmem:[%s2039_s0 + $0x40] sm:$0xff]  }
   0x7   :  { %v1512_v21 = vld [vmem:[%s2039_s0 + $0xc0] sm:$0xff]   ;;  %v1513_v22 = vld [vmem:[%s2039_s0 + $0x48] sm:$0xff]   ;;  %v1515_v24 = vld [vmem:[%s2039_s0 + $0x50] sm:$0xff]  }
   0x8   :  { %1332 = vmatmul.mubr.msk.bf16.vlgmr.msra.gmra.mxu0 %vm261_vm1, %v1495_v4  ;;  %1348 = vmatmul.mubr.msk.bf16.vlgmr.msra.gmra.mxu1 %vm261_vm1, %v1496_v5  ;;  %v1514_v23 = vld [vmem:[%s2039_s0 + $0xc8] sm:$0xff]   ;;  %v1516_v25 = vld [vmem:[%s2039_s0 + $0xd0] sm:$0xff]   ;;  %v1517_v26 = vld [vmem:[%s2039_s0 + $0x58] sm:$0xff]  }
   0x9   :  { %407 = vmatprep.mubr.bf16.mxu0 %v1527_v1  ;;  %567 = vmatprep.mubr.bf16.mxu1 %v1527_v1  ;;  %v1518_v27 = vld [vmem:[%s2039_s0 + $0xd8] sm:$0xff]   ;;  %v1519_v28 = vld [vmem:[%s2039_s0 + $0x60] sm:$0xff]   ;;  %v1521_v30 = vld [vmem:[%s2039_s0 + $0x68] sm:$0xff]  }
   0xa   :  { %v1520_v29 = vld [vmem:[%s2039_s0 + $0xe0] sm:$0xff]   ;;  %v1522_v31 = vld [vmem:[%s2039_s0 + $0xe8] sm:$0xff]   ;;  %v1523_v32 = vld [vmem:[%s2039_s0 + $0x70] sm:$0xff]  }
   0xb   :  { %v1524_v33 = vld [vmem:[%s2039_s0 + $0xf0] sm:$0xff]   ;;  %v1525_v34 = vld [vmem:[%s2039_s0 + $0x78] sm:$0xff]   ;;  %v80_v39 = vld [vmem:[%s2040_s2] sm:$0x3] }
   0xc   :  { %v1526_v35 = vld [vmem:[%s2039_s0 + $0xf8] sm:$0xff]   ;;  %v1714_v41 = vrot.slane %v80_v39, %v84_v38  ;;  %v1716_v42 = vrot.slane %v80_v39, %v88_v40 }
  0x10   :  { %1333 = vmatmul.mubr.msk.bf16.gmra.mxu0 %vm261_vm1, %v1497_v6  ;;  %1349 = vmatmul.mubr.msk.bf16.gmra.mxu1 %vm261_vm1, %v1498_v7 }
  0x11   :  { %417 = vmatprep.mubr.bf16.mxu0 %v1527_v1  ;;  %577 = vmatprep.mubr.bf16.mxu1 %v1527_v1 }
  0x18   :  { %1334 = vmatmul.mubr.msk.bf16.gmra.mxu0 %vm261_vm1, %v1499_v8  ;;  %1350 = vmatmul.mubr.msk.bf16.gmra.mxu1 %vm261_vm1, %v1500_v9 }
  0x19   :  { %427 = vmatprep.mubr.bf16.mxu0 %v1527_v1  ;;  %587 = vmatprep.mubr.bf16.mxu1 %v1527_v1 }
  0x20   :  { %1335 = vmatmul.mubr.msk.bf16.gmra.mxu0 %vm261_vm1, %v1501_v10  ;;  %1351 = vmatmul.mubr.msk.bf16.gmra.mxu1 %vm261_vm1, %v1502_v11 }
  0x21   :  { %437 = vmatprep.mubr.bf16.mxu0 %v1527_v1  ;;  %597 = vmatprep.mubr.bf16.mxu1 %v1527_v1 }
  0x28   :  { %1336 = vmatmul.mubr.msk.bf16.gmra.mxu0 %vm261_vm1, %v1503_v12  ;;  %1352 = vmatmul.mubr.msk.bf16.gmra.mxu1 %vm261_vm1, %v1504_v13 }
  0x29   :  { %447 = vmatprep.mubr.bf16.mxu0 %v1527_v1  ;;  %607 = vmatprep.mubr.bf16.mxu1 %v1527_v1 }
  0x30   :  { %1337 = vmatmul.mubr.msk.bf16.gmra.mxu0 %vm261_vm1, %v1505_v14  ;;  %1353 = vmatmul.mubr.msk.bf16.gmra.mxu1 %vm261_vm1, %v1506_v15 }
  0x31   :  { %457 = vmatprep.mubr.bf16.mxu0 %v1527_v1  ;;  %617 = vmatprep.mubr.bf16.mxu1 %v1527_v1 }
  0x38   :  { %1338 = vmatmul.mubr.msk.bf16.gmra.mxu0 %vm261_vm1, %v1507_v16  ;;  %1354 = vmatmul.mubr.msk.bf16.gmra.mxu1 %vm261_vm1, %v1508_v17 }
  0x39   :  { %467 = vmatprep.mubr.bf16.mxu0 %v1527_v1  ;;  %627 = vmatprep.mubr.bf16.mxu1 %v1527_v1 }
  0x40   :  { %1339 = vmatmul.mubr.msk.bf16.gmra.mxu0 %vm261_vm1, %v1509_v18  ;;  %1355 = vmatmul.mubr.msk.bf16.gmra.mxu1 %vm261_vm1, %v1510_v19 }
  0x41   :  { %477 = vmatprep.mubr.bf16.mxu0 %v1527_v1  ;;  %637 = vmatprep.mubr.bf16.mxu1 %v1527_v1 }
  0x48   :  { %1340 = vmatmul.mubr.msk.bf16.gmra.mxu0 %vm261_vm1, %v1511_v20  ;;  %1356 = vmatmul.mubr.msk.bf16.gmra.mxu1 %vm261_vm1, %v1512_v21 }
  0x49   :  { %487 = vmatprep.mubr.bf16.mxu0 %v1527_v1  ;;  %647 = vmatprep.mubr.bf16.mxu1 %v1527_v1 }
  0x50   :  { %1341 = vmatmul.mubr.msk.bf16.gmra.mxu0 %vm261_vm1, %v1513_v22  ;;  %1357 = vmatmul.mubr.msk.bf16.gmra.mxu1 %vm261_vm1, %v1514_v23 }
  0x51   :  { %497 = vmatprep.mubr.bf16.mxu0 %v1527_v1  ;;  %657 = vmatprep.mubr.bf16.mxu1 %v1527_v1 }
  0x58   :  { %1342 = vmatmul.mubr.msk.bf16.gmra.mxu0 %vm261_vm1, %v1515_v24  ;;  %1358 = vmatmul.mubr.msk.bf16.gmra.mxu1 %vm261_vm1, %v1516_v25 }
  0x59   :  { %507 = vmatprep.mubr.bf16.mxu0 %v1527_v1  ;;  %667 = vmatprep.mubr.bf16.mxu1 %v1527_v1 }
  0x60   :  { %1343 = vmatmul.mubr.msk.bf16.gmra.mxu0 %vm261_vm1, %v1517_v26  ;;  %1359 = vmatmul.mubr.msk.bf16.gmra.mxu1 %vm261_vm1, %v1518_v27 }
  0x61   :  { %517 = vmatprep.mubr.bf16.mxu0 %v1527_v1  ;;  %677 = vmatprep.mubr.bf16.mxu1 %v1527_v1 }
  0x68   :  { %1344 = vmatmul.mubr.msk.bf16.gmra.mxu0 %vm261_vm1, %v1519_v28  ;;  %1360 = vmatmul.mubr.msk.bf16.gmra.mxu1 %vm261_vm1, %v1520_v29 }
  0x69   :  { %527 = vmatprep.mubr.bf16.mxu0 %v1527_v1  ;;  %687 = vmatprep.mubr.bf16.mxu1 %v1527_v1 }
  0x70   :  { %1345 = vmatmul.mubr.msk.bf16.gmra.mxu0 %vm261_vm1, %v1521_v30  ;;  %1361 = vmatmul.mubr.msk.bf16.gmra.mxu1 %vm261_vm1, %v1522_v31 }
  0x71   :  { %537 = vmatprep.mubr.bf16.mxu0 %v1527_v1  ;;  %697 = vmatprep.mubr.bf16.mxu1 %v1527_v1 }
  0x78   :  { %1346 = vmatmul.mubr.msk.bf16.gmra.mxu0 %vm261_vm1, %v1523_v32  ;;  %1362 = vmatmul.mubr.msk.bf16.gmra.mxu1 %vm261_vm1, %v1524_v33 }
  0x79   :  { %547 = vmatprep.mubr.bf16.mxu0 %v1527_v1  ;;  %707 = vmatprep.mubr.bf16.mxu1 %v1527_v1 }
  0x80   :  { %1347 = vmatmul.mubr.msk.bf16.gmra.mxu0 %vm261_vm1, %v1525_v34  ;;  %1363 = vmatmul.mubr.msk.bf16.gmra.mxu1 %vm261_vm1, %v1526_v35 }
  0xc8   :  { %v399_v43 = vpop.f32.mrf.mxu0  ;;  %v559_v44 = vpop.f32.mrf.mxu1 }
  0xc9   :  { %v400_v45 = vadd.f32 %v399_v43, %v1714_v41  ;;  %v560_v46 = vadd.f32 %v559_v44, %v1714_v41 }
  0xca   :  { %v401_v47 = vpop.f32.mrf.mxu0  ;;  %v561_v48 = vpop.f32.mrf.mxu1 }
  0xcb   :  { %v402_v49 = vadd.f32 %v401_v47, %v1716_v42  ;;  %v562_v50 = vadd.f32 %v561_v48, %v1716_v42  ;;  %v718_v53 = vmax.f32 %v400_v45, 0.0  ;;  %v782_v54 = vmax.f32 %v560_v46, 0.0 }
  0xcc   :  { %v403_v51 = vpop.f32.mrf.mxu0  ;;  %v563_v52 = vpop.f32.mrf.mxu1 }
  0xcd   :  { %v719_v55 = vmax.f32 %v402_v49, 0.0  ;;  %v783_v56 = vmax.f32 %v562_v50, 0.0  ;;  %v404_v57 = vadd.f32 %v403_v51, %v1714_v41  ;;  %v564_v58 = vadd.f32 %v563_v52, %v1714_v41 }
  0xce   :  { %v405_v59 = vpop.f32.mrf.mxu0  ;;  %v565_v60 = vpop.f32.mrf.mxu1 }
  0xcf   :  { %v1428_v61 = vpack.c.bf16 %v719_v55, %v718_v53  ;;  %v1460_v62 = vpack.c.bf16 %v783_v56, %v782_v54  ;;  %v406_v63 = vadd.f32 %v405_v59, %v1716_v42  ;;  %v566_v0 = vadd.f32 %v565_v60, %v1716_v42 }
  0xd0   :  { %v409_v1 = vpop.f32.mrf.mxu0  ;;  %v569_v2 = vpop.f32.mrf.mxu1  ;;  %v720_v5 = vmax.f32 %v404_v57, 0.0  ;;  %v784_v6 = vmax.f32 %v564_v58, 0.0 }
  0xd1   :  { %1230 = vst [vmem:[%s2041_s3] sm:$0xff] %v1428_v61  ;;  %1262 = vst [vmem:[%s2041_s3 + $0x100] sm:$0xff] %v1460_v62  ;;  %v410_v3 = vadd.f32 %v409_v1, %v1714_v41  ;;  %v570_v4 = vadd.f32 %v569_v2, %v1714_v41  ;;  %v721_v7 = vmax.f32 %v406_v63, 0.0  ;;  %v785_v8 = vmax.f32 %v566_v0, 0.0 }
  0xd2   :  { %v411_v9 = vpop.f32.mrf.mxu0  ;;  %v571_v10 = vpop.f32.mrf.mxu1 }
  0xd3   :  { %v412_v11 = vadd.f32 %v411_v9, %v1716_v42  ;;  %v572_v12 = vadd.f32 %v571_v10, %v1716_v42  ;;  %v1429_v13 = vpack.c.bf16 %v721_v7, %v720_v5  ;;  %v1461_v14 = vpack.c.bf16 %v785_v8, %v784_v6 }
  0xd4   :  { %v413_v15 = vpop.f32.mrf.mxu0  ;;  %v573_v16 = vpop.f32.mrf.mxu1  ;;  %v722_v17 = vmax.f32 %v410_v3, 0.0  ;;  %v786_v18 = vmax.f32 %v570_v4, 0.0 }
  0xd5   :  { %v723_v19 = vmax.f32 %v412_v11, 0.0  ;;  %v787_v20 = vmax.f32 %v572_v12, 0.0  ;;  %1231 = vst [vmem:[%s2041_s3 + $0x8] sm:$0xff] %v1429_v13  ;;  %1263 = vst [vmem:[%s2041_s3 + $0x108] sm:$0xff] %v1461_v14  ;;  %v414_v21 = vadd.f32 %v413_v15, %v1714_v41  ;;  %v574_v22 = vadd.f32 %v573_v16, %v1714_v41 }
  0xd6   :  { %v415_v23 = vpop.f32.mrf.mxu0  ;;  %v575_v24 = vpop.f32.mrf.mxu1 }
  0xd7   :  { %v1430_v25 = vpack.c.bf16 %v723_v19, %v722_v17  ;;  %v1462_v26 = vpack.c.bf16 %v787_v20, %v786_v18  ;;  %v416_v27 = vadd.f32 %v415_v23, %v1716_v42  ;;  %v576_v28 = vadd.f32 %v575_v24, %v1716_v42 }
  0xd8   :  { %v419_v29 = vpop.f32.mrf.mxu0  ;;  %v579_v30 = vpop.f32.mrf.mxu1  ;;  %v724_v33 = vmax.f32 %v414_v21, 0.0  ;;  %v788_v34 = vmax.f32 %v574_v22, 0.0 }
  0xd9   :  { %1232 = vst [vmem:[%s2041_s3 + $0x10] sm:$0xff] %v1430_v25  ;;  %1264 = vst [vmem:[%s2041_s3 + $0x110] sm:$0xff] %v1462_v26  ;;  %v420_v31 = vadd.f32 %v419_v29, %v1714_v41  ;;  %v580_v32 = vadd.f32 %v579_v30, %v1714_v41  ;;  %v725_v35 = vmax.f32 %v416_v27, 0.0  ;;  %v789_v36 = vmax.f32 %v576_v28, 0.0 }
  0xda   :  { %v421_v37 = vpop.f32.mrf.mxu0  ;;  %v581_v38 = vpop.f32.mrf.mxu1 }
  0xdb   :  { %v422_v39 = vadd.f32 %v421_v37, %v1716_v42  ;;  %v582_v40 = vadd.f32 %v581_v38, %v1716_v42  ;;  %v1431_v43 = vpack.c.bf16 %v725_v35, %v724_v33  ;;  %v1463_v44 = vpack.c.bf16 %v789_v36, %v788_v34 }
  0xdc   :  { %v423_v45 = vpop.f32.mrf.mxu0  ;;  %v583_v46 = vpop.f32.mrf.mxu1  ;;  %v726_v47 = vmax.f32 %v420_v31, 0.0  ;;  %v790_v48 = vmax.f32 %v580_v32, 0.0 }
  0xdd   :  { %v727_v49 = vmax.f32 %v422_v39, 0.0  ;;  %v791_v50 = vmax.f32 %v582_v40, 0.0  ;;  %1233 = vst [vmem:[%s2041_s3 + $0x18] sm:$0xff] %v1431_v43  ;;  %1265 = vst [vmem:[%s2041_s3 + $0x118] sm:$0xff] %v1463_v44  ;;  %v424_v51 = vadd.f32 %v423_v45, %v1714_v41  ;;  %v584_v52 = vadd.f32 %v583_v46, %v1714_v41 }
  0xde   :  { %v425_v53 = vpop.f32.mrf.mxu0  ;;  %v585_v54 = vpop.f32.mrf.mxu1 }
  0xdf   :  { %v1432_v55 = vpack.c.bf16 %v727_v49, %v726_v47  ;;  %v1464_v56 = vpack.c.bf16 %v791_v50, %v790_v48  ;;  %v426_v57 = vadd.f32 %v425_v53, %v1716_v42  ;;  %v586_v58 = vadd.f32 %v585_v54, %v1716_v42 }
  0xe0   :  { %v429_v59 = vpop.f32.mrf.mxu0  ;;  %v589_v60 = vpop.f32.mrf.mxu1  ;;  %v728_v63 = vmax.f32 %v424_v51, 0.0  ;;  %v792_v0 = vmax.f32 %v584_v52, 0.0 }
  0xe1   :  { %1234 = vst [vmem:[%s2041_s3 + $0x20] sm:$0xff] %v1432_v55  ;;  %1266 = vst [vmem:[%s2041_s3 + $0x120] sm:$0xff] %v1464_v56  ;;  %v430_v61 = vadd.f32 %v429_v59, %v1714_v41  ;;  %v590_v62 = vadd.f32 %v589_v60, %v1714_v41  ;;  %v729_v1 = vmax.f32 %v426_v57, 0.0  ;;  %v793_v2 = vmax.f32 %v586_v58, 0.0 }
  0xe2   :  { %v431_v3 = vpop.f32.mrf.mxu0  ;;  %v591_v4 = vpop.f32.mrf.mxu1 }
  0xe3   :  { %v432_v5 = vadd.f32 %v431_v3, %v1716_v42  ;;  %v592_v6 = vadd.f32 %v591_v4, %v1716_v42  ;;  %v1433_v7 = vpack.c.bf16 %v729_v1, %v728_v63  ;;  %v1465_v8 = vpack.c.bf16 %v793_v2, %v792_v0 }
  0xe4   :  { %v433_v9 = vpop.f32.mrf.mxu0  ;;  %v593_v10 = vpop.f32.mrf.mxu1  ;;  %v730_v11 = vmax.f32 %v430_v61, 0.0  ;;  %v794_v12 = vmax.f32 %v590_v62, 0.0 }
  0xe5   :  { %v731_v13 = vmax.f32 %v432_v5, 0.0  ;;  %v795_v14 = vmax.f32 %v592_v6, 0.0  ;;  %1235 = vst [vmem:[%s2041_s3 + $0x28] sm:$0xff] %v1433_v7  ;;  %1267 = vst [vmem:[%s2041_s3 + $0x128] sm:$0xff] %v1465_v8  ;;  %v434_v15 = vadd.f32 %v433_v9, %v1714_v41  ;;  %v594_v16 = vadd.f32 %v593_v10, %v1714_v41 }
  0xe6   :  { %v435_v17 = vpop.f32.mrf.mxu0  ;;  %v595_v18 = vpop.f32.mrf.mxu1 }
  0xe7   :  { %v1434_v19 = vpack.c.bf16 %v731_v13, %v730_v11  ;;  %v1466_v20 = vpack.c.bf16 %v795_v14, %v794_v12  ;;  %v436_v21 = vadd.f32 %v435_v17, %v1716_v42  ;;  %v596_v22 = vadd.f32 %v595_v18, %v1716_v42 }
  0xe8   :  { %v439_v23 = vpop.f32.mrf.mxu0  ;;  %v599_v24 = vpop.f32.mrf.mxu1  ;;  %v732_v27 = vmax.f32 %v434_v15, 0.0  ;;  %v796_v28 = vmax.f32 %v594_v16, 0.0 }
  0xe9   :  { %1236 = vst [vmem:[%s2041_s3 + $0x30] sm:$0xff] %v1434_v19  ;;  %1268 = vst [vmem:[%s2041_s3 + $0x130] sm:$0xff] %v1466_v20  ;;  %v440_v25 = vadd.f32 %v439_v23, %v1714_v41  ;;  %v600_v26 = vadd.f32 %v599_v24, %v1714_v41  ;;  %v733_v29 = vmax.f32 %v436_v21, 0.0  ;;  %v797_v30 = vmax.f32 %v596_v22, 0.0 }
  0xea   :  { %v441_v31 = vpop.f32.mrf.mxu0  ;;  %v601_v32 = vpop.f32.mrf.mxu1 }
  0xeb   :  { %v442_v33 = vadd.f32 %v441_v31, %v1716_v42  ;;  %v602_v34 = vadd.f32 %v601_v32, %v1716_v42  ;;  %v1435_v35 = vpack.c.bf16 %v733_v29, %v732_v27  ;;  %v1467_v36 = vpack.c.bf16 %v797_v30, %v796_v28 }
  0xec   :  { %v443_v37 = vpop.f32.mrf.mxu0  ;;  %v603_v38 = vpop.f32.mrf.mxu1  ;;  %v734_v39 = vmax.f32 %v440_v25, 0.0  ;;  %v798_v40 = vmax.f32 %v600_v26, 0.0 }
  0xed   :  { %v735_v43 = vmax.f32 %v442_v33, 0.0  ;;  %v799_v44 = vmax.f32 %v602_v34, 0.0  ;;  %1237 = vst [vmem:[%s2041_s3 + $0x38] sm:$0xff] %v1435_v35  ;;  %1269 = vst [vmem:[%s2041_s3 + $0x138] sm:$0xff] %v1467_v36  ;;  %v444_v45 = vadd.f32 %v443_v37, %v1714_v41  ;;  %v604_v46 = vadd.f32 %v603_v38, %v1714_v41 }
  0xee   :  { %v445_v47 = vpop.f32.mrf.mxu0  ;;  %v605_v48 = vpop.f32.mrf.mxu1 }
  0xef   :  { %v1436_v49 = vpack.c.bf16 %v735_v43, %v734_v39  ;;  %v1468_v50 = vpack.c.bf16 %v799_v44, %v798_v40  ;;  %v446_v51 = vadd.f32 %v445_v47, %v1716_v42  ;;  %v606_v52 = vadd.f32 %v605_v48, %v1716_v42 }
  0xf0   :  { %v449_v53 = vpop.f32.mrf.mxu0  ;;  %v609_v54 = vpop.f32.mrf.mxu1  ;;  %v736_v57 = vmax.f32 %v444_v45, 0.0  ;;  %v800_v58 = vmax.f32 %v604_v46, 0.0 }
  0xf1   :  { %1238 = vst [vmem:[%s2041_s3 + $0x40] sm:$0xff] %v1436_v49  ;;  %1270 = vst [vmem:[%s2041_s3 + $0x140] sm:$0xff] %v1468_v50  ;;  %v450_v55 = vadd.f32 %v449_v53, %v1714_v41  ;;  %v610_v56 = vadd.f32 %v609_v54, %v1714_v41  ;;  %v737_v59 = vmax.f32 %v446_v51, 0.0  ;;  %v801_v60 = vmax.f32 %v606_v52, 0.0 }
  0xf2   :  { %v451_v61 = vpop.f32.mrf.mxu0  ;;  %v611_v62 = vpop.f32.mrf.mxu1 }
  0xf3   :  { %v452_v63 = vadd.f32 %v451_v61, %v1716_v42  ;;  %v612_v0 = vadd.f32 %v611_v62, %v1716_v42  ;;  %v1437_v1 = vpack.c.bf16 %v737_v59, %v736_v57  ;;  %v1469_v2 = vpack.c.bf16 %v801_v60, %v800_v58 }
  0xf4   :  { %v453_v3 = vpop.f32.mrf.mxu0  ;;  %v613_v4 = vpop.f32.mrf.mxu1  ;;  %v738_v5 = vmax.f32 %v450_v55, 0.0  ;;  %v802_v6 = vmax.f32 %v610_v56, 0.0 }
  0xf5   :  { %v739_v7 = vmax.f32 %v452_v63, 0.0  ;;  %v803_v8 = vmax.f32 %v612_v0, 0.0  ;;  %1239 = vst [vmem:[%s2041_s3 + $0x48] sm:$0xff] %v1437_v1  ;;  %1271 = vst [vmem:[%s2041_s3 + $0x148] sm:$0xff] %v1469_v2  ;;  %v454_v9 = vadd.f32 %v453_v3, %v1714_v41  ;;  %v614_v10 = vadd.f32 %v613_v4, %v1714_v41 }
  0xf6   :  { %v455_v11 = vpop.f32.mrf.mxu0  ;;  %v615_v12 = vpop.f32.mrf.mxu1 }
  0xf7   :  { %v1438_v13 = vpack.c.bf16 %v739_v7, %v738_v5  ;;  %v1470_v14 = vpack.c.bf16 %v803_v8, %v802_v6  ;;  %v456_v15 = vadd.f32 %v455_v11, %v1716_v42  ;;  %v616_v16 = vadd.f32 %v615_v12, %v1716_v42 }
  0xf8   :  { %v459_v17 = vpop.f32.mrf.mxu0  ;;  %v619_v18 = vpop.f32.mrf.mxu1  ;;  %v740_v21 = vmax.f32 %v454_v9, 0.0  ;;  %v804_v22 = vmax.f32 %v614_v10, 0.0 }
  0xf9   :  { %1240 = vst [vmem:[%s2041_s3 + $0x50] sm:$0xff] %v1438_v13  ;;  %1272 = vst [vmem:[%s2041_s3 + $0x150] sm:$0xff] %v1470_v14  ;;  %v460_v19 = vadd.f32 %v459_v17, %v1714_v41  ;;  %v620_v20 = vadd.f32 %v619_v18, %v1714_v41  ;;  %v741_v23 = vmax.f32 %v456_v15, 0.0  ;;  %v805_v24 = vmax.f32 %v616_v16, 0.0 }
  0xfa   :  { %v461_v25 = vpop.f32.mrf.mxu0  ;;  %v621_v26 = vpop.f32.mrf.mxu1 }
  0xfb   :  { %v462_v27 = vadd.f32 %v461_v25, %v1716_v42  ;;  %v622_v28 = vadd.f32 %v621_v26, %v1716_v42  ;;  %v1439_v29 = vpack.c.bf16 %v741_v23, %v740_v21  ;;  %v1471_v30 = vpack.c.bf16 %v805_v24, %v804_v22 }
  0xfc   :  { %v463_v31 = vpop.f32.mrf.mxu0  ;;  %v623_v32 = vpop.f32.mrf.mxu1  ;;  %v742_v33 = vmax.f32 %v460_v19, 0.0  ;;  %v806_v34 = vmax.f32 %v620_v20, 0.0 }
  0xfd   :  { %v743_v35 = vmax.f32 %v462_v27, 0.0  ;;  %v807_v36 = vmax.f32 %v622_v28, 0.0  ;;  %1241 = vst [vmem:[%s2041_s3 + $0x58] sm:$0xff] %v1439_v29  ;;  %1273 = vst [vmem:[%s2041_s3 + $0x158] sm:$0xff] %v1471_v30  ;;  %v464_v37 = vadd.f32 %v463_v31, %v1714_v41  ;;  %v624_v38 = vadd.f32 %v623_v32, %v1714_v41 }
  0xfe   :  { %v465_v39 = vpop.f32.mrf.mxu0  ;;  %v625_v40 = vpop.f32.mrf.mxu1 }
  0xff   :  { %v1440_v43 = vpack.c.bf16 %v743_v35, %v742_v33  ;;  %v1472_v44 = vpack.c.bf16 %v807_v36, %v806_v34  ;;  %v466_v45 = vadd.f32 %v465_v39, %v1716_v42  ;;  %v626_v46 = vadd.f32 %v625_v40, %v1716_v42 }
 0x100   :  { %v469_v47 = vpop.f32.mrf.mxu0  ;;  %v629_v48 = vpop.f32.mrf.mxu1  ;;  %v744_v51 = vmax.f32 %v464_v37, 0.0  ;;  %v808_v52 = vmax.f32 %v624_v38, 0.0 }
 0x101   :  { %1242 = vst [vmem:[%s2041_s3 + $0x60] sm:$0xff] %v1440_v43  ;;  %1274 = vst [vmem:[%s2041_s3 + $0x160] sm:$0xff] %v1472_v44  ;;  %v470_v49 = vadd.f32 %v469_v47, %v1714_v41  ;;  %v630_v50 = vadd.f32 %v629_v48, %v1714_v41  ;;  %v745_v53 = vmax.f32 %v466_v45, 0.0  ;;  %v809_v54 = vmax.f32 %v626_v46, 0.0 }
 0x102   :  { %v471_v55 = vpop.f32.mrf.mxu0  ;;  %v631_v56 = vpop.f32.mrf.mxu1 }
 0x103   :  { %v472_v57 = vadd.f32 %v471_v55, %v1716_v42  ;;  %v632_v58 = vadd.f32 %v631_v56, %v1716_v42  ;;  %v1441_v59 = vpack.c.bf16 %v745_v53, %v744_v51  ;;  %v1473_v60 = vpack.c.bf16 %v809_v54, %v808_v52 }
 0x104   :  { %v473_v61 = vpop.f32.mrf.mxu0  ;;  %v633_v62 = vpop.f32.mrf.mxu1  ;;  %v746_v63 = vmax.f32 %v470_v49, 0.0  ;;  %v810_v0 = vmax.f32 %v630_v50, 0.0 }
 0x105   :  { %v747_v1 = vmax.f32 %v472_v57, 0.0  ;;  %v811_v2 = vmax.f32 %v632_v58, 0.0  ;;  %1243 = vst [vmem:[%s2041_s3 + $0x68] sm:$0xff] %v1441_v59  ;;  %1275 = vst [vmem:[%s2041_s3 + $0x168] sm:$0xff] %v1473_v60  ;;  %v474_v3 = vadd.f32 %v473_v61, %v1714_v41  ;;  %v634_v4 = vadd.f32 %v633_v62, %v1714_v41 }
 0x106   :  { %v475_v5 = vpop.f32.mrf.mxu0  ;;  %v635_v6 = vpop.f32.mrf.mxu1 }
 0x107   :  { %v1442_v7 = vpack.c.bf16 %v747_v1, %v746_v63  ;;  %v1474_v8 = vpack.c.bf16 %v811_v2, %v810_v0  ;;  %v476_v9 = vadd.f32 %v475_v5, %v1716_v42  ;;  %v636_v10 = vadd.f32 %v635_v6, %v1716_v42 }
 0x108   :  { %v479_v11 = vpop.f32.mrf.mxu0  ;;  %v639_v12 = vpop.f32.mrf.mxu1  ;;  %v748_v15 = vmax.f32 %v474_v3, 0.0  ;;  %v812_v16 = vmax.f32 %v634_v4, 0.0 }
 0x109   :  { %1244 = vst [vmem:[%s2041_s3 + $0x70] sm:$0xff] %v1442_v7  ;;  %1276 = vst [vmem:[%s2041_s3 + $0x170] sm:$0xff] %v1474_v8  ;;  %v480_v13 = vadd.f32 %v479_v11, %v1714_v41  ;;  %v640_v14 = vadd.f32 %v639_v12, %v1714_v41  ;;  %v749_v17 = vmax.f32 %v476_v9, 0.0  ;;  %v813_v18 = vmax.f32 %v636_v10, 0.0 }
 0x10a   :  { %v481_v19 = vpop.f32.mrf.mxu0  ;;  %v641_v20 = vpop.f32.mrf.mxu1 }
 0x10b   :  { %v482_v21 = vadd.f32 %v481_v19, %v1716_v42  ;;  %v642_v22 = vadd.f32 %v641_v20, %v1716_v42  ;;  %v1443_v23 = vpack.c.bf16 %v749_v17, %v748_v15  ;;  %v1475_v24 = vpack.c.bf16 %v813_v18, %v812_v16 }
 0x10c   :  { %v483_v25 = vpop.f32.mrf.mxu0  ;;  %v643_v26 = vpop.f32.mrf.mxu1  ;;  %v750_v27 = vmax.f32 %v480_v13, 0.0  ;;  %v814_v28 = vmax.f32 %v640_v14, 0.0 }
 0x10d   :  { %v751_v29 = vmax.f32 %v482_v21, 0.0  ;;  %v815_v30 = vmax.f32 %v642_v22, 0.0  ;;  %1245 = vst [vmem:[%s2041_s3 + $0x78] sm:$0xff] %v1443_v23  ;;  %1277 = vst [vmem:[%s2041_s3 + $0x178] sm:$0xff] %v1475_v24  ;;  %v484_v31 = vadd.f32 %v483_v25, %v1714_v41  ;;  %v644_v32 = vadd.f32 %v643_v26, %v1714_v41 }
 0x10e   :  { %v485_v33 = vpop.f32.mrf.mxu0  ;;  %v645_v34 = vpop.f32.mrf.mxu1 }
 0x10f   :  { %v1444_v35 = vpack.c.bf16 %v751_v29, %v750_v27  ;;  %v1476_v36 = vpack.c.bf16 %v815_v30, %v814_v28  ;;  %v486_v37 = vadd.f32 %v485_v33, %v1716_v42  ;;  %v646_v38 = vadd.f32 %v645_v34, %v1716_v42 }
 0x110   :  { %v489_v39 = vpop.f32.mrf.mxu0  ;;  %v649_v40 = vpop.f32.mrf.mxu1  ;;  %v752_v45 = vmax.f32 %v484_v31, 0.0  ;;  %v816_v46 = vmax.f32 %v644_v32, 0.0 }
 0x111   :  { %1246 = vst [vmem:[%s2041_s3 + $0x80] sm:$0xff] %v1444_v35  ;;  %1278 = vst [vmem:[%s2041_s3 + $0x180] sm:$0xff] %v1476_v36  ;;  %v490_v43 = vadd.f32 %v489_v39, %v1714_v41  ;;  %v650_v44 = vadd.f32 %v649_v40, %v1714_v41  ;;  %v753_v47 = vmax.f32 %v486_v37, 0.0  ;;  %v817_v48 = vmax.f32 %v646_v38, 0.0 }
 0x112   :  { %v491_v49 = vpop.f32.mrf.mxu0  ;;  %v651_v50 = vpop.f32.mrf.mxu1 }
 0x113   :  { %v492_v51 = vadd.f32 %v491_v49, %v1716_v42  ;;  %v652_v52 = vadd.f32 %v651_v50, %v1716_v42  ;;  %v1445_v53 = vpack.c.bf16 %v753_v47, %v752_v45  ;;  %v1477_v54 = vpack.c.bf16 %v817_v48, %v816_v46 }
 0x114   :  { %v493_v55 = vpop.f32.mrf.mxu0  ;;  %v653_v56 = vpop.f32.mrf.mxu1  ;;  %v754_v57 = vmax.f32 %v490_v43, 0.0  ;;  %v818_v58 = vmax.f32 %v650_v44, 0.0 }
 0x115   :  { %v755_v59 = vmax.f32 %v492_v51, 0.0  ;;  %v819_v60 = vmax.f32 %v652_v52, 0.0  ;;  %1247 = vst [vmem:[%s2041_s3 + $0x88] sm:$0xff] %v1445_v53  ;;  %1279 = vst [vmem:[%s2041_s3 + $0x188] sm:$0xff] %v1477_v54  ;;  %v494_v61 = vadd.f32 %v493_v55, %v1714_v41  ;;  %v654_v62 = vadd.f32 %v653_v56, %v1714_v41 }
 0x116   :  { %v495_v63 = vpop.f32.mrf.mxu0  ;;  %v655_v0 = vpop.f32.mrf.mxu1 }
 0x117   :  { %v1446_v1 = vpack.c.bf16 %v755_v59, %v754_v57  ;;  %v1478_v2 = vpack.c.bf16 %v819_v60, %v818_v58  ;;  %v496_v3 = vadd.f32 %v495_v63, %v1716_v42  ;;  %v656_v4 = vadd.f32 %v655_v0, %v1716_v42 }
 0x118   :  { %v499_v5 = vpop.f32.mrf.mxu0  ;;  %v659_v6 = vpop.f32.mrf.mxu1  ;;  %v756_v9 = vmax.f32 %v494_v61, 0.0  ;;  %v820_v10 = vmax.f32 %v654_v62, 0.0 }
 0x119   :  { %1248 = vst [vmem:[%s2041_s3 + $0x90] sm:$0xff] %v1446_v1  ;;  %1280 = vst [vmem:[%s2041_s3 + $0x190] sm:$0xff] %v1478_v2  ;;  %v500_v7 = vadd.f32 %v499_v5, %v1714_v41  ;;  %v660_v8 = vadd.f32 %v659_v6, %v1714_v41  ;;  %v757_v11 = vmax.f32 %v496_v3, 0.0  ;;  %v821_v12 = vmax.f32 %v656_v4, 0.0 }
 0x11a   :  { %v501_v13 = vpop.f32.mrf.mxu0  ;;  %v661_v14 = vpop.f32.mrf.mxu1 }
 0x11b   :  { %v502_v15 = vadd.f32 %v501_v13, %v1716_v42  ;;  %v662_v16 = vadd.f32 %v661_v14, %v1716_v42  ;;  %v1447_v17 = vpack.c.bf16 %v757_v11, %v756_v9  ;;  %v1479_v18 = vpack.c.bf16 %v821_v12, %v820_v10 }
 0x11c   :  { %v503_v19 = vpop.f32.mrf.mxu0  ;;  %v663_v20 = vpop.f32.mrf.mxu1  ;;  %v758_v21 = vmax.f32 %v500_v7, 0.0  ;;  %v822_v22 = vmax.f32 %v660_v8, 0.0 }
 0x11d   :  { %v759_v23 = vmax.f32 %v502_v15, 0.0  ;;  %v823_v24 = vmax.f32 %v662_v16, 0.0  ;;  %1249 = vst [vmem:[%s2041_s3 + $0x98] sm:$0xff] %v1447_v17  ;;  %1281 = vst [vmem:[%s2041_s3 + $0x198] sm:$0xff] %v1479_v18  ;;  %v504_v25 = vadd.f32 %v503_v19, %v1714_v41  ;;  %v664_v26 = vadd.f32 %v663_v20, %v1714_v41 }
 0x11e   :  { %v505_v27 = vpop.f32.mrf.mxu0  ;;  %v665_v28 = vpop.f32.mrf.mxu1 }
 0x11f   :  { %v1448_v29 = vpack.c.bf16 %v759_v23, %v758_v21  ;;  %v1480_v30 = vpack.c.bf16 %v823_v24, %v822_v22  ;;  %v506_v31 = vadd.f32 %v505_v27, %v1716_v42  ;;  %v666_v32 = vadd.f32 %v665_v28, %v1716_v42 }
 0x120   :  { %v509_v33 = vpop.f32.mrf.mxu0  ;;  %v669_v34 = vpop.f32.mrf.mxu1  ;;  %v760_v37 = vmax.f32 %v504_v25, 0.0  ;;  %v824_v38 = vmax.f32 %v664_v26, 0.0 }
 0x121   :  { %1250 = vst [vmem:[%s2041_s3 + $0xa0] sm:$0xff] %v1448_v29  ;;  %1282 = vst [vmem:[%s2041_s3 + $0x1a0] sm:$0xff] %v1480_v30  ;;  %v510_v35 = vadd.f32 %v509_v33, %v1714_v41  ;;  %v670_v36 = vadd.f32 %v669_v34, %v1714_v41  ;;  %v761_v39 = vmax.f32 %v506_v31, 0.0  ;;  %v825_v40 = vmax.f32 %v666_v32, 0.0 }
 0x122   :  { %v511_v43 = vpop.f32.mrf.mxu0  ;;  %v671_v44 = vpop.f32.mrf.mxu1 }
 0x123   :  { %v512_v45 = vadd.f32 %v511_v43, %v1716_v42  ;;  %v672_v46 = vadd.f32 %v671_v44, %v1716_v42  ;;  %v1449_v47 = vpack.c.bf16 %v761_v39, %v760_v37  ;;  %v1481_v48 = vpack.c.bf16 %v825_v40, %v824_v38 }
 0x124   :  { %v513_v49 = vpop.f32.mrf.mxu0  ;;  %v673_v50 = vpop.f32.mrf.mxu1  ;;  %v762_v51 = vmax.f32 %v510_v35, 0.0  ;;  %v826_v52 = vmax.f32 %v670_v36, 0.0 }
 0x125   :  { %v763_v53 = vmax.f32 %v512_v45, 0.0  ;;  %v827_v54 = vmax.f32 %v672_v46, 0.0  ;;  %1251 = vst [vmem:[%s2041_s3 + $0xa8] sm:$0xff] %v1449_v47  ;;  %1283 = vst [vmem:[%s2041_s3 + $0x1a8] sm:$0xff] %v1481_v48  ;;  %v514_v55 = vadd.f32 %v513_v49, %v1714_v41  ;;  %v674_v56 = vadd.f32 %v673_v50, %v1714_v41 }
 0x126   :  { %v515_v57 = vpop.f32.mrf.mxu0  ;;  %v675_v58 = vpop.f32.mrf.mxu1 }
 0x127   :  { %v1450_v59 = vpack.c.bf16 %v763_v53, %v762_v51  ;;  %v1482_v60 = vpack.c.bf16 %v827_v54, %v826_v52  ;;  %v516_v61 = vadd.f32 %v515_v57, %v1716_v42  ;;  %v676_v62 = vadd.f32 %v675_v58, %v1716_v42 }
 0x128   :  { %v519_v63 = vpop.f32.mrf.mxu0  ;;  %v679_v0 = vpop.f32.mrf.mxu1  ;;  %v764_v3 = vmax.f32 %v514_v55, 0.0  ;;  %v828_v4 = vmax.f32 %v674_v56, 0.0 }
 0x129   :  { %1252 = vst [vmem:[%s2041_s3 + $0xb0] sm:$0xff] %v1450_v59  ;;  %1284 = vst [vmem:[%s2041_s3 + $0x1b0] sm:$0xff] %v1482_v60  ;;  %v520_v1 = vadd.f32 %v519_v63, %v1714_v41  ;;  %v680_v2 = vadd.f32 %v679_v0, %v1714_v41  ;;  %v765_v5 = vmax.f32 %v516_v61, 0.0  ;;  %v829_v6 = vmax.f32 %v676_v62, 0.0 }
 0x12a   :  { %v521_v7 = vpop.f32.mrf.mxu0  ;;  %v681_v8 = vpop.f32.mrf.mxu1 }
 0x12b   :  { %v522_v9 = vadd.f32 %v521_v7, %v1716_v42  ;;  %v682_v10 = vadd.f32 %v681_v8, %v1716_v42  ;;  %v1451_v11 = vpack.c.bf16 %v765_v5, %v764_v3  ;;  %v1483_v12 = vpack.c.bf16 %v829_v6, %v828_v4 }
 0x12c   :  { %v523_v13 = vpop.f32.mrf.mxu0  ;;  %v683_v14 = vpop.f32.mrf.mxu1  ;;  %v766_v15 = vmax.f32 %v520_v1, 0.0  ;;  %v830_v16 = vmax.f32 %v680_v2, 0.0 }
 0x12d   :  { %v767_v17 = vmax.f32 %v522_v9, 0.0  ;;  %v831_v18 = vmax.f32 %v682_v10, 0.0  ;;  %1253 = vst [vmem:[%s2041_s3 + $0xb8] sm:$0xff] %v1451_v11  ;;  %1285 = vst [vmem:[%s2041_s3 + $0x1b8] sm:$0xff] %v1483_v12  ;;  %v524_v19 = vadd.f32 %v523_v13, %v1714_v41  ;;  %v684_v20 = vadd.f32 %v683_v14, %v1714_v41 }
 0x12e   :  { %v525_v21 = vpop.f32.mrf.mxu0  ;;  %v685_v22 = vpop.f32.mrf.mxu1 }
 0x12f   :  { %v1452_v23 = vpack.c.bf16 %v767_v17, %v766_v15  ;;  %v1484_v24 = vpack.c.bf16 %v831_v18, %v830_v16  ;;  %v526_v25 = vadd.f32 %v525_v21, %v1716_v42  ;;  %v686_v26 = vadd.f32 %v685_v22, %v1716_v42 }
 0x130   :  { %v529_v27 = vpop.f32.mrf.mxu0  ;;  %v689_v28 = vpop.f32.mrf.mxu1  ;;  %v768_v31 = vmax.f32 %v524_v19, 0.0  ;;  %v832_v32 = vmax.f32 %v684_v20, 0.0 }
 0x131   :  { %1254 = vst [vmem:[%s2041_s3 + $0xc0] sm:$0xff] %v1452_v23  ;;  %1286 = vst [vmem:[%s2041_s3 + $0x1c0] sm:$0xff] %v1484_v24  ;;  %v530_v29 = vadd.f32 %v529_v27, %v1714_v41  ;;  %v690_v30 = vadd.f32 %v689_v28, %v1714_v41  ;;  %v769_v33 = vmax.f32 %v526_v25, 0.0  ;;  %v833_v34 = vmax.f32 %v686_v26, 0.0 }
 0x132   :  { %v531_v35 = vpop.f32.mrf.mxu0  ;;  %v691_v36 = vpop.f32.mrf.mxu1 }
 0x133   :  { %v532_v37 = vadd.f32 %v531_v35, %v1716_v42  ;;  %v692_v38 = vadd.f32 %v691_v36, %v1716_v42  ;;  %v1453_v39 = vpack.c.bf16 %v769_v33, %v768_v31  ;;  %v1485_v40 = vpack.c.bf16 %v833_v34, %v832_v32 }
 0x134   :  { %v533_v43 = vpop.f32.mrf.mxu0  ;;  %v693_v44 = vpop.f32.mrf.mxu1  ;;  %v770_v45 = vmax.f32 %v530_v29, 0.0  ;;  %v834_v46 = vmax.f32 %v690_v30, 0.0 }
 0x135   :  { %v771_v47 = vmax.f32 %v532_v37, 0.0  ;;  %v835_v48 = vmax.f32 %v692_v38, 0.0  ;;  %1255 = vst [vmem:[%s2041_s3 + $0xc8] sm:$0xff] %v1453_v39  ;;  %1287 = vst [vmem:[%s2041_s3 + $0x1c8] sm:$0xff] %v1485_v40  ;;  %v534_v49 = vadd.f32 %v533_v43, %v1714_v41  ;;  %v694_v50 = vadd.f32 %v693_v44, %v1714_v41 }
 0x136   :  { %v535_v51 = vpop.f32.mrf.mxu0  ;;  %v695_v52 = vpop.f32.mrf.mxu1 }
 0x137   :  { %v1454_v53 = vpack.c.bf16 %v771_v47, %v770_v45  ;;  %v1486_v54 = vpack.c.bf16 %v835_v48, %v834_v46  ;;  %v536_v55 = vadd.f32 %v535_v51, %v1716_v42  ;;  %v696_v56 = vadd.f32 %v695_v52, %v1716_v42 }
 0x138   :  { %v539_v57 = vpop.f32.mrf.mxu0  ;;  %v699_v58 = vpop.f32.mrf.mxu1  ;;  %v772_v61 = vmax.f32 %v534_v49, 0.0  ;;  %v836_v62 = vmax.f32 %v694_v50, 0.0 }
 0x139   :  { %1256 = vst [vmem:[%s2041_s3 + $0xd0] sm:$0xff] %v1454_v53  ;;  %1288 = vst [vmem:[%s2041_s3 + $0x1d0] sm:$0xff] %v1486_v54  ;;  %v540_v59 = vadd.f32 %v539_v57, %v1714_v41  ;;  %v700_v60 = vadd.f32 %v699_v58, %v1714_v41  ;;  %v773_v63 = vmax.f32 %v536_v55, 0.0  ;;  %v837_v0 = vmax.f32 %v696_v56, 0.0 }
 0x13a   :  { %v541_v1 = vpop.f32.mrf.mxu0  ;;  %v701_v2 = vpop.f32.mrf.mxu1 }
 0x13b   :  { %v542_v3 = vadd.f32 %v541_v1, %v1716_v42  ;;  %v702_v4 = vadd.f32 %v701_v2, %v1716_v42  ;;  %v1455_v5 = vpack.c.bf16 %v773_v63, %v772_v61  ;;  %v1487_v6 = vpack.c.bf16 %v837_v0, %v836_v62 }
 0x13c   :  { %v543_v7 = vpop.f32.mrf.mxu0  ;;  %v703_v8 = vpop.f32.mrf.mxu1  ;;  %v774_v9 = vmax.f32 %v540_v59, 0.0  ;;  %v838_v10 = vmax.f32 %v700_v60, 0.0 }
 0x13d   :  { %v775_v11 = vmax.f32 %v542_v3, 0.0  ;;  %v839_v12 = vmax.f32 %v702_v4, 0.0  ;;  %1257 = vst [vmem:[%s2041_s3 + $0xd8] sm:$0xff] %v1455_v5  ;;  %1289 = vst [vmem:[%s2041_s3 + $0x1d8] sm:$0xff] %v1487_v6  ;;  %v544_v13 = vadd.f32 %v543_v7, %v1714_v41  ;;  %v704_v14 = vadd.f32 %v703_v8, %v1714_v41 }
 0x13e   :  { %v545_v15 = vpop.f32.mrf.mxu0  ;;  %v705_v16 = vpop.f32.mrf.mxu1 }
 0x13f   :  { %v1456_v17 = vpack.c.bf16 %v775_v11, %v774_v9  ;;  %v1488_v18 = vpack.c.bf16 %v839_v12, %v838_v10  ;;  %v546_v19 = vadd.f32 %v545_v15, %v1716_v42  ;;  %v706_v20 = vadd.f32 %v705_v16, %v1716_v42 }
 0x140   :  { %v549_v21 = vpop.f32.mrf.mxu0  ;;  %v709_v22 = vpop.f32.mrf.mxu1  ;;  %v776_v25 = vmax.f32 %v544_v13, 0.0  ;;  %v840_v26 = vmax.f32 %v704_v14, 0.0 }
 0x141   :  { %1258 = vst [vmem:[%s2041_s3 + $0xe0] sm:$0xff] %v1456_v17  ;;  %1290 = vst [vmem:[%s2041_s3 + $0x1e0] sm:$0xff] %v1488_v18  ;;  %v550_v23 = vadd.f32 %v549_v21, %v1714_v41  ;;  %v710_v24 = vadd.f32 %v709_v22, %v1714_v41  ;;  %v777_v27 = vmax.f32 %v546_v19, 0.0  ;;  %v841_v28 = vmax.f32 %v706_v20, 0.0 }
 0x142   :  { %v551_v29 = vpop.f32.mrf.mxu0  ;;  %v711_v30 = vpop.f32.mrf.mxu1 }
 0x143   :  { %v552_v31 = vadd.f32 %v551_v29, %v1716_v42  ;;  %v712_v32 = vadd.f32 %v711_v30, %v1716_v42  ;;  %v1457_v33 = vpack.c.bf16 %v777_v27, %v776_v25  ;;  %v1489_v34 = vpack.c.bf16 %v841_v28, %v840_v26 }
 0x144   :  { %v553_v35 = vpop.f32.mrf.mxu0  ;;  %v713_v36 = vpop.f32.mrf.mxu1  ;;  %v778_v37 = vmax.f32 %v550_v23, 0.0  ;;  %v842_v38 = vmax.f32 %v710_v24, 0.0 }
 0x145   :  { %v779_v39 = vmax.f32 %v552_v31, 0.0  ;;  %v843_v40 = vmax.f32 %v712_v32, 0.0  ;;  %1259 = vst [vmem:[%s2041_s3 + $0xe8] sm:$0xff] %v1457_v33  ;;  %1291 = vst [vmem:[%s2041_s3 + $0x1e8] sm:$0xff] %v1489_v34  ;;  %v554_v43 = vadd.f32 %v553_v35, %v1714_v41  ;;  %v714_v44 = vadd.f32 %v713_v36, %v1714_v41 }
 0x146   :  { %v555_v45 = vpop.f32.mrf.mxu0  ;;  %v715_v46 = vpop.f32.mrf.mxu1 }
 0x147   :  { %v1458_v47 = vpack.c.bf16 %v779_v39, %v778_v37  ;;  %v1490_v48 = vpack.c.bf16 %v843_v40, %v842_v38  ;;  %v556_v49 = vadd.f32 %v555_v45, %v1716_v42  ;;  %v716_v50 = vadd.f32 %v715_v46, %v1716_v42 }
 0x148   :  { %v780_v51 = vmax.f32 %v554_v43, 0.0  ;;  %v844_v52 = vmax.f32 %v714_v44, 0.0 }
 0x149   :  { %1260 = vst [vmem:[%s2041_s3 + $0xf0] sm:$0xff] %v1458_v47  ;;  %1292 = vst [vmem:[%s2041_s3 + $0x1f0] sm:$0xff] %v1490_v48  ;;  %v781_v53 = vmax.f32 %v556_v49, 0.0  ;;  %v845_v41 = vmax.f32 %v716_v50, 0.0 }
 0x14b   :  { %v1459_v54 = vpack.c.bf16 %v781_v53, %v780_v51  ;;  %v1491_v55 = vpack.c.bf16 %v845_v41, %v844_v52 }
 0x14d   :  { %1261 = vst [vmem:[%s2041_s3 + $0xf8] sm:$0xff] %v1459_v54  ;;  %1293 = vst [vmem:[%s2041_s3 + $0x1f8] sm:$0xff] %v1491_v55 }

// kernel: reduction_a_forward.7
= control target key start
LH: loop header
LB: loop body
LE: loop exit
PB: predicated region body
PF: predicated region fallthrough
CT: control target
= control target key end

     0   :  { %vm3979_vm0 = vcmask 523264   ;;  %s12502_s1 = inlined_call_operand.vmem [shape: bf16[1728,256], index: 1, kind: input, shape index: {}]   ;;  %s12503_s0 = inlined_call_operand.vmem [shape: bf16[512,1728], index: 0, kind: input, shape index: {}]   ;;  %s12504_s2 = inlined_call_operand.vmem [shape: f32[1,256], index: 2, kind: input, shape index: {}]   ;;  %s12505_s3 = inlined_call_operand.vmem [shape: bf16[512,256], index: 3, kind: output, shape index: {}]  }
   0x1   :  { %v7983_v0 = vld [vmem:[%s12502_s1 + $0x74] ss:$8 sps:$4 sm:$0xff]   ;;  %v7985_v1 = vld [vmem:[%s12502_s1 + $0x70] ss:$8 sps:$4 sm:$0xff]   ;;  %v7986_v2 = vld [vmem:[%s12502_s1 + $0x64] ss:$8 sps:$4 sm:$0xff]  }
   0x2   :  { %4076 = vmatprep.subr.bf16.mxu0 %v7983_v0  ;;  %7951 = vmatprep.subr.bf16.mxu1 %v7983_v0  ;;  %v7988_v3 = vld [vmem:[%s12502_s1 + $0x60] ss:$8 sps:$4 sm:$0xff]   ;;  %v7989_v4 = vld [vmem:[%s12502_s1 + $0x54] ss:$8 sps:$4 sm:$0xff]   ;;  %v7991_v5 = vld [vmem:[%s12502_s1 + $0x50] ss:$8 sps:$4 sm:$0xff]  }
   0x3   :  { %4077 = vmatpush1.bf16.msra.mxu0 %v7985_v1  ;;  %7967 = vmatpush1.bf16.msra.mxu1 %v7985_v1  ;;  %v7992_v6 = vld [vmem:[%s12502_s1 + $0x44] ss:$8 sps:$4 sm:$0xff]   ;;  %v7994_v7 = vld [vmem:[%s12502_s1 + $0x40] ss:$8 sps:$4 sm:$0xff]   ;;  %v7995_v8 = vld [vmem:[%s12502_s1 + $0x34] ss:$8 sps:$4 sm:$0xff]  }
   0x4   :  { %4078 = vmatprep.subr.bf16.mxu0 %v7986_v2  ;;  %7952 = vmatprep.subr.bf16.mxu1 %v7986_v2  ;;  %v7997_v9 = vld [vmem:[%s12502_s1 + $0x30] ss:$8 sps:$4 sm:$0xff]   ;;  %v7998_v10 = vld [vmem:[%s12502_s1 + $0x24] ss:$8 sps:$4 sm:$0xff]   ;;  %v8000_v11 = vld [vmem:[%s12502_s1 + $0x20] ss:$8 sps:$4 sm:$0xff]  }
   0x5   :  { %v8001_v12 = vld [vmem:[%s12502_s1 + $0x14] ss:$8 sps:$4 sm:$0xff]   ;;  %v8003_v14 = vld [vmem:[%s12502_s1 + $0x10] ss:$8 sps:$4 sm:$0xff]   ;;  %v8004_v16 = vld [vmem:[%s12502_s1 + $0x4] ss:$8 sps:$4 sm:$0xff]  }
   0x6   :  { %v8033_v13 = vld [vmem:[%s12503_s0 + $0x4] ss:$56 sps:$4 sm:$0xff]   ;;  %v8006_v17 = vld [vmem:[%s12502_s1] ss:$8 sps:$4 sm:$0xff]   ;;  %v8009_v19 = vld [vmem:[%s12502_s1 + $0xf0] ss:$8 sps:$4 sm:$0xff]  }
   0x7   :  { %4079 = vmatpush1.bf16.msra.mxu0 %v7988_v3  ;;  %7968 = vmatpush1.bf16.msra.mxu1 %v7988_v3  ;;  %v8036_v15 = vld [vmem:[%s12503_s0 + $0x704] ss:$56 sps:$4 sm:$0xff]   ;;  %v8012_v21 = vld [vmem:[%s12502_s1 + $0xe0] ss:$8 sps:$4 sm:$0xff]   ;;  %v8015_v23 = vld [vmem:[%s12502_s1 + $0xd0] ss:$8 sps:$4 sm:$0xff]  }
   0x8   :  { %4080 = vmatprep.subr.bf16.mxu0 %v7989_v4  ;;  %7953 = vmatprep.subr.bf16.mxu1 %v7989_v4  ;;  %v8007_v18 = vld [vmem:[%s12502_s1 + $0xf4] ss:$8 sps:$4 sm:$0xff]   ;;  %v8010_v20 = vld [vmem:[%s12502_s1 + $0xe4] ss:$8 sps:$4 sm:$0xff]   ;;  %v8018_v25 = vld [vmem:[%s12502_s1 + $0xc0] ss:$8 sps:$4 sm:$0xff]  }
   0x9   :  { %4108 = vmatprep.mubr.bf16.mxu0 %v8033_v13  ;;  %4268 = vmatprep.mubr.bf16.mxu1 %v8036_v15  ;;  %v8013_v22 = vld [vmem:[%s12502_s1 + $0xd4] ss:$8 sps:$4 sm:$0xff]   ;;  %v8016_v24 = vld [vmem:[%s12502_s1 + $0xc4] ss:$8 sps:$4 sm:$0xff]   ;;  %v8021_v27 = vld [vmem:[%s12502_s1 + $0xb0] ss:$8 sps:$4 sm:$0xff]  }
   0xa   :  { %v8019_v26 = vld [vmem:[%s12502_s1 + $0xb4] ss:$8 sps:$4 sm:$0xff]   ;;  %v8022_v28 = vld [vmem:[%s12502_s1 + $0xa4] ss:$8 sps:$4 sm:$0xff]   ;;  %v8024_v29 = vld [vmem:[%s12502_s1 + $0xa0] ss:$8 sps:$4 sm:$0xff]  }
   0xb   :  { %4081 = vmatpush1.bf16.msra.mxu0 %v7991_v5  ;;  %7969 = vmatpush1.bf16.msra.mxu1 %v7991_v5  ;;  %v8025_v30 = vld [vmem:[%s12502_s1 + $0x94] ss:$8 sps:$4 sm:$0xff]   ;;  %v8027_v31 = vld [vmem:[%s12502_s1 + $0x90] ss:$8 sps:$4 sm:$0xff]   ;;  %v8028_v32 = vld [vmem:[%s12502_s1 + $0x84] ss:$8 sps:$4 sm:$0xff]  }
   0xc   :  { %4082 = vmatprep.subr.bf16.mxu0 %v7992_v6  ;;  %7954 = vmatprep.subr.bf16.mxu1 %v7992_v6  ;;  %v8030_v33 = vld [vmem:[%s12502_s1 + $0x80] ss:$8 sps:$4 sm:$0xff]   ;;  %v8039_v35 = vld [vmem:[%s12502_s1 + $0x174] ss:$8 sps:$4 sm:$0xff]   ;;  %v8037_v38 = vld [vmem:[%s12502_s1 + $0x170] ss:$8 sps:$4 sm:$0xff]  }
   0xd   :  { %v8031_v34 = vld [vmem:[%s12503_s0] ss:$56 sps:$4 sm:$0xff]   ;;  %v8042_v36 = vld [vmem:[%s12502_s1 + $0x274] ss:$8 sps:$4 sm:$0xff]   ;;  %v8051_v42 = vld [vmem:[%s12502_s1 + $0x164] ss:$8 sps:$4 sm:$0xff]  }
   0xe   :  { %v8034_v37 = vld [vmem:[%s12503_s0 + $0x700] ss:$56 sps:$4 sm:$0xff]   ;;  %v8043_v40 = vld [vmem:[%s12503_s0 + $0x74] ss:$56 sps:$4 sm:$0xff]   ;;  %v8047_v47 = vld [vmem:[%s12503_s0 + $0x70] ss:$56 sps:$4 sm:$0xff]  }
   0xf   :  { %4083 = vmatpush1.bf16.msra.mxu0 %v7994_v7  ;;  %7970 = vmatpush1.bf16.msra.mxu1 %v7994_v7  ;;  %v8040_v39 = vld [vmem:[%s12502_s1 + $0x270] ss:$8 sps:$4 sm:$0xff]   ;;  %v8045_v41 = vld [vmem:[%s12503_s0 + $0x774] ss:$56 sps:$4 sm:$0xff]   ;;  %v8049_v44 = vld [vmem:[%s12502_s1 + $0x160] ss:$8 sps:$4 sm:$0xff]  }
  0x10   :  { %4084 = vmatprep.subr.bf16.mxu0 %v7995_v8  ;;  %7955 = vmatprep.subr.bf16.mxu1 %v7995_v8  ;;  %v8054_v43 = vld [vmem:[%s12502_s1 + $0x264] ss:$8 sps:$4 sm:$0xff]   ;;  %v8052_v45 = vld [vmem:[%s12502_s1 + $0x260] ss:$8 sps:$4 sm:$0xff]   ;;  %v8063_v46 = vld [vmem:[%s12502_s1 + $0x154] ss:$8 sps:$4 sm:$0xff]  }
  0x11   :  { %v8066_v48 = vld [vmem:[%s12502_s1 + $0x254] ss:$8 sps:$4 sm:$0xff]   ;;  %v8048_v49 = vld [vmem:[%s12503_s0 + $0x770] ss:$56 sps:$4 sm:$0xff]   ;;  %v8075_v54 = vld [vmem:[%s12502_s1 + $0x144] ss:$8 sps:$4 sm:$0xff]  }
  0x12   :  { %v8055_v50 = vld [vmem:[%s12503_s0 + $0xe4] ss:$56 sps:$4 sm:$0xff]   ;;  %v8061_v52 = vld [vmem:[%s12502_s1 + $0x150] ss:$8 sps:$4 sm:$0xff]   ;;  %v8073_v56 = vld [vmem:[%s12502_s1 + $0x140] ss:$8 sps:$4 sm:$0xff]  }
  0x13   :  { %4085 = vmatpush1.bf16.msra.mxu0 %v7997_v9  ;;  %7971 = vmatpush1.bf16.msra.mxu1 %v7997_v9  ;;  %v8057_v51 = vld [vmem:[%s12503_s0 + $0x7e4] ss:$56 sps:$4 sm:$0xff]   ;;  %v8064_v53 = vld [vmem:[%s12502_s1 + $0x250] ss:$8 sps:$4 sm:$0xff]   ;;  %v8076_v59 = vld [vmem:[%s12502_s1 + $0x240] ss:$8 sps:$4 sm:$0xff]  }
  0x14   :  { %4086 = vmatprep.subr.bf16.mxu0 %v7998_v10  ;;  %7956 = vmatprep.subr.bf16.mxu1 %v7998_v10  ;;  %v8078_v55 = vld [vmem:[%s12502_s1 + $0x244] ss:$8 sps:$4 sm:$0xff]   ;;  %v8059_v57 = vld [vmem:[%s12503_s0 + $0xe0] ss:$56 sps:$4 sm:$0xff]   ;;  %v8087_v60 = vld [vmem:[%s12502_s1 + $0x134] ss:$8 sps:$4 sm:$0xff]  }
  0x15   :  { %v8060_v58 = vld [vmem:[%s12503_s0 + $0x7e0] ss:$56 sps:$4 sm:$0xff]   ;;  %v8090_v61 = vld [vmem:[%s12502_s1 + $0x234] ss:$8 sps:$4 sm:$0xff]   ;;  %v8099_v2 = vld [vmem:[%s12502_s1 + $0x124] ss:$8 sps:$4 sm:$0xff]  }
  0x16   :  { %v8067_v62 = vld [vmem:[%s12503_s0 + $0x154] ss:$56 sps:$4 sm:$0xff]   ;;  %v8085_v0 = vld [vmem:[%s12502_s1 + $0x130] ss:$8 sps:$4 sm:$0xff]   ;;  %v8097_v4 = vld [vmem:[%s12502_s1 + $0x120] ss:$8 sps:$4 sm:$0xff]  }
  0x17   :  { %4087 = vmatpush1.bf16.msra.mxu0 %v8000_v11  ;;  %7972 = vmatpush1.bf16.msra.mxu1 %v8000_v11  ;;  %v8069_v63 = vld [vmem:[%s12503_s0 + $0x854] ss:$56 sps:$4 sm:$0xff]   ;;  %v8088_v1 = vld [vmem:[%s12502_s1 + $0x230] ss:$8 sps:$4 sm:$0xff]   ;;  %v8100_v5 = vld [vmem:[%s12502_s1 + $0x220] ss:$8 sps:$4 sm:$0xff]  }
  0x18   :  { %4088 = vmatprep.subr.bf16.mxu0 %v8001_v12  ;;  %7957 = vmatprep.subr.bf16.mxu1 %v8001_v12  ;;  %v8102_v3 = vld [vmem:[%s12502_s1 + $0x224] ss:$8 sps:$4 sm:$0xff]   ;;  %v8071_v6 = vld [vmem:[%s12503_s0 + $0x150] ss:$56 sps:$4 sm:$0xff]   ;;  %v8111_v8 = vld [vmem:[%s12502_s1 + $0x114] ss:$8 sps:$4 sm:$0xff]  }
  0x19   :  { %v8072_v7 = vld [vmem:[%s12503_s0 + $0x850] ss:$56 sps:$4 sm:$0xff]   ;;  %v8114_v9 = vld [vmem:[%s12502_s1 + $0x214] ss:$8 sps:$4 sm:$0xff]   ;;  %v8126_v15 = vld [vmem:[%s12502_s1 + $0x204] ss:$8 sps:$4 sm:$0xff]  }
  0x1a   :  { %v8079_v10 = vld [vmem:[%s12503_s0 + $0x1c4] ss:$56 sps:$4 sm:$0xff]   ;;  %v8109_v12 = vld [vmem:[%s12502_s1 + $0x110] ss:$8 sps:$4 sm:$0xff]  }
  0x1b   :  { %4089 = vmatpush1.bf16.msra.mxu0 %v8003_v14  ;;  %7973 = vmatpush1.bf16.msra.mxu1 %v8003_v14  ;;  %v8081_v11 = vld [vmem:[%s12503_s0 + $0x8c4] ss:$56 sps:$4 sm:$0xff]   ;;  %v8112_v13 = vld [vmem:[%s12502_s1 + $0x210] ss:$8 sps:$4 sm:$0xff]  }
  0x1c   :  { %4090 = vmatprep.subr.bf16.mxu0 %v8004_v16  ;;  %7958 = vmatprep.subr.bf16.mxu1 %v8004_v16  ;;  %v8123_v14 = vld [vmem:[%s12502_s1 + $0x104] ss:$8 sps:$4 sm:$0xff]   ;;  %v8121_v16 = vld [vmem:[%s12502_s1 + $0x100] ss:$8 sps:$4 sm:$0xff]  }
  0x1f   :  { %4091 = vmatpush1.bf16.msra.mxu0 %v8006_v17  ;;  %7974 = vmatpush1.bf16.msra.mxu1 %v8006_v17  ;;  %v8083_v17 = vld [vmem:[%s12503_s0 + $0x1c0] ss:$56 sps:$4 sm:$0xff]  }
  0x20   :  { %4092 = vmatprep.subr.bf16.mxu0 %v8007_v18  ;;  %7959 = vmatprep.subr.bf16.mxu1 %v8007_v18  ;;  %v8084_v18 = vld [vmem:[%s12503_s0 + $0x8c0] ss:$56 sps:$4 sm:$0xff]  }
  0x23   :  { %4093 = vmatpush2.bf16.msra.mxu0 %v8009_v19  ;;  %7975 = vmatpush2.bf16.msra.mxu1 %v8009_v19  ;;  %v8124_v19 = vld [vmem:[%s12502_s1 + $0x200] ss:$8 sps:$4 sm:$0xff]  }
  0x24   :  { %4094 = vmatprep.subr.bf16.mxu0 %v8010_v20  ;;  %7960 = vmatprep.subr.bf16.mxu1 %v8010_v20  ;;  %v8135_v20 = vld [vmem:[%s12502_s1 + $0x1f4] ss:$8 sps:$4 sm:$0xff]  }
  0x27   :  { %4095 = vmatpush2.bf16.msra.mxu0 %v8012_v21  ;;  %7976 = vmatpush2.bf16.msra.mxu1 %v8012_v21  ;;  %v8138_v21 = vld [vmem:[%s12502_s1 + $0x2f4] ss:$8 sps:$4 sm:$0xff]  }
  0x28   :  { %4096 = vmatprep.subr.bf16.mxu0 %v8013_v22  ;;  %7961 = vmatprep.subr.bf16.mxu1 %v8013_v22  ;;  %v8091_v22 = vld [vmem:[%s12503_s0 + $0x234] ss:$56 sps:$4 sm:$0xff]  }
  0x2b   :  { %4097 = vmatpush2.bf16.msra.mxu0 %v8015_v23  ;;  %7977 = vmatpush2.bf16.msra.mxu1 %v8015_v23  ;;  %v8093_v23 = vld [vmem:[%s12503_s0 + $0x934] ss:$56 sps:$4 sm:$0xff]  }
  0x2c   :  { %4098 = vmatprep.subr.bf16.mxu0 %v8016_v24  ;;  %7962 = vmatprep.subr.bf16.mxu1 %v8016_v24  ;;  %v8133_v24 = vld [vmem:[%s12502_s1 + $0x1f0] ss:$8 sps:$4 sm:$0xff]  }
  0x2f   :  { %4099 = vmatpush2.bf16.msra.mxu0 %v8018_v25  ;;  %7978 = vmatpush2.bf16.msra.mxu1 %v8018_v25  ;;  %v8136_v25 = vld [vmem:[%s12502_s1 + $0x2f0] ss:$8 sps:$4 sm:$0xff]  }
  0x30   :  { %4100 = vmatprep.subr.bf16.mxu0 %v8019_v26  ;;  %7963 = vmatprep.subr.bf16.mxu1 %v8019_v26  ;;  %v8147_v26 = vld [vmem:[%s12502_s1 + $0x1e4] ss:$8 sps:$4 sm:$0xff]  }
  0x33   :  { %4101 = vmatpush2.bf16.msra.mxu0 %v8021_v27  ;;  %7979 = vmatpush2.bf16.msra.mxu1 %v8021_v27  ;;  %v8150_v27 = vld [vmem:[%s12502_s1 + $0x2e4] ss:$8 sps:$4 sm:$0xff]  }
  0x34   :  { %4102 = vmatprep.subr.bf16.mxu0 %v8022_v28  ;;  %7964 = vmatprep.subr.bf16.mxu1 %v8022_v28  ;;  %v8145_v28 = vld [vmem:[%s12502_s1 + $0x1e0] ss:$8 sps:$4 sm:$0xff]  }
  0x37   :  { %4103 = vmatpush2.bf16.msra.mxu0 %v8024_v29  ;;  %7980 = vmatpush2.bf16.msra.mxu1 %v8024_v29  ;;  %v8148_v29 = vld [vmem:[%s12502_s1 + $0x2e0] ss:$8 sps:$4 sm:$0xff]  }
  0x38   :  { %4104 = vmatprep.subr.bf16.mxu0 %v8025_v30  ;;  %7965 = vmatprep.subr.bf16.mxu1 %v8025_v30  ;;  %v8095_v30 = vld [vmem:[%s12503_s0 + $0x230] ss:$56 sps:$4 sm:$0xff]  }
  0x3b   :  { %4105 = vmatpush2.bf16.msra.mxu0 %v8027_v31  ;;  %7981 = vmatpush2.bf16.msra.mxu1 %v8027_v31  ;;  %v8096_v31 = vld [vmem:[%s12503_s0 + $0x930] ss:$56 sps:$4 sm:$0xff]  }
  0x3c   :  { %4106 = vmatprep.subr.bf16.mxu0 %v8028_v32  ;;  %7966 = vmatprep.subr.bf16.mxu1 %v8028_v32  ;;  %v8159_v32 = vld [vmem:[%s12502_s1 + $0x1d4] ss:$8 sps:$4 sm:$0xff]  }
  0x3f   :  { %4107 = vmatpush2.bf16.msra.mxu0 %v8030_v33  ;;  %7982 = vmatpush2.bf16.msra.mxu1 %v8030_v33  ;;  %v8162_v33 = vld [vmem:[%s12502_s1 + $0x2d4] ss:$8 sps:$4 sm:$0xff]  }
  0x40   :  { %4429 = vmatprep.subr.bf16.mxu1 %v8039_v35  ;;  %4782 = vmatprep.subr.bf16.mxu0 %v8042_v36  ;;  %v8105_v35 = vld [vmem:[%s12503_s0 + $0x9a4] ss:$56 sps:$4 sm:$0xff]   ;;  %v8157_v36 = vld [vmem:[%s12502_s1 + $0x1d0] ss:$8 sps:$4 sm:$0xff]  }
  0x42   :  { %4109 = vmatmul.mubr.bf16.vlgmr.msra.gmra.mxu0 %v8031_v34  ;;  %4269 = vmatmul.mubr.bf16.vlgmr.msra.gmra.mxu1 %v8034_v37  ;;  %v8103_v34 = vld [vmem:[%s12503_s0 + $0x2a4] ss:$56 sps:$4 sm:$0xff]   ;;  %v8160_v37 = vld [vmem:[%s12502_s1 + $0x2d0] ss:$8 sps:$4 sm:$0xff]  }
  0x43   :  { %4430 = vmatpush1.bf16.msra.mxu1 %v8037_v38  ;;  %4783 = vmatpush1.bf16.msra.mxu0 %v8040_v39  ;;  %v8171_v38 = vld [vmem:[%s12502_s1 + $0x1c4] ss:$8 sps:$4 sm:$0xff]  }
  0x44   :  { %4118 = vmatprep.mubr.bf16.mxu0 %v8043_v40  ;;  %4278 = vmatprep.mubr.bf16.mxu1 %v8045_v41  ;;  %v8174_v39 = vld [vmem:[%s12502_s1 + $0x2c4] ss:$8 sps:$4 sm:$0xff]   ;;  %v8169_v40 = vld [vmem:[%s12502_s1 + $0x1c0] ss:$8 sps:$4 sm:$0xff]  }
  0x45   :  { %4431 = vmatprep.subr.bf16.mxu1 %v8051_v42  ;;  %4784 = vmatprep.subr.bf16.mxu0 %v8054_v43  ;;  %v8172_v41 = vld [vmem:[%s12502_s1 + $0x2c0] ss:$8 sps:$4 sm:$0xff]  }
  0x46   :  { %v8107_v42 = vld [vmem:[%s12503_s0 + $0x2a0] ss:$56 sps:$4 sm:$0xff]  }
  0x47   :  { %4432 = vmatpush1.bf16.msra.mxu1 %v8049_v44  ;;  %4785 = vmatpush1.bf16.msra.mxu0 %v8052_v45  ;;  %v8108_v43 = vld [vmem:[%s12503_s0 + $0x9a0] ss:$56 sps:$4 sm:$0xff]   ;;  %v8183_v44 = vld [vmem:[%s12502_s1 + $0x1b4] ss:$8 sps:$4 sm:$0xff]  }
  0x48   :  { %4433 = vmatprep.subr.bf16.mxu1 %v8063_v46  ;;  %4786 = vmatprep.subr.bf16.mxu0 %v8066_v48  ;;  %v8186_v45 = vld [vmem:[%s12502_s1 + $0x2b4] ss:$8 sps:$4 sm:$0xff]   ;;  %v8181_v48 = vld [vmem:[%s12502_s1 + $0x1b0] ss:$8 sps:$4 sm:$0xff]  }
  0x49   :  { %v8115_v46 = vld [vmem:[%s12503_s0 + $0x314] ss:$56 sps:$4 sm:$0xff]  }
  0x4a   :  { %4119 = vmatmul.mubr.bf16.gmra.mxu0 %v8047_v47  ;;  %4279 = vmatmul.mubr.bf16.gmra.mxu1 %v8048_v49  ;;  %v8117_v47 = vld [vmem:[%s12503_s0 + $0xa14] ss:$56 sps:$4 sm:$0xff]   ;;  %v8184_v49 = vld [vmem:[%s12502_s1 + $0x2b0] ss:$8 sps:$4 sm:$0xff]  }
  0x4b   :  { %4128 = vmatprep.mubr.bf16.mxu0 %v8055_v50  ;;  %4288 = vmatprep.mubr.bf16.mxu1 %v8057_v51  ;;  %v8195_v50 = vld [vmem:[%s12502_s1 + $0x1a4] ss:$8 sps:$4 sm:$0xff]  }
  0x4c   :  { %4434 = vmatpush1.bf16.msra.mxu1 %v8061_v52  ;;  %4787 = vmatpush1.bf16.msra.mxu0 %v8064_v53  ;;  %v8198_v51 = vld [vmem:[%s12502_s1 + $0x2a4] ss:$8 sps:$4 sm:$0xff]   ;;  %v8193_v52 = vld [vmem:[%s12502_s1 + $0x1a0] ss:$8 sps:$4 sm:$0xff]  }
  0x4d   :  { %4435 = vmatprep.subr.bf16.mxu1 %v8075_v54  ;;  %4788 = vmatprep.subr.bf16.mxu0 %v8078_v55  ;;  %v8119_v53 = vld [vmem:[%s12503_s0 + $0x310] ss:$56 sps:$4 sm:$0xff]  }
  0x4e   :  { %v8120_v54 = vld [vmem:[%s12503_s0 + $0xa10] ss:$56 sps:$4 sm:$0xff]  }
  0x4f   :  { %v8196_v55 = vld [vmem:[%s12502_s1 + $0x2a0] ss:$8 sps:$4 sm:$0xff]  }
  0x50   :  { %4436 = vmatpush1.bf16.msra.mxu1 %v8073_v56  ;;  %4789 = vmatpush1.bf16.msra.mxu0 %v8076_v59  ;;  %v8207_v56 = vld [vmem:[%s12502_s1 + $0x194] ss:$8 sps:$4 sm:$0xff]  }
  0x51   :  { %4437 = vmatprep.subr.bf16.mxu1 %v8087_v60  ;;  %4790 = vmatprep.subr.bf16.mxu0 %v8090_v61  ;;  %v8129_v59 = vld [vmem:[%s12503_s0 + $0xa84] ss:$56 sps:$4 sm:$0xff]   ;;  %v8205_v60 = vld [vmem:[%s12502_s1 + $0x190] ss:$8 sps:$4 sm:$0xff]  }
  0x52   :  { %4129 = vmatmul.mubr.bf16.gmra.mxu0 %v8059_v57  ;;  %4289 = vmatmul.mubr.bf16.gmra.mxu1 %v8060_v58  ;;  %v8210_v57 = vld [vmem:[%s12502_s1 + $0x294] ss:$8 sps:$4 sm:$0xff]   ;;  %v8208_v61 = vld [vmem:[%s12502_s1 + $0x290] ss:$8 sps:$4 sm:$0xff]  }
  0x53   :  { %4138 = vmatprep.mubr.bf16.mxu0 %v8067_v62  ;;  %4298 = vmatprep.mubr.bf16.mxu1 %v8069_v63  ;;  %v8127_v58 = vld [vmem:[%s12503_s0 + $0x384] ss:$56 sps:$4 sm:$0xff]  }
  0x54   :  { %4438 = vmatpush1.bf16.msra.mxu1 %v8085_v0  ;;  %4791 = vmatpush1.bf16.msra.mxu0 %v8088_v1  ;;  %v8219_v62 = vld [vmem:[%s12502_s1 + $0x184] ss:$8 sps:$4 sm:$0xff]   ;;  %v8217_v0 = vld [vmem:[%s12502_s1 + $0x180] ss:$8 sps:$4 sm:$0xff]  }
  0x55   :  { %4439 = vmatprep.subr.bf16.mxu1 %v8099_v2  ;;  %4792 = vmatprep.subr.bf16.mxu0 %v8102_v3  ;;  %v8222_v63 = vld [vmem:[%s12502_s1 + $0x284] ss:$8 sps:$4 sm:$0xff]   ;;  %v8220_v1 = vld [vmem:[%s12502_s1 + $0x280] ss:$8 sps:$4 sm:$0xff]   ;;  %v8231_v2 = vld [vmem:[%s12502_s1 + $0x374] ss:$8 sps:$4 sm:$0xff]  }
  0x56   :  { %v8234_v3 = vld [vmem:[%s12502_s1 + $0x474] ss:$8 sps:$4 sm:$0xff]  }
  0x58   :  { %4440 = vmatpush1.bf16.msra.mxu1 %v8097_v4  ;;  %4793 = vmatpush1.bf16.msra.mxu0 %v8100_v5  ;;  %v8131_v4 = vld [vmem:[%s12503_s0 + $0x380] ss:$56 sps:$4 sm:$0xff]  }
  0x59   :  { %4441 = vmatprep.subr.bf16.mxu1 %v8111_v8  ;;  %4794 = vmatprep.subr.bf16.mxu0 %v8114_v9  ;;  %v8132_v5 = vld [vmem:[%s12503_s0 + $0xa80] ss:$56 sps:$4 sm:$0xff]   ;;  %v8143_v8 = vld [vmem:[%s12503_s0 + $0x3f0] ss:$56 sps:$4 sm:$0xff]  }
  0x5a   :  { %4139 = vmatmul.mubr.bf16.gmra.mxu0 %v8071_v6  ;;  %4299 = vmatmul.mubr.bf16.gmra.mxu1 %v8072_v7  ;;  %v8139_v6 = vld [vmem:[%s12503_s0 + $0x3f4] ss:$56 sps:$4 sm:$0xff]   ;;  %v8144_v9 = vld [vmem:[%s12503_s0 + $0xaf0] ss:$56 sps:$4 sm:$0xff]  }
  0x5b   :  { %4148 = vmatprep.mubr.bf16.mxu0 %v8079_v10  ;;  %4308 = vmatprep.mubr.bf16.mxu1 %v8081_v11  ;;  %v8141_v7 = vld [vmem:[%s12503_s0 + $0xaf4] ss:$56 sps:$4 sm:$0xff]   ;;  %v8151_v10 = vld [vmem:[%s12503_s0 + $0x464] ss:$56 sps:$4 sm:$0xff]  }
  0x5c   :  { %4442 = vmatpush1.bf16.msra.mxu1 %v8109_v12  ;;  %4795 = vmatpush1.bf16.msra.mxu0 %v8112_v13  ;;  %v8153_v11 = vld [vmem:[%s12503_s0 + $0xb64] ss:$56 sps:$4 sm:$0xff]   ;;  %v8155_v12 = vld [vmem:[%s12503_s0 + $0x460] ss:$56 sps:$4 sm:$0xff]  }
  0x5d   :  { %4443 = vmatprep.subr.bf16.mxu1 %v8123_v14  ;;  %4796 = vmatprep.subr.bf16.mxu0 %v8126_v15  ;;  %v8156_v13 = vld [vmem:[%s12503_s0 + $0xb60] ss:$56 sps:$4 sm:$0xff]   ;;  %v8163_v14 = vld [vmem:[%s12503_s0 + $0x4d4] ss:$56 sps:$4 sm:$0xff]  }
  0x5e   :  { %v8165_v15 = vld [vmem:[%s12503_s0 + $0xbd4] ss:$56 sps:$4 sm:$0xff]  }
  0x60   :  { %4444 = vmatpush1.bf16.msra.mxu1 %v8121_v16  ;;  %4797 = vmatpush1.bf16.msra.mxu0 %v8124_v19  ;;  %v8167_v16 = vld [vmem:[%s12503_s0 + $0x4d0] ss:$56 sps:$4 sm:$0xff]   ;;  %v8177_v19 = vld [vmem:[%s12503_s0 + $0xc44] ss:$56 sps:$4 sm:$0xff]  }
  0x61   :  { %4445 = vmatprep.subr.bf16.mxu1 %v8135_v20  ;;  %4798 = vmatprep.subr.bf16.mxu0 %v8138_v21  ;;  %v8179_v20 = vld [vmem:[%s12503_s0 + $0x540] ss:$56 sps:$4 sm:$0xff]  }
  0x62   :  { %4149 = vmatmul.mubr.bf16.gmra.mxu0 %v8083_v17  ;;  %4309 = vmatmul.mubr.bf16.gmra.mxu1 %v8084_v18  ;;  %v8168_v17 = vld [vmem:[%s12503_s0 + $0xbd0] ss:$56 sps:$4 sm:$0xff]   ;;  %v8175_v18 = vld [vmem:[%s12503_s0 + $0x544] ss:$56 sps:$4 sm:$0xff]   ;;  %v8180_v21 = vld [vmem:[%s12503_s0 + $0xc40] ss:$56 sps:$4 sm:$0xff]  }
  0x63   :  { %4158 = vmatprep.mubr.bf16.mxu0 %v8091_v22  ;;  %4318 = vmatprep.mubr.bf16.mxu1 %v8093_v23  ;;  %v8187_v22 = vld [vmem:[%s12503_s0 + $0x5b4] ss:$56 sps:$4 sm:$0xff]  }
  0x64   :  { %4446 = vmatpush2.bf16.msra.mxu1 %v8133_v24  ;;  %4799 = vmatpush2.bf16.msra.mxu0 %v8136_v25  ;;  %v8189_v23 = vld [vmem:[%s12503_s0 + $0xcb4] ss:$56 sps:$4 sm:$0xff]   ;;  %v8191_v24 = vld [vmem:[%s12503_s0 + $0x5b0] ss:$56 sps:$4 sm:$0xff]  }
  0x65   :  { %4447 = vmatprep.subr.bf16.mxu1 %v8147_v26  ;;  %4800 = vmatprep.subr.bf16.mxu0 %v8150_v27  ;;  %v8192_v25 = vld [vmem:[%s12503_s0 + $0xcb0] ss:$56 sps:$4 sm:$0xff]   ;;  %v8199_v26 = vld [vmem:[%s12503_s0 + $0x624] ss:$56 sps:$4 sm:$0xff]  }
  0x66   :  { %v8201_v27 = vld [vmem:[%s12503_s0 + $0xd24] ss:$56 sps:$4 sm:$0xff]  }
  0x68   :  { %4448 = vmatpush2.bf16.msra.mxu1 %v8145_v28  ;;  %4801 = vmatpush2.bf16.msra.mxu0 %v8148_v29  ;;  %v8203_v28 = vld [vmem:[%s12503_s0 + $0x620] ss:$56 sps:$4 sm:$0xff]  }
  0x69   :  { %4449 = vmatprep.subr.bf16.mxu1 %v8159_v32  ;;  %4802 = vmatprep.subr.bf16.mxu0 %v8162_v33  ;;  %v8204_v29 = vld [vmem:[%s12503_s0 + $0xd20] ss:$56 sps:$4 sm:$0xff]   ;;  %v8215_v32 = vld [vmem:[%s12503_s0 + $0x690] ss:$56 sps:$4 sm:$0xff]  }
  0x6a   :  { %4159 = vmatmul.mubr.bf16.gmra.mxu0 %v8095_v30  ;;  %4319 = vmatmul.mubr.bf16.gmra.mxu1 %v8096_v31  ;;  %v8211_v30 = vld [vmem:[%s12503_s0 + $0x694] ss:$56 sps:$4 sm:$0xff]   ;;  %v8216_v33 = vld [vmem:[%s12503_s0 + $0xd90] ss:$56 sps:$4 sm:$0xff]  }
  0x6b   :  { %4168 = vmatprep.mubr.bf16.mxu0 %v8103_v34  ;;  %4328 = vmatprep.mubr.bf16.mxu1 %v8105_v35  ;;  %v8213_v31 = vld [vmem:[%s12503_s0 + $0xd94] ss:$56 sps:$4 sm:$0xff]  }
  0x6c   :  { %4450 = vmatpush2.bf16.msra.mxu1 %v8157_v36  ;;  %4803 = vmatpush2.bf16.msra.mxu0 %v8160_v37  ;;  %v8225_v34 = vld [vmem:[%s12503_s0 + $0xc] ss:$56 sps:$4 sm:$0xff]   ;;  %v8223_v36 = vld [vmem:[%s12503_s0 + $0x8] ss:$56 sps:$4 sm:$0xff]  }
  0x6d   :  { %4451 = vmatprep.subr.bf16.mxu1 %v8171_v38  ;;  %4804 = vmatprep.subr.bf16.mxu0 %v8174_v39  ;;  %v8228_v35 = vld [vmem:[%s12503_s0 + $0x14] ss:$56 sps:$4 sm:$0xff]   ;;  %v8226_v37 = vld [vmem:[%s12503_s0 + $0x10] ss:$56 sps:$4 sm:$0xff]  }
  0x6e   :  { %v8229_v38 = vld [vmem:[%s12502_s1 + $0x370] ss:$8 sps:$4 sm:$0xff]  }
  0x6f   :  { %v8232_v39 = vld [vmem:[%s12502_s1 + $0x470] ss:$8 sps:$4 sm:$0xff]  }
  0x70   :  { %4452 = vmatpush2.bf16.msra.mxu1 %v8169_v40  ;;  %4805 = vmatpush2.bf16.msra.mxu0 %v8172_v41  ;;  %v8235_v40 = vld [vmem:[%s12503_s0 + $0x7c] ss:$56 sps:$4 sm:$0xff]  }
  0x71   :  { %4453 = vmatprep.subr.bf16.mxu1 %v8183_v44  ;;  %4806 = vmatprep.subr.bf16.mxu0 %v8186_v45  ;;  %v8237_v41 = vld [vmem:[%s12503_s0 + $0x84] ss:$56 sps:$4 sm:$0xff]   ;;  %v8247_v44 = vld [vmem:[%s12502_s1 + $0x360] ss:$8 sps:$4 sm:$0xff]  }
  0x72   :  { %4169 = vmatmul.mubr.bf16.gmra.mxu0 %v8107_v42  ;;  %4329 = vmatmul.mubr.bf16.gmra.mxu1 %v8108_v43  ;;  %v8249_v42 = vld [vmem:[%s12502_s1 + $0x364] ss:$8 sps:$4 sm:$0xff]   ;;  %v8250_v45 = vld [vmem:[%s12502_s1 + $0x460] ss:$8 sps:$4 sm:$0xff]  }
  0x73   :  { %4178 = vmatprep.mubr.bf16.mxu0 %v8115_v46  ;;  %4338 = vmatprep.mubr.bf16.mxu1 %v8117_v47  ;;  %v8252_v43 = vld [vmem:[%s12502_s1 + $0x464] ss:$8 sps:$4 sm:$0xff]   ;;  %v8267_v46 = vld [vmem:[%s12502_s1 + $0x354] ss:$8 sps:$4 sm:$0xff]  }
  0x74   :  { %4454 = vmatpush2.bf16.msra.mxu1 %v8181_v48  ;;  %4807 = vmatpush2.bf16.msra.mxu0 %v8184_v49  ;;  %v8270_v47 = vld [vmem:[%s12502_s1 + $0x454] ss:$8 sps:$4 sm:$0xff]   ;;  %v8239_v48 = vld [vmem:[%s12503_s0 + $0x78] ss:$56 sps:$4 sm:$0xff]  }
  0x75   :  { %4455 = vmatprep.subr.bf16.mxu1 %v8195_v50  ;;  %4808 = vmatprep.subr.bf16.mxu0 %v8198_v51  ;;  %v8240_v49 = vld [vmem:[%s12503_s0 + $0x80] ss:$56 sps:$4 sm:$0xff]   ;;  %v8241_v50 = vld [vmem:[%s12503_s0 + $0xec] ss:$56 sps:$4 sm:$0xff]  }
  0x76   :  { %v8243_v51 = vld [vmem:[%s12503_s0 + $0xf4] ss:$56 sps:$4 sm:$0xff]  }
  0x78   :  { %4456 = vmatpush2.bf16.msra.mxu1 %v8193_v52  ;;  %4809 = vmatpush2.bf16.msra.mxu0 %v8196_v55  ;;  %v8265_v52 = vld [vmem:[%s12502_s1 + $0x350] ss:$8 sps:$4 sm:$0xff]   ;;  %v8288_v55 = vld [vmem:[%s12502_s1 + $0x444] ss:$8 sps:$4 sm:$0xff]  }
  0x79   :  { %4457 = vmatprep.subr.bf16.mxu1 %v8207_v56  ;;  %4810 = vmatprep.subr.bf16.mxu0 %v8210_v57  ;;  %v8283_v56 = vld [vmem:[%s12502_s1 + $0x340] ss:$8 sps:$4 sm:$0xff]  }
  0x7a   :  { %4179 = vmatmul.mubr.bf16.gmra.mxu0 %v8119_v53  ;;  %4339 = vmatmul.mubr.bf16.gmra.mxu1 %v8120_v54  ;;  %v8268_v53 = vld [vmem:[%s12502_s1 + $0x450] ss:$8 sps:$4 sm:$0xff]   ;;  %v8285_v54 = vld [vmem:[%s12502_s1 + $0x344] ss:$8 sps:$4 sm:$0xff]   ;;  %v8286_v57 = vld [vmem:[%s12502_s1 + $0x440] ss:$8 sps:$4 sm:$0xff]  }
  0x7b   :  { %4188 = vmatprep.mubr.bf16.mxu0 %v8127_v58  ;;  %4348 = vmatprep.mubr.bf16.mxu1 %v8129_v59  ;;  %v8303_v58 = vld [vmem:[%s12502_s1 + $0x334] ss:$8 sps:$4 sm:$0xff]  }
  0x7c   :  { %4458 = vmatpush2.bf16.msra.mxu1 %v8205_v60  ;;  %4811 = vmatpush2.bf16.msra.mxu0 %v8208_v61  ;;  %v8306_v59 = vld [vmem:[%s12502_s1 + $0x434] ss:$8 sps:$4 sm:$0xff]   ;;  %v8245_v60 = vld [vmem:[%s12503_s0 + $0xe8] ss:$56 sps:$4 sm:$0xff]  }
  0x7d   :  { %4459 = vmatprep.subr.bf16.mxu1 %v8219_v62  ;;  %4812 = vmatprep.subr.bf16.mxu0 %v8222_v63  ;;  %v8246_v61 = vld [vmem:[%s12503_s0 + $0xf0] ss:$56 sps:$4 sm:$0xff]   ;;  %v8253_v62 = vld [vmem:[%s12503_s0 + $0x15c] ss:$56 sps:$4 sm:$0xff]  }
  0x7e   :  { %v8255_v63 = vld [vmem:[%s12503_s0 + $0x164] ss:$56 sps:$4 sm:$0xff]  }
  0x80   :  { %4460 = vmatpush2.bf16.msra.mxu1 %v8217_v0  ;;  %4813 = vmatpush2.bf16.msra.mxu0 %v8220_v1  ;;  %v8301_v0 = vld [vmem:[%s12502_s1 + $0x330] ss:$8 sps:$4 sm:$0xff]  }
  0x81   :  { %5135 = vmatprep.subr.bf16.mxu1 %v8231_v2  ;;  %5488 = vmatprep.subr.bf16.mxu0 %v8234_v3  ;;  %v8304_v1 = vld [vmem:[%s12502_s1 + $0x430] ss:$8 sps:$4 sm:$0xff]   ;;  %v8321_v2 = vld [vmem:[%s12502_s1 + $0x324] ss:$8 sps:$4 sm:$0xff]  }
  0x82   :  { %4189 = vmatmul.mubr.bf16.gmra.mxu0 %v8131_v4  ;;  %4349 = vmatmul.mubr.bf16.gmra.mxu1 %v8132_v5  ;;  %v8324_v3 = vld [vmem:[%s12502_s1 + $0x424] ss:$8 sps:$4 sm:$0xff]   ;;  %v8319_v4 = vld [vmem:[%s12502_s1 + $0x320] ss:$8 sps:$4 sm:$0xff]  }
  0x83   :  { %4198 = vmatprep.mubr.bf16.mxu0 %v8139_v6  ;;  %4358 = vmatprep.mubr.bf16.mxu1 %v8141_v7  ;;  %v8322_v5 = vld [vmem:[%s12502_s1 + $0x420] ss:$8 sps:$4 sm:$0xff]   ;;  %v8257_v6 = vld [vmem:[%s12503_s0 + $0x158] ss:$56 sps:$4 sm:$0xff]  }
  0x84   :  { %v8258_v7 = vld [vmem:[%s12503_s0 + $0x160] ss:$56 sps:$4 sm:$0xff]  }
  0x8a   :  { %4199 = vmatmul.mubr.bf16.gmra.mxu0 %v8143_v8  ;;  %4359 = vmatmul.mubr.bf16.gmra.mxu1 %v8144_v9  ;;  %v8259_v8 = vld [vmem:[%s12503_s0 + $0x1cc] ss:$56 sps:$4 sm:$0xff]  }
  0x8b   :  { %4208 = vmatprep.mubr.bf16.mxu0 %v8151_v10  ;;  %4368 = vmatprep.mubr.bf16.mxu1 %v8153_v11  ;;  %v8261_v9 = vld [vmem:[%s12503_s0 + $0x1d4] ss:$56 sps:$4 sm:$0xff]  }
  0x8c   :  { %v8339_v10 = vld [vmem:[%s12502_s1 + $0x314] ss:$8 sps:$4 sm:$0xff]  }
  0x8d   :  { %v8342_v11 = vld [vmem:[%s12502_s1 + $0x414] ss:$8 sps:$4 sm:$0xff]  }
  0x92   :  { %4209 = vmatmul.mubr.bf16.gmra.mxu0 %v8155_v12  ;;  %4369 = vmatmul.mubr.bf16.gmra.mxu1 %v8156_v13  ;;  %v8337_v12 = vld [vmem:[%s12502_s1 + $0x310] ss:$8 sps:$4 sm:$0xff]  }
  0x93   :  { %4218 = vmatprep.mubr.bf16.mxu0 %v8163_v14  ;;  %4378 = vmatprep.mubr.bf16.mxu1 %v8165_v15  ;;  %v8340_v13 = vld [vmem:[%s12502_s1 + $0x410] ss:$8 sps:$4 sm:$0xff]   ;;  %v8357_v14 = vld [vmem:[%s12502_s1 + $0x304] ss:$8 sps:$4 sm:$0xff]  }
  0x94   :  { %v8360_v15 = vld [vmem:[%s12502_s1 + $0x404] ss:$8 sps:$4 sm:$0xff]  }
  0x9a   :  { %4219 = vmatmul.mubr.bf16.gmra.mxu0 %v8167_v16  ;;  %4379 = vmatmul.mubr.bf16.gmra.mxu1 %v8168_v17  ;;  %v8355_v16 = vld [vmem:[%s12502_s1 + $0x300] ss:$8 sps:$4 sm:$0xff]  }
  0x9b   :  { %4228 = vmatprep.mubr.bf16.mxu0 %v8175_v18  ;;  %4388 = vmatprep.mubr.bf16.mxu1 %v8177_v19  ;;  %v8358_v17 = vld [vmem:[%s12502_s1 + $0x400] ss:$8 sps:$4 sm:$0xff]   ;;  %v8375_v18 = vld [vmem:[%s12502_s1 + $0x3f4] ss:$8 sps:$4 sm:$0xff]  }
  0x9c   :  { %v8378_v19 = vld [vmem:[%s12502_s1 + $0x4f4] ss:$8 sps:$4 sm:$0xff]  }
  0xa2   :  { %4229 = vmatmul.mubr.bf16.gmra.mxu0 %v8179_v20  ;;  %4389 = vmatmul.mubr.bf16.gmra.mxu1 %v8180_v21  ;;  %v8263_v20 = vld [vmem:[%s12503_s0 + $0x1c8] ss:$56 sps:$4 sm:$0xff]  }
  0xa3   :  { %4238 = vmatprep.mubr.bf16.mxu0 %v8187_v22  ;;  %4398 = vmatprep.mubr.bf16.mxu1 %v8189_v23  ;;  %v8264_v21 = vld [vmem:[%s12503_s0 + $0x1d0] ss:$56 sps:$4 sm:$0xff]   ;;  %v8271_v22 = vld [vmem:[%s12503_s0 + $0x23c] ss:$56 sps:$4 sm:$0xff]  }
  0xa4   :  { %v8273_v23 = vld [vmem:[%s12503_s0 + $0x244] ss:$56 sps:$4 sm:$0xff]  }
  0xaa   :  { %4239 = vmatmul.mubr.bf16.gmra.mxu0 %v8191_v24  ;;  %4399 = vmatmul.mubr.bf16.gmra.mxu1 %v8192_v25  ;;  %v8373_v24 = vld [vmem:[%s12502_s1 + $0x3f0] ss:$8 sps:$4 sm:$0xff]  }
  0xab   :  { %4248 = vmatprep.mubr.bf16.mxu0 %v8199_v26  ;;  %4408 = vmatprep.mubr.bf16.mxu1 %v8201_v27  ;;  %v8376_v25 = vld [vmem:[%s12502_s1 + $0x4f0] ss:$8 sps:$4 sm:$0xff]   ;;  %v8393_v26 = vld [vmem:[%s12502_s1 + $0x3e4] ss:$8 sps:$4 sm:$0xff]  }
  0xac   :  { %v8396_v27 = vld [vmem:[%s12502_s1 + $0x4e4] ss:$8 sps:$4 sm:$0xff]  }
  0xb2   :  { %4249 = vmatmul.mubr.bf16.gmra.mxu0 %v8203_v28  ;;  %4409 = vmatmul.mubr.bf16.gmra.mxu1 %v8204_v29  ;;  %v8391_v28 = vld [vmem:[%s12502_s1 + $0x3e0] ss:$8 sps:$4 sm:$0xff]  }
  0xb3   :  { %4258 = vmatprep.mubr.bf16.mxu0 %v8211_v30  ;;  %4418 = vmatprep.mubr.bf16.mxu1 %v8213_v31  ;;  %v8394_v29 = vld [vmem:[%s12502_s1 + $0x4e0] ss:$8 sps:$4 sm:$0xff]   ;;  %v8275_v30 = vld [vmem:[%s12503_s0 + $0x238] ss:$56 sps:$4 sm:$0xff]  }
  0xb4   :  { %v8276_v31 = vld [vmem:[%s12503_s0 + $0x240] ss:$56 sps:$4 sm:$0xff]  }
  0xba   :  { %4259 = vmatmul.mubr.bf16.gmra.mxu0 %v8215_v32  ;;  %4419 = vmatmul.mubr.bf16.gmra.mxu1 %v8216_v33  ;;  %v8411_v32 = vld [vmem:[%s12502_s1 + $0x3d4] ss:$8 sps:$4 sm:$0xff]  }
  0xbb   :  { %4461 = vmatprep.mubr.bf16.mxu1 %v8225_v34  ;;  %4814 = vmatprep.mubr.bf16.mxu0 %v8228_v35  ;;  %v8414_v33 = vld [vmem:[%s12502_s1 + $0x4d4] ss:$8 sps:$4 sm:$0xff]   ;;  %v8277_v34 = vld [vmem:[%s12503_s0 + $0x2ac] ss:$56 sps:$4 sm:$0xff]  }
  0xbc   :  { %v8279_v35 = vld [vmem:[%s12503_s0 + $0x2b4] ss:$56 sps:$4 sm:$0xff]  }
  0xc2   :  { %4462 = vmatmul.mubr.bf16.vlgmr.msra.gmra.mxu1 %v8223_v36  ;;  %4815 = vmatmul.mubr.bf16.vlgmr.msra.gmra.mxu0 %v8226_v37  ;;  %v8409_v36 = vld [vmem:[%s12502_s1 + $0x3d0] ss:$8 sps:$4 sm:$0xff]  }
  0xc3   :  { %5136 = vmatpush1.bf16.msra.mxu1 %v8229_v38  ;;  %5489 = vmatpush1.bf16.msra.mxu0 %v8232_v39  ;;  %v8412_v37 = vld [vmem:[%s12502_s1 + $0x4d0] ss:$8 sps:$4 sm:$0xff]   ;;  %v8281_v38 = vld [vmem:[%s12503_s0 + $0x2a8] ss:$56 sps:$4 sm:$0xff]  }
  0xc4   :  { %4471 = vmatprep.mubr.bf16.mxu1 %v8235_v40  ;;  %4824 = vmatprep.mubr.bf16.mxu0 %v8237_v41  ;;  %v8282_v39 = vld [vmem:[%s12503_s0 + $0x2b0] ss:$56 sps:$4 sm:$0xff]   ;;  %v8289_v40 = vld [vmem:[%s12503_s0 + $0x31c] ss:$56 sps:$4 sm:$0xff]  }
  0xc5   :  { %5137 = vmatprep.subr.bf16.mxu1 %v8249_v42  ;;  %5490 = vmatprep.subr.bf16.mxu0 %v8252_v43  ;;  %v8291_v41 = vld [vmem:[%s12503_s0 + $0x324] ss:$56 sps:$4 sm:$0xff]   ;;  %v8427_v42 = vld [vmem:[%s12502_s1 + $0x3c0] ss:$8 sps:$4 sm:$0xff]  }
  0xc6   :  { %v8429_v43 = vld [vmem:[%s12502_s1 + $0x3c4] ss:$8 sps:$4 sm:$0xff]  }
  0xc7   :  { %5138 = vmatpush1.bf16.msra.mxu1 %v8247_v44  ;;  %5491 = vmatpush1.bf16.msra.mxu0 %v8250_v45  ;;  %v8293_v44 = vld [vmem:[%s12503_s0 + $0x318] ss:$56 sps:$4 sm:$0xff]  }
  0xc8   :  { %5139 = vmatprep.subr.bf16.mxu1 %v8267_v46  ;;  %5492 = vmatprep.subr.bf16.mxu0 %v8270_v47  ;;  %v8294_v45 = vld [vmem:[%s12503_s0 + $0x320] ss:$56 sps:$4 sm:$0xff]   ;;  %v8432_v47 = vld [vmem:[%s12502_s1 + $0x4c4] ss:$8 sps:$4 sm:$0xff]  }
  0xc9   :  { %v8430_v46 = vld [vmem:[%s12502_s1 + $0x4c0] ss:$8 sps:$4 sm:$0xff]  }
  0xca   :  { %4472 = vmatmul.mubr.bf16.gmra.mxu1 %v8239_v48  ;;  %4825 = vmatmul.mubr.bf16.gmra.mxu0 %v8240_v49  ;;  %v8295_v48 = vld [vmem:[%s12503_s0 + $0x38c] ss:$56 sps:$4 sm:$0xff]  }
  0xcb   :  { %4481 = vmatprep.mubr.bf16.mxu1 %v8241_v50  ;;  %4834 = vmatprep.mubr.bf16.mxu0 %v8243_v51  ;;  %v8297_v49 = vld [vmem:[%s12503_s0 + $0x394] ss:$56 sps:$4 sm:$0xff]   ;;  %v8299_v50 = vld [vmem:[%s12503_s0 + $0x388] ss:$56 sps:$4 sm:$0xff]  }
  0xcc   :  { %5140 = vmatpush1.bf16.msra.mxu1 %v8265_v52  ;;  %5493 = vmatpush1.bf16.msra.mxu0 %v8268_v53  ;;  %v8300_v51 = vld [vmem:[%s12503_s0 + $0x390] ss:$56 sps:$4 sm:$0xff]   ;;  %v8307_v52 = vld [vmem:[%s12503_s0 + $0x3fc] ss:$56 sps:$4 sm:$0xff]  }
  0xcd   :  { %5141 = vmatprep.subr.bf16.mxu1 %v8285_v54  ;;  %5494 = vmatprep.subr.bf16.mxu0 %v8288_v55  ;;  %v8309_v53 = vld [vmem:[%s12503_s0 + $0x404] ss:$56 sps:$4 sm:$0xff]  }
  0xd0   :  { %5142 = vmatpush1.bf16.msra.mxu1 %v8283_v56  ;;  %5495 = vmatpush1.bf16.msra.mxu0 %v8286_v57 }
  0xd1   :  { %5143 = vmatprep.subr.bf16.mxu1 %v8303_v58  ;;  %5496 = vmatprep.subr.bf16.mxu0 %v8306_v59  ;;  %v8311_v58 = vld [vmem:[%s12503_s0 + $0x3f8] ss:$56 sps:$4 sm:$0xff]  }
  0xd2   :  { %4482 = vmatmul.mubr.bf16.gmra.mxu1 %v8245_v60  ;;  %4835 = vmatmul.mubr.bf16.gmra.mxu0 %v8246_v61  ;;  %v8312_v59 = vld [vmem:[%s12503_s0 + $0x400] ss:$56 sps:$4 sm:$0xff]   ;;  %v8447_v61 = vld [vmem:[%s12502_s1 + $0x3b4] ss:$8 sps:$4 sm:$0xff]  }
  0xd3   :  { %4491 = vmatprep.mubr.bf16.mxu1 %v8253_v62  ;;  %4844 = vmatprep.mubr.bf16.mxu0 %v8255_v63  ;;  %v8445_v60 = vld [vmem:[%s12502_s1 + $0x3b0] ss:$8 sps:$4 sm:$0xff]  }
  0xd4   :  { %5144 = vmatpush1.bf16.msra.mxu1 %v8301_v0  ;;  %5497 = vmatpush1.bf16.msra.mxu0 %v8304_v1  ;;  %v8313_v0 = vld [vmem:[%s12503_s0 + $0x46c] ss:$56 sps:$4 sm:$0xff]  }
  0xd5   :  { %5145 = vmatprep.subr.bf16.mxu1 %v8321_v2  ;;  %5498 = vmatprep.subr.bf16.mxu0 %v8324_v3  ;;  %v8315_v1 = vld [vmem:[%s12503_s0 + $0x474] ss:$56 sps:$4 sm:$0xff]  }
  0xd6   :  { %v8450_v2 = vld [vmem:[%s12502_s1 + $0x4b4] ss:$8 sps:$4 sm:$0xff]  }
  0xd8   :  { %5146 = vmatpush1.bf16.msra.mxu1 %v8319_v4  ;;  %5499 = vmatpush1.bf16.msra.mxu0 %v8322_v5  ;;  %v8448_v5 = vld [vmem:[%s12502_s1 + $0x4b0] ss:$8 sps:$4 sm:$0xff]  }
  0xd9   :  { %5147 = vmatprep.subr.bf16.mxu1 %v8339_v10  ;;  %5500 = vmatprep.subr.bf16.mxu0 %v8342_v11  ;;  %v8317_v10 = vld [vmem:[%s12503_s0 + $0x468] ss:$56 sps:$4 sm:$0xff]  }
  0xda   :  { %4492 = vmatmul.mubr.bf16.gmra.mxu1 %v8257_v6  ;;  %4845 = vmatmul.mubr.bf16.gmra.mxu0 %v8258_v7  ;;  %v8318_v11 = vld [vmem:[%s12503_s0 + $0x470] ss:$56 sps:$4 sm:$0xff]  }
  0xdb   :  { %4501 = vmatprep.mubr.bf16.mxu1 %v8259_v8  ;;  %4854 = vmatprep.mubr.bf16.mxu0 %v8261_v9 }
  0xdc   :  { %5148 = vmatpush1.bf16.msra.mxu1 %v8337_v12  ;;  %5501 = vmatpush1.bf16.msra.mxu0 %v8340_v13 }
  0xdd   :  { %5149 = vmatprep.subr.bf16.mxu1 %v8357_v14  ;;  %5502 = vmatprep.subr.bf16.mxu0 %v8360_v15  ;;  %v8325_v14 = vld [vmem:[%s12503_s0 + $0x4dc] ss:$56 sps:$4 sm:$0xff]  }
  0xde   :  { %v8327_v15 = vld [vmem:[%s12503_s0 + $0x4e4] ss:$56 sps:$4 sm:$0xff]  }
  0xe0   :  { %5150 = vmatpush1.bf16.msra.mxu1 %v8355_v16  ;;  %5503 = vmatpush1.bf16.msra.mxu0 %v8358_v17 }
  0xe1   :  { %5151 = vmatprep.subr.bf16.mxu1 %v8375_v18  ;;  %5504 = vmatprep.subr.bf16.mxu0 %v8378_v19 }
  0xe2   :  { %4502 = vmatmul.mubr.bf16.gmra.mxu1 %v8263_v20  ;;  %4855 = vmatmul.mubr.bf16.gmra.mxu0 %v8264_v21 }
  0xe3   :  { %4511 = vmatprep.mubr.bf16.mxu1 %v8271_v22  ;;  %4864 = vmatprep.mubr.bf16.mxu0 %v8273_v23  ;;  %v8329_v22 = vld [vmem:[%s12503_s0 + $0x4d8] ss:$56 sps:$4 sm:$0xff]  }
  0xe4   :  { %5152 = vmatpush2.bf16.msra.mxu1 %v8373_v24  ;;  %5505 = vmatpush2.bf16.msra.mxu0 %v8376_v25  ;;  %v8330_v23 = vld [vmem:[%s12503_s0 + $0x4e0] ss:$56 sps:$4 sm:$0xff]   ;;  %v8465_v25 = vld [vmem:[%s12502_s1 + $0x3a4] ss:$8 sps:$4 sm:$0xff]  }
  0xe5   :  { %5153 = vmatprep.subr.bf16.mxu1 %v8393_v26  ;;  %5506 = vmatprep.subr.bf16.mxu0 %v8396_v27  ;;  %v8463_v24 = vld [vmem:[%s12502_s1 + $0x3a0] ss:$8 sps:$4 sm:$0xff]  }
  0xe8   :  { %5154 = vmatpush2.bf16.msra.mxu1 %v8391_v28  ;;  %5507 = vmatpush2.bf16.msra.mxu0 %v8394_v29  ;;  %v8333_v28 = vld [vmem:[%s12503_s0 + $0x54c] ss:$56 sps:$4 sm:$0xff]  }
  0xe9   :  { %5155 = vmatprep.subr.bf16.mxu1 %v8411_v32  ;;  %5508 = vmatprep.subr.bf16.mxu0 %v8414_v33  ;;  %v8336_v29 = vld [vmem:[%s12503_s0 + $0x554] ss:$56 sps:$4 sm:$0xff]   ;;  %v8466_v33 = vld [vmem:[%s12502_s1 + $0x4a0] ss:$8 sps:$4 sm:$0xff]  }
  0xea   :  { %4512 = vmatmul.mubr.bf16.gmra.mxu1 %v8275_v30  ;;  %4865 = vmatmul.mubr.bf16.gmra.mxu0 %v8276_v31  ;;  %v8468_v30 = vld [vmem:[%s12502_s1 + $0x4a4] ss:$8 sps:$4 sm:$0xff]  }
  0xeb   :  { %4521 = vmatprep.mubr.bf16.mxu1 %v8277_v34  ;;  %4874 = vmatprep.mubr.bf16.mxu0 %v8279_v35 }
  0xec   :  { %5156 = vmatpush2.bf16.msra.mxu1 %v8409_v36  ;;  %5509 = vmatpush2.bf16.msra.mxu0 %v8412_v37 }
  0xed   :  { %5157 = vmatprep.subr.bf16.mxu1 %v8429_v43  ;;  %5510 = vmatprep.subr.bf16.mxu0 %v8432_v47  ;;  %v8348_v43 = vld [vmem:[%s12503_s0 + $0x5c4] ss:$56 sps:$4 sm:$0xff]  }
  0xf0   :  { %5158 = vmatpush2.bf16.msra.mxu1 %v8427_v42  ;;  %5511 = vmatpush2.bf16.msra.mxu0 %v8430_v46  ;;  %v8345_v42 = vld [vmem:[%s12503_s0 + $0x5bc] ss:$56 sps:$4 sm:$0xff]  }
  0xf1   :  { %5159 = vmatprep.subr.bf16.mxu1 %v8447_v61  ;;  %5512 = vmatprep.subr.bf16.mxu0 %v8450_v2  ;;  %v8354_v61 = vld [vmem:[%s12503_s0 + $0x634] ss:$56 sps:$4 sm:$0xff]  }
  0xf2   :  { %4522 = vmatmul.mubr.bf16.gmra.mxu1 %v8281_v38  ;;  %4875 = vmatmul.mubr.bf16.gmra.mxu0 %v8282_v39  ;;  %v8331_v38 = vld [vmem:[%s12503_s0 + $0x548] ss:$56 sps:$4 sm:$0xff]  }
  0xf3   :  { %4531 = vmatprep.mubr.bf16.mxu1 %v8289_v40  ;;  %4884 = vmatprep.mubr.bf16.mxu0 %v8291_v41  ;;  %v8334_v39 = vld [vmem:[%s12503_s0 + $0x550] ss:$56 sps:$4 sm:$0xff]  }
  0xf4   :  { %5160 = vmatpush2.bf16.msra.mxu1 %v8445_v60  ;;  %5513 = vmatpush2.bf16.msra.mxu0 %v8448_v5  ;;  %v8351_v60 = vld [vmem:[%s12503_s0 + $0x62c] ss:$56 sps:$4 sm:$0xff]   ;;  %v8484_v5 = vld [vmem:[%s12502_s1 + $0x490] ss:$8 sps:$4 sm:$0xff]  }
  0xf5   :  { %5161 = vmatprep.subr.bf16.mxu1 %v8465_v25  ;;  %5514 = vmatprep.subr.bf16.mxu0 %v8468_v30 }
  0xf8   :  { %5162 = vmatpush2.bf16.msra.mxu1 %v8463_v24  ;;  %5515 = vmatpush2.bf16.msra.mxu0 %v8466_v33 }
  0xfa   :  { %4532 = vmatmul.mubr.bf16.gmra.mxu1 %v8293_v44  ;;  %4885 = vmatmul.mubr.bf16.gmra.mxu0 %v8294_v45 }
  0xfb   :  { %4541 = vmatprep.mubr.bf16.mxu1 %v8295_v48  ;;  %4894 = vmatprep.mubr.bf16.mxu0 %v8297_v49 }
 0x102   :  { %v9737_v54 = vpop.f32.mrf.mxu0  ;;  %v9739_v55 = vpop.f32.mrf.mxu1  ;;  %4542 = vmatmul.mubr.bf16.gmra.mxu1 %v8299_v50  ;;  %4895 = vmatmul.mubr.bf16.gmra.mxu0 %v8300_v51  ;;  %v8343_v50 = vld [vmem:[%s12503_s0 + $0x5b8] ss:$56 sps:$4 sm:$0xff]  }
 0x103   :  { %12506 = vst [vmem:[#allocation2_spill] sm:$0xff] %v9739_v55  ;;  %4551 = vmatprep.mubr.bf16.mxu1 %v8307_v52  ;;  %4904 = vmatprep.mubr.bf16.mxu0 %v8309_v53  ;;  %v8346_v51 = vld [vmem:[%s12503_s0 + $0x5c0] ss:$56 sps:$4 sm:$0xff]   ;;  %v8483_v53 = vld [vmem:[%s12502_s1 + $0x394] ss:$8 sps:$4 sm:$0xff]   ;;  %v681_v55 = vlaneseq }
 0x104   :  { %v9741_v56 = vpop.f32.mrf.mxu0  ;;  %v9743_v57 = vpop.f32.mrf.mxu1  ;;  %v8481_v52 = vld [vmem:[%s12502_s1 + $0x390] ss:$8 sps:$4 sm:$0xff]   ;;  %5163 = vmatprep.subr.bf16.mxu1 %v8483_v53  ;;  %v8501_v53 = vld [vmem:[%s12502_s1 + $0x384] ss:$8 sps:$4 sm:$0xff]  }
 0x105   :  { %12507 = vst [vmem:[#allocation3_spill] sm:$0xff] %v9743_v57  ;;  %5164 = vmatpush2.bf16.msra.mxu1 %v8481_v52  ;;  %v8499_v52 = vld [vmem:[%s12502_s1 + $0x380] ss:$8 sps:$4 sm:$0xff]  }
 0x106   :  { %v9757_v62 = vpop.f32.mrf.mxu0  ;;  %v9759_v63 = vpop.f32.mrf.mxu1  ;;  %5165 = vmatprep.subr.bf16.mxu1 %v8501_v53 }
 0x107   :  { %12508 = vst [vmem:[#allocation4_spill] sm:$0xff] %v9759_v63 }
 0x108   :  { %v9770_v3 = vpop.f32.mrf.mxu0  ;;  %v9772_v4 = vpop.f32.mrf.mxu1 }
 0x109   :  { %12509 = vst [vmem:[#allocation5_spill] sm:$0xff] %v9772_v4  ;;  %5166 = vmatpush2.bf16.msra.mxu1 %v8499_v52  ;;  %v8367_v52 = vld [vmem:[%s12503_s0 + $0x708] ss:$56 sps:$4 sm:$0xff]  }
 0x10a   :  { %v9777_v6 = vpop.f32.mrf.mxu0  ;;  %v9779_v7 = vpop.f32.mrf.mxu1  ;;  %4552 = vmatmul.mubr.bf16.gmra.mxu1 %v8311_v58  ;;  %4905 = vmatmul.mubr.bf16.gmra.mxu0 %v8312_v59 }
 0x10b   :  { %12510 = vst [vmem:[#allocation6_spill] sm:$0xff] %v9779_v7  ;;  %4561 = vmatprep.mubr.bf16.mxu1 %v8313_v0  ;;  %4914 = vmatprep.mubr.bf16.mxu0 %v8315_v1  ;;  %v8486_v0 = vld [vmem:[%s12502_s1 + $0x494] ss:$8 sps:$4 sm:$0xff]  }
 0x10c   :  { %v9781_v8 = vpop.f32.mrf.mxu0  ;;  %v9783_v9 = vpop.f32.mrf.mxu1  ;;  %5516 = vmatprep.subr.bf16.mxu0 %v8486_v0  ;;  %v8369_v0 = vld [vmem:[%s12503_s0 + $0x70c] ss:$56 sps:$4 sm:$0xff]  }
 0x10d   :  { %12511 = vst [vmem:[#allocation7_spill] sm:$0xff] %v9783_v9  ;;  %5517 = vmatpush2.bf16.msra.mxu0 %v8484_v5  ;;  %v8372_v5 = vld [vmem:[%s12503_s0 + $0x714] ss:$56 sps:$4 sm:$0xff]  }
 0x10e   :  { %v9791_v12 = vpop.f32.mrf.mxu0  ;;  %v9793_v13 = vpop.f32.mrf.mxu1 }
 0x10f   :  { %12512 = vst [vmem:[#allocation8_spill] sm:$0xff] %v9793_v13 }
 0x110   :  { %v9801_v16 = vpop.f32.mrf.mxu0  ;;  %v9803_v17 = vpop.f32.mrf.mxu1 }
 0x111   :  { %12513 = vst [vmem:[#allocation9_spill] sm:$0xff] %v9803_v17 }
 0x112   :  { %v9805_v18 = vpop.f32.mrf.mxu0  ;;  %v9807_v19 = vpop.f32.mrf.mxu1  ;;  %4562 = vmatmul.mubr.bf16.gmra.mxu1 %v8317_v10  ;;  %4915 = vmatmul.mubr.bf16.gmra.mxu0 %v8318_v11 }
 0x113   :  { %12514 = vst [vmem:[#allocation10_spill] sm:$0xff] %v9807_v19  ;;  %4571 = vmatprep.mubr.bf16.mxu1 %v8325_v14  ;;  %4924 = vmatprep.mubr.bf16.mxu0 %v8327_v15 }
 0x114   :  { %v9809_v20 = vpop.f32.mrf.mxu0  ;;  %v9811_v21 = vpop.f32.mrf.mxu1 }
 0x115   :  { %12515 = vst [vmem:[#allocation11_spill] sm:$0xff] %v9811_v21 }
 0x116   :  { %v9825_v26 = vpop.f32.mrf.mxu0  ;;  %v9827_v27 = vpop.f32.mrf.mxu1 }
 0x117   :  { %12516 = vst [vmem:[#allocation12_spill] sm:$0xff] %v9827_v27 }
 0x118   :  { %v9838_v31 = vpop.f32.mrf.mxu0  ;;  %v9840_v32 = vpop.f32.mrf.mxu1 }
 0x119   :  { %12517 = vst [vmem:[#allocation13_spill] sm:$0xff] %v9840_v32 }
 0x11a   :  { %v9845_v34 = vpop.f32.mrf.mxu0  ;;  %v9847_v35 = vpop.f32.mrf.mxu1  ;;  %4572 = vmatmul.mubr.bf16.gmra.mxu1 %v8329_v22  ;;  %4925 = vmatmul.mubr.bf16.gmra.mxu0 %v8330_v23  ;;  %v8349_v22 = vld [vmem:[%s12503_s0 + $0x628] ss:$56 sps:$4 sm:$0xff]  }
 0x11b   :  { %12518 = vst [vmem:[#allocation14_spill] sm:$0xff] %v9847_v35  ;;  %4581 = vmatprep.mubr.bf16.mxu1 %v8333_v28  ;;  %4934 = vmatprep.mubr.bf16.mxu0 %v8336_v29  ;;  %v8352_v23 = vld [vmem:[%s12503_s0 + $0x630] ss:$56 sps:$4 sm:$0xff]   ;;  %v8363_v28 = vld [vmem:[%s12503_s0 + $0x69c] ss:$56 sps:$4 sm:$0xff]  }
 0x11c   :  { %v9849_v36 = vpop.f32.mrf.mxu0  ;;  %v9851_v37 = vpop.f32.mrf.mxu1  ;;  %v8366_v29 = vld [vmem:[%s12503_s0 + $0x6a4] ss:$56 sps:$4 sm:$0xff]  }
 0x11d   :  { %12519 = vst [vmem:[#allocation15_spill] sm:$0xff] %v9851_v37 }
 0x11e   :  { %v9859_v40 = vpop.f32.mrf.mxu0  ;;  %v9861_v41 = vpop.f32.mrf.mxu1 }
 0x11f   :  { %12520 = vst [vmem:[#allocation16_spill] sm:$0xff] %v9861_v41  ;;  %v8397_v41 = vld [vmem:[%s12503_s0 + $0x858] ss:$56 sps:$4 sm:$0xff]  }
 0x120   :  { %v9869_v44 = vpop.f32.mrf.mxu0  ;;  %v9871_v45 = vpop.f32.mrf.mxu1 }
 0x121   :  { %12521 = vst [vmem:[#allocation17_spill] sm:$0xff] %v9871_v45 }
 0x122   :  { %v9873_v46 = vpop.f32.mrf.mxu0  ;;  %v9875_v47 = vpop.f32.mrf.mxu1  ;;  %4582 = vmatmul.mubr.bf16.gmra.mxu1 %v8331_v38  ;;  %4935 = vmatmul.mubr.bf16.gmra.mxu0 %v8334_v39 }
 0x123   :  { %12522 = vst [vmem:[#allocation18_spill] sm:$0xff] %v9875_v47  ;;  %4591 = vmatprep.mubr.bf16.mxu1 %v8345_v42  ;;  %4944 = vmatprep.mubr.bf16.mxu0 %v8348_v43 }
 0x124   :  { %v9877_v48 = vpop.f32.mrf.mxu0  ;;  %v9879_v49 = vpop.f32.mrf.mxu1 }
 0x125   :  { %12523 = vst [vmem:[#allocation19_spill] sm:$0xff] %v9879_v49  ;;  %v8385_v49 = vld [vmem:[%s12503_s0 + $0x7e8] ss:$56 sps:$4 sm:$0xff]  }
 0x126   :  { %v9893_v58 = vpop.f32.mrf.mxu0  ;;  %v9895_v59 = vpop.f32.mrf.mxu1 }
 0x127   :  { %12524 = vst [vmem:[#allocation20_spill] sm:$0xff] %v9895_v59 }
 0x128   :  { %v9906_v1 = vpop.f32.mrf.mxu0  ;;  %v9908_v2 = vpop.f32.mrf.mxu1 }
 0x129   :  { %12525 = vst [vmem:[#allocation21_spill] sm:$0xff] %v9908_v2 }
 0x12a   :  { %v9913_v10 = vpop.f32.mrf.mxu0  ;;  %v9915_v11 = vpop.f32.mrf.mxu1  ;;  %4592 = vmatmul.mubr.bf16.gmra.mxu1 %v8343_v50  ;;  %4945 = vmatmul.mubr.bf16.gmra.mxu0 %v8346_v51  ;;  %v8361_v50 = vld [vmem:[%s12503_s0 + $0x698] ss:$56 sps:$4 sm:$0xff]  }
 0x12b   :  { %12526 = vst [vmem:[#allocation22_spill] sm:$0xff] %v9915_v11  ;;  %4601 = vmatprep.mubr.bf16.mxu1 %v8351_v60  ;;  %4954 = vmatprep.mubr.bf16.mxu0 %v8354_v61  ;;  %v8364_v51 = vld [vmem:[%s12503_s0 + $0x6a0] ss:$56 sps:$4 sm:$0xff]  }
 0x12c   :  { %v9917_v14 = vpop.f32.mrf.mxu0  ;;  %v9919_v15 = vpop.f32.mrf.mxu1 }
 0x12d   :  { %12527 = vst [vmem:[#allocation23_spill] sm:$0xff] %v9919_v15 }
 0x12e   :  { %v9927_v24 = vpop.f32.mrf.mxu0  ;;  %v9929_v25 = vpop.f32.mrf.mxu1 }
 0x12f   :  { %12528 = vst [vmem:[#allocation24_spill] sm:$0xff] %v9929_v25  ;;  %v8379_v25 = vld [vmem:[%s12503_s0 + $0x778] ss:$56 sps:$4 sm:$0xff]  }
 0x130   :  { %v9937_v30 = vpop.f32.mrf.mxu0  ;;  %v9939_v33 = vpop.f32.mrf.mxu1 }
 0x131   :  { %12529 = vst [vmem:[#allocation25_spill] sm:$0xff] %v9939_v33 }
 0x132   :  { %v9941_v38 = vpop.f32.mrf.mxu0  ;;  %v9943_v39 = vpop.f32.mrf.mxu1  ;;  %4602 = vmatmul.mubr.bf16.gmra.mxu1 %v8349_v22  ;;  %4955 = vmatmul.mubr.bf16.gmra.mxu0 %v8352_v23  ;;  %v8504_v22 = vld [vmem:[%s12502_s1 + $0x484] ss:$8 sps:$4 sm:$0xff]  }
 0x133   :  { %12530 = vst [vmem:[#allocation26_spill] sm:$0xff] %v9943_v39  ;;  %4611 = vmatprep.mubr.bf16.mxu1 %v8363_v28  ;;  %4964 = vmatprep.mubr.bf16.mxu0 %v8366_v29  ;;  %v8502_v29 = vld [vmem:[%s12502_s1 + $0x480] ss:$8 sps:$4 sm:$0xff]  }
 0x134   :  { %v9945_v42 = vpop.f32.mrf.mxu0  ;;  %v9947_v43 = vpop.f32.mrf.mxu1  ;;  %5518 = vmatprep.subr.bf16.mxu0 %v8504_v22  ;;  %v8370_v22 = vld [vmem:[%s12503_s0 + $0x710] ss:$56 sps:$4 sm:$0xff]  }
 0x135   :  { %12531 = vst [vmem:[#allocation27_spill] sm:$0xff] %v9947_v43  ;;  %5519 = vmatpush2.bf16.msra.mxu0 %v8502_v29 }
 0x136   :  { %v9961_v60 = vpop.f32.mrf.mxu0  ;;  %v9963_v61 = vpop.f32.mrf.mxu1 }
 0x137   :  { %12532 = vst [vmem:[#allocation28_spill] sm:$0xff] %v9963_v61 }
 0x138   :  { %v9974_v23 = vpop.f32.mrf.mxu0  ;;  %v9976_v28 = vpop.f32.mrf.mxu1 }
 0x139   :  { %12533 = vst [vmem:[#allocation29_spill] sm:$0xff] %v9976_v28 }
 0x13a   :  { %v9981_v61 = vpop.f32.mrf.mxu0  ;;  %v9983_v43 = vpop.f32.mrf.mxu1  ;;  %4612 = vmatmul.mubr.bf16.gmra.mxu1 %v8361_v50  ;;  %4965 = vmatmul.mubr.bf16.gmra.mxu0 %v8364_v51  ;;  %v8381_v50 = vld [vmem:[%s12503_s0 + $0x77c] ss:$56 sps:$4 sm:$0xff]  }
 0x13b   :  { %12534 = vst [vmem:[#allocation30_spill] sm:$0xff] %v9983_v43  ;;  %4621 = vmatprep.mubr.bf16.mxu1 %v8369_v0  ;;  %4974 = vmatprep.mubr.bf16.mxu0 %v8372_v5  ;;  %v8384_v51 = vld [vmem:[%s12503_s0 + $0x784] ss:$56 sps:$4 sm:$0xff]  }
 0x13c   :  { %v9985_v53 = vpop.f32.mrf.mxu0  ;;  %v9987_v39 = vpop.f32.mrf.mxu1 }
 0x13d   :  { %12535 = vst [vmem:[#allocation31_spill] sm:$0xff] %v9987_v39 }
 0x13e   :  { %v9995_v28 = vpop.f32.mrf.mxu0  ;;  %v9997_v43 = vpop.f32.mrf.mxu1 }
 0x13f   :  { %12536 = vst [vmem:[#allocation32_spill] sm:$0xff] %v9997_v43 }
 0x140   :  { %v10005_v0 = vpop.f32.mrf.mxu0  ;;  %v10007_v5 = vpop.f32.mrf.mxu1 }
 0x141   :  { %12537 = vst [vmem:[#allocation33_spill] sm:$0xff] %v10007_v5  ;;  %v8382_v5 = vld [vmem:[%s12503_s0 + $0x780] ss:$56 sps:$4 sm:$0xff]  }
 0x142   :  { %v10009_v39 = vpop.f32.mrf.mxu0  ;;  %v10011_v33 = vpop.f32.mrf.mxu1  ;;  %4622 = vmatmul.mubr.bf16.gmra.mxu1 %v8367_v52  ;;  %4975 = vmatmul.mubr.bf16.gmra.mxu0 %v8370_v22 }
 0x143   :  { %12538 = vst [vmem:[#allocation34_spill] sm:$0xff] %v10011_v33  ;;  %4631 = vmatprep.mubr.bf16.mxu1 %v8381_v50  ;;  %4984 = vmatprep.mubr.bf16.mxu0 %v8384_v51  ;;  %v8519_v33 = vld [vmem:[%s12502_s1 + $0x574] ss:$8 sps:$4 sm:$0xff]   ;;  %v8387_v50 = vld [vmem:[%s12503_s0 + $0x7ec] ss:$56 sps:$4 sm:$0xff]  }
 0x144   :  { %v10013_v29 = vpop.f32.mrf.mxu0  ;;  %v10015_v43 = vpop.f32.mrf.mxu1  ;;  %v8390_v51 = vld [vmem:[%s12503_s0 + $0x7f4] ss:$56 sps:$4 sm:$0xff]   ;;  %5841 = vmatprep.subr.bf16.mxu1 %v8519_v33 }
 0x145   :  { %12539 = vst [vmem:[#allocation35_spill] sm:$0xff] %v10015_v43  ;;  %v8522_v43 = vld [vmem:[%s12502_s1 + $0x674] ss:$8 sps:$4 sm:$0xff]  }
 0x146   :  { %v10026_v52 = vpop.f32.mrf.mxu0  ;;  %v10028_v22 = vpop.f32.mrf.mxu1  ;;  %6194 = vmatprep.subr.bf16.mxu0 %v8522_v43  ;;  %v8388_v43 = vld [vmem:[%s12503_s0 + $0x7f0] ss:$56 sps:$4 sm:$0xff]  }
 0x147   :  { %12540 = vst [vmem:[#allocation36_spill] sm:$0xff] %v10028_v22 }
 0x148   :  { %v10039_v15 = vpop.f32.mrf.mxu0  ;;  %v10041_v11 = vpop.f32.mrf.mxu1 }
 0x149   :  { %12541 = vst [vmem:[#allocation37_spill] sm:$0xff] %v10041_v11 }
 0x14a   :  { %v10043_v2 = vpop.f32.mrf.mxu0  ;;  %v10045_v22 = vpop.f32.mrf.mxu1  ;;  %4632 = vmatmul.mubr.bf16.gmra.mxu1 %v8379_v25  ;;  %4985 = vmatmul.mubr.bf16.gmra.mxu0 %v8382_v5  ;;  %v8399_v25 = vld [vmem:[%s12503_s0 + $0x85c] ss:$56 sps:$4 sm:$0xff]  }
 0x14b   :  { %12542 = vst [vmem:[#allocation38_spill] sm:$0xff] %v10045_v22  ;;  %4641 = vmatprep.mubr.bf16.mxu1 %v8387_v50  ;;  %4994 = vmatprep.mubr.bf16.mxu0 %v8390_v51  ;;  %v8402_v5 = vld [vmem:[%s12503_s0 + $0x864] ss:$56 sps:$4 sm:$0xff]  }
 0x14c   :  { %v10047_v59 = vpop.f32.mrf.mxu0  ;;  %v10049_v33 = vpop.f32.mrf.mxu1 }
 0x14d   :  { %12543 = vst [vmem:[#allocation39_spill] sm:$0xff] %v10049_v33 }
 0x14e   :  { %v10057_v11 = vpop.f32.mrf.mxu0  ;;  %v10059_v47 = vpop.f32.mrf.mxu1 }
 0x14f   :  { %12544 = vst [vmem:[#allocation40_spill] sm:$0xff] %v10059_v47 }
 0x150   :  { %v10067_v50 = vpop.f32.mrf.mxu0  ;;  %v10069_v51 = vpop.f32.mrf.mxu1 }
 0x151   :  { %12545 = vst [vmem:[#allocation41_spill] sm:$0xff] %v10069_v51  ;;  %v8400_v51 = vld [vmem:[%s12503_s0 + $0x860] ss:$56 sps:$4 sm:$0xff]  }
 0x152   :  { %v10071_v33 = vpop.f32.mrf.mxu0  ;;  %v10073_v22 = vpop.f32.mrf.mxu1  ;;  %4642 = vmatmul.mubr.bf16.gmra.mxu1 %v8385_v49  ;;  %4995 = vmatmul.mubr.bf16.gmra.mxu0 %v8388_v43  ;;  %v8405_v49 = vld [vmem:[%s12503_s0 + $0x8cc] ss:$56 sps:$4 sm:$0xff]  }
 0x153   :  { %12546 = vst [vmem:[#allocation42_spill] sm:$0xff] %v10073_v22  ;;  %4651 = vmatprep.mubr.bf16.mxu1 %v8399_v25  ;;  %5004 = vmatprep.mubr.bf16.mxu0 %v8402_v5  ;;  %v8408_v43 = vld [vmem:[%s12503_s0 + $0x8d4] ss:$56 sps:$4 sm:$0xff]  }
 0x154   :  { %v10075_v47 = vpop.f32.mrf.mxu0  ;;  %v10077_v45 = vpop.f32.mrf.mxu1 }
 0x155   :  { %12547 = vst [vmem:[#allocation43_spill] sm:$0xff] %v10077_v45 }
 0x156   :  { %v10085_v37 = vpop.f32.mrf.mxu0  ;;  %v10087_v35 = vpop.f32.mrf.mxu1 }
 0x157   :  { %12548 = vst [vmem:[#allocation44_spill] sm:$0xff] %v10087_v35 }
 0x158   :  { %v10095_v25 = vpop.f32.mrf.mxu0  ;;  %v10097_v5 = vpop.f32.mrf.mxu1 }
 0x159   :  { %12549 = vst [vmem:[#allocation45_spill] sm:$0xff] %v10097_v5  ;;  %v8403_v5 = vld [vmem:[%s12503_s0 + $0x8c8] ss:$56 sps:$4 sm:$0xff]  }
 0x15a   :  { %v10099_v45 = vpop.f32.mrf.mxu0  ;;  %v10101_v22 = vpop.f32.mrf.mxu1  ;;  %4652 = vmatmul.mubr.bf16.gmra.mxu1 %v8397_v41  ;;  %5005 = vmatmul.mubr.bf16.gmra.mxu0 %v8400_v51  ;;  %v8417_v41 = vld [vmem:[%s12503_s0 + $0x93c] ss:$56 sps:$4 sm:$0xff]  }
 0x15b   :  { %12550 = vst [vmem:[#allocation46_spill] sm:$0xff] %v10101_v22  ;;  %4661 = vmatprep.mubr.bf16.mxu1 %v8405_v49  ;;  %5014 = vmatprep.mubr.bf16.mxu0 %v8408_v43  ;;  %v8406_v22 = vld [vmem:[%s12503_s0 + $0x8d0] ss:$56 sps:$4 sm:$0xff]   ;;  %v8420_v51 = vld [vmem:[%s12503_s0 + $0x944] ss:$56 sps:$4 sm:$0xff]  }
 0x15c   :  { %v10103_v35 = vpop.f32.mrf.mxu0  ;;  %v10105_v32 = vpop.f32.mrf.mxu1 }
 0x15d   :  { %12551 = vst [vmem:[#allocation47_spill] sm:$0xff] %v10105_v32 }
 0x15e   :  { %v10107_v27 = vpop.f32.mrf.mxu0  ;;  %v10109_v21 = vpop.f32.mrf.mxu1 }
 0x15f   :  { %12552 = vst [vmem:[#allocation48_spill] sm:$0xff] %v10109_v21 }
 0x160   :  { %v10123_v49 = vpop.f32.mrf.mxu0  ;;  %v10125_v43 = vpop.f32.mrf.mxu1 }
 0x161   :  { %12553 = vst [vmem:[#allocation49_spill] sm:$0xff] %v10123_v49  ;;  %12554 = vst [vmem:[#allocation50_spill] sm:$0xff] %v10125_v43  ;;  %v8415_v43 = vld [vmem:[%s12503_s0 + $0x938] ss:$56 sps:$4 sm:$0xff]  }
 0x162   :  { %v10127_v21 = vpop.f32.mrf.mxu0  ;;  %v10129_v32 = vpop.f32.mrf.mxu1  ;;  %4662 = vmatmul.mubr.bf16.gmra.mxu1 %v8403_v5  ;;  %5015 = vmatmul.mubr.bf16.gmra.mxu0 %v8406_v22  ;;  %v8423_v22 = vld [vmem:[%s12503_s0 + $0x9ac] ss:$56 sps:$4 sm:$0xff]  }
 0x163   :  { %12555 = vst [vmem:[#allocation51_spill] sm:$0xff] %v10127_v21  ;;  %12556 = vst [vmem:[#allocation52_spill] sm:$0xff] %v10129_v32  ;;  %4671 = vmatprep.mubr.bf16.mxu1 %v8417_v41  ;;  %5024 = vmatprep.mubr.bf16.mxu0 %v8420_v51  ;;  %v8418_v32 = vld [vmem:[%s12503_s0 + $0x940] ss:$56 sps:$4 sm:$0xff]   ;;  %v8426_v5 = vld [vmem:[%s12503_s0 + $0x9b4] ss:$56 sps:$4 sm:$0xff]  }
 0x164   :  { %v10131_v19 = vpop.f32.mrf.mxu0  ;;  %v10133_v17 = vpop.f32.mrf.mxu1 }
 0x165   :  { %12557 = vst [vmem:[#allocation53_spill] sm:$0xff] %v10131_v19  ;;  %12558 = vst [vmem:[#allocation54_spill] sm:$0xff] %v10133_v17 }
 0x166   :  { %v10135_v13 = vpop.f32.mrf.mxu0  ;;  %v10137_v9 = vpop.f32.mrf.mxu1 }
 0x167   :  { %12559 = vst [vmem:[#allocation55_spill] sm:$0xff] %v10135_v13  ;;  %12560 = vst [vmem:[#allocation56_spill] sm:$0xff] %v10137_v9 }
 0x168   :  { %v10151_v41 = vpop.f32.mrf.mxu0  ;;  %v10153_v51 = vpop.f32.mrf.mxu1 }
 0x169   :  { %12561 = vst [vmem:[#allocation57_spill] sm:$0xff] %v10151_v41  ;;  %12562 = vst [vmem:[#allocation58_spill] sm:$0xff] %v10153_v51  ;;  %v8421_v51 = vld [vmem:[%s12503_s0 + $0x9a8] ss:$56 sps:$4 sm:$0xff]  }
 0x16a   :  { %v10155_v9 = vpop.f32.mrf.mxu0  ;;  %v10157_v17 = vpop.f32.mrf.mxu1  ;;  %4672 = vmatmul.mubr.bf16.gmra.mxu1 %v8415_v43  ;;  %5025 = vmatmul.mubr.bf16.gmra.mxu0 %v8418_v32  ;;  %v8435_v32 = vld [vmem:[%s12503_s0 + $0xa1c] ss:$56 sps:$4 sm:$0xff]  }
 0x16b   :  { %12563 = vst [vmem:[#allocation59_spill] sm:$0xff] %v10155_v9  ;;  %12564 = vst [vmem:[#allocation60_spill] sm:$0xff] %v10157_v17  ;;  %4681 = vmatprep.mubr.bf16.mxu1 %v8423_v22  ;;  %5034 = vmatprep.mubr.bf16.mxu0 %v8426_v5  ;;  %v8424_v17 = vld [vmem:[%s12503_s0 + $0x9b0] ss:$56 sps:$4 sm:$0xff]   ;;  %v8438_v43 = vld [vmem:[%s12503_s0 + $0xa24] ss:$56 sps:$4 sm:$0xff]  }
 0x16c   :  { %v10159_v7 = vpop.f32.mrf.mxu0  ;;  %v10161_v4 = vpop.f32.mrf.mxu1 }
 0x16d   :  { %12565 = vst [vmem:[#allocation61_spill] sm:$0xff] %v10159_v7  ;;  %12566 = vst [vmem:[#allocation62_spill] sm:$0xff] %v10161_v4 }
 0x16e   :  { %v10163_v63 = vpop.f32.mrf.mxu0  ;;  %v10165_v57 = vpop.f32.mrf.mxu1 }
 0x16f   :  { %12567 = vst [vmem:[#allocation63_spill] sm:$0xff] %v10163_v63  ;;  %12568 = vst [vmem:[#allocation64_spill] sm:$0xff] %v10165_v57 }
 0x170   :  { %v10179_v22 = vpop.f32.mrf.mxu0  ;;  %v10181_v5 = vpop.f32.mrf.mxu1 }
 0x171   :  { %12569 = vst [vmem:[#allocation65_spill] sm:$0xff] %v10179_v22  ;;  %12570 = vst [vmem:[#allocation66_spill] sm:$0xff] %v10181_v5  ;;  %v8433_v5 = vld [vmem:[%s12503_s0 + $0xa18] ss:$56 sps:$4 sm:$0xff]  }
 0x172   :  { %v10183_v57 = vpop.f32.mrf.mxu0  ;;  %v10185_v4 = vpop.f32.mrf.mxu1  ;;  %4682 = vmatmul.mubr.bf16.gmra.mxu1 %v8421_v51  ;;  %5035 = vmatmul.mubr.bf16.gmra.mxu0 %v8424_v17  ;;  %v8436_v51 = vld [vmem:[%s12503_s0 + $0xa20] ss:$56 sps:$4 sm:$0xff]   ;;  %v682_v17 = vshrl.u32 %v681_v55, 7 }
 0x173   :  { %12571 = vst [vmem:[#allocation67_spill] sm:$0xff] %v10183_v57  ;;  %12572 = vst [vmem:[#allocation68_spill] sm:$0xff] %v10185_v4  ;;  %4691 = vmatprep.mubr.bf16.mxu1 %v8435_v32  ;;  %5044 = vmatprep.mubr.bf16.mxu0 %v8438_v43  ;;  %v8441_v32 = vld [vmem:[%s12503_s0 + $0xa8c] ss:$56 sps:$4 sm:$0xff]   ;;  %v679_v57 = vld [vmem:[%s12504_s2] sm:$0x3] }
 0x174   :  { %v10187_v63 = vpop.f32.mrf.mxu0  ;;  %v10189_v7 = vpop.f32.mrf.mxu1  ;;  %v8444_v43 = vld [vmem:[%s12503_s0 + $0xa94] ss:$56 sps:$4 sm:$0xff]   ;;  %v687_v55 = vsub.s32 1, %v682_v17 }
 0x175   :  { %12573 = vst [vmem:[#allocation69_spill] sm:$0xff] %v10187_v63  ;;  %12574 = vst [vmem:[#allocation70_spill] sm:$0xff] %v10189_v7  ;;  %v683_v63 = vsub.s32 0, %v682_v17 }
 0x176   :  { %v10191_v9 = vpop.f32.mrf.mxu0  ;;  %v10193_v41 = vpop.f32.mrf.mxu1 }
 0x177   :  { %12575 = vst [vmem:[#allocation71_spill] sm:$0xff] %v10191_v9  ;;  %12576 = vst [vmem:[#allocation72_spill] sm:$0xff] %v10193_v41  ;;  %v10232_v17 = vrot.slane %v679_v57, %v683_v63 }
 0x178   :  { %v10207_v7 = vpop.f32.mrf.mxu0  ;;  %v10209_v41 = vpop.f32.mrf.mxu1 }
 0x179   :  { %12577 = vst [vmem:[#allocation73_spill] sm:$0xff] %v10207_v7  ;;  %12578 = vst [vmem:[#allocation74_spill] sm:$0xff] %v10209_v41 }
 0x17a   :  { %v10211_v4 = vpop.f32.mrf.mxu0  ;;  %v10213_v9 = vpop.f32.mrf.mxu1  ;;  %4692 = vmatmul.mubr.bf16.gmra.mxu1 %v8433_v5  ;;  %5045 = vmatmul.mubr.bf16.gmra.mxu0 %v8436_v51  ;;  %v8439_v5 = vld [vmem:[%s12503_s0 + $0xa88] ss:$56 sps:$4 sm:$0xff]  }
 0x17b   :  { %12579 = vst [vmem:[#allocation75_spill] sm:$0xff] %v10211_v4  ;;  %12580 = vst [vmem:[#allocation76_spill] sm:$0xff] %v10213_v9  ;;  %4701 = vmatprep.mubr.bf16.mxu1 %v8441_v32  ;;  %5054 = vmatprep.mubr.bf16.mxu0 %v8444_v43  ;;  %v8442_v51 = vld [vmem:[%s12503_s0 + $0xa90] ss:$56 sps:$4 sm:$0xff]   ;;  %v10234_v32 = vrot.slane %v679_v57, %v687_v55  ;;  %v8453_v43 = vld [vmem:[%s12503_s0 + $0xafc] ss:$56 sps:$4 sm:$0xff]  }
 0x17c   :  { %v10218_v22 = vpop.f32.mrf.mxu0  ;;  %v10220_v13 = vpop.f32.mrf.mxu1 }
 0x17d   :  { %12581 = vst [vmem:[#allocation77_spill] sm:$0xff] %v10218_v22  ;;  %12582 = vst [vmem:[#allocation78_spill] sm:$0xff] %v10220_v13  ;;  %v4113_v57 = vadd.f32 %v9741_v56, %v10234_v32  ;;  %v8454_v56 = vld [vmem:[%s12503_s0 + $0xb00] ss:$56 sps:$4 sm:$0xff]  }
 0x17e   :  { %v10222_v7 = vpop.f32.mrf.mxu0  ;;  %v10224_v41 = vpop.f32.mrf.mxu1 }
 0x17f   :  { %12583 = vst [vmem:[#allocation79_spill] sm:$0xff] %v10222_v7  ;;  %12584 = vst [vmem:[#allocation80_spill] sm:$0xff] %v10224_v41  ;;  %v8456_v41 = vld [vmem:[%s12503_s0 + $0xb04] ss:$56 sps:$4 sm:$0xff]   ;;  %v4111_v7 = vadd.f32 %v9737_v54, %v10232_v17 }
 0x180   :  { %v10242_v13 = vpop.f32.mrf.mxu0  ;;  %v10244_v9 = vpop.f32.mrf.mxu1 }
 0x181   :  { %12585 = vst [vmem:[#allocation81_spill] sm:$0xff] %v10242_v13  ;;  %12586 = vst [vmem:[#allocation82_spill] sm:$0xff] %v10244_v9  ;;  %v4115_v13 = vadd.f32 %v9757_v62, %v10232_v17  ;;  %v8459_v62 = vld [vmem:[%s12503_s0 + $0xb6c] ss:$56 sps:$4 sm:$0xff]  }
 0x182   :  { %v4463_v22 = vpop.f32.mrf.mxu1  ;;  %4702 = vmatmul.mubr.bf16.gmra.mxu1 %v8439_v5  ;;  %v4816_v63 = vpop.f32.mrf.mxu0  ;;  %5055 = vmatmul.mubr.bf16.gmra.mxu0 %v8442_v51  ;;  %v8451_v5 = vld [vmem:[%s12503_s0 + $0xaf8] ss:$56 sps:$4 sm:$0xff]  }
 0x183   :  { %v4464_v55 = vadd.f32 %v4463_v22, %v4111_v7  ;;  %4711 = vmatprep.mubr.bf16.mxu1 %v8453_v43  ;;  %5064 = vmatprep.mubr.bf16.mxu0 %v8456_v41  ;;  %v4117_v7 = vadd.f32 %v9770_v3, %v10234_v32 }
 0x184   :  { %v4465_v4 = vpop.f32.mrf.mxu1  ;;  %v4818_v19 = vpop.f32.mrf.mxu0 }
 0x185   :  { %v10252_v21 = vadd.f32 %v4816_v63, %v4464_v55  ;;  %v4466_v9 = vadd.f32 %v4465_v4, %v4113_v57  ;;  %v8462_v4 = vld [vmem:[%s12503_s0 + $0xb74] ss:$56 sps:$4 sm:$0xff]   ;;  %v4121_v63 = vadd.f32 %v9777_v6, %v10232_v17  ;;  %v4125_v6 = vadd.f32 %v9791_v12, %v10232_v17 }
 0x186   :  { %v4467_v49 = vpop.f32.mrf.mxu1  ;;  %v4820_v54 = vpop.f32.mrf.mxu0  ;;  %v8471_v12 = vld [vmem:[%s12503_s0 + $0xbdc] ss:$56 sps:$4 sm:$0xff]  }
 0x187   :  { %12587 = vst [vmem:[#allocation83_spill] sm:$0xff] %v10252_v21  ;;  %v10262_v41 = vadd.f32 %v4818_v19, %v4466_v9  ;;  %v4468_v22 = vadd.f32 %v4467_v49, %v4115_v13  ;;  %v4123_v13 = vadd.f32 %v9781_v8, %v10234_v32  ;;  %v8460_v8 = vld [vmem:[%s12503_s0 + $0xb70] ss:$56 sps:$4 sm:$0xff]  }
 0x188   :  { %v4469_v51 = vpop.f32.mrf.mxu1  ;;  %v4822_v43 = vpop.f32.mrf.mxu0 }
 0x189   :  { %12588 = vst [vmem:[#allocation84_spill] sm:$0xff] %v10262_v41  ;;  %v10272_v57 = vadd.f32 %v4820_v54, %v4468_v22  ;;  %v4470_v55 = vadd.f32 %v4469_v51, %v4117_v7 }
 0x18a   :  { %v4473_v3 = vpop.f32.mrf.mxu1  ;;  %4712 = vmatmul.mubr.bf16.gmra.mxu1 %v8451_v5  ;;  %v4826_v9 = vpop.f32.mrf.mxu0  ;;  %5065 = vmatmul.mubr.bf16.gmra.mxu0 %v8454_v56  ;;  %v8457_v56 = vld [vmem:[%s12503_s0 + $0xb68] ss:$56 sps:$4 sm:$0xff]  }
 0x18b   :  { %v10276_v19 = vadd.f32 %v4822_v43, %v4470_v55  ;;  %v4474_v49 = vadd.f32 %v4473_v3, %v4121_v63  ;;  %4721 = vmatprep.mubr.bf16.mxu1 %v8459_v62  ;;  %5074 = vmatprep.mubr.bf16.mxu0 %v8462_v4  ;;  %v4127_v62 = vadd.f32 %v9801_v16, %v10234_v32 }
 0x18c   :  { %v4475_v41 = vpop.f32.mrf.mxu1  ;;  %v4828_v21 = vpop.f32.mrf.mxu0  ;;  %v4131_v55 = vadd.f32 %v9805_v18, %v10232_v17  ;;  %v4135_v18 = vadd.f32 %v9825_v26, %v10232_v17  ;;  %v8477_v26 = vld [vmem:[%s12503_s0 + $0xc4c] ss:$56 sps:$4 sm:$0xff]  }
 0x18d   :  { %v10280_v54 = vadd.f32 %v4826_v9, %v4474_v49  ;;  %v4476_v7 = vadd.f32 %v4475_v41, %v4123_v13  ;;  %v8474_v41 = vld [vmem:[%s12503_s0 + $0xbe4] ss:$56 sps:$4 sm:$0xff]   ;;  %v4133_v13 = vadd.f32 %v9809_v20, %v10234_v32  ;;  %v8472_v20 = vld [vmem:[%s12503_s0 + $0xbe0] ss:$56 sps:$4 sm:$0xff]  }
 0x18e   :  { %v4477_v22 = vpop.f32.mrf.mxu1  ;;  %v4830_v5 = vpop.f32.mrf.mxu0 }
 0x18f   :  { %v10290_v4 = vadd.f32 %v4828_v21, %v4476_v7  ;;  %v4478_v51 = vadd.f32 %v4477_v22, %v4125_v6 }
 0x190   :  { %v4479_v43 = vpop.f32.mrf.mxu1  ;;  %v4832_v63 = vpop.f32.mrf.mxu0 }
 0x191   :  { %v10300_v3 = vadd.f32 %v4830_v5, %v4478_v51  ;;  %v4480_v9 = vadd.f32 %v4479_v43, %v4127_v62 }
 0x192   :  { %v4483_v16 = vpop.f32.mrf.mxu1  ;;  %4722 = vmatmul.mubr.bf16.gmra.mxu1 %v8457_v56  ;;  %v4836_v21 = vpop.f32.mrf.mxu0  ;;  %5075 = vmatmul.mubr.bf16.gmra.mxu0 %v8460_v8  ;;  %v8469_v8 = vld [vmem:[%s12503_s0 + $0xbd8] ss:$56 sps:$4 sm:$0xff]  }
 0x193   :  { %v10304_v49 = vadd.f32 %v4832_v63, %v4480_v9  ;;  %v4484_v6 = vadd.f32 %v4483_v16, %v4131_v55  ;;  %4731 = vmatprep.mubr.bf16.mxu1 %v8471_v12  ;;  %5084 = vmatprep.mubr.bf16.mxu0 %v8474_v41  ;;  %v4137_v12 = vadd.f32 %v9838_v31, %v10234_v32  ;;  %v8480_v63 = vld [vmem:[%s12503_s0 + $0xc54] ss:$56 sps:$4 sm:$0xff]  }
 0x194   :  { %v4485_v7 = vpop.f32.mrf.mxu1  ;;  %v4838_v22 = vpop.f32.mrf.mxu0  ;;  %v4141_v16 = vadd.f32 %v9845_v34, %v10232_v17  ;;  %v4145_v34 = vadd.f32 %v9859_v40, %v10232_v17  ;;  %v8489_v40 = vld [vmem:[%s12503_s0 + $0xcbc] ss:$56 sps:$4 sm:$0xff]  }
 0x195   :  { %v10308_v5 = vadd.f32 %v4836_v21, %v4484_v6  ;;  %v4486_v62 = vadd.f32 %v4485_v7, %v4133_v13  ;;  %v4143_v7 = vadd.f32 %v9849_v36, %v10234_v32  ;;  %v8478_v36 = vld [vmem:[%s12503_s0 + $0xc50] ss:$56 sps:$4 sm:$0xff]  }
 0x196   :  { %v4487_v51 = vpop.f32.mrf.mxu1  ;;  %v4840_v56 = vpop.f32.mrf.mxu0 }
 0x197   :  { %v10318_v41 = vadd.f32 %v4838_v22, %v4486_v62  ;;  %v4488_v43 = vadd.f32 %v4487_v51, %v4135_v18 }
 0x198   :  { %v4489_v55 = vpop.f32.mrf.mxu1  ;;  %v4842_v9 = vpop.f32.mrf.mxu0 }
 0x199   :  { %v10328_v21 = vadd.f32 %v4840_v56, %v4488_v43  ;;  %v4490_v13 = vadd.f32 %v4489_v55, %v4137_v12 }
 0x19a   :  { %v4493_v31 = vpop.f32.mrf.mxu1  ;;  %4732 = vmatmul.mubr.bf16.gmra.mxu1 %v8469_v8  ;;  %v4846_v6 = vpop.f32.mrf.mxu0  ;;  %5085 = vmatmul.mubr.bf16.gmra.mxu0 %v8472_v20  ;;  %v8475_v20 = vld [vmem:[%s12503_s0 + $0xc48] ss:$56 sps:$4 sm:$0xff]  }
 0x19b   :  { %v10332_v22 = vadd.f32 %v4842_v9, %v4490_v13  ;;  %v4494_v18 = vadd.f32 %v4493_v31, %v4141_v16  ;;  %4741 = vmatprep.mubr.bf16.mxu1 %v8477_v26  ;;  %5094 = vmatprep.mubr.bf16.mxu0 %v8480_v63  ;;  %v4147_v26 = vadd.f32 %v9869_v44, %v10234_v32  ;;  %v8492_v9 = vld [vmem:[%s12503_s0 + $0xcc4] ss:$56 sps:$4 sm:$0xff]  }
 0x19c   :  { %v4495_v62 = vpop.f32.mrf.mxu1  ;;  %v4848_v51 = vpop.f32.mrf.mxu0  ;;  %v4151_v31 = vadd.f32 %v9873_v46, %v10232_v17  ;;  %v4155_v46 = vadd.f32 %v9893_v58, %v10232_v17  ;;  %v8495_v58 = vld [vmem:[%s12503_s0 + $0xd2c] ss:$56 sps:$4 sm:$0xff]  }
 0x19d   :  { %v10336_v56 = vadd.f32 %v4846_v6, %v4494_v18  ;;  %v4496_v12 = vadd.f32 %v4495_v62, %v4143_v7  ;;  %v4153_v62 = vadd.f32 %v9877_v48, %v10234_v32  ;;  %v8490_v48 = vld [vmem:[%s12503_s0 + $0xcc0] ss:$56 sps:$4 sm:$0xff]  }
 0x19e   :  { %v4497_v43 = vpop.f32.mrf.mxu1  ;;  %v4850_v8 = vpop.f32.mrf.mxu0 }
 0x19f   :  { %v10346_v63 = vadd.f32 %v4848_v51, %v4496_v12  ;;  %v4498_v55 = vadd.f32 %v4497_v43, %v4145_v34 }
 0x1a0   :  { %v4499_v16 = vpop.f32.mrf.mxu1  ;;  %v4852_v13 = vpop.f32.mrf.mxu0 }
 0x1a1   :  { %v10356_v6 = vadd.f32 %v4850_v8, %v4498_v55  ;;  %v4500_v7 = vadd.f32 %v4499_v16, %v4147_v26 }
 0x1a2   :  { %v4503_v44 = vpop.f32.mrf.mxu1  ;;  %4742 = vmatmul.mubr.bf16.gmra.mxu1 %v8475_v20  ;;  %v4856_v18 = vpop.f32.mrf.mxu0  ;;  %5095 = vmatmul.mubr.bf16.gmra.mxu0 %v8478_v36  ;;  %v8487_v36 = vld [vmem:[%s12503_s0 + $0xcb8] ss:$56 sps:$4 sm:$0xff]  }
 0x1a3   :  { %v10360_v51 = vadd.f32 %v4852_v13, %v4500_v7  ;;  %v4504_v34 = vadd.f32 %v4503_v44, %v4151_v31  ;;  %4751 = vmatprep.mubr.bf16.mxu1 %v8489_v40  ;;  %5104 = vmatprep.mubr.bf16.mxu0 %v8492_v9  ;;  %v4157_v40 = vadd.f32 %v9906_v1, %v10234_v32  ;;  %v8498_v13 = vld [vmem:[%s12503_s0 + $0xd34] ss:$56 sps:$4 sm:$0xff]  }
 0x1a4   :  { %v4505_v12 = vpop.f32.mrf.mxu1  ;;  %v4858_v43 = vpop.f32.mrf.mxu0  ;;  %v4161_v44 = vadd.f32 %v9913_v10, %v10232_v17  ;;  %v4165_v10 = vadd.f32 %v9927_v24, %v10232_v17  ;;  %v8507_v24 = vld [vmem:[%s12503_s0 + $0xd9c] ss:$56 sps:$4 sm:$0xff]  }
 0x1a5   :  { %v10364_v8 = vadd.f32 %v4856_v18, %v4504_v34  ;;  %v4506_v26 = vadd.f32 %v4505_v12, %v4153_v62  ;;  %v4163_v12 = vadd.f32 %v9917_v14, %v10234_v32  ;;  %v8496_v14 = vld [vmem:[%s12503_s0 + $0xd30] ss:$56 sps:$4 sm:$0xff]  }
 0x1a6   :  { %v4507_v55 = vpop.f32.mrf.mxu1  ;;  %v4860_v20 = vpop.f32.mrf.mxu0 }
 0x1a7   :  { %v10374_v9 = vadd.f32 %v4858_v43, %v4506_v26  ;;  %v4508_v16 = vadd.f32 %v4507_v55, %v4155_v46 }
 0x1a8   :  { %v4509_v31 = vpop.f32.mrf.mxu1  ;;  %v4862_v7 = vpop.f32.mrf.mxu0 }
 0x1a9   :  { %v10384_v18 = vadd.f32 %v4860_v20, %v4508_v16  ;;  %v4510_v62 = vadd.f32 %v4509_v31, %v4157_v40 }
 0x1aa   :  { %v4513_v1 = vpop.f32.mrf.mxu1  ;;  %4752 = vmatmul.mubr.bf16.gmra.mxu1 %v8487_v36  ;;  %v4866_v34 = vpop.f32.mrf.mxu0  ;;  %5105 = vmatmul.mubr.bf16.gmra.mxu0 %v8490_v48  ;;  %v8493_v48 = vld [vmem:[%s12503_s0 + $0xd28] ss:$56 sps:$4 sm:$0xff]  }
 0x1ab   :  { %v10388_v43 = vadd.f32 %v4862_v7, %v4510_v62  ;;  %v4514_v46 = vadd.f32 %v4513_v1, %v4161_v44  ;;  %4761 = vmatprep.mubr.bf16.mxu1 %v8495_v58  ;;  %5114 = vmatprep.mubr.bf16.mxu0 %v8498_v13  ;;  %v4167_v58 = vadd.f32 %v9937_v30, %v10234_v32  ;;  %v8510_v7 = vld [vmem:[%s12503_s0 + $0xda4] ss:$56 sps:$4 sm:$0xff]  }
 0x1ac   :  { %v4515_v26 = vpop.f32.mrf.mxu1  ;;  %v4868_v55 = vpop.f32.mrf.mxu0  ;;  %v4171_v1 = vadd.f32 %v9941_v38, %v10232_v17  ;;  %v4175_v38 = vadd.f32 %v9961_v60, %v10232_v17  ;;  %v8513_v60 = vld [vmem:[%s12503_s0 + $0x1c] ss:$56 sps:$4 sm:$0xff]  }
 0x1ad   :  { %v10392_v20 = vadd.f32 %v4866_v34, %v4514_v46  ;;  %v4516_v40 = vadd.f32 %v4515_v26, %v4163_v12  ;;  %v4173_v26 = vadd.f32 %v9945_v42, %v10234_v32  ;;  %v8508_v42 = vld [vmem:[%s12503_s0 + $0xda0] ss:$56 sps:$4 sm:$0xff]  }
 0x1ae   :  { %v4517_v16 = vpop.f32.mrf.mxu1  ;;  %v4870_v36 = vpop.f32.mrf.mxu0 }
 0x1af   :  { %v10402_v13 = vadd.f32 %v4868_v55, %v4516_v40  ;;  %v4518_v31 = vadd.f32 %v4517_v16, %v4165_v10 }
 0x1b0   :  { %v4519_v44 = vpop.f32.mrf.mxu1  ;;  %v4872_v62 = vpop.f32.mrf.mxu0 }
 0x1b1   :  { %v10412_v34 = vadd.f32 %v4870_v36, %v4518_v31  ;;  %v4520_v12 = vadd.f32 %v4519_v44, %v4167_v58 }
 0x1b2   :  { %v4523_v30 = vpop.f32.mrf.mxu1  ;;  %4762 = vmatmul.mubr.bf16.gmra.mxu1 %v8493_v48  ;;  %v4876_v46 = vpop.f32.mrf.mxu0  ;;  %5115 = vmatmul.mubr.bf16.gmra.mxu0 %v8496_v14  ;;  %v8505_v14 = vld [vmem:[%s12503_s0 + $0xd98] ss:$56 sps:$4 sm:$0xff]  }
 0x1b3   :  { %v10416_v55 = vadd.f32 %v4872_v62, %v4520_v12  ;;  %v4524_v10 = vadd.f32 %v4523_v30, %v4171_v1  ;;  %4771 = vmatprep.mubr.bf16.mxu1 %v8507_v24  ;;  %5124 = vmatprep.mubr.bf16.mxu0 %v8510_v7  ;;  %v4177_v24 = vadd.f32 %v9974_v23, %v10234_v32  ;;  %v8516_v62 = vld [vmem:[%s12503_s0 + $0x24] ss:$56 sps:$4 sm:$0xff]  }
 0x1b4   :  { %v4525_v40 = vpop.f32.mrf.mxu1  ;;  %v4878_v16 = vpop.f32.mrf.mxu0  ;;  %v4181_v30 = vadd.f32 %v9981_v61, %v10232_v17  ;;  %v4185_v61 = vadd.f32 %v9995_v28, %v10232_v17  ;;  %v8517_v28 = vld [vmem:[%s12502_s1 + $0x570] ss:$8 sps:$4 sm:$0xff]  }
 0x1b5   :  { %v10420_v36 = vadd.f32 %v4876_v46, %v4524_v10  ;;  %v4526_v58 = vadd.f32 %v4525_v40, %v4173_v26  ;;  %v4183_v40 = vadd.f32 %v9985_v53, %v10234_v32  ;;  %v8514_v53 = vld [vmem:[%s12503_s0 + $0x20] ss:$56 sps:$4 sm:$0xff]  }
 0x1b6   :  { %v4527_v31 = vpop.f32.mrf.mxu1  ;;  %v4880_v48 = vpop.f32.mrf.mxu0 }
 0x1b7   :  { %v10430_v7 = vadd.f32 %v4878_v16, %v4526_v58  ;;  %v4528_v44 = vadd.f32 %v4527_v31, %v4175_v38 }
 0x1b8   :  { %v4529_v1 = vpop.f32.mrf.mxu1  ;;  %v4882_v12 = vpop.f32.mrf.mxu0 }
 0x1b9   :  { %v10440_v46 = vadd.f32 %v4880_v48, %v4528_v44  ;;  %v4530_v26 = vadd.f32 %v4529_v1, %v4177_v24 }
 0x1ba   :  { %v4533_v23 = vpop.f32.mrf.mxu1  ;;  %4772 = vmatmul.mubr.bf16.gmra.mxu1 %v8505_v14  ;;  %v4886_v10 = vpop.f32.mrf.mxu0  ;;  %5125 = vmatmul.mubr.bf16.gmra.mxu0 %v8508_v42  ;;  %v8511_v42 = vld [vmem:[%s12503_s0 + $0x18] ss:$56 sps:$4 sm:$0xff]  }
 0x1bb   :  { %v10444_v16 = vadd.f32 %v4882_v12, %v4530_v26  ;;  %v4534_v38 = vadd.f32 %v4533_v23, %v4181_v30  ;;  %5167 = vmatprep.mubr.bf16.mxu1 %v8513_v60  ;;  %5520 = vmatprep.mubr.bf16.mxu0 %v8516_v62  ;;  %v4187_v60 = vadd.f32 %v10005_v0, %v10234_v32  ;;  %v8520_v12 = vld [vmem:[%s12502_s1 + $0x670] ss:$8 sps:$4 sm:$0xff]   ;;  %v8525_v23 = vld [vmem:[%s12503_s0 + $0x8c] ss:$56 sps:$4 sm:$0xff]  }
 0x1bc   :  { %v4535_v58 = vpop.f32.mrf.mxu1  ;;  %v4888_v31 = vpop.f32.mrf.mxu0  ;;  %v8528_v0 = vld [vmem:[%s12503_s0 + $0x94] ss:$56 sps:$4 sm:$0xff]  }
 0x1bd   :  { %v10448_v48 = vadd.f32 %v4886_v10, %v4534_v38  ;;  %v4536_v24 = vadd.f32 %v4535_v58, %v4183_v40  ;;  %v4191_v10 = vadd.f32 %v10009_v39, %v10232_v17  ;;  %v8537_v58 = vld [vmem:[%s12502_s1 + $0x564] ss:$8 sps:$4 sm:$0xff]  }
 0x1be   :  { %v4537_v44 = vpop.f32.mrf.mxu1  ;;  %v4890_v14 = vpop.f32.mrf.mxu0 }
 0x1bf   :  { %v10458_v62 = vadd.f32 %v4888_v31, %v4536_v24  ;;  %v4538_v1 = vadd.f32 %v4537_v44, %v4185_v61  ;;  %v8546_v31 = vld [vmem:[%s12502_s1 + $0x664] ss:$8 sps:$4 sm:$0xff]   ;;  %v4193_v44 = vadd.f32 %v10013_v29, %v10234_v32  ;;  %v8555_v29 = vld [vmem:[%s12502_s1 + $0x554] ss:$8 sps:$4 sm:$0xff]  }
 0x1c0   :  { %v4539_v30 = vpop.f32.mrf.mxu1  ;;  %v4892_v26 = vpop.f32.mrf.mxu0 }
 0x1c1   :  { %12589 = vst [vmem:[#allocation85_spill] sm:$0xff] %v10458_v62  ;;  %v10474_v40 = vadd.f32 %v4890_v14, %v4538_v1  ;;  %v4540_v38 = vadd.f32 %v4539_v30, %v4187_v60  ;;  %v8535_v14 = vld [vmem:[%s12502_s1 + $0x560] ss:$8 sps:$4 sm:$0xff]  }
 0x1c2   :  { %v4543_v61 = vpop.f32.mrf.mxu1  ;;  %v4896_v24 = vpop.f32.mrf.mxu0  ;;  %5168 = vmatmul.mubr.bf16.vlgmr.msra.gmra.mxu1 %v8511_v42  ;;  %5521 = vmatmul.mubr.bf16.vlgmr.msra.gmra.mxu0 %v8514_v53  ;;  %v8544_v60 = vld [vmem:[%s12502_s1 + $0x660] ss:$8 sps:$4 sm:$0xff]   ;;  %v8564_v42 = vld [vmem:[%s12502_s1 + $0x654] ss:$8 sps:$4 sm:$0xff]   ;;  %v4195_v53 = vadd.f32 %v10026_v52, %v10232_v17 }
 0x1c3   :  { %v10484_v62 = vadd.f32 %v4892_v26, %v4540_v38  ;;  %v4544_v39 = vadd.f32 %v4543_v61, %v4191_v10  ;;  %5842 = vmatpush1.bf16.msra.mxu1 %v8517_v28  ;;  %6195 = vmatpush1.bf16.msra.mxu0 %v8520_v12  ;;  %v4197_v38 = vadd.f32 %v10039_v15, %v10234_v32  ;;  %v8562_v15 = vld [vmem:[%s12502_s1 + $0x650] ss:$8 sps:$4 sm:$0xff]  }
 0x1c4   :  { %v4545_v1 = vpop.f32.mrf.mxu1  ;;  %v4898_v30 = vpop.f32.mrf.mxu0  ;;  %5177 = vmatprep.mubr.bf16.mxu1 %v8525_v23  ;;  %5530 = vmatprep.mubr.bf16.mxu0 %v8528_v0  ;;  %v8523_v23 = vld [vmem:[%s12503_s0 + $0x88] ss:$56 sps:$4 sm:$0xff]  }
 0x1c5   :  { %v10500_v28 = vadd.f32 %v4896_v24, %v4544_v39  ;;  %v4546_v12 = vadd.f32 %v4545_v1, %v4193_v44  ;;  %5843 = vmatprep.subr.bf16.mxu1 %v8537_v58  ;;  %6196 = vmatprep.subr.bf16.mxu0 %v8546_v31  ;;  %v8526_v0 = vld [vmem:[%s12503_s0 + $0x90] ss:$56 sps:$4 sm:$0xff]   ;;  %v8531_v58 = vld [vmem:[%s12503_s0 + $0xfc] ss:$56 sps:$4 sm:$0xff]   ;;  %v4201_v1 = vadd.f32 %v10043_v2, %v10232_v17 }
 0x1c6   :  { %v4547_v26 = vpop.f32.mrf.mxu1  ;;  %v4900_v10 = vpop.f32.mrf.mxu0  ;;  %v8534_v31 = vld [vmem:[%s12503_s0 + $0x104] ss:$56 sps:$4 sm:$0xff]   ;;  %v8553_v39 = vld [vmem:[%s12502_s1 + $0x550] ss:$8 sps:$4 sm:$0xff]  }
 0x1c7   :  { %v10510_v61 = vadd.f32 %v4898_v30, %v4546_v12  ;;  %v4548_v52 = vadd.f32 %v4547_v26, %v4195_v53  ;;  %5844 = vmatpush1.bf16.msra.mxu1 %v8535_v14  ;;  %6197 = vmatpush1.bf16.msra.mxu0 %v8544_v60  ;;  %v8573_v14 = vld [vmem:[%s12502_s1 + $0x544] ss:$8 sps:$4 sm:$0xff]  }
 0x1c8   :  { %v4549_v24 = vpop.f32.mrf.mxu1  ;;  %v4902_v44 = vpop.f32.mrf.mxu0  ;;  %5845 = vmatprep.subr.bf16.mxu1 %v8555_v29  ;;  %6198 = vmatprep.subr.bf16.mxu0 %v8564_v42  ;;  %v8591_v60 = vld [vmem:[%s12502_s1 + $0x644] ss:$8 sps:$4 sm:$0xff]   ;;  %v4203_v42 = vadd.f32 %v10047_v59, %v10234_v32  ;;  %v4205_v59 = vadd.f32 %v10057_v11, %v10232_v17  ;;  %v8532_v11 = vld [vmem:[%s12503_s0 + $0x100] ss:$56 sps:$4 sm:$0xff]  }
 0x1c9   :  { %v10526_v30 = vadd.f32 %v4900_v10, %v4548_v52  ;;  %v4550_v53 = vadd.f32 %v4549_v24, %v4197_v38  ;;  %v8571_v52 = vld [vmem:[%s12502_s1 + $0x540] ss:$8 sps:$4 sm:$0xff]  }
 0x1ca   :  { %v4553_v29 = vpop.f32.mrf.mxu1  ;;  %v4906_v12 = vpop.f32.mrf.mxu0  ;;  %5178 = vmatmul.mubr.bf16.gmra.mxu1 %v8523_v23  ;;  %5531 = vmatmul.mubr.bf16.gmra.mxu0 %v8526_v0  ;;  %v8589_v23 = vld [vmem:[%s12502_s1 + $0x640] ss:$8 sps:$4 sm:$0xff]  }
 0x1cb   :  { %v10536_v26 = vadd.f32 %v4902_v44, %v4550_v53  ;;  %v4554_v2 = vadd.f32 %v4553_v29, %v4201_v1  ;;  %5187 = vmatprep.mubr.bf16.mxu1 %v8531_v58  ;;  %5540 = vmatprep.mubr.bf16.mxu0 %v8534_v31  ;;  %v8588_v58 = vld [vmem:[%s12502_s1 + $0x534] ss:$8 sps:$4 sm:$0xff]   ;;  %v4207_v1 = vadd.f32 %v10067_v50, %v10234_v32  ;;  %v8613_v50 = vld [vmem:[%s12502_s1 + $0x630] ss:$8 sps:$4 sm:$0xff]  }
 0x1cc   :  { %v4555_v10 = vpop.f32.mrf.mxu1  ;;  %v4908_v38 = vpop.f32.mrf.mxu0  ;;  %5846 = vmatpush1.bf16.msra.mxu1 %v8553_v39  ;;  %6199 = vmatpush1.bf16.msra.mxu0 %v8562_v15  ;;  %v8615_v31 = vld [vmem:[%s12502_s1 + $0x634] ss:$8 sps:$4 sm:$0xff]   ;;  %v8529_v15 = vld [vmem:[%s12503_s0 + $0xf8] ss:$56 sps:$4 sm:$0xff]  }
 0x1cd   :  { %v10546_v0 = vadd.f32 %v4906_v12, %v4554_v2  ;;  %v4556_v24 = vadd.f32 %v4555_v10, %v4203_v42  ;;  %5847 = vmatprep.subr.bf16.mxu1 %v8573_v14  ;;  %6200 = vmatprep.subr.bf16.mxu0 %v8591_v60  ;;  %v8540_v60 = vld [vmem:[%s12503_s0 + $0x16c] ss:$56 sps:$4 sm:$0xff]   ;;  %v8586_v2 = vld [vmem:[%s12502_s1 + $0x530] ss:$8 sps:$4 sm:$0xff]   ;;  %v4211_v10 = vadd.f32 %v10071_v33, %v10232_v17 }
 0x1ce   :  { %v4557_v44 = vpop.f32.mrf.mxu1  ;;  %v4910_v39 = vpop.f32.mrf.mxu0  ;;  %v8543_v29 = vld [vmem:[%s12503_s0 + $0x174] ss:$56 sps:$4 sm:$0xff]   ;;  %v4213_v33 = vadd.f32 %v10075_v47, %v10234_v32  ;;  %v4215_v47 = vadd.f32 %v10085_v37, %v10232_v17  ;;  %v8541_v37 = vld [vmem:[%s12503_s0 + $0x170] ss:$56 sps:$4 sm:$0xff]  }
 0x1cf   :  { %v10562_v53 = vadd.f32 %v4908_v38, %v4556_v24  ;;  %v4558_v14 = vadd.f32 %v4557_v44, %v4205_v59 }
 0x1d0   :  { %v4559_v12 = vpop.f32.mrf.mxu1  ;;  %v4912_v42 = vpop.f32.mrf.mxu0  ;;  %5848 = vmatpush1.bf16.msra.mxu1 %v8571_v52  ;;  %6201 = vmatpush1.bf16.msra.mxu0 %v8589_v23  ;;  %v8606_v52 = vld [vmem:[%s12502_s1 + $0x524] ss:$8 sps:$4 sm:$0xff]  }
 0x1d1   :  { %v10578_v38 = vadd.f32 %v4910_v39, %v4558_v14  ;;  %v4560_v59 = vadd.f32 %v4559_v12, %v4207_v1  ;;  %5849 = vmatprep.subr.bf16.mxu1 %v8588_v58  ;;  %6202 = vmatprep.subr.bf16.mxu0 %v8615_v31  ;;  %v8633_v23 = vld [vmem:[%s12502_s1 + $0x624] ss:$8 sps:$4 sm:$0xff]   ;;  %v8604_v31 = vld [vmem:[%s12502_s1 + $0x520] ss:$8 sps:$4 sm:$0xff]  }
 0x1d2   :  { %v4563_v24 = vpop.f32.mrf.mxu1  ;;  %v4916_v44 = vpop.f32.mrf.mxu0  ;;  %5188 = vmatmul.mubr.bf16.gmra.mxu1 %v8529_v15  ;;  %5541 = vmatmul.mubr.bf16.gmra.mxu0 %v8532_v11  ;;  %v8631_v15 = vld [vmem:[%s12502_s1 + $0x620] ss:$8 sps:$4 sm:$0xff]  }
 0x1d3   :  { %v10588_v39 = vadd.f32 %v4912_v42, %v4560_v59  ;;  %v4564_v1 = vadd.f32 %v4563_v24, %v4211_v10  ;;  %5197 = vmatprep.mubr.bf16.mxu1 %v8540_v60  ;;  %5550 = vmatprep.mubr.bf16.mxu0 %v8543_v29  ;;  %v8624_v60 = vld [vmem:[%s12502_s1 + $0x514] ss:$8 sps:$4 sm:$0xff]   ;;  %v4217_v10 = vadd.f32 %v10095_v25, %v10234_v32  ;;  %v8658_v25 = vld [vmem:[%s12502_s1 + $0x610] ss:$8 sps:$4 sm:$0xff]  }
 0x1d4   :  { %v4565_v58 = vpop.f32.mrf.mxu1  ;;  %v4918_v14 = vpop.f32.mrf.mxu0  ;;  %5850 = vmatpush1.bf16.msra.mxu1 %v8586_v2  ;;  %6203 = vmatpush1.bf16.msra.mxu0 %v8613_v50  ;;  %v8660_v29 = vld [vmem:[%s12502_s1 + $0x614] ss:$8 sps:$4 sm:$0xff]   ;;  %v8538_v50 = vld [vmem:[%s12503_s0 + $0x168] ss:$56 sps:$4 sm:$0xff]  }
 0x1d5   :  { %v10598_v11 = vadd.f32 %v4916_v44, %v4564_v1  ;;  %v4566_v12 = vadd.f32 %v4565_v58, %v4213_v33  ;;  %5851 = vmatprep.subr.bf16.mxu1 %v8606_v52  ;;  %6204 = vmatprep.subr.bf16.mxu0 %v8633_v23  ;;  %v8549_v23 = vld [vmem:[%s12503_s0 + $0x1dc] ss:$56 sps:$4 sm:$0xff]   ;;  %v8622_v1 = vld [vmem:[%s12502_s1 + $0x510] ss:$8 sps:$4 sm:$0xff]   ;;  %v4221_v58 = vadd.f32 %v10099_v45, %v10232_v17 }
 0x1d6   :  { %v4567_v42 = vpop.f32.mrf.mxu1  ;;  %v4920_v2 = vpop.f32.mrf.mxu0  ;;  %v8552_v24 = vld [vmem:[%s12503_s0 + $0x1e4] ss:$56 sps:$4 sm:$0xff]  }
 0x1d7   :  { %12590 = vst [vmem:[#allocation86_spill] sm:$0xff] %v10598_v11  ;;  %v10614_v59 = vadd.f32 %v4918_v14, %v4566_v12  ;;  %v4568_v52 = vadd.f32 %v4567_v42, %v4215_v47 }
 0x1d8   :  { %v4569_v44 = vpop.f32.mrf.mxu1  ;;  %v4922_v33 = vpop.f32.mrf.mxu0  ;;  %5852 = vmatpush1.bf16.msra.mxu1 %v8604_v31  ;;  %6205 = vmatpush1.bf16.msra.mxu0 %v8631_v15  ;;  %v8642_v31 = vld [vmem:[%s12502_s1 + $0x504] ss:$8 sps:$4 sm:$0xff]   ;;  %v4223_v15 = vadd.f32 %v10103_v35, %v10234_v32  ;;  %v8657_v35 = vld [vmem:[%s12502_s1 + $0x5f4] ss:$8 sps:$4 sm:$0xff]  }
 0x1d9   :  { %12591 = vst [vmem:[#allocation87_spill] sm:$0xff] %v10614_v59  ;;  %v10630_v14 = vadd.f32 %v4920_v2, %v4568_v52  ;;  %v4570_v47 = vadd.f32 %v4569_v44, %v4217_v10  ;;  %5853 = vmatprep.subr.bf16.mxu1 %v8624_v60  ;;  %6206 = vmatprep.subr.bf16.mxu0 %v8660_v29  ;;  %v8640_v60 = vld [vmem:[%s12502_s1 + $0x500] ss:$8 sps:$4 sm:$0xff]   ;;  %v8684_v52 = vld [vmem:[%s12502_s1 + $0x604] ss:$8 sps:$4 sm:$0xff]   ;;  %v12593_v44 = vld [vmem:[#allocation49_spill] sm:$0xff] }
 0x1da   :  { %v4573_v12 = vpop.f32.mrf.mxu1  ;;  %v4926_v42 = vpop.f32.mrf.mxu0  ;;  %5198 = vmatmul.mubr.bf16.gmra.mxu1 %v8538_v50  ;;  %5551 = vmatmul.mubr.bf16.gmra.mxu0 %v8541_v37  ;;  %v4225_v29 = vadd.f32 %v10107_v27, %v10232_v17  ;;  %v8682_v10 = vld [vmem:[%s12502_s1 + $0x600] ss:$8 sps:$4 sm:$0xff]   ;;  %v8547_v27 = vld [vmem:[%s12503_s0 + $0x1d8] ss:$56 sps:$4 sm:$0xff]  }
 0x1db   :  { %v10637_v59 = vadd.f32 %v4922_v33, %v4570_v47  ;;  %v4574_v11 = vadd.f32 %v4573_v12, %v4221_v58  ;;  %5207 = vmatprep.mubr.bf16.mxu1 %v8549_v23  ;;  %5560 = vmatprep.mubr.bf16.mxu0 %v8552_v24  ;;  %v4227_v33 = vadd.f32 %v12593_v44, %v10234_v32  ;;  %v8558_v58 = vld [vmem:[%s12503_s0 + $0x24c] ss:$56 sps:$4 sm:$0xff]  }
 0x1dc   :  { %v4575_v45 = vpop.f32.mrf.mxu1  ;;  %v4928_v2 = vpop.f32.mrf.mxu0  ;;  %5854 = vmatpush1.bf16.msra.mxu1 %v8622_v1  ;;  %6207 = vmatpush1.bf16.msra.mxu0 %v8658_v25  ;;  %v8561_v47 = vld [vmem:[%s12503_s0 + $0x254] ss:$56 sps:$4 sm:$0xff]  }
 0x1dd   :  { %v10644_v50 = vadd.f32 %v4926_v42, %v4574_v11  ;;  %v4576_v37 = vadd.f32 %v4575_v45, %v4223_v15  ;;  %5855 = vmatprep.subr.bf16.mxu1 %v8642_v31  ;;  %v8550_v11 = vld [vmem:[%s12503_s0 + $0x1e0] ss:$56 sps:$4 sm:$0xff]   ;;  %6208 = vmatprep.subr.bf16.mxu0 %v8684_v52  ;;  %v12595_v15 = vld [vmem:[#allocation51_spill] sm:$0xff] }
 0x1de   :  { %v4577_v23 = vpop.f32.mrf.mxu1  ;;  %v4930_v24 = vpop.f32.mrf.mxu0  ;;  %v8655_v42 = vld [vmem:[%s12502_s1 + $0x5f0] ss:$8 sps:$4 sm:$0xff]   ;;  %v4231_v45 = vadd.f32 %v12595_v15, %v10232_v17 }
 0x1df   :  { %12592 = vst [vmem:[#allocation88_spill] sm:$0xff] %v10644_v50  ;;  %v10663_v1 = vadd.f32 %v4928_v2, %v4576_v37  ;;  %v4578_v25 = vadd.f32 %v4577_v23, %v4225_v29  ;;  %v8675_v37 = vld [vmem:[%s12502_s1 + $0x5e4] ss:$8 sps:$4 sm:$0xff]   ;;  %v8559_v15 = vld [vmem:[%s12503_s0 + $0x250] ss:$56 sps:$4 sm:$0xff]  }
 0x1e0   :  { %v4579_v31 = vpop.f32.mrf.mxu1  ;;  %v4932_v12 = vpop.f32.mrf.mxu0  ;;  %5856 = vmatpush1.bf16.msra.mxu1 %v8640_v60  ;;  %6209 = vmatpush1.bf16.msra.mxu0 %v8682_v10  ;;  %v12597_v60 = vld [vmem:[#allocation53_spill] sm:$0xff] }
 0x1e1   :  { %12594 = vst [vmem:[#allocation49_spill] sm:$0xff] %v10663_v1  ;;  %v10676_v2 = vadd.f32 %v4930_v24, %v4578_v25  ;;  %v4580_v29 = vadd.f32 %v4579_v31, %v4227_v33  ;;  %5857 = vmatprep.subr.bf16.mxu1 %v8657_v35  ;;  %v4233_v44 = vadd.f32 %v12597_v60, %v10234_v32  ;;  %v8673_v35 = vld [vmem:[%s12502_s1 + $0x5e0] ss:$8 sps:$4 sm:$0xff]   ;;  %v8570_v60 = vld [vmem:[%s12503_s0 + $0x2c4] ss:$56 sps:$4 sm:$0xff]  }
 0x1e2   :  { %v4583_v52 = vpop.f32.mrf.mxu1  ;;  %v4936_v23 = vpop.f32.mrf.mxu0  ;;  %5208 = vmatmul.mubr.bf16.gmra.mxu1 %v8547_v27  ;;  %5561 = vmatmul.mubr.bf16.gmra.mxu0 %v8550_v11  ;;  %v12599_v33 = vld [vmem:[#allocation55_spill] sm:$0xff] }
 0x1e3   :  { %12596 = vst [vmem:[#allocation51_spill] sm:$0xff] %v10676_v2  ;;  %v10683_v1 = vadd.f32 %v4932_v12, %v4580_v29  ;;  %v4584_v10 = vadd.f32 %v4583_v52, %v4231_v45  ;;  %5217 = vmatprep.mubr.bf16.mxu1 %v8558_v58  ;;  %5570 = vmatprep.mubr.bf16.mxu0 %v8561_v47  ;;  %v8693_v12 = vld [vmem:[%s12502_s1 + $0x5d4] ss:$8 sps:$4 sm:$0xff]  }
 0x1e4   :  { %v4585_v24 = vpop.f32.mrf.mxu1  ;;  %v4938_v25 = vpop.f32.mrf.mxu0  ;;  %5858 = vmatpush2.bf16.msra.mxu1 %v8655_v42  ;;  %v4235_v31 = vadd.f32 %v12599_v33, %v10232_v17  ;;  %v8556_v42 = vld [vmem:[%s12503_s0 + $0x248] ss:$56 sps:$4 sm:$0xff]   ;;  %v12601_v45 = vld [vmem:[#allocation57_spill] sm:$0xff] }
 0x1e5   :  { %12598 = vst [vmem:[#allocation53_spill] sm:$0xff] %v10683_v1  ;;  %v10690_v27 = vadd.f32 %v4936_v23, %v4584_v10  ;;  %v4586_v11 = vadd.f32 %v4585_v24, %v4233_v44  ;;  %5859 = vmatprep.subr.bf16.mxu1 %v8675_v37  ;;  %v4237_v29 = vadd.f32 %v12601_v45, %v10234_v32  ;;  %v8567_v23 = vld [vmem:[%s12503_s0 + $0x2bc] ss:$56 sps:$4 sm:$0xff]   ;;  %v8691_v24 = vld [vmem:[%s12502_s1 + $0x5d0] ss:$8 sps:$4 sm:$0xff]   ;;  %v12603_v33 = vld [vmem:[#allocation59_spill] sm:$0xff] }
 0x1e6   :  { %v4587_v58 = vpop.f32.mrf.mxu1  ;;  %v4940_v47 = vpop.f32.mrf.mxu0 }
 0x1e7   :  { %12600 = vst [vmem:[#allocation55_spill] sm:$0xff] %v10690_v27  ;;  %v10703_v52 = vadd.f32 %v4938_v25, %v4586_v11  ;;  %v4588_v37 = vadd.f32 %v4587_v58, %v4235_v31  ;;  %v4241_v25 = vadd.f32 %v12603_v33, %v10232_v17 }
 0x1e8   :  { %v4589_v44 = vpop.f32.mrf.mxu1  ;;  %v4942_v10 = vpop.f32.mrf.mxu0  ;;  %5860 = vmatpush2.bf16.msra.mxu1 %v8673_v35 }
 0x1e9   :  { %12602 = vst [vmem:[#allocation57_spill] sm:$0xff] %v10703_v52  ;;  %v10716_v11 = vadd.f32 %v4940_v47, %v4588_v37  ;;  %v4590_v31 = vadd.f32 %v4589_v44, %v4237_v29  ;;  %5861 = vmatprep.subr.bf16.mxu1 %v8693_v12  ;;  %v12605_v52 = vld [vmem:[#allocation61_spill] sm:$0xff]  ;;  %v12607_v47 = vld [vmem:[#allocation63_spill] sm:$0xff] }
 0x1ea   :  { %v4593_v58 = vpop.f32.mrf.mxu1  ;;  %v4946_v45 = vpop.f32.mrf.mxu0  ;;  %5218 = vmatmul.mubr.bf16.gmra.mxu1 %v8556_v42  ;;  %5571 = vmatmul.mubr.bf16.gmra.mxu0 %v8559_v15  ;;  %v4243_v27 = vadd.f32 %v12605_v52, %v10234_v32  ;;  %v4245_v37 = vadd.f32 %v12607_v47, %v10232_v17  ;;  %v8565_v15 = vld [vmem:[%s12503_s0 + $0x2b8] ss:$56 sps:$4 sm:$0xff]   ;;  %v8702_v47 = vld [vmem:[%s12502_s1 + $0x6b4] ss:$8 sps:$4 sm:$0xff]  }
 0x1eb   :  { %12604 = vst [vmem:[#allocation59_spill] sm:$0xff] %v10716_v11  ;;  %v10720_v1 = vadd.f32 %v4942_v10, %v4590_v31  ;;  %v4594_v35 = vadd.f32 %v4593_v58, %v4241_v25  ;;  %5227 = vmatprep.mubr.bf16.mxu1 %v8567_v23  ;;  %5580 = vmatprep.mubr.bf16.mxu0 %v8570_v60  ;;  %v8568_v52 = vld [vmem:[%s12503_s0 + $0x2c0] ss:$56 sps:$4 sm:$0xff]   ;;  %v12611_v31 = vld [vmem:[#allocation67_spill] sm:$0xff] }
 0x1ec   :  { %v4595_v2 = vpop.f32.mrf.mxu1  ;;  %v4948_v50 = vpop.f32.mrf.mxu0  ;;  %5862 = vmatpush2.bf16.msra.mxu1 %v8691_v24  ;;  %v12609_v23 = vld [vmem:[#allocation65_spill] sm:$0xff]  ;;  %v4251_v58 = vadd.f32 %v12611_v31, %v10232_v17  ;;  %6218 = vmatprep.subr.bf16.mxu0 %v8702_v47 }
 0x1ed   :  { %12606 = vst [vmem:[#allocation61_spill] sm:$0xff] %v10720_v1  ;;  %v10724_v29 = vadd.f32 %v4946_v45, %v4594_v35  ;;  %v4596_v12 = vadd.f32 %v4595_v2, %v4243_v27  ;;  %v4247_v60 = vadd.f32 %v12609_v23, %v10234_v32  ;;  %v8576_v2 = vld [vmem:[%s12503_s0 + $0x32c] ss:$56 sps:$4 sm:$0xff]  }
 0x1ee   :  { %v4597_v44 = vpop.f32.mrf.mxu1  ;;  %v4950_v42 = vpop.f32.mrf.mxu0  ;;  %v8579_v27 = vld [vmem:[%s12503_s0 + $0x334] ss:$56 sps:$4 sm:$0xff]  }
 0x1ef   :  { %12608 = vst [vmem:[#allocation63_spill] sm:$0xff] %v10724_v29  ;;  %v10734_v10 = vadd.f32 %v4948_v50, %v4596_v12  ;;  %v4598_v24 = vadd.f32 %v4597_v44, %v4245_v37  ;;  %v8700_v50 = vld [vmem:[%s12502_s1 + $0x6b0] ss:$8 sps:$4 sm:$0xff]   ;;  %v12623_v1 = vld [vmem:[#allocation79_spill] sm:$0xff] }
 0x1f0   :  { %v4599_v33 = vpop.f32.mrf.mxu1  ;;  %v4952_v25 = vpop.f32.mrf.mxu0  ;;  %v12613_v44 = vld [vmem:[#allocation69_spill] sm:$0xff]  ;;  %6219 = vmatpush2.bf16.msra.mxu0 %v8700_v50 }
 0x1f1   :  { %12610 = vst [vmem:[#allocation65_spill] sm:$0xff] %v10734_v10  ;;  %v10744_v45 = vadd.f32 %v4950_v42, %v4598_v24  ;;  %v4600_v35 = vadd.f32 %v4599_v33, %v4247_v60  ;;  %v4253_v23 = vadd.f32 %v12613_v44, %v10234_v32  ;;  %v12615_v33 = vld [vmem:[#allocation71_spill] sm:$0xff]  ;;  %v8585_v44 = vld [vmem:[%s12503_s0 + $0x3a4] ss:$56 sps:$4 sm:$0xff]  }
 0x1f2   :  { %v4603_v37 = vpop.f32.mrf.mxu1  ;;  %v4956_v12 = vpop.f32.mrf.mxu0  ;;  %5228 = vmatmul.mubr.bf16.gmra.mxu1 %v8565_v15  ;;  %5581 = vmatmul.mubr.bf16.gmra.mxu0 %v8568_v52  ;;  %v4255_v31 = vadd.f32 %v12615_v33, %v10232_v17  ;;  %v8709_v15 = vld [vmem:[%s12502_s1 + $0x5c0] ss:$8 sps:$4 sm:$0xff]   ;;  %v8711_v52 = vld [vmem:[%s12502_s1 + $0x5c4] ss:$8 sps:$4 sm:$0xff]  }
 0x1f3   :  { %12612 = vst [vmem:[#allocation67_spill] sm:$0xff] %v10744_v45  ;;  %v10754_v10 = vadd.f32 %v4952_v25, %v4600_v35  ;;  %v4604_v42 = vadd.f32 %v4603_v37, %v4251_v58  ;;  %5237 = vmatprep.mubr.bf16.mxu1 %v8576_v2  ;;  %5590 = vmatprep.mubr.bf16.mxu0 %v8579_v27  ;;  %v8574_v25 = vld [vmem:[%s12503_s0 + $0x328] ss:$56 sps:$4 sm:$0xff]   ;;  %v12617_v35 = vld [vmem:[#allocation73_spill] sm:$0xff] }
 0x1f4   :  { %v4605_v60 = vpop.f32.mrf.mxu1  ;;  %v4958_v24 = vpop.f32.mrf.mxu0  ;;  %v8577_v58 = vld [vmem:[%s12503_s0 + $0x330] ss:$56 sps:$4 sm:$0xff]   ;;  %v4257_v50 = vadd.f32 %v12617_v35, %v10234_v32  ;;  %5863 = vmatprep.subr.bf16.mxu1 %v8711_v52 }
 0x1f5   :  { %12614 = vst [vmem:[#allocation69_spill] sm:$0xff] %v10754_v10  ;;  %v10758_v45 = vadd.f32 %v4956_v12, %v4604_v42  ;;  %v4606_v29 = vadd.f32 %v4605_v60, %v4253_v23  ;;  %v8582_v12 = vld [vmem:[%s12503_s0 + $0x39c] ss:$56 sps:$4 sm:$0xff]   ;;  %5864 = vmatpush2.bf16.msra.mxu1 %v8709_v15  ;;  %v12619_v60 = vld [vmem:[#allocation75_spill] sm:$0xff] }
 0x1f6   :  { %v4607_v2 = vpop.f32.mrf.mxu1  ;;  %v4960_v27 = vpop.f32.mrf.mxu0  ;;  %v4261_v33 = vadd.f32 %v12619_v60, %v10232_v17  ;;  %v4265_v60 = vadd.f32 %v12623_v1, %v10232_v17  ;;  %v8594_v1 = vld [vmem:[%s12503_s0 + $0x40c] ss:$56 sps:$4 sm:$0xff]  }
 0x1f7   :  { %12616 = vst [vmem:[#allocation71_spill] sm:$0xff] %v10758_v45  ;;  %v10774_v47 = vadd.f32 %v4958_v24, %v4606_v29  ;;  %v4608_v37 = vadd.f32 %v4607_v2, %v4255_v31  ;;  %v12621_v2 = vld [vmem:[#allocation77_spill] sm:$0xff] }
 0x1f8   :  { %v4609_v23 = vpop.f32.mrf.mxu1  ;;  %v4962_v42 = vpop.f32.mrf.mxu0  ;;  %v4263_v35 = vadd.f32 %v12621_v2, %v10234_v32 }
 0x1f9   :  { %12618 = vst [vmem:[#allocation73_spill] sm:$0xff] %v10774_v47  ;;  %v10784_v45 = vadd.f32 %v4960_v27, %v4608_v37  ;;  %v4610_v29 = vadd.f32 %v4609_v23, %v4257_v50 }
 0x1fa   :  { %v4613_v24 = vpop.f32.mrf.mxu1  ;;  %v4966_v31 = vpop.f32.mrf.mxu0  ;;  %5238 = vmatmul.mubr.bf16.gmra.mxu1 %v8574_v25  ;;  %5591 = vmatmul.mubr.bf16.gmra.mxu0 %v8577_v58  ;;  %v8580_v25 = vld [vmem:[%s12503_s0 + $0x398] ss:$56 sps:$4 sm:$0xff]  }
 0x1fb   :  { %12620 = vst [vmem:[#allocation75_spill] sm:$0xff] %v10784_v45  ;;  %v10788_v47 = vadd.f32 %v4962_v42, %v4610_v29  ;;  %v4614_v10 = vadd.f32 %v4613_v24, %v4261_v33  ;;  %5247 = vmatprep.mubr.bf16.mxu1 %v8582_v12  ;;  %5600 = vmatprep.mubr.bf16.mxu0 %v8585_v44  ;;  %v8583_v58 = vld [vmem:[%s12503_s0 + $0x3a0] ss:$56 sps:$4 sm:$0xff]   ;;  %v12631_v45 = vld [vmem:[#allocation4_spill] sm:$0xff] }
 0x1fc   :  { %v4615_v52 = vpop.f32.mrf.mxu1  ;;  %v4968_v15 = vpop.f32.mrf.mxu0  ;;  %v12625_v12 = vld [vmem:[#allocation81_spill] sm:$0xff] }
 0x1fd   :  { %12622 = vst [vmem:[#allocation77_spill] sm:$0xff] %v10788_v47  ;;  %v10792_v27 = vadd.f32 %v4966_v31, %v4614_v10  ;;  %v4616_v50 = vadd.f32 %v4615_v52, %v4263_v35  ;;  %v4267_v44 = vadd.f32 %v12625_v12, %v10234_v32  ;;  %v8597_v10 = vld [vmem:[%s12503_s0 + $0x414] ss:$56 sps:$4 sm:$0xff]   ;;  %v12627_v31 = vld [vmem:[#allocation2_spill] sm:$0xff] }
 0x1fe   :  { %v4617_v37 = vpop.f32.mrf.mxu1  ;;  %v4970_v23 = vpop.f32.mrf.mxu0  ;;  %v4271_v2 = vadd.f32 %v12627_v31, %v10232_v17  ;;  %v4275_v31 = vadd.f32 %v12631_v45, %v10232_v17  ;;  %v8595_v45 = vld [vmem:[%s12503_s0 + $0x410] ss:$56 sps:$4 sm:$0xff]  }
 0x1ff   :  { %12624 = vst [vmem:[#allocation79_spill] sm:$0xff] %v10792_v27  ;;  %v10802_v42 = vadd.f32 %v4968_v15, %v4616_v50  ;;  %v4618_v33 = vadd.f32 %v4617_v37, %v4265_v60  ;;  %v12629_v60 = vld [vmem:[#allocation3_spill] sm:$0xff] }
 0x200   :  { %v4619_v29 = vpop.f32.mrf.mxu1  ;;  %v4972_v24 = vpop.f32.mrf.mxu0  ;;  %v4273_v50 = vadd.f32 %v12629_v60, %v10234_v32 }
 0x201   :  { %12626 = vst [vmem:[#allocation81_spill] sm:$0xff] %v10802_v42  ;;  %v10812_v35 = vadd.f32 %v4970_v23, %v4618_v33  ;;  %v4620_v52 = vadd.f32 %v4619_v29, %v4267_v44 }
 0x202   :  { %v4623_v12 = vpop.f32.mrf.mxu1  ;;  %v4976_v15 = vpop.f32.mrf.mxu0  ;;  %5248 = vmatmul.mubr.bf16.gmra.mxu1 %v8580_v25  ;;  %5601 = vmatmul.mubr.bf16.gmra.mxu0 %v8583_v58  ;;  %v8724_v25 = vld [vmem:[%s12502_s1 + $0x5b0] ss:$8 sps:$4 sm:$0xff]   ;;  %v8726_v58 = vld [vmem:[%s12502_s1 + $0x5b4] ss:$8 sps:$4 sm:$0xff]  }
 0x203   :  { %12628 = vst [vmem:[#allocation2_spill] sm:$0xff] %v10812_v35  ;;  %v10816_v37 = vadd.f32 %v4972_v24, %v4620_v52  ;;  %v4624_v42 = vadd.f32 %v4623_v12, %v4271_v2  ;;  %5257 = vmatprep.mubr.bf16.mxu1 %v8594_v1  ;;  %5610 = vmatprep.mubr.bf16.mxu0 %v8597_v10  ;;  %v8592_v1 = vld [vmem:[%s12503_s0 + $0x408] ss:$56 sps:$4 sm:$0xff]   ;;  %v8600_v2 = vld [vmem:[%s12503_s0 + $0x47c] ss:$56 sps:$4 sm:$0xff]  }
 0x204   :  { %v4625_v27 = vpop.f32.mrf.mxu1  ;;  %v4978_v47 = vpop.f32.mrf.mxu0  ;;  %v8603_v52 = vld [vmem:[%s12503_s0 + $0x484] ss:$56 sps:$4 sm:$0xff]   ;;  %5865 = vmatprep.subr.bf16.mxu1 %v8726_v58 }
 0x205   :  { %12630 = vst [vmem:[#allocation3_spill] sm:$0xff] %v10816_v37  ;;  %v10820_v23 = vadd.f32 %v4976_v15, %v4624_v42  ;;  %v4626_v44 = vadd.f32 %v4625_v27, %v4273_v50  ;;  %v12633_v27 = vld [vmem:[#allocation5_spill] sm:$0xff]  ;;  %v8729_v12 = vld [vmem:[%s12502_s1 + $0x6a4] ss:$8 sps:$4 sm:$0xff]   ;;  %5866 = vmatpush2.bf16.msra.mxu1 %v8724_v25 }
 0x206   :  { %v4627_v33 = vpop.f32.mrf.mxu1  ;;  %v4980_v29 = vpop.f32.mrf.mxu0  ;;  %v4277_v42 = vadd.f32 %v12633_v27, %v10234_v32  ;;  %v12635_v50 = vld [vmem:[#allocation6_spill] sm:$0xff]  ;;  %6220 = vmatprep.subr.bf16.mxu0 %v8729_v12 }
 0x207   :  { %12632 = vst [vmem:[#allocation4_spill] sm:$0xff] %v10820_v23  ;;  %v10836_v10 = vadd.f32 %v4978_v47, %v4626_v44  ;;  %v4628_v24 = vadd.f32 %v4627_v33, %v4275_v31  ;;  %v8727_v47 = vld [vmem:[%s12502_s1 + $0x6a0] ss:$8 sps:$4 sm:$0xff]   ;;  %v4281_v31 = vadd.f32 %v12635_v50, %v10232_v17 }
 0x208   :  { %v4629_v15 = vpop.f32.mrf.mxu1  ;;  %v4982_v60 = vpop.f32.mrf.mxu0  ;;  %6221 = vmatpush2.bf16.msra.mxu0 %v8727_v47 }
 0x209   :  { %12634 = vst [vmem:[#allocation5_spill] sm:$0xff] %v10836_v10  ;;  %v10852_v44 = vadd.f32 %v4980_v29, %v4628_v24  ;;  %v4630_v33 = vadd.f32 %v4629_v15, %v4277_v42  ;;  %v12636_v10 = vld [vmem:[#allocation7_spill] sm:$0xff]  ;;  %v12638_v29 = vld [vmem:[#allocation8_spill] sm:$0xff] }
 0x20a   :  { %v4633_v27 = vpop.f32.mrf.mxu1  ;;  %v4986_v58 = vpop.f32.mrf.mxu0  ;;  %5258 = vmatmul.mubr.bf16.gmra.mxu1 %v8592_v1  ;;  %5611 = vmatmul.mubr.bf16.gmra.mxu0 %v8595_v45  ;;  %v4283_v23 = vadd.f32 %v12636_v10, %v10234_v32  ;;  %v4285_v24 = vadd.f32 %v12638_v29, %v10232_v17  ;;  %v8598_v45 = vld [vmem:[%s12503_s0 + $0x478] ss:$56 sps:$4 sm:$0xff]  }
 0x20b   :  { %v10856_v37 = vadd.f32 %v4982_v60, %v4630_v33  ;;  %v4634_v25 = vadd.f32 %v4633_v27, %v4281_v31  ;;  %5267 = vmatprep.mubr.bf16.mxu1 %v8600_v2  ;;  %5620 = vmatprep.mubr.bf16.mxu0 %v8603_v52  ;;  %v8601_v10 = vld [vmem:[%s12503_s0 + $0x480] ss:$56 sps:$4 sm:$0xff]  }
 0x20c   :  { %v4635_v35 = vpop.f32.mrf.mxu1  ;;  %v4988_v11 = vpop.f32.mrf.mxu0  ;;  %v12640_v2 = vld [vmem:[#allocation9_spill] sm:$0xff]  ;;  %v12642_v33 = vld [vmem:[#allocation10_spill] sm:$0xff] }
 0x20d   :  { %12637 = vst [vmem:[#allocation6_spill] sm:$0xff] %v10856_v37  ;;  %v10860_v42 = vadd.f32 %v4986_v58, %v4634_v25  ;;  %v4636_v12 = vadd.f32 %v4635_v35, %v4283_v23  ;;  %v4287_v52 = vadd.f32 %v12640_v2, %v10234_v32  ;;  %v8609_v35 = vld [vmem:[%s12503_s0 + $0x4ec] ss:$56 sps:$4 sm:$0xff]   ;;  %v4291_v27 = vadd.f32 %v12642_v33, %v10232_v17  ;;  %v12646_v37 = vld [vmem:[#allocation12_spill] sm:$0xff] }
 0x20e   :  { %v4637_v15 = vpop.f32.mrf.mxu1  ;;  %v4990_v1 = vpop.f32.mrf.mxu0  ;;  %v8612_v23 = vld [vmem:[%s12503_s0 + $0x4f4] ss:$56 sps:$4 sm:$0xff]   ;;  %v4295_v33 = vadd.f32 %v12646_v37, %v10232_v17  ;;  %v8610_v37 = vld [vmem:[%s12503_s0 + $0x4f0] ss:$56 sps:$4 sm:$0xff]  }
 0x20f   :  { %12639 = vst [vmem:[#allocation7_spill] sm:$0xff] %v10860_v42  ;;  %v10870_v60 = vadd.f32 %v4988_v11, %v4636_v12  ;;  %v4638_v47 = vadd.f32 %v4637_v15, %v4285_v24  ;;  %v12644_v24 = vld [vmem:[#allocation11_spill] sm:$0xff] }
 0x210   :  { %v4639_v50 = vpop.f32.mrf.mxu1  ;;  %v4992_v31 = vpop.f32.mrf.mxu0  ;;  %v4293_v12 = vadd.f32 %v12644_v24, %v10234_v32 }
 0x211   :  { %12641 = vst [vmem:[#allocation8_spill] sm:$0xff] %v10870_v60  ;;  %v10880_v58 = vadd.f32 %v4990_v1, %v4638_v47  ;;  %v4640_v25 = vadd.f32 %v4639_v50, %v4287_v52 }
 0x212   :  { %v4643_v29 = vpop.f32.mrf.mxu1  ;;  %v4996_v11 = vpop.f32.mrf.mxu0  ;;  %5268 = vmatmul.mubr.bf16.gmra.mxu1 %v8598_v45  ;;  %5621 = vmatmul.mubr.bf16.gmra.mxu0 %v8601_v10  ;;  %v8742_v45 = vld [vmem:[%s12502_s1 + $0x5a0] ss:$8 sps:$4 sm:$0xff]   ;;  %v8744_v10 = vld [vmem:[%s12502_s1 + $0x5a4] ss:$8 sps:$4 sm:$0xff]  }
 0x213   :  { %12643 = vst [vmem:[#allocation9_spill] sm:$0xff] %v10880_v58  ;;  %v10884_v15 = vadd.f32 %v4992_v31, %v4640_v25  ;;  %v4644_v2 = vadd.f32 %v4643_v29, %v4291_v27  ;;  %5277 = vmatprep.mubr.bf16.mxu1 %v8609_v35  ;;  %5630 = vmatprep.mubr.bf16.mxu0 %v8612_v23  ;;  %v8607_v35 = vld [vmem:[%s12503_s0 + $0x4e8] ss:$56 sps:$4 sm:$0xff]   ;;  %v8618_v25 = vld [vmem:[%s12503_s0 + $0x55c] ss:$56 sps:$4 sm:$0xff]  }
 0x214   :  { %v4645_v60 = vpop.f32.mrf.mxu1  ;;  %v4998_v42 = vpop.f32.mrf.mxu0  ;;  %v8621_v29 = vld [vmem:[%s12503_s0 + $0x564] ss:$56 sps:$4 sm:$0xff]   ;;  %5867 = vmatprep.subr.bf16.mxu1 %v8744_v10  ;;  %v12654_v58 = vld [vmem:[#allocation16_spill] sm:$0xff] }
 0x215   :  { %12645 = vst [vmem:[#allocation10_spill] sm:$0xff] %v10884_v15  ;;  %v10888_v1 = vadd.f32 %v4996_v11, %v4644_v2  ;;  %v4646_v52 = vadd.f32 %v4645_v60, %v4293_v12  ;;  %v12648_v60 = vld [vmem:[#allocation13_spill] sm:$0xff]  ;;  %5868 = vmatpush2.bf16.msra.mxu1 %v8742_v45  ;;  %v12650_v12 = vld [vmem:[#allocation14_spill] sm:$0xff] }
 0x216   :  { %v4647_v47 = vpop.f32.mrf.mxu1  ;;  %v5000_v50 = vpop.f32.mrf.mxu0  ;;  %v4297_v23 = vadd.f32 %v12648_v60, %v10234_v32  ;;  %v4301_v2 = vadd.f32 %v12650_v12, %v10232_v17  ;;  %v4305_v12 = vadd.f32 %v12654_v58, %v10232_v17  ;;  %v8619_v58 = vld [vmem:[%s12503_s0 + $0x560] ss:$56 sps:$4 sm:$0xff]  }
 0x217   :  { %12647 = vst [vmem:[#allocation11_spill] sm:$0xff] %v10888_v1  ;;  %v10904_v31 = vadd.f32 %v4998_v42, %v4646_v52  ;;  %v4648_v27 = vadd.f32 %v4647_v47, %v4295_v33  ;;  %v12652_v47 = vld [vmem:[#allocation15_spill] sm:$0xff] }
 0x218   :  { %v4649_v11 = vpop.f32.mrf.mxu1  ;;  %v5002_v24 = vpop.f32.mrf.mxu0  ;;  %v4303_v60 = vadd.f32 %v12652_v47, %v10234_v32 }
 0x219   :  { %12649 = vst [vmem:[#allocation12_spill] sm:$0xff] %v10904_v31  ;;  %v10914_v1 = vadd.f32 %v5000_v50, %v4648_v27  ;;  %v4650_v42 = vadd.f32 %v4649_v11, %v4297_v23 }
 0x21a   :  { %v4653_v52 = vpop.f32.mrf.mxu1  ;;  %v5006_v33 = vpop.f32.mrf.mxu0  ;;  %5278 = vmatmul.mubr.bf16.gmra.mxu1 %v8607_v35  ;;  %5631 = vmatmul.mubr.bf16.gmra.mxu0 %v8610_v37  ;;  %v8751_v35 = vld [vmem:[%s12502_s1 + $0x690] ss:$8 sps:$4 sm:$0xff]   ;;  %v8753_v37 = vld [vmem:[%s12502_s1 + $0x694] ss:$8 sps:$4 sm:$0xff]  }
 0x21b   :  { %12651 = vst [vmem:[#allocation13_spill] sm:$0xff] %v10914_v1  ;;  %v10918_v31 = vadd.f32 %v5002_v24, %v4650_v42  ;;  %v4654_v15 = vadd.f32 %v4653_v52, %v4301_v2  ;;  %5287 = vmatprep.mubr.bf16.mxu1 %v8618_v25  ;;  %5640 = vmatprep.mubr.bf16.mxu0 %v8621_v29  ;;  %v8616_v25 = vld [vmem:[%s12503_s0 + $0x558] ss:$56 sps:$4 sm:$0xff]   ;;  %v8627_v42 = vld [vmem:[%s12503_s0 + $0x5cc] ss:$56 sps:$4 sm:$0xff]  }
 0x21c   :  { %v4655_v10 = vpop.f32.mrf.mxu1  ;;  %v5008_v45 = vpop.f32.mrf.mxu0  ;;  %v8630_v52 = vld [vmem:[%s12503_s0 + $0x5d4] ss:$56 sps:$4 sm:$0xff]   ;;  %6222 = vmatprep.subr.bf16.mxu0 %v8753_v37 }
 0x21d   :  { %12653 = vst [vmem:[#allocation14_spill] sm:$0xff] %v10918_v31  ;;  %v10922_v50 = vadd.f32 %v5006_v33, %v4654_v15  ;;  %v4656_v23 = vadd.f32 %v4655_v10, %v4303_v60  ;;  %v12656_v15 = vld [vmem:[#allocation17_spill] sm:$0xff]  ;;  %6223 = vmatpush2.bf16.msra.mxu0 %v8751_v35  ;;  %v12658_v60 = vld [vmem:[#allocation18_spill] sm:$0xff]  ;;  %v12662_v1 = vld [vmem:[#allocation20_spill] sm:$0xff] }
 0x21e   :  { %v4657_v27 = vpop.f32.mrf.mxu1  ;;  %v5010_v11 = vpop.f32.mrf.mxu0  ;;  %v4307_v29 = vadd.f32 %v12656_v15, %v10234_v32  ;;  %v4311_v10 = vadd.f32 %v12658_v60, %v10232_v17  ;;  %v4315_v60 = vadd.f32 %v12662_v1, %v10232_v17  ;;  %v8628_v1 = vld [vmem:[%s12503_s0 + $0x5d0] ss:$56 sps:$4 sm:$0xff]  }
 0x21f   :  { %12655 = vst [vmem:[#allocation15_spill] sm:$0xff] %v10922_v50  ;;  %v10938_v24 = vadd.f32 %v5008_v45, %v4656_v23  ;;  %v4658_v2 = vadd.f32 %v4657_v27, %v4305_v12  ;;  %v12660_v27 = vld [vmem:[#allocation19_spill] sm:$0xff] }
 0x220   :  { %v4659_v33 = vpop.f32.mrf.mxu1  ;;  %v5012_v47 = vpop.f32.mrf.mxu0  ;;  %v4313_v15 = vadd.f32 %v12660_v27, %v10234_v32 }
 0x221   :  { %12657 = vst [vmem:[#allocation16_spill] sm:$0xff] %v10938_v24  ;;  %v10948_v50 = vadd.f32 %v5010_v11, %v4658_v2  ;;  %v4660_v45 = vadd.f32 %v4659_v33, %v4307_v29 }
 0x222   :  { %v4663_v23 = vpop.f32.mrf.mxu1  ;;  %v5016_v12 = vpop.f32.mrf.mxu0  ;;  %5288 = vmatmul.mubr.bf16.gmra.mxu1 %v8616_v25  ;;  %5641 = vmatmul.mubr.bf16.gmra.mxu0 %v8619_v58  ;;  %v8760_v25 = vld [vmem:[%s12502_s1 + $0x590] ss:$8 sps:$4 sm:$0xff]   ;;  %v8762_v58 = vld [vmem:[%s12502_s1 + $0x594] ss:$8 sps:$4 sm:$0xff]  }
 0x223   :  { %12659 = vst [vmem:[#allocation17_spill] sm:$0xff] %v10948_v50  ;;  %v10952_v24 = vadd.f32 %v5012_v47, %v4660_v45  ;;  %v4664_v31 = vadd.f32 %v4663_v23, %v4311_v10  ;;  %5297 = vmatprep.mubr.bf16.mxu1 %v8627_v42  ;;  %5650 = vmatprep.mubr.bf16.mxu0 %v8630_v52  ;;  %v8625_v42 = vld [vmem:[%s12503_s0 + $0x5c8] ss:$56 sps:$4 sm:$0xff]   ;;  %v8636_v45 = vld [vmem:[%s12503_s0 + $0x63c] ss:$56 sps:$4 sm:$0xff]  }
 0x224   :  { %v4665_v37 = vpop.f32.mrf.mxu1  ;;  %v5018_v35 = vpop.f32.mrf.mxu0  ;;  %v8639_v23 = vld [vmem:[%s12503_s0 + $0x644] ss:$56 sps:$4 sm:$0xff]   ;;  %5869 = vmatprep.subr.bf16.mxu1 %v8762_v58  ;;  %v12670_v50 = vld [vmem:[#allocation24_spill] sm:$0xff] }
 0x225   :  { %12661 = vst [vmem:[#allocation18_spill] sm:$0xff] %v10952_v24  ;;  %v10956_v11 = vadd.f32 %v5016_v12, %v4664_v31  ;;  %v4666_v29 = vadd.f32 %v4665_v37, %v4313_v15  ;;  %v12664_v31 = vld [vmem:[#allocation21_spill] sm:$0xff]  ;;  %5870 = vmatpush2.bf16.msra.mxu1 %v8760_v25  ;;  %v12666_v15 = vld [vmem:[#allocation22_spill] sm:$0xff] }
 0x226   :  { %v4667_v2 = vpop.f32.mrf.mxu1  ;;  %v5020_v33 = vpop.f32.mrf.mxu0  ;;  %v4317_v52 = vadd.f32 %v12664_v31, %v10234_v32  ;;  %v4321_v37 = vadd.f32 %v12666_v15, %v10232_v17  ;;  %v4325_v15 = vadd.f32 %v12670_v50, %v10232_v17  ;;  %v8645_v50 = vld [vmem:[%s12503_s0 + $0x6ac] ss:$56 sps:$4 sm:$0xff]  }
 0x227   :  { %12663 = vst [vmem:[#allocation19_spill] sm:$0xff] %v10956_v11  ;;  %v10972_v47 = vadd.f32 %v5018_v35, %v4666_v29  ;;  %v4668_v10 = vadd.f32 %v4667_v2, %v4315_v60  ;;  %v12668_v2 = vld [vmem:[#allocation23_spill] sm:$0xff] }
 0x228   :  { %v4669_v12 = vpop.f32.mrf.mxu1  ;;  %v5022_v27 = vpop.f32.mrf.mxu0  ;;  %v4323_v31 = vadd.f32 %v12668_v2, %v10234_v32 }
 0x229   :  { %12665 = vst [vmem:[#allocation20_spill] sm:$0xff] %v10972_v47  ;;  %v10982_v11 = vadd.f32 %v5020_v33, %v4668_v10  ;;  %v4670_v35 = vadd.f32 %v4669_v12, %v4317_v52 }
 0x22a   :  { %v4673_v29 = vpop.f32.mrf.mxu1  ;;  %v5026_v60 = vpop.f32.mrf.mxu0  ;;  %5298 = vmatmul.mubr.bf16.gmra.mxu1 %v8625_v42  ;;  %5651 = vmatmul.mubr.bf16.gmra.mxu0 %v8628_v1  ;;  %v8634_v42 = vld [vmem:[%s12503_s0 + $0x638] ss:$56 sps:$4 sm:$0xff]  }
 0x22b   :  { %12667 = vst [vmem:[#allocation21_spill] sm:$0xff] %v10982_v11  ;;  %v10986_v47 = vadd.f32 %v5022_v27, %v4670_v35  ;;  %v4674_v24 = vadd.f32 %v4673_v29, %v4321_v37  ;;  %5307 = vmatprep.mubr.bf16.mxu1 %v8636_v45  ;;  %5660 = vmatprep.mubr.bf16.mxu0 %v8639_v23  ;;  %v8637_v1 = vld [vmem:[%s12503_s0 + $0x640] ss:$56 sps:$4 sm:$0xff]   ;;  %v12686_v11 = vld [vmem:[#allocation32_spill] sm:$0xff] }
 0x22c   :  { %v4675_v58 = vpop.f32.mrf.mxu1  ;;  %v5028_v25 = vpop.f32.mrf.mxu0  ;;  %v12672_v45 = vld [vmem:[#allocation25_spill] sm:$0xff] }
 0x22d   :  { %12669 = vst [vmem:[#allocation22_spill] sm:$0xff] %v10986_v47  ;;  %v10990_v33 = vadd.f32 %v5026_v60, %v4674_v24  ;;  %v4676_v52 = vadd.f32 %v4675_v58, %v4323_v31  ;;  %v4327_v23 = vadd.f32 %v12672_v45, %v10234_v32  ;;  %v8648_v24 = vld [vmem:[%s12503_s0 + $0x6b4] ss:$56 sps:$4 sm:$0xff]   ;;  %v12674_v60 = vld [vmem:[#allocation26_spill] sm:$0xff] }
 0x22e   :  { %v4677_v10 = vpop.f32.mrf.mxu1  ;;  %v5030_v12 = vpop.f32.mrf.mxu0  ;;  %v4331_v2 = vadd.f32 %v12674_v60, %v10232_v17  ;;  %v12676_v45 = vld [vmem:[#allocation27_spill] sm:$0xff] }
 0x22f   :  { %12671 = vst [vmem:[#allocation23_spill] sm:$0xff] %v10990_v33  ;;  %v11000_v27 = vadd.f32 %v5028_v25, %v4676_v52  ;;  %v4678_v37 = vadd.f32 %v4677_v10, %v4325_v15  ;;  %v8769_v25 = vld [vmem:[%s12502_s1 + $0x680] ss:$8 sps:$4 sm:$0xff]   ;;  %v8771_v15 = vld [vmem:[%s12502_s1 + $0x684] ss:$8 sps:$4 sm:$0xff]  }
 0x230   :  { %v4679_v35 = vpop.f32.mrf.mxu1  ;;  %v5032_v29 = vpop.f32.mrf.mxu0  ;;  %6224 = vmatprep.subr.bf16.mxu0 %v8771_v15 }
 0x231   :  { %12673 = vst [vmem:[#allocation24_spill] sm:$0xff] %v11000_v27  ;;  %v11010_v31 = vadd.f32 %v5030_v12, %v4678_v37  ;;  %v4680_v58 = vadd.f32 %v4679_v35, %v4327_v23  ;;  %v4333_v27 = vadd.f32 %v12676_v45, %v10234_v32  ;;  %v12678_v35 = vld [vmem:[#allocation28_spill] sm:$0xff]  ;;  %6225 = vmatpush2.bf16.msra.mxu0 %v8769_v25 }
 0x232   :  { %v4683_v52 = vpop.f32.mrf.mxu1  ;;  %v5036_v10 = vpop.f32.mrf.mxu0  ;;  %5308 = vmatmul.mubr.bf16.gmra.mxu1 %v8634_v42  ;;  %5661 = vmatmul.mubr.bf16.gmra.mxu0 %v8637_v1  ;;  %v4335_v60 = vadd.f32 %v12678_v35, %v10232_v17  ;;  %v8778_v42 = vld [vmem:[%s12502_s1 + $0x580] ss:$8 sps:$4 sm:$0xff]   ;;  %v8780_v1 = vld [vmem:[%s12502_s1 + $0x584] ss:$8 sps:$4 sm:$0xff]  }
 0x233   :  { %12675 = vst [vmem:[#allocation25_spill] sm:$0xff] %v11010_v31  ;;  %v11020_v33 = vadd.f32 %v5032_v29, %v4680_v58  ;;  %v4684_v12 = vadd.f32 %v4683_v52, %v4331_v2  ;;  %5317 = vmatprep.mubr.bf16.mxu1 %v8645_v50  ;;  %5670 = vmatprep.mubr.bf16.mxu0 %v8648_v24  ;;  %v8643_v29 = vld [vmem:[%s12503_s0 + $0x6a8] ss:$56 sps:$4 sm:$0xff]   ;;  %v8651_v52 = vld [vmem:[%s12503_s0 + $0x71c] ss:$56 sps:$4 sm:$0xff]  }
 0x234   :  { %v4685_v23 = vpop.f32.mrf.mxu1  ;;  %v5038_v37 = vpop.f32.mrf.mxu0  ;;  %v8646_v2 = vld [vmem:[%s12503_s0 + $0x6b0] ss:$56 sps:$4 sm:$0xff]   ;;  %5871 = vmatprep.subr.bf16.mxu1 %v8780_v1 }
 0x235   :  { %12677 = vst [vmem:[#allocation26_spill] sm:$0xff] %v11020_v33  ;;  %v11024_v31 = vadd.f32 %v5036_v10, %v4684_v12  ;;  %v4686_v47 = vadd.f32 %v4685_v23, %v4333_v27  ;;  %v12680_v27 = vld [vmem:[#allocation29_spill] sm:$0xff]  ;;  %5872 = vmatpush2.bf16.msra.mxu1 %v8778_v42  ;;  %v12682_v23 = vld [vmem:[#allocation30_spill] sm:$0xff] }
 0x236   :  { %v4687_v50 = vpop.f32.mrf.mxu1  ;;  %v5040_v24 = vpop.f32.mrf.mxu0  ;;  %v4337_v58 = vadd.f32 %v12680_v27, %v10234_v32  ;;  %v8654_v10 = vld [vmem:[%s12503_s0 + $0x724] ss:$56 sps:$4 sm:$0xff]   ;;  %v4341_v35 = vadd.f32 %v12682_v23, %v10232_v17  ;;  %v4345_v23 = vadd.f32 %v12686_v11, %v10232_v17 }
 0x237   :  { %12679 = vst [vmem:[#allocation27_spill] sm:$0xff] %v11024_v31  ;;  %v11040_v25 = vadd.f32 %v5038_v37, %v4686_v47  ;;  %v4688_v15 = vadd.f32 %v4687_v50, %v4335_v60  ;;  %v12684_v50 = vld [vmem:[#allocation31_spill] sm:$0xff] }
 0x238   :  { %v4689_v45 = vpop.f32.mrf.mxu1  ;;  %v5042_v12 = vpop.f32.mrf.mxu0  ;;  %v4343_v27 = vadd.f32 %v12684_v50, %v10234_v32  ;;  %v8663_v11 = vld [vmem:[%s12503_s0 + $0x78c] ss:$56 sps:$4 sm:$0xff]  }
 0x239   :  { %12681 = vst [vmem:[#allocation28_spill] sm:$0xff] %v11040_v25  ;;  %v11050_v31 = vadd.f32 %v5040_v24, %v4688_v15  ;;  %v4690_v47 = vadd.f32 %v4689_v45, %v4337_v58 }
 0x23a   :  { %v4693_v37 = vpop.f32.mrf.mxu1  ;;  %v5046_v60 = vpop.f32.mrf.mxu0  ;;  %5318 = vmatmul.mubr.bf16.gmra.mxu1 %v8643_v29  ;;  %5671 = vmatmul.mubr.bf16.gmra.mxu0 %v8646_v2  ;;  %v8649_v29 = vld [vmem:[%s12503_s0 + $0x718] ss:$56 sps:$4 sm:$0xff]  }
 0x23b   :  { %12683 = vst [vmem:[#allocation29_spill] sm:$0xff] %v11050_v31  ;;  %v11054_v25 = vadd.f32 %v5042_v12, %v4690_v47  ;;  %v4694_v33 = vadd.f32 %v4693_v37, %v4341_v35  ;;  %5327 = vmatprep.mubr.bf16.mxu1 %v8651_v52  ;;  %5680 = vmatprep.mubr.bf16.mxu0 %v8654_v10  ;;  %v8652_v2 = vld [vmem:[%s12503_s0 + $0x720] ss:$56 sps:$4 sm:$0xff]   ;;  %v12694_v31 = vld [vmem:[#allocation36_spill] sm:$0xff] }
 0x23c   :  { %v4695_v1 = vpop.f32.mrf.mxu1  ;;  %v5048_v42 = vpop.f32.mrf.mxu0  ;;  %v12688_v52 = vld [vmem:[#allocation33_spill] sm:$0xff] }
 0x23d   :  { %12685 = vst [vmem:[#allocation30_spill] sm:$0xff] %v11054_v25  ;;  %v11058_v24 = vadd.f32 %v5046_v60, %v4694_v33  ;;  %v4696_v58 = vadd.f32 %v4695_v1, %v4343_v27  ;;  %v4347_v10 = vadd.f32 %v12688_v52, %v10234_v32  ;;  %v8666_v33 = vld [vmem:[%s12503_s0 + $0x794] ss:$56 sps:$4 sm:$0xff]   ;;  %v12690_v60 = vld [vmem:[#allocation34_spill] sm:$0xff] }
 0x23e   :  { %v4697_v15 = vpop.f32.mrf.mxu1  ;;  %v5050_v45 = vpop.f32.mrf.mxu0  ;;  %v4351_v50 = vadd.f32 %v12690_v60, %v10232_v17  ;;  %v4355_v60 = vadd.f32 %v12694_v31, %v10232_v17  ;;  %v8669_v31 = vld [vmem:[%s12503_s0 + $0x7fc] ss:$56 sps:$4 sm:$0xff]  }
 0x23f   :  { %12687 = vst [vmem:[#allocation31_spill] sm:$0xff] %v11058_v24  ;;  %v11068_v12 = vadd.f32 %v5048_v42, %v4696_v58  ;;  %v4698_v35 = vadd.f32 %v4697_v15, %v4345_v23  ;;  %v12692_v23 = vld [vmem:[#allocation35_spill] sm:$0xff] }
 0x240   :  { %v4699_v47 = vpop.f32.mrf.mxu1  ;;  %v5052_v37 = vpop.f32.mrf.mxu0  ;;  %v4353_v58 = vadd.f32 %v12692_v23, %v10234_v32 }
 0x241   :  { %12689 = vst [vmem:[#allocation32_spill] sm:$0xff] %v11068_v12  ;;  %v11078_v27 = vadd.f32 %v5050_v45, %v4698_v35  ;;  %v4700_v1 = vadd.f32 %v4699_v47, %v4347_v10 }
 0x242   :  { %v4703_v52 = vpop.f32.mrf.mxu1  ;;  %v5056_v42 = vpop.f32.mrf.mxu0  ;;  %5328 = vmatmul.mubr.bf16.gmra.mxu1 %v8649_v29  ;;  %5681 = vmatmul.mubr.bf16.gmra.mxu0 %v8652_v2  ;;  %v8661_v29 = vld [vmem:[%s12503_s0 + $0x788] ss:$56 sps:$4 sm:$0xff]  }
 0x243   :  { %12691 = vst [vmem:[#allocation33_spill] sm:$0xff] %v11078_v27  ;;  %v11082_v15 = vadd.f32 %v5052_v37, %v4700_v1  ;;  %v4704_v12 = vadd.f32 %v4703_v52, %v4351_v50  ;;  %5337 = vmatprep.mubr.bf16.mxu1 %v8663_v11  ;;  %5690 = vmatprep.mubr.bf16.mxu0 %v8666_v33  ;;  %v8664_v2 = vld [vmem:[%s12503_s0 + $0x790] ss:$56 sps:$4 sm:$0xff]   ;;  %v12696_v11 = vld [vmem:[#allocation37_spill] sm:$0xff]  ;;  %v12698_v52 = vld [vmem:[#allocation38_spill] sm:$0xff] }
 0x244   :  { %v4705_v24 = vpop.f32.mrf.mxu1  ;;  %v5058_v25 = vpop.f32.mrf.mxu0  ;;  %v4357_v33 = vadd.f32 %v12696_v11, %v10234_v32  ;;  %v12702_v27 = vld [vmem:[#allocation40_spill] sm:$0xff] }
 0x245   :  { %12693 = vst [vmem:[#allocation34_spill] sm:$0xff] %v11082_v15  ;;  %v11086_v45 = vadd.f32 %v5056_v42, %v4704_v12  ;;  %v4706_v10 = vadd.f32 %v4705_v24, %v4353_v58  ;;  %v8672_v24 = vld [vmem:[%s12503_s0 + $0x804] ss:$56 sps:$4 sm:$0xff]   ;;  %v4361_v42 = vadd.f32 %v12698_v52, %v10232_v17  ;;  %v4365_v52 = vadd.f32 %v12702_v27, %v10232_v17 }
 0x246   :  { %v4707_v35 = vpop.f32.mrf.mxu1  ;;  %v5060_v47 = vpop.f32.mrf.mxu0  ;;  %v8678_v27 = vld [vmem:[%s12503_s0 + $0x86c] ss:$56 sps:$4 sm:$0xff]  }
 0x247   :  { %12695 = vst [vmem:[#allocation35_spill] sm:$0xff] %v11086_v45  ;;  %v11096_v37 = vadd.f32 %v5058_v25, %v4706_v10  ;;  %v4708_v50 = vadd.f32 %v4707_v35, %v4355_v60  ;;  %v12700_v60 = vld [vmem:[#allocation39_spill] sm:$0xff] }
 0x248   :  { %v4709_v12 = vpop.f32.mrf.mxu1  ;;  %v5062_v1 = vpop.f32.mrf.mxu0  ;;  %v4363_v10 = vadd.f32 %v12700_v60, %v10234_v32 }
 0x249   :  { %12697 = vst [vmem:[#allocation36_spill] sm:$0xff] %v11096_v37  ;;  %v11106_v23 = vadd.f32 %v5060_v47, %v4708_v50  ;;  %v4710_v58 = vadd.f32 %v4709_v12, %v4357_v33 }
 0x24a   :  { %v4713_v11 = vpop.f32.mrf.mxu1  ;;  %v5066_v25 = vpop.f32.mrf.mxu0  ;;  %5338 = vmatmul.mubr.bf16.gmra.mxu1 %v8661_v29  ;;  %5691 = vmatmul.mubr.bf16.gmra.mxu0 %v8664_v2  ;;  %v8667_v29 = vld [vmem:[%s12503_s0 + $0x7f8] ss:$56 sps:$4 sm:$0xff]  }
 0x24b   :  { %12699 = vst [vmem:[#allocation37_spill] sm:$0xff] %v11106_v23  ;;  %v11110_v35 = vadd.f32 %v5062_v1, %v4710_v58  ;;  %v4714_v37 = vadd.f32 %v4713_v11, %v4361_v42  ;;  %5347 = vmatprep.mubr.bf16.mxu1 %v8669_v31  ;;  %5700 = vmatprep.mubr.bf16.mxu0 %v8672_v24  ;;  %v8670_v2 = vld [vmem:[%s12503_s0 + $0x800] ss:$56 sps:$4 sm:$0xff]   ;;  %v12710_v23 = vld [vmem:[#allocation44_spill] sm:$0xff] }
 0x24c   :  { %v4715_v45 = vpop.f32.mrf.mxu1  ;;  %v5068_v15 = vpop.f32.mrf.mxu0  ;;  %v12704_v31 = vld [vmem:[#allocation41_spill] sm:$0xff]  ;;  %v12706_v11 = vld [vmem:[#allocation42_spill] sm:$0xff] }
 0x24d   :  { %12701 = vst [vmem:[#allocation38_spill] sm:$0xff] %v11110_v35  ;;  %v11114_v47 = vadd.f32 %v5066_v25, %v4714_v37  ;;  %v4716_v33 = vadd.f32 %v4715_v45, %v4363_v10  ;;  %v4367_v24 = vadd.f32 %v12704_v31, %v10234_v32  ;;  %v8681_v45 = vld [vmem:[%s12503_s0 + $0x874] ss:$56 sps:$4 sm:$0xff]   ;;  %v4371_v25 = vadd.f32 %v12706_v11, %v10232_v17 }
 0x24e   :  { %v4717_v50 = vpop.f32.mrf.mxu1  ;;  %v5070_v12 = vpop.f32.mrf.mxu0  ;;  %v4375_v11 = vadd.f32 %v12710_v23, %v10232_v17  ;;  %v8687_v23 = vld [vmem:[%s12503_s0 + $0x8dc] ss:$56 sps:$4 sm:$0xff]  }
 0x24f   :  { %12703 = vst [vmem:[#allocation39_spill] sm:$0xff] %v11114_v47  ;;  %v11124_v1 = vadd.f32 %v5068_v15, %v4716_v33  ;;  %v4718_v42 = vadd.f32 %v4717_v50, %v4365_v52  ;;  %v12708_v52 = vld [vmem:[#allocation43_spill] sm:$0xff] }
 0x250   :  { %v4719_v37 = vpop.f32.mrf.mxu1  ;;  %v5072_v58 = vpop.f32.mrf.mxu0  ;;  %v4373_v33 = vadd.f32 %v12708_v52, %v10234_v32 }
 0x251   :  { %12705 = vst [vmem:[#allocation40_spill] sm:$0xff] %v11124_v1  ;;  %v11134_v60 = vadd.f32 %v5070_v12, %v4718_v42  ;;  %v4720_v10 = vadd.f32 %v4719_v37, %v4367_v24 }
 0x252   :  { %v4723_v31 = vpop.f32.mrf.mxu1  ;;  %v5076_v15 = vpop.f32.mrf.mxu0  ;;  %5348 = vmatmul.mubr.bf16.gmra.mxu1 %v8667_v29  ;;  %5701 = vmatmul.mubr.bf16.gmra.mxu0 %v8670_v2  ;;  %v8676_v29 = vld [vmem:[%s12503_s0 + $0x868] ss:$56 sps:$4 sm:$0xff]  }
 0x253   :  { %12707 = vst [vmem:[#allocation41_spill] sm:$0xff] %v11134_v60  ;;  %v11138_v50 = vadd.f32 %v5072_v58, %v4720_v10  ;;  %v4724_v1 = vadd.f32 %v4723_v31, %v4371_v25  ;;  %5357 = vmatprep.mubr.bf16.mxu1 %v8678_v27  ;;  %5710 = vmatprep.mubr.bf16.mxu0 %v8681_v45  ;;  %v8679_v2 = vld [vmem:[%s12503_s0 + $0x870] ss:$56 sps:$4 sm:$0xff]   ;;  %v12712_v27 = vld [vmem:[#allocation45_spill] sm:$0xff]  ;;  %v12714_v31 = vld [vmem:[#allocation46_spill] sm:$0xff] }
 0x254   :  { %v4725_v47 = vpop.f32.mrf.mxu1  ;;  %v5078_v35 = vpop.f32.mrf.mxu0  ;;  %v4377_v45 = vadd.f32 %v12712_v27, %v10234_v32  ;;  %v12718_v60 = vld [vmem:[#allocation48_spill] sm:$0xff] }
 0x255   :  { %12709 = vst [vmem:[#allocation42_spill] sm:$0xff] %v11138_v50  ;;  %v11142_v12 = vadd.f32 %v5076_v15, %v4724_v1  ;;  %v4726_v24 = vadd.f32 %v4725_v47, %v4373_v33  ;;  %v8690_v47 = vld [vmem:[%s12503_s0 + $0x8e4] ss:$56 sps:$4 sm:$0xff]   ;;  %v4381_v15 = vadd.f32 %v12714_v31, %v10232_v17  ;;  %v4385_v31 = vadd.f32 %v12718_v60, %v10232_v17 }
 0x256   :  { %v4727_v42 = vpop.f32.mrf.mxu1  ;;  %v5080_v37 = vpop.f32.mrf.mxu0  ;;  %v8696_v60 = vld [vmem:[%s12503_s0 + $0x94c] ss:$56 sps:$4 sm:$0xff]  }
 0x257   :  { %12711 = vst [vmem:[#allocation43_spill] sm:$0xff] %v11142_v12  ;;  %v11152_v58 = vadd.f32 %v5078_v35, %v4726_v24  ;;  %v4728_v25 = vadd.f32 %v4727_v42, %v4375_v11  ;;  %v12716_v11 = vld [vmem:[#allocation47_spill] sm:$0xff] }
 0x258   :  { %v4729_v1 = vpop.f32.mrf.mxu1  ;;  %v5082_v10 = vpop.f32.mrf.mxu0  ;;  %v4383_v24 = vadd.f32 %v12716_v11, %v10234_v32 }
 0x259   :  { %12713 = vst [vmem:[#allocation44_spill] sm:$0xff] %v11152_v58  ;;  %v11162_v52 = vadd.f32 %v5080_v37, %v4728_v25  ;;  %v4730_v33 = vadd.f32 %v4729_v1, %v4377_v45 }
 0x25a   :  { %v4733_v27 = vpop.f32.mrf.mxu1  ;;  %v5086_v35 = vpop.f32.mrf.mxu0  ;;  %5358 = vmatmul.mubr.bf16.gmra.mxu1 %v8676_v29  ;;  %5711 = vmatmul.mubr.bf16.gmra.mxu0 %v8679_v2  ;;  %v8685_v29 = vld [vmem:[%s12503_s0 + $0x8d8] ss:$56 sps:$4 sm:$0xff]  }
 0x25b   :  { %12715 = vst [vmem:[#allocation45_spill] sm:$0xff] %v11162_v52  ;;  %v11166_v42 = vadd.f32 %v5082_v10, %v4730_v33  ;;  %v4734_v58 = vadd.f32 %v4733_v27, %v4381_v15  ;;  %5367 = vmatprep.mubr.bf16.mxu1 %v8687_v23  ;;  %5720 = vmatprep.mubr.bf16.mxu0 %v8690_v47  ;;  %v8688_v2 = vld [vmem:[%s12503_s0 + $0x8e0] ss:$56 sps:$4 sm:$0xff]   ;;  %v12722_v27 = vld [vmem:[#allocation52_spill] sm:$0xff] }
 0x25c   :  { %v4735_v12 = vpop.f32.mrf.mxu1  ;;  %v5088_v50 = vpop.f32.mrf.mxu0  ;;  %v12720_v23 = vld [vmem:[#allocation50_spill] sm:$0xff]  ;;  %v12726_v52 = vld [vmem:[#allocation56_spill] sm:$0xff] }
 0x25d   :  { %12717 = vst [vmem:[#allocation46_spill] sm:$0xff] %v11166_v42  ;;  %v11170_v37 = vadd.f32 %v5086_v35, %v4734_v58  ;;  %v4736_v45 = vadd.f32 %v4735_v12, %v4383_v24  ;;  %v4387_v47 = vadd.f32 %v12720_v23, %v10234_v32  ;;  %v8699_v12 = vld [vmem:[%s12503_s0 + $0x954] ss:$56 sps:$4 sm:$0xff]   ;;  %v4391_v35 = vadd.f32 %v12722_v27, %v10232_v17 }
 0x25e   :  { %v4737_v25 = vpop.f32.mrf.mxu1  ;;  %v5090_v1 = vpop.f32.mrf.mxu0  ;;  %v4395_v27 = vadd.f32 %v12726_v52, %v10232_v17  ;;  %v8705_v52 = vld [vmem:[%s12503_s0 + $0x9bc] ss:$56 sps:$4 sm:$0xff]  }
 0x25f   :  { %12719 = vst [vmem:[#allocation47_spill] sm:$0xff] %v11170_v37  ;;  %v11180_v10 = vadd.f32 %v5088_v50, %v4736_v45  ;;  %v4738_v15 = vadd.f32 %v4737_v25, %v4385_v31  ;;  %v12724_v31 = vld [vmem:[#allocation54_spill] sm:$0xff] }
 0x260   :  { %v4739_v58 = vpop.f32.mrf.mxu1  ;;  %v5092_v33 = vpop.f32.mrf.mxu0  ;;  %v4393_v45 = vadd.f32 %v12724_v31, %v10234_v32 }
 0x261   :  { %12721 = vst [vmem:[#allocation48_spill] sm:$0xff] %v11180_v10  ;;  %v11190_v11 = vadd.f32 %v5090_v1, %v4738_v15  ;;  %v4740_v24 = vadd.f32 %v4739_v58, %v4387_v47 }
 0x262   :  { %v4743_v23 = vpop.f32.mrf.mxu1  ;;  %v5096_v50 = vpop.f32.mrf.mxu0  ;;  %5368 = vmatmul.mubr.bf16.gmra.mxu1 %v8685_v29  ;;  %5721 = vmatmul.mubr.bf16.gmra.mxu0 %v8688_v2  ;;  %v8694_v29 = vld [vmem:[%s12503_s0 + $0x948] ss:$56 sps:$4 sm:$0xff]  }
 0x263   :  { %12723 = vst [vmem:[#allocation50_spill] sm:$0xff] %v11190_v11  ;;  %v11194_v25 = vadd.f32 %v5092_v33, %v4740_v24  ;;  %v4744_v10 = vadd.f32 %v4743_v23, %v4391_v35  ;;  %5377 = vmatprep.mubr.bf16.mxu1 %v8696_v60  ;;  %5730 = vmatprep.mubr.bf16.mxu0 %v8699_v12  ;;  %v8697_v2 = vld [vmem:[%s12503_s0 + $0x950] ss:$56 sps:$4 sm:$0xff]   ;;  %v12728_v60 = vld [vmem:[#allocation58_spill] sm:$0xff] }
 0x264   :  { %v4745_v37 = vpop.f32.mrf.mxu1  ;;  %v5098_v42 = vpop.f32.mrf.mxu0  ;;  %v4397_v12 = vadd.f32 %v12728_v60, %v10234_v32  ;;  %v12730_v23 = vld [vmem:[#allocation60_spill] sm:$0xff] }
 0x265   :  { %12725 = vst [vmem:[#allocation52_spill] sm:$0xff] %v11194_v25  ;;  %v11198_v1 = vadd.f32 %v5096_v50, %v4744_v10  ;;  %v4746_v47 = vadd.f32 %v4745_v37, %v4393_v45  ;;  %v8708_v37 = vld [vmem:[%s12503_s0 + $0x9c4] ss:$56 sps:$4 sm:$0xff]   ;;  %v4401_v50 = vadd.f32 %v12730_v23, %v10232_v17  ;;  %v12734_v11 = vld [vmem:[#allocation64_spill] sm:$0xff] }
 0x266   :  { %v4747_v15 = vpop.f32.mrf.mxu1  ;;  %v5100_v58 = vpop.f32.mrf.mxu0  ;;  %v4405_v23 = vadd.f32 %v12734_v11, %v10232_v17  ;;  %v8714_v11 = vld [vmem:[%s12503_s0 + $0xa2c] ss:$56 sps:$4 sm:$0xff]  }
 0x267   :  { %12727 = vst [vmem:[#allocation54_spill] sm:$0xff] %v11198_v1  ;;  %v11208_v33 = vadd.f32 %v5098_v42, %v4746_v47  ;;  %v4748_v35 = vadd.f32 %v4747_v15, %v4395_v27  ;;  %v12732_v27 = vld [vmem:[#allocation62_spill] sm:$0xff] }
 0x268   :  { %v4749_v10 = vpop.f32.mrf.mxu1  ;;  %v5102_v24 = vpop.f32.mrf.mxu0  ;;  %v4403_v47 = vadd.f32 %v12732_v27, %v10234_v32 }
 0x269   :  { %12729 = vst [vmem:[#allocation56_spill] sm:$0xff] %v11208_v33  ;;  %v11218_v31 = vadd.f32 %v5100_v58, %v4748_v35  ;;  %v4750_v45 = vadd.f32 %v4749_v10, %v4397_v12 }
 0x26a   :  { %v4753_v60 = vpop.f32.mrf.mxu1  ;;  %v5106_v42 = vpop.f32.mrf.mxu0  ;;  %5378 = vmatmul.mubr.bf16.gmra.mxu1 %v8694_v29  ;;  %5731 = vmatmul.mubr.bf16.gmra.mxu0 %v8697_v2  ;;  %v8703_v29 = vld [vmem:[%s12503_s0 + $0x9b8] ss:$56 sps:$4 sm:$0xff]  }
 0x26b   :  { %12731 = vst [vmem:[#allocation58_spill] sm:$0xff] %v11218_v31  ;;  %v11222_v15 = vadd.f32 %v5102_v24, %v4750_v45  ;;  %v4754_v33 = vadd.f32 %v4753_v60, %v4401_v50  ;;  %5387 = vmatprep.mubr.bf16.mxu1 %v8705_v52  ;;  %5740 = vmatprep.mubr.bf16.mxu0 %v8708_v37  ;;  %v8706_v2 = vld [vmem:[%s12503_s0 + $0x9c0] ss:$56 sps:$4 sm:$0xff]   ;;  %v12738_v60 = vld [vmem:[#allocation68_spill] sm:$0xff] }
 0x26c   :  { %v4755_v1 = vpop.f32.mrf.mxu1  ;;  %v5108_v25 = vpop.f32.mrf.mxu0  ;;  %v12736_v52 = vld [vmem:[#allocation66_spill] sm:$0xff]  ;;  %v12742_v31 = vld [vmem:[#allocation72_spill] sm:$0xff] }
 0x26d   :  { %12733 = vst [vmem:[#allocation60_spill] sm:$0xff] %v11222_v15  ;;  %v11226_v58 = vadd.f32 %v5106_v42, %v4754_v33  ;;  %v4756_v12 = vadd.f32 %v4755_v1, %v4403_v47  ;;  %v4407_v37 = vadd.f32 %v12736_v52, %v10234_v32  ;;  %v8717_v1 = vld [vmem:[%s12503_s0 + $0xa34] ss:$56 sps:$4 sm:$0xff]   ;;  %v4411_v42 = vadd.f32 %v12738_v60, %v10232_v17 }
 0x26e   :  { %v4757_v35 = vpop.f32.mrf.mxu1  ;;  %v5110_v10 = vpop.f32.mrf.mxu0  ;;  %v4415_v60 = vadd.f32 %v12742_v31, %v10232_v17  ;;  %v8720_v31 = vld [vmem:[%s12503_s0 + $0xa9c] ss:$56 sps:$4 sm:$0xff]  }
 0x26f   :  { %12735 = vst [vmem:[#allocation62_spill] sm:$0xff] %v11226_v58  ;;  %v11236_v24 = vadd.f32 %v5108_v25, %v4756_v12  ;;  %v4758_v50 = vadd.f32 %v4757_v35, %v4405_v23  ;;  %v12740_v23 = vld [vmem:[#allocation70_spill] sm:$0xff] }
 0x270   :  { %v4759_v33 = vpop.f32.mrf.mxu1  ;;  %v5112_v45 = vpop.f32.mrf.mxu0  ;;  %v4413_v12 = vadd.f32 %v12740_v23, %v10234_v32 }
 0x271   :  { %12737 = vst [vmem:[#allocation64_spill] sm:$0xff] %v11236_v24  ;;  %v11246_v27 = vadd.f32 %v5110_v10, %v4758_v50  ;;  %v4760_v47 = vadd.f32 %v4759_v33, %v4407_v37 }
 0x272   :  { %v4763_v52 = vpop.f32.mrf.mxu1  ;;  %v5116_v25 = vpop.f32.mrf.mxu0  ;;  %5388 = vmatmul.mubr.bf16.gmra.mxu1 %v8703_v29  ;;  %5741 = vmatmul.mubr.bf16.gmra.mxu0 %v8706_v2  ;;  %v8712_v29 = vld [vmem:[%s12503_s0 + $0xa28] ss:$56 sps:$4 sm:$0xff]  }
 0x273   :  { %12739 = vst [vmem:[#allocation66_spill] sm:$0xff] %v11246_v27  ;;  %v11250_v35 = vadd.f32 %v5112_v45, %v4760_v47  ;;  %v4764_v24 = vadd.f32 %v4763_v52, %v4411_v42  ;;  %5397 = vmatprep.mubr.bf16.mxu1 %v8714_v11  ;;  %5750 = vmatprep.mubr.bf16.mxu0 %v8717_v1  ;;  %v8715_v2 = vld [vmem:[%s12503_s0 + $0xa30] ss:$56 sps:$4 sm:$0xff]   ;;  %v12744_v11 = vld [vmem:[#allocation74_spill] sm:$0xff] }
 0x274   :  { %v4765_v58 = vpop.f32.mrf.mxu1  ;;  %v5118_v15 = vpop.f32.mrf.mxu0  ;;  %v4417_v1 = vadd.f32 %v12744_v11, %v10234_v32  ;;  %v12746_v52 = vld [vmem:[#allocation76_spill] sm:$0xff] }
 0x275   :  { %12741 = vst [vmem:[#allocation68_spill] sm:$0xff] %v11250_v35  ;;  %v11254_v10 = vadd.f32 %v5116_v25, %v4764_v24  ;;  %v4766_v37 = vadd.f32 %v4765_v58, %v4413_v12  ;;  %v8723_v58 = vld [vmem:[%s12503_s0 + $0xaa4] ss:$56 sps:$4 sm:$0xff]   ;;  %v4421_v25 = vadd.f32 %v12746_v52, %v10232_v17  ;;  %v12748_v27 = vld [vmem:[#allocation80_spill] sm:$0xff] }
 0x276   :  { %v4767_v50 = vpop.f32.mrf.mxu1  ;;  %v5120_v33 = vpop.f32.mrf.mxu0  ;;  %v4425_v52 = vadd.f32 %v12748_v27, %v10232_v17  ;;  %v8732_v17 = vld [vmem:[%s12503_s0 + $0xb0c] ss:$56 sps:$4 sm:$0xff]  }
 0x277   :  { %12743 = vst [vmem:[#allocation70_spill] sm:$0xff] %v11254_v10  ;;  %v11264_v45 = vadd.f32 %v5118_v15, %v4766_v37  ;;  %v4768_v42 = vadd.f32 %v4767_v50, %v4415_v60  ;;  %v12747_v60 = vld [vmem:[#allocation78_spill] sm:$0xff]  ;;  %v8735_v27 = vld [vmem:[%s12503_s0 + $0xb14] ss:$56 sps:$4 sm:$0xff]  }
 0x278   :  { %v4769_v24 = vpop.f32.mrf.mxu1  ;;  %v5122_v47 = vpop.f32.mrf.mxu0  ;;  %v4423_v37 = vadd.f32 %v12747_v60, %v10234_v32 }
 0x279   :  { %12745 = vst [vmem:[#allocation72_spill] sm:$0xff] %v11264_v45  ;;  %v11274_v23 = vadd.f32 %v5120_v33, %v4768_v42  ;;  %v4770_v12 = vadd.f32 %v4769_v24, %v4417_v1 }
 0x27a   :  { %v4773_v11 = vpop.f32.mrf.mxu1  ;;  %v5126_v15 = vpop.f32.mrf.mxu0  ;;  %5398 = vmatmul.mubr.bf16.gmra.mxu1 %v8712_v29  ;;  %5751 = vmatmul.mubr.bf16.gmra.mxu0 %v8715_v2  ;;  %v8718_v29 = vld [vmem:[%s12503_s0 + $0xa98] ss:$56 sps:$4 sm:$0xff]  }
 0x27b   :  { %v11278_v50 = vadd.f32 %v5122_v47, %v4770_v12  ;;  %v4774_v45 = vadd.f32 %v4773_v11, %v4421_v25  ;;  %5407 = vmatprep.mubr.bf16.mxu1 %v8720_v31  ;;  %5760 = vmatprep.mubr.bf16.mxu0 %v8723_v58  ;;  %v8721_v2 = vld [vmem:[%s12503_s0 + $0xaa0] ss:$56 sps:$4 sm:$0xff]  }
 0x27c   :  { %v4775_v10 = vpop.f32.mrf.mxu1  ;;  %v5128_v35 = vpop.f32.mrf.mxu0  ;;  %v12750_v31 = vld [vmem:[#allocation82_spill] sm:$0xff] }
 0x27d   :  { %v11282_v33 = vadd.f32 %v5126_v15, %v4774_v45  ;;  %v4776_v1 = vadd.f32 %v4775_v10, %v4423_v37  ;;  %v4427_v58 = vadd.f32 %v12750_v31, %v10234_v32  ;;  %v12753_v31 = vld [vmem:[#allocation84_spill] sm:$0xff] }
 0x27e   :  { %v4777_v42 = vpop.f32.mrf.mxu1  ;;  %v5130_v24 = vpop.f32.mrf.mxu0 }
 0x27f   :  { %12749 = vst [vmem:[#allocation74_spill] sm:$0xff] %v11282_v33  ;;  %v11292_v47 = vadd.f32 %v5128_v35, %v4776_v1  ;;  %v4778_v25 = vadd.f32 %v4777_v42, %v4425_v52  ;;  %v12752_v35 = vld [vmem:[#allocation83_spill] sm:$0xff] }
 0x280   :  { %v4779_v10 = vpop.f32.mrf.mxu1  ;;  %v5132_v45 = vpop.f32.mrf.mxu0 }
 0x281   :  { %12751 = vst [vmem:[#allocation76_spill] sm:$0xff] %v11292_v47  ;;  %v11300_v12 = vadd.f32 %v5130_v24, %v4778_v25  ;;  %v4780_v11 = vadd.f32 %v4779_v10, %v4427_v58 }
 0x282   :  { %v5169_v15 = vpop.f32.mrf.mxu1  ;;  %5408 = vmatmul.mubr.bf16.gmra.mxu1 %v8718_v29  ;;  %v5522_v60 = vpop.f32.mrf.mxu0  ;;  %5761 = vmatmul.mubr.bf16.gmra.mxu0 %v8721_v2  ;;  %v8730_v29 = vld [vmem:[%s12503_s0 + $0xb08] ss:$56 sps:$4 sm:$0xff]  }
 0x283   :  { %v11302_v32 = vadd.f32 %v5132_v45, %v4780_v11  ;;  %v5170_v37 = vadd.f32 %v5169_v15, %v12752_v35  ;;  %5417 = vmatprep.mubr.bf16.mxu1 %v8732_v17  ;;  %5770 = vmatprep.mubr.bf16.mxu0 %v8735_v27  ;;  %v8733_v2 = vld [vmem:[%s12503_s0 + $0xb10] ss:$56 sps:$4 sm:$0xff]   ;;  %v8738_v17 = vld [vmem:[%s12503_s0 + $0xb7c] ss:$56 sps:$4 sm:$0xff]  }
 0x284   :  { %v5171_v52 = vpop.f32.mrf.mxu1  ;;  %v5524_v1 = vpop.f32.mrf.mxu0  ;;  %v8741_v27 = vld [vmem:[%s12503_s0 + $0xb84] ss:$56 sps:$4 sm:$0xff]  }
 0x285   :  { %v11305_v42 = vadd.f32 %v5522_v60, %v5170_v37  ;;  %v5172_v47 = vadd.f32 %v5171_v52, %v12753_v31 }
 0x286   :  { %v5173_v33 = vpop.f32.mrf.mxu1  ;;  %v5526_v24 = vpop.f32.mrf.mxu0 }
 0x287   :  { %v11314_v58 = vadd.f32 %v5524_v1, %v5172_v47  ;;  %v5174_v25 = vadd.f32 %v5173_v33, %v10272_v57 }
 0x288   :  { %v5175_v10 = vpop.f32.mrf.mxu1  ;;  %v5528_v45 = vpop.f32.mrf.mxu0 }
 0x289   :  { %v11323_v11 = vadd.f32 %v5526_v24, %v5174_v25  ;;  %v5176_v15 = vadd.f32 %v5175_v10, %v10276_v19  ;;  %v8736_v19 = vld [vmem:[%s12503_s0 + $0xb78] ss:$56 sps:$4 sm:$0xff]   ;;  %v8747_v25 = vld [vmem:[%s12503_s0 + $0xbec] ss:$56 sps:$4 sm:$0xff]  }
 0x28a   :  { %v5179_v60 = vpop.f32.mrf.mxu1  ;;  %5418 = vmatmul.mubr.bf16.gmra.mxu1 %v8730_v29  ;;  %v5532_v47 = vpop.f32.mrf.mxu0  ;;  %5771 = vmatmul.mubr.bf16.gmra.mxu0 %v8733_v2  ;;  %v8739_v29 = vld [vmem:[%s12503_s0 + $0xb80] ss:$56 sps:$4 sm:$0xff]  }
 0x28b   :  { %v11326_v35 = vadd.f32 %v5528_v45, %v5176_v15  ;;  %v5180_v57 = vadd.f32 %v5179_v60, %v10280_v54  ;;  %5427 = vmatprep.mubr.bf16.mxu1 %v8738_v17  ;;  %5780 = vmatprep.mubr.bf16.mxu0 %v8741_v27 }
 0x28c   :  { %v5181_v33 = vpop.f32.mrf.mxu1  ;;  %v5534_v37 = vpop.f32.mrf.mxu0 }
 0x28d   :  { %v11329_v52 = vadd.f32 %v5532_v47, %v5180_v57  ;;  %v5182_v1 = vadd.f32 %v5181_v33, %v10290_v4  ;;  %v8750_v4 = vld [vmem:[%s12503_s0 + $0xbf4] ss:$56 sps:$4 sm:$0xff]  }
 0x28e   :  { %v5183_v31 = vpop.f32.mrf.mxu1  ;;  %v5536_v24 = vpop.f32.mrf.mxu0 }
 0x28f   :  { %v11338_v2 = vadd.f32 %v5534_v37, %v5182_v1  ;;  %v5184_v54 = vadd.f32 %v5183_v31, %v10300_v3 }
 0x290   :  { %v5185_v17 = vpop.f32.mrf.mxu1  ;;  %v5538_v27 = vpop.f32.mrf.mxu0 }
 0x291   :  { %v11347_v10 = vadd.f32 %v5536_v24, %v5184_v54  ;;  %v5186_v45 = vadd.f32 %v5185_v17, %v10304_v49  ;;  %v8745_v49 = vld [vmem:[%s12503_s0 + $0xbe8] ss:$56 sps:$4 sm:$0xff]   ;;  %v8756_v54 = vld [vmem:[%s12503_s0 + $0xc5c] ss:$56 sps:$4 sm:$0xff]  }
 0x292   :  { %v5189_v15 = vpop.f32.mrf.mxu1  ;;  %5428 = vmatmul.mubr.bf16.gmra.mxu1 %v8736_v19  ;;  %v5542_v60 = vpop.f32.mrf.mxu0  ;;  %5781 = vmatmul.mubr.bf16.gmra.mxu0 %v8739_v29  ;;  %v8748_v19 = vld [vmem:[%s12503_s0 + $0xbf0] ss:$56 sps:$4 sm:$0xff]  }
 0x293   :  { %v11350_v47 = vadd.f32 %v5538_v27, %v5186_v45  ;;  %v5190_v3 = vadd.f32 %v5189_v15, %v10308_v5  ;;  %5437 = vmatprep.mubr.bf16.mxu1 %v8747_v25  ;;  %5790 = vmatprep.mubr.bf16.mxu0 %v8750_v4 }
 0x294   :  { %v5191_v57 = vpop.f32.mrf.mxu1  ;;  %v5544_v33 = vpop.f32.mrf.mxu0 }
 0x295   :  { %v11353_v37 = vadd.f32 %v5542_v60, %v5190_v3  ;;  %v5192_v1 = vadd.f32 %v5191_v57, %v10318_v41  ;;  %v8759_v41 = vld [vmem:[%s12503_s0 + $0xc64] ss:$56 sps:$4 sm:$0xff]  }
 0x296   :  { %v5193_v31 = vpop.f32.mrf.mxu1  ;;  %v5546_v24 = vpop.f32.mrf.mxu0 }
 0x297   :  { %v11362_v29 = vadd.f32 %v5544_v33, %v5192_v1  ;;  %v5194_v5 = vadd.f32 %v5193_v31, %v10328_v21 }
 0x298   :  { %v5195_v25 = vpop.f32.mrf.mxu1  ;;  %v5548_v4 = vpop.f32.mrf.mxu0 }
 0x299   :  { %v11371_v17 = vadd.f32 %v5546_v24, %v5194_v5  ;;  %v5196_v27 = vadd.f32 %v5195_v25, %v10332_v22  ;;  %v8754_v22 = vld [vmem:[%s12503_s0 + $0xc58] ss:$56 sps:$4 sm:$0xff]   ;;  %v8765_v5 = vld [vmem:[%s12503_s0 + $0xccc] ss:$56 sps:$4 sm:$0xff]  }
 0x29a   :  { %v5199_v45 = vpop.f32.mrf.mxu1  ;;  %5438 = vmatmul.mubr.bf16.gmra.mxu1 %v8745_v49  ;;  %v5552_v15 = vpop.f32.mrf.mxu0  ;;  %5791 = vmatmul.mubr.bf16.gmra.mxu0 %v8748_v19  ;;  %v8757_v49 = vld [vmem:[%s12503_s0 + $0xc60] ss:$56 sps:$4 sm:$0xff]  }
 0x29b   :  { %v11374_v60 = vadd.f32 %v5548_v4, %v5196_v27  ;;  %v5200_v21 = vadd.f32 %v5199_v45, %v10336_v56  ;;  %5447 = vmatprep.mubr.bf16.mxu1 %v8756_v54  ;;  %5800 = vmatprep.mubr.bf16.mxu0 %v8759_v41 }
 0x29c   :  { %v5201_v3 = vpop.f32.mrf.mxu1  ;;  %v5554_v57 = vpop.f32.mrf.mxu0 }
 0x29d   :  { %v11377_v33 = vadd.f32 %v5552_v15, %v5200_v21  ;;  %v5202_v1 = vadd.f32 %v5201_v3, %v10346_v63  ;;  %v8768_v63 = vld [vmem:[%s12503_s0 + $0xcd4] ss:$56 sps:$4 sm:$0xff]  }
 0x29e   :  { %v5203_v31 = vpop.f32.mrf.mxu1  ;;  %v5556_v24 = vpop.f32.mrf.mxu0 }
 0x29f   :  { %v11386_v19 = vadd.f32 %v5554_v57, %v5202_v1  ;;  %v5204_v56 = vadd.f32 %v5203_v31, %v10356_v6 }
 0x2a0   :  { %v5205_v54 = vpop.f32.mrf.mxu1  ;;  %v5558_v41 = vpop.f32.mrf.mxu0 }
 0x2a1   :  { %v11395_v25 = vadd.f32 %v5556_v24, %v5204_v56  ;;  %v5206_v4 = vadd.f32 %v5205_v54, %v10360_v51  ;;  %v8763_v51 = vld [vmem:[%s12503_s0 + $0xcc8] ss:$56 sps:$4 sm:$0xff]   ;;  %v8774_v56 = vld [vmem:[%s12503_s0 + $0xd3c] ss:$56 sps:$4 sm:$0xff]  }
 0x2a2   :  { %v5209_v27 = vpop.f32.mrf.mxu1  ;;  %5448 = vmatmul.mubr.bf16.gmra.mxu1 %v8754_v22  ;;  %v5562_v45 = vpop.f32.mrf.mxu0  ;;  %5801 = vmatmul.mubr.bf16.gmra.mxu0 %v8757_v49  ;;  %v8766_v22 = vld [vmem:[%s12503_s0 + $0xcd0] ss:$56 sps:$4 sm:$0xff]  }
 0x2a3   :  { %v11398_v15 = vadd.f32 %v5558_v41, %v5206_v4  ;;  %v5210_v6 = vadd.f32 %v5209_v27, %v10364_v8  ;;  %5457 = vmatprep.mubr.bf16.mxu1 %v8765_v5  ;;  %5810 = vmatprep.mubr.bf16.mxu0 %v8768_v63 }
 0x2a4   :  { %v5211_v21 = vpop.f32.mrf.mxu1  ;;  %v5564_v3 = vpop.f32.mrf.mxu0 }
 0x2a5   :  { %v11401_v57 = vadd.f32 %v5562_v45, %v5210_v6  ;;  %v5212_v1 = vadd.f32 %v5211_v21, %v10374_v9  ;;  %v8777_v9 = vld [vmem:[%s12503_s0 + $0xd44] ss:$56 sps:$4 sm:$0xff]  }
 0x2a6   :  { %v5213_v31 = vpop.f32.mrf.mxu1  ;;  %v5566_v24 = vpop.f32.mrf.mxu0 }
 0x2a7   :  { %v11410_v49 = vadd.f32 %v5564_v3, %v5212_v1  ;;  %v5214_v8 = vadd.f32 %v5213_v31, %v10384_v18 }
 0x2a8   :  { %v5215_v5 = vpop.f32.mrf.mxu1  ;;  %v5568_v63 = vpop.f32.mrf.mxu0 }
 0x2a9   :  { %v11419_v54 = vadd.f32 %v5566_v24, %v5214_v8  ;;  %v5216_v41 = vadd.f32 %v5215_v5, %v10388_v43  ;;  %v8772_v43 = vld [vmem:[%s12503_s0 + $0xd38] ss:$56 sps:$4 sm:$0xff]   ;;  %v8783_v8 = vld [vmem:[%s12503_s0 + $0xdac] ss:$56 sps:$4 sm:$0xff]  }
 0x2aa   :  { %v5219_v4 = vpop.f32.mrf.mxu1  ;;  %5458 = vmatmul.mubr.bf16.gmra.mxu1 %v8763_v51  ;;  %v5572_v27 = vpop.f32.mrf.mxu0  ;;  %5811 = vmatmul.mubr.bf16.gmra.mxu0 %v8766_v22  ;;  %v8775_v51 = vld [vmem:[%s12503_s0 + $0xd40] ss:$56 sps:$4 sm:$0xff]  }
 0x2ab   :  { %v11422_v45 = vadd.f32 %v5568_v63, %v5216_v41  ;;  %v5220_v18 = vadd.f32 %v5219_v4, %v10392_v20  ;;  %5467 = vmatprep.mubr.bf16.mxu1 %v8774_v56  ;;  %5820 = vmatprep.mubr.bf16.mxu0 %v8777_v9 }
 0x2ac   :  { %v5221_v6 = vpop.f32.mrf.mxu1  ;;  %v5574_v21 = vpop.f32.mrf.mxu0 }
 0x2ad   :  { %v11425_v3 = vadd.f32 %v5572_v27, %v5220_v18  ;;  %v5222_v1 = vadd.f32 %v5221_v6, %v10402_v13  ;;  %v8786_v13 = vld [vmem:[%s12503_s0 + $0xdb4] ss:$56 sps:$4 sm:$0xff]  }
 0x2ae   :  { %v5223_v31 = vpop.f32.mrf.mxu1  ;;  %v5576_v24 = vpop.f32.mrf.mxu0 }
 0x2af   :  { %v11434_v22 = vadd.f32 %v5574_v21, %v5222_v1  ;;  %v5224_v20 = vadd.f32 %v5223_v31, %v10412_v34 }
 0x2b0   :  { %v5225_v56 = vpop.f32.mrf.mxu1  ;;  %v5578_v9 = vpop.f32.mrf.mxu0 }
 0x2b1   :  { %v11443_v5 = vadd.f32 %v5576_v24, %v5224_v20  ;;  %v5226_v63 = vadd.f32 %v5225_v56, %v10416_v55  ;;  %v8781_v55 = vld [vmem:[%s12503_s0 + $0xda8] ss:$56 sps:$4 sm:$0xff]   ;;  %v8789_v20 = vld [vmem:[%s12503_s0 + $0x2c] ss:$56 sps:$4 sm:$0xff]  }
 0x2b2   :  { %v5229_v41 = vpop.f32.mrf.mxu1  ;;  %5468 = vmatmul.mubr.bf16.gmra.mxu1 %v8772_v43  ;;  %v5582_v4 = vpop.f32.mrf.mxu0  ;;  %5821 = vmatmul.mubr.bf16.gmra.mxu0 %v8775_v51  ;;  %v8784_v43 = vld [vmem:[%s12503_s0 + $0xdb0] ss:$56 sps:$4 sm:$0xff]  }
 0x2b3   :  { %v11446_v27 = vadd.f32 %v5578_v9, %v5226_v63  ;;  %v5230_v34 = vadd.f32 %v5229_v41, %v10420_v36  ;;  %5477 = vmatprep.mubr.bf16.mxu1 %v8783_v8  ;;  %5830 = vmatprep.mubr.bf16.mxu0 %v8786_v13 }
 0x2b4   :  { %v5231_v18 = vpop.f32.mrf.mxu1  ;;  %v5584_v6 = vpop.f32.mrf.mxu0 }
 0x2b5   :  { %v11449_v21 = vadd.f32 %v5582_v4, %v5230_v34  ;;  %v5232_v1 = vadd.f32 %v5231_v18, %v10430_v7  ;;  %v8792_v7 = vld [vmem:[%s12503_s0 + $0x34] ss:$56 sps:$4 sm:$0xff]  }
 0x2b6   :  { %v5233_v31 = vpop.f32.mrf.mxu1  ;;  %v5586_v24 = vpop.f32.mrf.mxu0 }
 0x2b7   :  { %v11458_v51 = vadd.f32 %v5584_v6, %v5232_v1  ;;  %v5234_v36 = vadd.f32 %v5233_v31, %v10440_v46  ;;  %v12754_v1 = vld [vmem:[#allocation85_spill] sm:$0xff] }
 0x2b8   :  { %v5235_v8 = vpop.f32.mrf.mxu1  ;;  %v5588_v13 = vpop.f32.mrf.mxu0 }
 0x2b9   :  { %v11467_v56 = vadd.f32 %v5586_v24, %v5234_v36  ;;  %v5236_v9 = vadd.f32 %v5235_v8, %v10444_v16  ;;  %v8787_v16 = vld [vmem:[%s12503_s0 + $0x28] ss:$56 sps:$4 sm:$0xff]  }
 0x2ba   :  { %v5239_v63 = vpop.f32.mrf.mxu1  ;;  %5478 = vmatmul.mubr.bf16.gmra.mxu1 %v8781_v55  ;;  %v5592_v41 = vpop.f32.mrf.mxu0  ;;  %5831 = vmatmul.mubr.bf16.gmra.mxu0 %v8784_v43  ;;  %v8790_v55 = vld [vmem:[%s12503_s0 + $0x30] ss:$56 sps:$4 sm:$0xff]  }
 0x2bb   :  { %v11470_v46 = vadd.f32 %v5588_v13, %v5236_v9  ;;  %v5240_v4 = vadd.f32 %v5239_v63, %v10448_v48  ;;  %5873 = vmatprep.mubr.bf16.mxu1 %v8789_v20  ;;  %7791 = vmatprep.mubr.msk.bf16.mxu0 %vm3979_vm0, %v8792_v7  ;;  %v8795_v20 = vld [vmem:[%s12503_s0 + $0x9c] ss:$56 sps:$4 sm:$0xff]  }
 0x2bc   :  { %v5241_v34 = vpop.f32.mrf.mxu1  ;;  %v5594_v18 = vpop.f32.mrf.mxu0  ;;  %v8796_v7 = vld [vmem:[%s12503_s0 + $0xa4] ss:$56 sps:$4 sm:$0xff]  }
 0x2bd   :  { %v11474_v6 = vadd.f32 %v5592_v41, %v5240_v4  ;;  %v5242_v31 = vadd.f32 %v5241_v34, %v12754_v1 }
 0x2be   :  { %v5243_v24 = vpop.f32.mrf.mxu1  ;;  %v5596_v36 = vpop.f32.mrf.mxu0 }
 0x2bf   :  { %v11483_v48 = vadd.f32 %v5594_v18, %v5242_v31  ;;  %v5244_v43 = vadd.f32 %v5243_v24, %v10474_v40 }
 0x2c0   :  { %v5245_v8 = vpop.f32.mrf.mxu1  ;;  %v5598_v13 = vpop.f32.mrf.mxu0 }
 0x2c1   :  { %v11492_v9 = vadd.f32 %v5596_v36, %v5244_v43  ;;  %v5246_v63 = vadd.f32 %v5245_v8, %v10484_v62  ;;  %v8793_v62 = vld [vmem:[%s12503_s0 + $0x98] ss:$56 sps:$4 sm:$0xff]  }
 0x2c2   :  { %v5249_v41 = vpop.f32.mrf.mxu1  ;;  %v5602_v4 = vpop.f32.mrf.mxu0  ;;  %5874 = vmatmul.mubr.bf16.vlgmr.msra.gmra.mxu1 %v8787_v16  ;;  %6227 = vmatmul.mubr.bf16.vlgmr.msra.gmra.mxu0 %v8790_v55  ;;  %v8798_v16 = vld [vmem:[%s12503_s0 + $0xa0] ss:$56 sps:$4 sm:$0xff]  }
 0x2c3   :  { %v11495_v34 = vadd.f32 %v5598_v13, %v5246_v63  ;;  %v5250_v40 = vadd.f32 %v5249_v41, %v10500_v28  ;;  %5883 = vmatprep.mubr.bf16.mxu1 %v8795_v20  ;;  %7792 = vmatprep.mubr.msk.bf16.mxu0 %vm3979_vm0, %v8796_v7  ;;  %v8801_v20 = vld [vmem:[%s12503_s0 + $0x10c] ss:$56 sps:$4 sm:$0xff]  }
 0x2c4   :  { %v5251_v18 = vpop.f32.mrf.mxu1  ;;  %v5604_v1 = vpop.f32.mrf.mxu0 }
 0x2c5   :  { %v11499_v31 = vadd.f32 %v5602_v4, %v5250_v40  ;;  %v5252_v24 = vadd.f32 %v5251_v18, %v10510_v61  ;;  %v8802_v61 = vld [vmem:[%s12503_s0 + $0x114] ss:$56 sps:$4 sm:$0xff]  }
 0x2c6   :  { %v5253_v36 = vpop.f32.mrf.mxu1  ;;  %v5606_v43 = vpop.f32.mrf.mxu0 }
 0x2c7   :  { %v11508_v28 = vadd.f32 %v5604_v1, %v5252_v24  ;;  %v5254_v55 = vadd.f32 %v5253_v36, %v10526_v30 }
 0x2c8   :  { %v5255_v7 = vpop.f32.mrf.mxu1  ;;  %v5608_v8 = vpop.f32.mrf.mxu0 }
 0x2c9   :  { %v11517_v13 = vadd.f32 %v5606_v43, %v5254_v55  ;;  %v5256_v63 = vadd.f32 %v5255_v7, %v10536_v26  ;;  %v8799_v26 = vld [vmem:[%s12503_s0 + $0x108] ss:$56 sps:$4 sm:$0xff]  }
 0x2ca   :  { %v5259_v41 = vpop.f32.mrf.mxu1  ;;  %v5612_v4 = vpop.f32.mrf.mxu0  ;;  %5884 = vmatmul.mubr.bf16.gmra.mxu1 %v8793_v62  ;;  %6237 = vmatmul.mubr.bf16.gmra.mxu0 %v8798_v16  ;;  %v8804_v62 = vld [vmem:[%s12503_s0 + $0x110] ss:$56 sps:$4 sm:$0xff]  }
 0x2cb   :  { %v11520_v40 = vadd.f32 %v5608_v8, %v5256_v63  ;;  %v5260_v30 = vadd.f32 %v5259_v41, %v10546_v0  ;;  %5893 = vmatprep.mubr.bf16.mxu1 %v8801_v20  ;;  %7793 = vmatprep.mubr.msk.bf16.mxu0 %vm3979_vm0, %v8802_v61  ;;  %v8807_v20 = vld [vmem:[%s12503_s0 + $0x17c] ss:$56 sps:$4 sm:$0xff]  }
 0x2cc   :  { %v5261_v18 = vpop.f32.mrf.mxu1  ;;  %v5614_v1 = vpop.f32.mrf.mxu0 }
 0x2cd   :  { %v11524_v24 = vadd.f32 %v5612_v4, %v5260_v30  ;;  %v5262_v36 = vadd.f32 %v5261_v18, %v10562_v53  ;;  %v8808_v53 = vld [vmem:[%s12503_s0 + $0x184] ss:$56 sps:$4 sm:$0xff]  }
 0x2ce   :  { %v5263_v43 = vpop.f32.mrf.mxu1  ;;  %v5616_v55 = vpop.f32.mrf.mxu0 }
 0x2cf   :  { %v11533_v0 = vadd.f32 %v5614_v1, %v5262_v36  ;;  %v5264_v16 = vadd.f32 %v5263_v43, %v10578_v38  ;;  %v12757_v38 = vld [vmem:[#allocation86_spill] sm:$0xff] }
 0x2d0   :  { %v5265_v61 = vpop.f32.mrf.mxu1  ;;  %v5618_v7 = vpop.f32.mrf.mxu0 }
 0x2d1   :  { %12755 = vst [vmem:[#allocation78_spill] sm:$0xff] %v11533_v0  ;;  %v11542_v8 = vadd.f32 %v5616_v55, %v5264_v16  ;;  %v5266_v63 = vadd.f32 %v5265_v61, %v10588_v39  ;;  %v12758_v0 = vld [vmem:[#allocation87_spill] sm:$0xff]  ;;  %v8805_v39 = vld [vmem:[%s12503_s0 + $0x178] ss:$56 sps:$4 sm:$0xff]  }
 0x2d2   :  { %v5269_v41 = vpop.f32.mrf.mxu1  ;;  %v5622_v4 = vpop.f32.mrf.mxu0  ;;  %5894 = vmatmul.mubr.bf16.gmra.mxu1 %v8799_v26  ;;  %6247 = vmatmul.mubr.bf16.gmra.mxu0 %v8804_v62  ;;  %v8810_v26 = vld [vmem:[%s12503_s0 + $0x180] ss:$56 sps:$4 sm:$0xff]  }
 0x2d3   :  { %12756 = vst [vmem:[#allocation80_spill] sm:$0xff] %v11542_v8  ;;  %v11545_v30 = vadd.f32 %v5618_v7, %v5266_v63  ;;  %v5270_v18 = vadd.f32 %v5269_v41, %v12757_v38  ;;  %5903 = vmatprep.mubr.bf16.mxu1 %v8807_v20  ;;  %7794 = vmatprep.mubr.msk.bf16.mxu0 %vm3979_vm0, %v8808_v53  ;;  %v8813_v53 = vld [vmem:[%s12503_s0 + $0x1ec] ss:$56 sps:$4 sm:$0xff]  }
 0x2d4   :  { %v5271_v1 = vpop.f32.mrf.mxu1  ;;  %v5624_v36 = vpop.f32.mrf.mxu0 }
 0x2d5   :  { %v11549_v43 = vadd.f32 %v5622_v4, %v5270_v18  ;;  %v5272_v55 = vadd.f32 %v5271_v1, %v12758_v0  ;;  %v8814_v0 = vld [vmem:[%s12503_s0 + $0x1f4] ss:$56 sps:$4 sm:$0xff]  }
 0x2d6   :  { %v5273_v16 = vpop.f32.mrf.mxu1  ;;  %v5626_v8 = vpop.f32.mrf.mxu0 }
 0x2d7   :  { %v11558_v62 = vadd.f32 %v5624_v36, %v5272_v55  ;;  %v5274_v20 = vadd.f32 %v5273_v16, %v10630_v14  ;;  %v12762_v14 = vld [vmem:[#allocation88_spill] sm:$0xff] }
 0x2d8   :  { %v5275_v61 = vpop.f32.mrf.mxu1  ;;  %v5628_v7 = vpop.f32.mrf.mxu0 }
 0x2d9   :  { %12759 = vst [vmem:[#allocation82_spill] sm:$0xff] %v11558_v62  ;;  %v11567_v63 = vadd.f32 %v5626_v8, %v5274_v20  ;;  %v5276_v41 = vadd.f32 %v5275_v61, %v10637_v59  ;;  %v12764_v62 = vld [vmem:[#allocation49_spill] sm:$0xff]  ;;  %v8811_v59 = vld [vmem:[%s12503_s0 + $0x1e8] ss:$56 sps:$4 sm:$0xff]  }
 0x2da   :  { %v5279_v4 = vpop.f32.mrf.mxu1  ;;  %v5632_v38 = vpop.f32.mrf.mxu0  ;;  %5904 = vmatmul.mubr.bf16.gmra.mxu1 %v8805_v39  ;;  %6257 = vmatmul.mubr.bf16.gmra.mxu0 %v8810_v26  ;;  %v8816_v39 = vld [vmem:[%s12503_s0 + $0x1f0] ss:$56 sps:$4 sm:$0xff]   ;;  %v8819_v61 = vld [vmem:[%s12503_s0 + $0x25c] ss:$56 sps:$4 sm:$0xff]  }
 0x2db   :  { %12760 = vst [vmem:[#allocation83_spill] sm:$0xff] %v11567_v63  ;;  %v11570_v18 = vadd.f32 %v5628_v7, %v5276_v41  ;;  %v5280_v1 = vadd.f32 %v5279_v4, %v12762_v14  ;;  %5913 = vmatprep.mubr.bf16.mxu1 %v8813_v53  ;;  %7795 = vmatprep.mubr.msk.bf16.mxu0 %vm3979_vm0, %v8814_v0  ;;  %v12766_v53 = vld [vmem:[#allocation51_spill] sm:$0xff] }
 0x2dc   :  { %v5281_v36 = vpop.f32.mrf.mxu1  ;;  %v5634_v55 = vpop.f32.mrf.mxu0 }
 0x2dd   :  { %12761 = vst [vmem:[#allocation84_spill] sm:$0xff] %v11570_v18  ;;  %v11574_v16 = vadd.f32 %v5632_v38, %v5280_v1  ;;  %v5282_v8 = vadd.f32 %v5281_v36, %v12764_v62  ;;  %v8820_v62 = vld [vmem:[%s12503_s0 + $0x264] ss:$56 sps:$4 sm:$0xff]  }
 0x2de   :  { %v5283_v20 = vpop.f32.mrf.mxu1  ;;  %v5636_v63 = vpop.f32.mrf.mxu0  ;;  %v12768_v38 = vld [vmem:[#allocation53_spill] sm:$0xff] }
 0x2df   :  { %12763 = vst [vmem:[#allocation85_spill] sm:$0xff] %v11574_v16  ;;  %v11583_v26 = vadd.f32 %v5634_v55, %v5282_v8  ;;  %v5284_v0 = vadd.f32 %v5283_v20, %v12766_v53  ;;  %v12770_v8 = vld [vmem:[#allocation55_spill] sm:$0xff]  ;;  %v12772_v18 = vld [vmem:[#allocation57_spill] sm:$0xff] }
 0x2e0   :  { %v5285_v7 = vpop.f32.mrf.mxu1  ;;  %v5638_v41 = vpop.f32.mrf.mxu0 }
 0x2e1   :  { %12765 = vst [vmem:[#allocation86_spill] sm:$0xff] %v11583_v26  ;;  %v11592_v4 = vadd.f32 %v5636_v63, %v5284_v0  ;;  %v5286_v14 = vadd.f32 %v5285_v7, %v12768_v38 }
 0x2e2   :  { %v5289_v1 = vpop.f32.mrf.mxu1  ;;  %v5642_v36 = vpop.f32.mrf.mxu0  ;;  %5914 = vmatmul.mubr.bf16.gmra.mxu1 %v8811_v59  ;;  %6267 = vmatmul.mubr.bf16.gmra.mxu0 %v8816_v39  ;;  %v8817_v59 = vld [vmem:[%s12503_s0 + $0x258] ss:$56 sps:$4 sm:$0xff]  }
 0x2e3   :  { %12767 = vst [vmem:[#allocation87_spill] sm:$0xff] %v11592_v4  ;;  %v11595_v55 = vadd.f32 %v5638_v41, %v5286_v14  ;;  %v5290_v20 = vadd.f32 %v5289_v1, %v12770_v8  ;;  %5923 = vmatprep.mubr.bf16.mxu1 %v8819_v61  ;;  %7796 = vmatprep.mubr.msk.bf16.mxu0 %vm3979_vm0, %v8820_v62  ;;  %v8822_v39 = vld [vmem:[%s12503_s0 + $0x260] ss:$56 sps:$4 sm:$0xff]   ;;  %v12774_v61 = vld [vmem:[#allocation59_spill] sm:$0xff] }
 0x2e4   :  { %v5291_v53 = vpop.f32.mrf.mxu1  ;;  %v5644_v26 = vpop.f32.mrf.mxu0  ;;  %v8825_v41 = vld [vmem:[%s12503_s0 + $0x2cc] ss:$56 sps:$4 sm:$0xff]  }
 0x2e5   :  { %12769 = vst [vmem:[#allocation88_spill] sm:$0xff] %v11595_v55  ;;  %v11599_v16 = vadd.f32 %v5642_v36, %v5290_v20  ;;  %v5292_v63 = vadd.f32 %v5291_v53, %v12772_v18  ;;  %v8826_v18 = vld [vmem:[%s12503_s0 + $0x2d4] ss:$56 sps:$4 sm:$0xff]   ;;  %v12776_v36 = vld [vmem:[#allocation61_spill] sm:$0xff] }
 0x2e6   :  { %v5293_v0 = vpop.f32.mrf.mxu1  ;;  %v5646_v4 = vpop.f32.mrf.mxu0  ;;  %v12780_v55 = vld [vmem:[#allocation65_spill] sm:$0xff] }
 0x2e7   :  { %12771 = vst [vmem:[#allocation49_spill] sm:$0xff] %v11599_v16  ;;  %v11608_v7 = vadd.f32 %v5644_v26, %v5292_v63  ;;  %v5294_v62 = vadd.f32 %v5293_v0, %v12774_v61  ;;  %v12778_v63 = vld [vmem:[#allocation63_spill] sm:$0xff] }
 0x2e8   :  { %v5295_v38 = vpop.f32.mrf.mxu1  ;;  %v5648_v14 = vpop.f32.mrf.mxu0 }
 0x2e9   :  { %12773 = vst [vmem:[#allocation51_spill] sm:$0xff] %v11608_v7  ;;  %v11617_v1 = vadd.f32 %v5646_v4, %v5294_v62  ;;  %v5296_v8 = vadd.f32 %v5295_v38, %v12776_v36 }
 0x2ea   :  { %v5299_v20 = vpop.f32.mrf.mxu1  ;;  %v5652_v53 = vpop.f32.mrf.mxu0  ;;  %5924 = vmatmul.mubr.bf16.gmra.mxu1 %v8817_v59  ;;  %6277 = vmatmul.mubr.bf16.gmra.mxu0 %v8822_v39  ;;  %v8823_v59 = vld [vmem:[%s12503_s0 + $0x2c8] ss:$56 sps:$4 sm:$0xff]  }
 0x2eb   :  { %12775 = vst [vmem:[#allocation53_spill] sm:$0xff] %v11617_v1  ;;  %v11620_v26 = vadd.f32 %v5648_v14, %v5296_v8  ;;  %v5300_v0 = vadd.f32 %v5299_v20, %v12778_v63  ;;  %5933 = vmatprep.mubr.bf16.mxu1 %v8825_v41  ;;  %7797 = vmatprep.mubr.msk.bf16.mxu0 %vm3979_vm0, %v8826_v18  ;;  %v8828_v39 = vld [vmem:[%s12503_s0 + $0x2d0] ss:$56 sps:$4 sm:$0xff]   ;;  %v8831_v14 = vld [vmem:[%s12503_s0 + $0x33c] ss:$56 sps:$4 sm:$0xff]  }
 0x2ec   :  { %v5301_v61 = vpop.f32.mrf.mxu1  ;;  %v5654_v7 = vpop.f32.mrf.mxu0  ;;  %v12782_v41 = vld [vmem:[#allocation67_spill] sm:$0xff] }
 0x2ed   :  { %12777 = vst [vmem:[#allocation55_spill] sm:$0xff] %v11620_v26  ;;  %v11624_v16 = vadd.f32 %v5652_v53, %v5300_v0  ;;  %v5302_v4 = vadd.f32 %v5301_v61, %v12780_v55  ;;  %v8832_v55 = vld [vmem:[%s12503_s0 + $0x344] ss:$56 sps:$4 sm:$0xff]  }
 0x2ee   :  { %v5303_v62 = vpop.f32.mrf.mxu1  ;;  %v5656_v1 = vpop.f32.mrf.mxu0  ;;  %v12784_v53 = vld [vmem:[#allocation69_spill] sm:$0xff] }
 0x2ef   :  { %12779 = vst [vmem:[#allocation57_spill] sm:$0xff] %v11624_v16  ;;  %v11633_v38 = vadd.f32 %v5654_v7, %v5302_v4  ;;  %v5304_v18 = vadd.f32 %v5303_v62, %v12782_v41  ;;  %v12786_v4 = vld [vmem:[#allocation71_spill] sm:$0xff]  ;;  %v12788_v26 = vld [vmem:[#allocation73_spill] sm:$0xff] }
 0x2f0   :  { %v5305_v36 = vpop.f32.mrf.mxu1  ;;  %v5658_v8 = vpop.f32.mrf.mxu0 }
 0x2f1   :  { %12781 = vst [vmem:[#allocation59_spill] sm:$0xff] %v11633_v38  ;;  %v11642_v20 = vadd.f32 %v5656_v1, %v5304_v18  ;;  %v5306_v63 = vadd.f32 %v5305_v36, %v12784_v53 }
 0x2f2   :  { %v5309_v0 = vpop.f32.mrf.mxu1  ;;  %v5662_v61 = vpop.f32.mrf.mxu0  ;;  %5934 = vmatmul.mubr.bf16.gmra.mxu1 %v8823_v59  ;;  %6287 = vmatmul.mubr.bf16.gmra.mxu0 %v8828_v39  ;;  %v8829_v59 = vld [vmem:[%s12503_s0 + $0x338] ss:$56 sps:$4 sm:$0xff]  }
 0x2f3   :  { %12783 = vst [vmem:[#allocation61_spill] sm:$0xff] %v11642_v20  ;;  %v11645_v7 = vadd.f32 %v5658_v8, %v5306_v63  ;;  %v5310_v62 = vadd.f32 %v5309_v0, %v12786_v4  ;;  %5943 = vmatprep.mubr.bf16.mxu1 %v8831_v14  ;;  %7798 = vmatprep.mubr.msk.bf16.mxu0 %vm3979_vm0, %v8832_v55  ;;  %v8834_v39 = vld [vmem:[%s12503_s0 + $0x340] ss:$56 sps:$4 sm:$0xff]   ;;  %v12790_v14 = vld [vmem:[#allocation75_spill] sm:$0xff] }
 0x2f4   :  { %v5311_v41 = vpop.f32.mrf.mxu1  ;;  %v5664_v38 = vpop.f32.mrf.mxu0  ;;  %v8837_v8 = vld [vmem:[%s12503_s0 + $0x3ac] ss:$56 sps:$4 sm:$0xff]  }
 0x2f5   :  { %12785 = vst [vmem:[#allocation63_spill] sm:$0xff] %v11645_v7  ;;  %v11649_v16 = vadd.f32 %v5662_v61, %v5310_v62  ;;  %v5312_v1 = vadd.f32 %v5311_v41, %v12788_v26  ;;  %v8838_v26 = vld [vmem:[%s12503_s0 + $0x3b4] ss:$56 sps:$4 sm:$0xff]   ;;  %v12792_v61 = vld [vmem:[#allocation77_spill] sm:$0xff] }
 0x2f6   :  { %v5313_v18 = vpop.f32.mrf.mxu1  ;;  %v5666_v20 = vpop.f32.mrf.mxu0  ;;  %v12796_v7 = vld [vmem:[#allocation81_spill] sm:$0xff] }
 0x2f7   :  { %12787 = vst [vmem:[#allocation65_spill] sm:$0xff] %v11649_v16  ;;  %v11658_v36 = vadd.f32 %v5664_v38, %v5312_v1  ;;  %v5314_v55 = vadd.f32 %v5313_v18, %v12790_v14  ;;  %v12794_v1 = vld [vmem:[#allocation79_spill] sm:$0xff] }
 0x2f8   :  { %v5315_v53 = vpop.f32.mrf.mxu1  ;;  %v5668_v63 = vpop.f32.mrf.mxu0 }
 0x2f9   :  { %12789 = vst [vmem:[#allocation67_spill] sm:$0xff] %v11658_v36  ;;  %v11667_v0 = vadd.f32 %v5666_v20, %v5314_v55  ;;  %v5316_v4 = vadd.f32 %v5315_v53, %v12792_v61 }
 0x2fa   :  { %v5319_v62 = vpop.f32.mrf.mxu1  ;;  %v5672_v41 = vpop.f32.mrf.mxu0  ;;  %5944 = vmatmul.mubr.bf16.gmra.mxu1 %v8829_v59  ;;  %6297 = vmatmul.mubr.bf16.gmra.mxu0 %v8834_v39  ;;  %v8835_v59 = vld [vmem:[%s12503_s0 + $0x3a8] ss:$56 sps:$4 sm:$0xff]  }
 0x2fb   :  { %12791 = vst [vmem:[#allocation69_spill] sm:$0xff] %v11667_v0  ;;  %v11670_v38 = vadd.f32 %v5668_v63, %v5316_v4  ;;  %v5320_v18 = vadd.f32 %v5319_v62, %v12794_v1  ;;  %5953 = vmatprep.mubr.bf16.mxu1 %v8837_v8  ;;  %7799 = vmatprep.mubr.msk.bf16.mxu0 %vm3979_vm0, %v8838_v26  ;;  %v8840_v39 = vld [vmem:[%s12503_s0 + $0x3b0] ss:$56 sps:$4 sm:$0xff]   ;;  %v12798_v8 = vld [vmem:[#allocation2_spill] sm:$0xff]  ;;  %v8843_v63 = vld [vmem:[%s12503_s0 + $0x41c] ss:$56 sps:$4 sm:$0xff]  }
 0x2fc   :  { %v5321_v14 = vpop.f32.mrf.mxu1  ;;  %v5674_v36 = vpop.f32.mrf.mxu0 }
 0x2fd   :  { %12793 = vst [vmem:[#allocation71_spill] sm:$0xff] %v11670_v38  ;;  %v11674_v16 = vadd.f32 %v5672_v41, %v5320_v18  ;;  %v5322_v20 = vadd.f32 %v5321_v14, %v12796_v7  ;;  %v8844_v7 = vld [vmem:[%s12503_s0 + $0x424] ss:$56 sps:$4 sm:$0xff]   ;;  %v12800_v41 = vld [vmem:[#allocation3_spill] sm:$0xff] }
 0x2fe   :  { %v5323_v55 = vpop.f32.mrf.mxu1  ;;  %v5676_v0 = vpop.f32.mrf.mxu0  ;;  %v12803_v38 = vld [vmem:[#allocation5_spill] sm:$0xff] }
 0x2ff   :  { %12795 = vst [vmem:[#allocation73_spill] sm:$0xff] %v11674_v16  ;;  %v11683_v53 = vadd.f32 %v5674_v36, %v5322_v20  ;;  %v5324_v26 = vadd.f32 %v5323_v55, %v12798_v8  ;;  %v12801_v20 = vld [vmem:[#allocation4_spill] sm:$0xff] }
 0x300   :  { %v5325_v61 = vpop.f32.mrf.mxu1  ;;  %v5678_v4 = vpop.f32.mrf.mxu0 }
 0x301   :  { %12797 = vst [vmem:[#allocation75_spill] sm:$0xff] %v11683_v53  ;;  %v11692_v62 = vadd.f32 %v5676_v0, %v5324_v26  ;;  %v5326_v1 = vadd.f32 %v5325_v61, %v12800_v41 }
 0x302   :  { %v5329_v18 = vpop.f32.mrf.mxu1  ;;  %v5682_v14 = vpop.f32.mrf.mxu0  ;;  %5954 = vmatmul.mubr.bf16.gmra.mxu1 %v8835_v59  ;;  %6307 = vmatmul.mubr.bf16.gmra.mxu0 %v8840_v39  ;;  %v8841_v59 = vld [vmem:[%s12503_s0 + $0x418] ss:$56 sps:$4 sm:$0xff]  }
 0x303   :  { %12799 = vst [vmem:[#allocation77_spill] sm:$0xff] %v11692_v62  ;;  %v11695_v36 = vadd.f32 %v5678_v4, %v5326_v1  ;;  %v5330_v55 = vadd.f32 %v5329_v18, %v12801_v20  ;;  %5963 = vmatprep.mubr.bf16.mxu1 %v8843_v63  ;;  %7800 = vmatprep.mubr.msk.bf16.mxu0 %vm3979_vm0, %v8844_v7  ;;  %v8846_v39 = vld [vmem:[%s12503_s0 + $0x420] ss:$56 sps:$4 sm:$0xff]   ;;  %v8849_v7 = vld [vmem:[%s12503_s0 + $0x48c] ss:$56 sps:$4 sm:$0xff]  }
 0x304   :  { %v5331_v8 = vpop.f32.mrf.mxu1  ;;  %v5684_v53 = vpop.f32.mrf.mxu0  ;;  %v12806_v18 = vld [vmem:[#allocation6_spill] sm:$0xff] }
 0x305   :  { %v11699_v16 = vadd.f32 %v5682_v14, %v5330_v55  ;;  %v5332_v0 = vadd.f32 %v5331_v8, %v12803_v38  ;;  %v8850_v38 = vld [vmem:[%s12503_s0 + $0x494] ss:$56 sps:$4 sm:$0xff]  }
 0x306   :  { %v5333_v26 = vpop.f32.mrf.mxu1  ;;  %v5686_v62 = vpop.f32.mrf.mxu0 }
 0x307   :  { %12802 = vst [vmem:[#allocation79_spill] sm:$0xff] %v11699_v16  ;;  %v11708_v61 = vadd.f32 %v5684_v53, %v5332_v0  ;;  %v5334_v63 = vadd.f32 %v5333_v26, %v10852_v44  ;;  %v12808_v44 = vld [vmem:[#allocation7_spill] sm:$0xff]  ;;  %v12810_v16 = vld [vmem:[#allocation8_spill] sm:$0xff] }
 0x308   :  { %v5335_v4 = vpop.f32.mrf.mxu1  ;;  %v5688_v41 = vpop.f32.mrf.mxu0 }
 0x309   :  { %12804 = vst [vmem:[#allocation81_spill] sm:$0xff] %v11708_v61  ;;  %v11717_v1 = vadd.f32 %v5686_v62, %v5334_v63  ;;  %v5336_v14 = vadd.f32 %v5335_v4, %v12806_v18 }
 0x30a   :  { %v5339_v20 = vpop.f32.mrf.mxu1  ;;  %v5692_v55 = vpop.f32.mrf.mxu0  ;;  %5964 = vmatmul.mubr.bf16.gmra.mxu1 %v8841_v59  ;;  %6317 = vmatmul.mubr.bf16.gmra.mxu0 %v8846_v39  ;;  %v8847_v59 = vld [vmem:[%s12503_s0 + $0x488] ss:$56 sps:$4 sm:$0xff]  }
 0x30b   :  { %12805 = vst [vmem:[#allocation2_spill] sm:$0xff] %v11717_v1  ;;  %v11720_v53 = vadd.f32 %v5688_v41, %v5336_v14  ;;  %v5340_v8 = vadd.f32 %v5339_v20, %v12808_v44  ;;  %5973 = vmatprep.mubr.bf16.mxu1 %v8849_v7  ;;  %7801 = vmatprep.mubr.msk.bf16.mxu0 %vm3979_vm0, %v8850_v38  ;;  %v8852_v39 = vld [vmem:[%s12503_s0 + $0x490] ss:$56 sps:$4 sm:$0xff]   ;;  %v12812_v7 = vld [vmem:[#allocation9_spill] sm:$0xff] }
 0x30c   :  { %v5341_v0 = vpop.f32.mrf.mxu1  ;;  %v5694_v26 = vpop.f32.mrf.mxu0  ;;  %v8855_v41 = vld [vmem:[%s12503_s0 + $0x4fc] ss:$56 sps:$4 sm:$0xff]  }
 0x30d   :  { %12807 = vst [vmem:[#allocation3_spill] sm:$0xff] %v11720_v53  ;;  %v11724_v61 = vadd.f32 %v5692_v55, %v5340_v8  ;;  %v5342_v62 = vadd.f32 %v5341_v0, %v12810_v16  ;;  %v8856_v16 = vld [vmem:[%s12503_s0 + $0x504] ss:$56 sps:$4 sm:$0xff]   ;;  %v12818_v53 = vld [vmem:[#allocation12_spill] sm:$0xff] }
 0x30e   :  { %v5343_v63 = vpop.f32.mrf.mxu1  ;;  %v5696_v1 = vpop.f32.mrf.mxu0  ;;  %v12814_v55 = vld [vmem:[#allocation10_spill] sm:$0xff] }
 0x30f   :  { %12809 = vst [vmem:[#allocation4_spill] sm:$0xff] %v11724_v61  ;;  %v11733_v4 = vadd.f32 %v5694_v26, %v5342_v62  ;;  %v5344_v38 = vadd.f32 %v5343_v63, %v12812_v7  ;;  %v12816_v62 = vld [vmem:[#allocation11_spill] sm:$0xff] }
 0x310   :  { %v5345_v18 = vpop.f32.mrf.mxu1  ;;  %v5698_v14 = vpop.f32.mrf.mxu0 }
 0x311   :  { %12811 = vst [vmem:[#allocation5_spill] sm:$0xff] %v11733_v4  ;;  %v11742_v20 = vadd.f32 %v5696_v1, %v5344_v38  ;;  %v5346_v44 = vadd.f32 %v5345_v18, %v12814_v55 }
 0x312   :  { %v5349_v8 = vpop.f32.mrf.mxu1  ;;  %v5702_v0 = vpop.f32.mrf.mxu0  ;;  %5974 = vmatmul.mubr.bf16.gmra.mxu1 %v8847_v59  ;;  %6327 = vmatmul.mubr.bf16.gmra.mxu0 %v8852_v39  ;;  %v8853_v59 = vld [vmem:[%s12503_s0 + $0x4f8] ss:$56 sps:$4 sm:$0xff]  }
 0x313   :  { %12813 = vst [vmem:[#allocation6_spill] sm:$0xff] %v11742_v20  ;;  %v11745_v26 = vadd.f32 %v5698_v14, %v5346_v44  ;;  %v5350_v63 = vadd.f32 %v5349_v8, %v12816_v62  ;;  %5983 = vmatprep.mubr.bf16.mxu1 %v8855_v41  ;;  %7802 = vmatprep.mubr.msk.bf16.mxu0 %vm3979_vm0, %v8856_v16  ;;  %v8858_v39 = vld [vmem:[%s12503_s0 + $0x500] ss:$56 sps:$4 sm:$0xff]   ;;  %v8861_v14 = vld [vmem:[%s12503_s0 + $0x56c] ss:$56 sps:$4 sm:$0xff]  }
 0x314   :  { %v5351_v7 = vpop.f32.mrf.mxu1  ;;  %v5704_v4 = vpop.f32.mrf.mxu0  ;;  %v12820_v41 = vld [vmem:[#allocation13_spill] sm:$0xff] }
 0x315   :  { %12815 = vst [vmem:[#allocation7_spill] sm:$0xff] %v11745_v26  ;;  %v11749_v61 = vadd.f32 %v5702_v0, %v5350_v63  ;;  %v5352_v1 = vadd.f32 %v5351_v7, %v12818_v53  ;;  %v8862_v53 = vld [vmem:[%s12503_s0 + $0x574] ss:$56 sps:$4 sm:$0xff]   ;;  %v12822_v0 = vld [vmem:[#allocation14_spill] sm:$0xff] }
 0x316   :  { %v5353_v38 = vpop.f32.mrf.mxu1  ;;  %v5706_v20 = vpop.f32.mrf.mxu0  ;;  %v12826_v26 = vld [vmem:[#allocation16_spill] sm:$0xff] }
 0x317   :  { %12817 = vst [vmem:[#allocation8_spill] sm:$0xff] %v11749_v61  ;;  %v11758_v18 = vadd.f32 %v5704_v4, %v5352_v1  ;;  %v5354_v16 = vadd.f32 %v5353_v38, %v12820_v41  ;;  %v12824_v1 = vld [vmem:[#allocation15_spill] sm:$0xff] }
 0x318   :  { %v5355_v55 = vpop.f32.mrf.mxu1  ;;  %v5708_v44 = vpop.f32.mrf.mxu0 }
 0x319   :  { %12819 = vst [vmem:[#allocation9_spill] sm:$0xff] %v11758_v18  ;;  %v11767_v8 = vadd.f32 %v5706_v20, %v5354_v16  ;;  %v5356_v62 = vadd.f32 %v5355_v55, %v12822_v0 }
 0x31a   :  { %v5359_v63 = vpop.f32.mrf.mxu1  ;;  %v5712_v7 = vpop.f32.mrf.mxu0  ;;  %5984 = vmatmul.mubr.bf16.gmra.mxu1 %v8853_v59  ;;  %6337 = vmatmul.mubr.bf16.gmra.mxu0 %v8858_v39  ;;  %v8859_v59 = vld [vmem:[%s12503_s0 + $0x568] ss:$56 sps:$4 sm:$0xff]  }
 0x31b   :  { %12821 = vst [vmem:[#allocation10_spill] sm:$0xff] %v11767_v8  ;;  %v11770_v4 = vadd.f32 %v5708_v44, %v5356_v62  ;;  %v5360_v38 = vadd.f32 %v5359_v63, %v12824_v1  ;;  %5993 = vmatprep.mubr.bf16.mxu1 %v8861_v14  ;;  %7803 = vmatprep.mubr.msk.bf16.mxu0 %vm3979_vm0, %v8862_v53  ;;  %v8864_v39 = vld [vmem:[%s12503_s0 + $0x570] ss:$56 sps:$4 sm:$0xff]   ;;  %v12828_v14 = vld [vmem:[#allocation17_spill] sm:$0xff] }
 0x31c   :  { %v5361_v41 = vpop.f32.mrf.mxu1  ;;  %v5714_v18 = vpop.f32.mrf.mxu0  ;;  %v8867_v44 = vld [vmem:[%s12503_s0 + $0x5dc] ss:$56 sps:$4 sm:$0xff]  }
 0x31d   :  { %12823 = vst [vmem:[#allocation11_spill] sm:$0xff] %v11770_v4  ;;  %v11774_v61 = vadd.f32 %v5712_v7, %v5360_v38  ;;  %v5362_v20 = vadd.f32 %v5361_v41, %v12826_v26  ;;  %v8868_v26 = vld [vmem:[%s12503_s0 + $0x5e4] ss:$56 sps:$4 sm:$0xff]   ;;  %v12834_v4 = vld [vmem:[#allocation20_spill] sm:$0xff] }
 0x31e   :  { %v5363_v16 = vpop.f32.mrf.mxu1  ;;  %v5716_v8 = vpop.f32.mrf.mxu0  ;;  %v12830_v7 = vld [vmem:[#allocation18_spill] sm:$0xff] }
 0x31f   :  { %12825 = vst [vmem:[#allocation12_spill] sm:$0xff] %v11774_v61  ;;  %v11783_v55 = vadd.f32 %v5714_v18, %v5362_v20  ;;  %v5364_v53 = vadd.f32 %v5363_v16, %v12828_v14  ;;  %v12832_v20 = vld [vmem:[#allocation19_spill] sm:$0xff] }
 0x320   :  { %v5365_v0 = vpop.f32.mrf.mxu1  ;;  %v5718_v62 = vpop.f32.mrf.mxu0 }
 0x321   :  { %12827 = vst [vmem:[#allocation13_spill] sm:$0xff] %v11783_v55  ;;  %v11792_v63 = vadd.f32 %v5716_v8, %v5364_v53  ;;  %v5366_v1 = vadd.f32 %v5365_v0, %v12830_v7 }
 0x322   :  { %v5369_v38 = vpop.f32.mrf.mxu1  ;;  %v5722_v41 = vpop.f32.mrf.mxu0  ;;  %5994 = vmatmul.mubr.bf16.gmra.mxu1 %v8859_v59  ;;  %6347 = vmatmul.mubr.bf16.gmra.mxu0 %v8864_v39  ;;  %v8865_v59 = vld [vmem:[%s12503_s0 + $0x5d8] ss:$56 sps:$4 sm:$0xff]  }
 0x323   :  { %12829 = vst [vmem:[#allocation14_spill] sm:$0xff] %v11792_v63  ;;  %v11795_v18 = vadd.f32 %v5718_v62, %v5366_v1  ;;  %v5370_v16 = vadd.f32 %v5369_v38, %v12832_v20  ;;  %6003 = vmatprep.mubr.bf16.mxu1 %v8867_v44  ;;  %7804 = vmatprep.mubr.msk.bf16.mxu0 %vm3979_vm0, %v8868_v26  ;;  %v8870_v39 = vld [vmem:[%s12503_s0 + $0x5e0] ss:$56 sps:$4 sm:$0xff]   ;;  %v8873_v62 = vld [vmem:[%s12503_s0 + $0x64c] ss:$56 sps:$4 sm:$0xff]  }
 0x324   :  { %v5371_v14 = vpop.f32.mrf.mxu1  ;;  %v5724_v55 = vpop.f32.mrf.mxu0  ;;  %v12836_v44 = vld [vmem:[#allocation21_spill] sm:$0xff] }
 0x325   :  { %12831 = vst [vmem:[#allocation15_spill] sm:$0xff] %v11795_v18  ;;  %v11799_v61 = vadd.f32 %v5722_v41, %v5370_v16  ;;  %v5372_v8 = vadd.f32 %v5371_v14, %v12834_v4  ;;  %v8874_v4 = vld [vmem:[%s12503_s0 + $0x654] ss:$56 sps:$4 sm:$0xff]   ;;  %v12838_v41 = vld [vmem:[#allocation22_spill] sm:$0xff] }
 0x326   :  { %v5373_v53 = vpop.f32.mrf.mxu1  ;;  %v5726_v63 = vpop.f32.mrf.mxu0  ;;  %v12842_v18 = vld [vmem:[#allocation24_spill] sm:$0xff] }
 0x327   :  { %12833 = vst [vmem:[#allocation16_spill] sm:$0xff] %v11799_v61  ;;  %v11808_v0 = vadd.f32 %v5724_v55, %v5372_v8  ;;  %v5374_v26 = vadd.f32 %v5373_v53, %v12836_v44  ;;  %v12840_v8 = vld [vmem:[#allocation23_spill] sm:$0xff] }
 0x328   :  { %v5375_v7 = vpop.f32.mrf.mxu1  ;;  %v5728_v1 = vpop.f32.mrf.mxu0 }
 0x329   :  { %12835 = vst [vmem:[#allocation17_spill] sm:$0xff] %v11808_v0  ;;  %v11817_v38 = vadd.f32 %v5726_v63, %v5374_v26  ;;  %v5376_v20 = vadd.f32 %v5375_v7, %v12838_v41 }
 0x32a   :  { %v5379_v16 = vpop.f32.mrf.mxu1  ;;  %v5732_v14 = vpop.f32.mrf.mxu0  ;;  %6004 = vmatmul.mubr.bf16.gmra.mxu1 %v8865_v59  ;;  %6357 = vmatmul.mubr.bf16.gmra.mxu0 %v8870_v39  ;;  %v8871_v59 = vld [vmem:[%s12503_s0 + $0x648] ss:$56 sps:$4 sm:$0xff]  }
 0x32b   :  { %12837 = vst [vmem:[#allocation18_spill] sm:$0xff] %v11817_v38  ;;  %v11820_v55 = vadd.f32 %v5728_v1, %v5376_v20  ;;  %v5380_v53 = vadd.f32 %v5379_v16, %v12840_v8  ;;  %6013 = vmatprep.mubr.bf16.mxu1 %v8873_v62  ;;  %7805 = vmatprep.mubr.msk.bf16.mxu0 %vm3979_vm0, %v8874_v4  ;;  %v8876_v39 = vld [vmem:[%s12503_s0 + $0x650] ss:$56 sps:$4 sm:$0xff]   ;;  %v12844_v62 = vld [vmem:[#allocation25_spill] sm:$0xff] }
 0x32c   :  { %v5381_v44 = vpop.f32.mrf.mxu1  ;;  %v5734_v0 = vpop.f32.mrf.mxu0  ;;  %v8879_v1 = vld [vmem:[%s12503_s0 + $0x6bc] ss:$56 sps:$4 sm:$0xff]  }
 0x32d   :  { %12839 = vst [vmem:[#allocation19_spill] sm:$0xff] %v11820_v55  ;;  %v11824_v61 = vadd.f32 %v5732_v14, %v5380_v53  ;;  %v5382_v63 = vadd.f32 %v5381_v44, %v12842_v18  ;;  %v8880_v18 = vld [vmem:[%s12503_s0 + $0x6c4] ss:$56 sps:$4 sm:$0xff]   ;;  %v12850_v55 = vld [vmem:[#allocation28_spill] sm:$0xff] }
 0x32e   :  { %v5383_v26 = vpop.f32.mrf.mxu1  ;;  %v5736_v38 = vpop.f32.mrf.mxu0  ;;  %v12846_v14 = vld [vmem:[#allocation26_spill] sm:$0xff] }
 0x32f   :  { %12841 = vst [vmem:[#allocation20_spill] sm:$0xff] %v11824_v61  ;;  %v11833_v7 = vadd.f32 %v5734_v0, %v5382_v63  ;;  %v5384_v4 = vadd.f32 %v5383_v26, %v12844_v62  ;;  %v12848_v63 = vld [vmem:[#allocation27_spill] sm:$0xff] }
 0x330   :  { %v5385_v41 = vpop.f32.mrf.mxu1  ;;  %v5738_v20 = vpop.f32.mrf.mxu0 }
 0x331   :  { %12843 = vst [vmem:[#allocation21_spill] sm:$0xff] %v11833_v7  ;;  %v11842_v16 = vadd.f32 %v5736_v38, %v5384_v4  ;;  %v5386_v8 = vadd.f32 %v5385_v41, %v12846_v14 }
 0x332   :  { %v5389_v53 = vpop.f32.mrf.mxu1  ;;  %v5742_v44 = vpop.f32.mrf.mxu0  ;;  %6014 = vmatmul.mubr.bf16.gmra.mxu1 %v8871_v59  ;;  %6367 = vmatmul.mubr.bf16.gmra.mxu0 %v8876_v39  ;;  %v8877_v59 = vld [vmem:[%s12503_s0 + $0x6b8] ss:$56 sps:$4 sm:$0xff]  }
 0x333   :  { %12845 = vst [vmem:[#allocation22_spill] sm:$0xff] %v11842_v16  ;;  %v11845_v0 = vadd.f32 %v5738_v20, %v5386_v8  ;;  %v5390_v26 = vadd.f32 %v5389_v53, %v12848_v63  ;;  %6023 = vmatprep.mubr.bf16.mxu1 %v8879_v1  ;;  %7806 = vmatprep.mubr.msk.bf16.mxu0 %vm3979_vm0, %v8880_v18  ;;  %v8882_v39 = vld [vmem:[%s12503_s0 + $0x6c0] ss:$56 sps:$4 sm:$0xff]   ;;  %v8885_v20 = vld [vmem:[%s12503_s0 + $0x72c] ss:$56 sps:$4 sm:$0xff]  }
 0x334   :  { %v5391_v62 = vpop.f32.mrf.mxu1  ;;  %v5744_v7 = vpop.f32.mrf.mxu0  ;;  %v12852_v1 = vld [vmem:[#allocation29_spill] sm:$0xff] }
 0x335   :  { %12847 = vst [vmem:[#allocation23_spill] sm:$0xff] %v11845_v0  ;;  %v11849_v61 = vadd.f32 %v5742_v44, %v5390_v26  ;;  %v5392_v38 = vadd.f32 %v5391_v62, %v12850_v55  ;;  %v8886_v55 = vld [vmem:[%s12503_s0 + $0x734] ss:$56 sps:$4 sm:$0xff]   ;;  %v12854_v44 = vld [vmem:[#allocation30_spill] sm:$0xff] }
 0x336   :  { %v5393_v4 = vpop.f32.mrf.mxu1  ;;  %v5746_v16 = vpop.f32.mrf.mxu0  ;;  %v12858_v0 = vld [vmem:[#allocation32_spill] sm:$0xff] }
 0x337   :  { %12849 = vst [vmem:[#allocation24_spill] sm:$0xff] %v11849_v61  ;;  %v11858_v41 = vadd.f32 %v5744_v7, %v5392_v38  ;;  %v5394_v18 = vadd.f32 %v5393_v4, %v12852_v1  ;;  %v12856_v38 = vld [vmem:[#allocation31_spill] sm:$0xff] }
 0x338   :  { %v5395_v14 = vpop.f32.mrf.mxu1  ;;  %v5748_v8 = vpop.f32.mrf.mxu0 }
 0x339   :  { %12851 = vst [vmem:[#allocation25_spill] sm:$0xff] %v11858_v41  ;;  %v11867_v53 = vadd.f32 %v5746_v16, %v5394_v18  ;;  %v5396_v63 = vadd.f32 %v5395_v14, %v12854_v44 }
 0x33a   :  { %v5399_v26 = vpop.f32.mrf.mxu1  ;;  %v5752_v62 = vpop.f32.mrf.mxu0  ;;  %6024 = vmatmul.mubr.bf16.gmra.mxu1 %v8877_v59  ;;  %6377 = vmatmul.mubr.bf16.gmra.mxu0 %v8882_v39  ;;  %v8883_v59 = vld [vmem:[%s12503_s0 + $0x728] ss:$56 sps:$4 sm:$0xff]  }
 0x33b   :  { %12853 = vst [vmem:[#allocation26_spill] sm:$0xff] %v11867_v53  ;;  %v11870_v7 = vadd.f32 %v5748_v8, %v5396_v63  ;;  %v5400_v4 = vadd.f32 %v5399_v26, %v12856_v38  ;;  %6033 = vmatprep.mubr.bf16.mxu1 %v8885_v20  ;;  %7807 = vmatprep.mubr.msk.bf16.mxu0 %vm3979_vm0, %v8886_v55  ;;  %v8888_v39 = vld [vmem:[%s12503_s0 + $0x730] ss:$56 sps:$4 sm:$0xff]   ;;  %v12860_v20 = vld [vmem:[#allocation33_spill] sm:$0xff] }
 0x33c   :  { %v5401_v1 = vpop.f32.mrf.mxu1  ;;  %v5754_v41 = vpop.f32.mrf.mxu0  ;;  %v8891_v8 = vld [vmem:[%s12503_s0 + $0x79c] ss:$56 sps:$4 sm:$0xff]  }
 0x33d   :  { %12855 = vst [vmem:[#allocation27_spill] sm:$0xff] %v11870_v7  ;;  %v11874_v61 = vadd.f32 %v5752_v62, %v5400_v4  ;;  %v5402_v16 = vadd.f32 %v5401_v1, %v12858_v0  ;;  %v8892_v0 = vld [vmem:[%s12503_s0 + $0x7a4] ss:$56 sps:$4 sm:$0xff]   ;;  %v12866_v7 = vld [vmem:[#allocation36_spill] sm:$0xff] }
 0x33e   :  { %v5403_v18 = vpop.f32.mrf.mxu1  ;;  %v5756_v53 = vpop.f32.mrf.mxu0  ;;  %v12862_v62 = vld [vmem:[#allocation34_spill] sm:$0xff] }
 0x33f   :  { %12857 = vst [vmem:[#allocation28_spill] sm:$0xff] %v11874_v61  ;;  %v11883_v14 = vadd.f32 %v5754_v41, %v5402_v16  ;;  %v5404_v55 = vadd.f32 %v5403_v18, %v12860_v20  ;;  %v12864_v16 = vld [vmem:[#allocation35_spill] sm:$0xff] }
 0x340   :  { %v5405_v44 = vpop.f32.mrf.mxu1  ;;  %v5758_v63 = vpop.f32.mrf.mxu0 }
 0x341   :  { %12859 = vst [vmem:[#allocation29_spill] sm:$0xff] %v11883_v14  ;;  %v11892_v26 = vadd.f32 %v5756_v53, %v5404_v55  ;;  %v5406_v38 = vadd.f32 %v5405_v44, %v12862_v62 }
 0x342   :  { %v5409_v4 = vpop.f32.mrf.mxu1  ;;  %v5762_v1 = vpop.f32.mrf.mxu0  ;;  %6034 = vmatmul.mubr.bf16.gmra.mxu1 %v8883_v59  ;;  %6387 = vmatmul.mubr.bf16.gmra.mxu0 %v8888_v39  ;;  %v8889_v59 = vld [vmem:[%s12503_s0 + $0x798] ss:$56 sps:$4 sm:$0xff]  }
 0x343   :  { %12861 = vst [vmem:[#allocation30_spill] sm:$0xff] %v11892_v26  ;;  %v11895_v41 = vadd.f32 %v5758_v63, %v5406_v38  ;;  %v5410_v18 = vadd.f32 %v5409_v4, %v12864_v16  ;;  %6043 = vmatprep.mubr.bf16.mxu1 %v8891_v8  ;;  %7808 = vmatprep.mubr.msk.bf16.mxu0 %vm3979_vm0, %v8892_v0  ;;  %v8894_v39 = vld [vmem:[%s12503_s0 + $0x7a0] ss:$56 sps:$4 sm:$0xff]   ;;  %v8897_v63 = vld [vmem:[%s12503_s0 + $0x80c] ss:$56 sps:$4 sm:$0xff]  }
 0x344   :  { %v5411_v20 = vpop.f32.mrf.mxu1  ;;  %v5764_v14 = vpop.f32.mrf.mxu0  ;;  %v12868_v8 = vld [vmem:[#allocation37_spill] sm:$0xff] }
 0x345   :  { %12863 = vst [vmem:[#allocation31_spill] sm:$0xff] %v11895_v41  ;;  %v11899_v61 = vadd.f32 %v5762_v1, %v5410_v18  ;;  %v5412_v53 = vadd.f32 %v5411_v20, %v12866_v7  ;;  %v8898_v7 = vld [vmem:[%s12503_s0 + $0x814] ss:$56 sps:$4 sm:$0xff]   ;;  %v12870_v1 = vld [vmem:[#allocation38_spill] sm:$0xff] }
 0x346   :  { %v5413_v55 = vpop.f32.mrf.mxu1  ;;  %v5766_v26 = vpop.f32.mrf.mxu0  ;;  %v12874_v41 = vld [vmem:[#allocation40_spill] sm:$0xff] }
 0x347   :  { %12865 = vst [vmem:[#allocation32_spill] sm:$0xff] %v11899_v61  ;;  %v11908_v44 = vadd.f32 %v5764_v14, %v5412_v53  ;;  %v5414_v0 = vadd.f32 %v5413_v55, %v12868_v8  ;;  %v12872_v53 = vld [vmem:[#allocation39_spill] sm:$0xff] }
 0x348   :  { %v5415_v62 = vpop.f32.mrf.mxu1  ;;  %v5768_v38 = vpop.f32.mrf.mxu0 }
 0x349   :  { %12867 = vst [vmem:[#allocation33_spill] sm:$0xff] %v11908_v44  ;;  %v11917_v4 = vadd.f32 %v5766_v26, %v5414_v0  ;;  %v5416_v16 = vadd.f32 %v5415_v62, %v12870_v1 }
 0x34a   :  { %v5419_v18 = vpop.f32.mrf.mxu1  ;;  %v5772_v20 = vpop.f32.mrf.mxu0  ;;  %6044 = vmatmul.mubr.bf16.gmra.mxu1 %v8889_v59  ;;  %6397 = vmatmul.mubr.bf16.gmra.mxu0 %v8894_v39  ;;  %v8895_v59 = vld [vmem:[%s12503_s0 + $0x808] ss:$56 sps:$4 sm:$0xff]  }
 0x34b   :  { %12869 = vst [vmem:[#allocation34_spill] sm:$0xff] %v11917_v4  ;;  %v11920_v14 = vadd.f32 %v5768_v38, %v5416_v16  ;;  %v5420_v55 = vadd.f32 %v5419_v18, %v12872_v53  ;;  %6053 = vmatprep.mubr.bf16.mxu1 %v8897_v63  ;;  %7809 = vmatprep.mubr.msk.bf16.mxu0 %vm3979_vm0, %v8898_v7  ;;  %v8900_v39 = vld [vmem:[%s12503_s0 + $0x810] ss:$56 sps:$4 sm:$0xff]   ;;  %v12876_v63 = vld [vmem:[#allocation41_spill] sm:$0xff] }
 0x34c   :  { %v5421_v8 = vpop.f32.mrf.mxu1  ;;  %v5774_v44 = vpop.f32.mrf.mxu0  ;;  %v8903_v38 = vld [vmem:[%s12503_s0 + $0x87c] ss:$56 sps:$4 sm:$0xff]  }
 0x34d   :  { %12871 = vst [vmem:[#allocation35_spill] sm:$0xff] %v11920_v14  ;;  %v11924_v61 = vadd.f32 %v5772_v20, %v5420_v55  ;;  %v5422_v26 = vadd.f32 %v5421_v8, %v12874_v41  ;;  %v8904_v41 = vld [vmem:[%s12503_s0 + $0x884] ss:$56 sps:$4 sm:$0xff]   ;;  %v12882_v14 = vld [vmem:[#allocation44_spill] sm:$0xff] }
 0x34e   :  { %v5423_v0 = vpop.f32.mrf.mxu1  ;;  %v5776_v4 = vpop.f32.mrf.mxu0  ;;  %v12878_v20 = vld [vmem:[#allocation42_spill] sm:$0xff] }
 0x34f   :  { %12873 = vst [vmem:[#allocation36_spill] sm:$0xff] %v11924_v61  ;;  %v11933_v62 = vadd.f32 %v5774_v44, %v5422_v26  ;;  %v5424_v7 = vadd.f32 %v5423_v0, %v12876_v63  ;;  %v12880_v26 = vld [vmem:[#allocation43_spill] sm:$0xff] }
 0x350   :  { %v5425_v1 = vpop.f32.mrf.mxu1  ;;  %v5778_v16 = vpop.f32.mrf.mxu0 }
 0x351   :  { %12875 = vst [vmem:[#allocation37_spill] sm:$0xff] %v11933_v62  ;;  %v11942_v18 = vadd.f32 %v5776_v4, %v5424_v7  ;;  %v5426_v53 = vadd.f32 %v5425_v1, %v12878_v20 }
 0x352   :  { %v5429_v55 = vpop.f32.mrf.mxu1  ;;  %v5782_v8 = vpop.f32.mrf.mxu0  ;;  %6054 = vmatmul.mubr.bf16.gmra.mxu1 %v8895_v59  ;;  %6407 = vmatmul.mubr.bf16.gmra.mxu0 %v8900_v39  ;;  %v8901_v59 = vld [vmem:[%s12503_s0 + $0x878] ss:$56 sps:$4 sm:$0xff]  }
 0x353   :  { %12877 = vst [vmem:[#allocation38_spill] sm:$0xff] %v11942_v18  ;;  %v11945_v44 = vadd.f32 %v5778_v16, %v5426_v53  ;;  %v5430_v0 = vadd.f32 %v5429_v55, %v12880_v26  ;;  %6063 = vmatprep.mubr.bf16.mxu1 %v8903_v38  ;;  %7810 = vmatprep.mubr.msk.bf16.mxu0 %vm3979_vm0, %v8904_v41  ;;  %v8906_v39 = vld [vmem:[%s12503_s0 + $0x880] ss:$56 sps:$4 sm:$0xff]   ;;  %v8909_v16 = vld [vmem:[%s12503_s0 + $0x8ec] ss:$56 sps:$4 sm:$0xff]  }
 0x354   :  { %v5431_v63 = vpop.f32.mrf.mxu1  ;;  %v5784_v62 = vpop.f32.mrf.mxu0  ;;  %v12884_v38 = vld [vmem:[#allocation45_spill] sm:$0xff] }
 0x355   :  { %12879 = vst [vmem:[#allocation39_spill] sm:$0xff] %v11945_v44  ;;  %v11949_v61 = vadd.f32 %v5782_v8, %v5430_v0  ;;  %v5432_v4 = vadd.f32 %v5431_v63, %v12882_v14  ;;  %v8910_v14 = vld [vmem:[%s12503_s0 + $0x8f4] ss:$56 sps:$4 sm:$0xff]   ;;  %v12886_v8 = vld [vmem:[#allocation46_spill] sm:$0xff] }
 0x356   :  { %v5433_v7 = vpop.f32.mrf.mxu1  ;;  %v5786_v18 = vpop.f32.mrf.mxu0  ;;  %v12890_v44 = vld [vmem:[#allocation48_spill] sm:$0xff] }
 0x357   :  { %12881 = vst [vmem:[#allocation40_spill] sm:$0xff] %v11949_v61  ;;  %v11958_v1 = vadd.f32 %v5784_v62, %v5432_v4  ;;  %v5434_v41 = vadd.f32 %v5433_v7, %v12884_v38  ;;  %v12888_v4 = vld [vmem:[#allocation47_spill] sm:$0xff] }
 0x358   :  { %v5435_v20 = vpop.f32.mrf.mxu1  ;;  %v5788_v53 = vpop.f32.mrf.mxu0 }
 0x359   :  { %12883 = vst [vmem:[#allocation41_spill] sm:$0xff] %v11958_v1  ;;  %v11967_v55 = vadd.f32 %v5786_v18, %v5434_v41  ;;  %v5436_v26 = vadd.f32 %v5435_v20, %v12886_v8 }
 0x35a   :  { %v5439_v0 = vpop.f32.mrf.mxu1  ;;  %v5792_v63 = vpop.f32.mrf.mxu0  ;;  %6064 = vmatmul.mubr.bf16.gmra.mxu1 %v8901_v59  ;;  %6417 = vmatmul.mubr.bf16.gmra.mxu0 %v8906_v39  ;;  %v8907_v59 = vld [vmem:[%s12503_s0 + $0x8e8] ss:$56 sps:$4 sm:$0xff]  }
 0x35b   :  { %12885 = vst [vmem:[#allocation42_spill] sm:$0xff] %v11967_v55  ;;  %v11970_v62 = vadd.f32 %v5788_v53, %v5436_v26  ;;  %v5440_v7 = vadd.f32 %v5439_v0, %v12888_v4  ;;  %6073 = vmatprep.mubr.bf16.mxu1 %v8909_v16  ;;  %7811 = vmatprep.mubr.msk.bf16.mxu0 %vm3979_vm0, %v8910_v14  ;;  %v8912_v39 = vld [vmem:[%s12503_s0 + $0x8f0] ss:$56 sps:$4 sm:$0xff]   ;;  %v12892_v16 = vld [vmem:[#allocation50_spill] sm:$0xff]  ;;  %v8915_v53 = vld [vmem:[%s12503_s0 + $0x95c] ss:$56 sps:$4 sm:$0xff]  }
 0x35c   :  { %v5441_v38 = vpop.f32.mrf.mxu1  ;;  %v5794_v1 = vpop.f32.mrf.mxu0 }
 0x35d   :  { %12887 = vst [vmem:[#allocation43_spill] sm:$0xff] %v11970_v62  ;;  %v11974_v61 = vadd.f32 %v5792_v63, %v5440_v7  ;;  %v5442_v18 = vadd.f32 %v5441_v38, %v12890_v44  ;;  %v8916_v44 = vld [vmem:[%s12503_s0 + $0x964] ss:$56 sps:$4 sm:$0xff]   ;;  %v12894_v63 = vld [vmem:[#allocation52_spill] sm:$0xff] }
 0x35e   :  { %v5443_v41 = vpop.f32.mrf.mxu1  ;;  %v5796_v55 = vpop.f32.mrf.mxu0  ;;  %v12898_v62 = vld [vmem:[#allocation56_spill] sm:$0xff] }
 0x35f   :  { %12889 = vst [vmem:[#allocation44_spill] sm:$0xff] %v11974_v61  ;;  %v11983_v20 = vadd.f32 %v5794_v1, %v5442_v18  ;;  %v5444_v14 = vadd.f32 %v5443_v41, %v12892_v16  ;;  %v12896_v18 = vld [vmem:[#allocation54_spill] sm:$0xff] }
 0x360   :  { %v5445_v8 = vpop.f32.mrf.mxu1  ;;  %v5798_v26 = vpop.f32.mrf.mxu0 }
 0x361   :  { %12891 = vst [vmem:[#allocation45_spill] sm:$0xff] %v11983_v20  ;;  %v11992_v0 = vadd.f32 %v5796_v55, %v5444_v14  ;;  %v5446_v4 = vadd.f32 %v5445_v8, %v12894_v63 }
 0x362   :  { %v5449_v7 = vpop.f32.mrf.mxu1  ;;  %v5802_v38 = vpop.f32.mrf.mxu0  ;;  %6074 = vmatmul.mubr.bf16.gmra.mxu1 %v8907_v59  ;;  %6427 = vmatmul.mubr.bf16.gmra.mxu0 %v8912_v39  ;;  %v8913_v59 = vld [vmem:[%s12503_s0 + $0x958] ss:$56 sps:$4 sm:$0xff]  }
 0x363   :  { %12893 = vst [vmem:[#allocation46_spill] sm:$0xff] %v11992_v0  ;;  %v11995_v1 = vadd.f32 %v5798_v26, %v5446_v4  ;;  %v5450_v41 = vadd.f32 %v5449_v7, %v12896_v18  ;;  %6083 = vmatprep.mubr.bf16.mxu1 %v8915_v53  ;;  %7812 = vmatprep.mubr.msk.bf16.mxu0 %vm3979_vm0, %v8916_v44  ;;  %v8918_v39 = vld [vmem:[%s12503_s0 + $0x960] ss:$56 sps:$4 sm:$0xff]   ;;  %v8921_v26 = vld [vmem:[%s12503_s0 + $0x9cc] ss:$56 sps:$4 sm:$0xff]  }
 0x364   :  { %v5451_v16 = vpop.f32.mrf.mxu1  ;;  %v5804_v20 = vpop.f32.mrf.mxu0  ;;  %v12900_v53 = vld [vmem:[#allocation58_spill] sm:$0xff] }
 0x365   :  { %12895 = vst [vmem:[#allocation47_spill] sm:$0xff] %v11995_v1  ;;  %v11999_v61 = vadd.f32 %v5802_v38, %v5450_v41  ;;  %v5452_v55 = vadd.f32 %v5451_v16, %v12898_v62  ;;  %v8922_v62 = vld [vmem:[%s12503_s0 + $0x9d4] ss:$56 sps:$4 sm:$0xff]  }
 0x366   :  { %v5453_v14 = vpop.f32.mrf.mxu1  ;;  %v5806_v0 = vpop.f32.mrf.mxu0  ;;  %v12902_v38 = vld [vmem:[#allocation60_spill] sm:$0xff] }
 0x367   :  { %12897 = vst [vmem:[#allocation48_spill] sm:$0xff] %v11999_v61  ;;  %v12008_v8 = vadd.f32 %v5804_v20, %v5452_v55  ;;  %v5454_v44 = vadd.f32 %v5453_v14, %v12900_v53  ;;  %v12904_v55 = vld [vmem:[#allocation62_spill] sm:$0xff]  ;;  %v12906_v1 = vld [vmem:[#allocation64_spill] sm:$0xff] }
 0x368   :  { %v5455_v63 = vpop.f32.mrf.mxu1  ;;  %v5808_v4 = vpop.f32.mrf.mxu0 }
 0x369   :  { %12899 = vst [vmem:[#allocation50_spill] sm:$0xff] %v12008_v8  ;;  %v12017_v7 = vadd.f32 %v5806_v0, %v5454_v44  ;;  %v5456_v18 = vadd.f32 %v5455_v63, %v12902_v38 }
 0x36a   :  { %v5459_v41 = vpop.f32.mrf.mxu1  ;;  %v5812_v16 = vpop.f32.mrf.mxu0  ;;  %6084 = vmatmul.mubr.bf16.gmra.mxu1 %v8913_v59  ;;  %6437 = vmatmul.mubr.bf16.gmra.mxu0 %v8918_v39  ;;  %v8919_v59 = vld [vmem:[%s12503_s0 + $0x9c8] ss:$56 sps:$4 sm:$0xff]  }
 0x36b   :  { %12901 = vst [vmem:[#allocation52_spill] sm:$0xff] %v12017_v7  ;;  %v12020_v20 = vadd.f32 %v5808_v4, %v5456_v18  ;;  %v5460_v14 = vadd.f32 %v5459_v41, %v12904_v55  ;;  %6093 = vmatprep.mubr.bf16.mxu1 %v8921_v26  ;;  %7813 = vmatprep.mubr.msk.bf16.mxu0 %vm3979_vm0, %v8922_v62  ;;  %v8924_v39 = vld [vmem:[%s12503_s0 + $0x9d0] ss:$56 sps:$4 sm:$0xff]   ;;  %v12908_v26 = vld [vmem:[#allocation66_spill] sm:$0xff]  ;;  %v8927_v4 = vld [vmem:[%s12503_s0 + $0xa3c] ss:$56 sps:$4 sm:$0xff]  }
 0x36c   :  { %v5461_v53 = vpop.f32.mrf.mxu1  ;;  %v5814_v8 = vpop.f32.mrf.mxu0 }
 0x36d   :  { %12903 = vst [vmem:[#allocation54_spill] sm:$0xff] %v12020_v20  ;;  %v12024_v61 = vadd.f32 %v5812_v16, %v5460_v14  ;;  %v5462_v0 = vadd.f32 %v5461_v53, %v12906_v1  ;;  %v8928_v1 = vld [vmem:[%s12503_s0 + $0xa44] ss:$56 sps:$4 sm:$0xff]   ;;  %v12910_v16 = vld [vmem:[#allocation68_spill] sm:$0xff] }
 0x36e   :  { %v5463_v44 = vpop.f32.mrf.mxu1  ;;  %v5816_v7 = vpop.f32.mrf.mxu0  ;;  %v12912_v20 = vld [vmem:[#allocation72_spill] sm:$0xff] }
 0x36f   :  { %12905 = vst [vmem:[#allocation56_spill] sm:$0xff] %v12024_v61  ;;  %v12033_v63 = vadd.f32 %v5814_v8, %v5462_v0  ;;  %v5464_v62 = vadd.f32 %v5463_v44, %v12908_v26  ;;  %v12911_v0 = vld [vmem:[#allocation70_spill] sm:$0xff] }
 0x370   :  { %v5465_v38 = vpop.f32.mrf.mxu1  ;;  %v5818_v18 = vpop.f32.mrf.mxu0 }
 0x371   :  { %12907 = vst [vmem:[#allocation58_spill] sm:$0xff] %v12033_v63  ;;  %v12042_v41 = vadd.f32 %v5816_v7, %v5464_v62  ;;  %v5466_v55 = vadd.f32 %v5465_v38, %v12910_v16 }
 0x372   :  { %v5469_v14 = vpop.f32.mrf.mxu1  ;;  %v5822_v53 = vpop.f32.mrf.mxu0  ;;  %6094 = vmatmul.mubr.bf16.gmra.mxu1 %v8919_v59  ;;  %6447 = vmatmul.mubr.bf16.gmra.mxu0 %v8924_v39  ;;  %v8925_v59 = vld [vmem:[%s12503_s0 + $0xa38] ss:$56 sps:$4 sm:$0xff]  }
 0x373   :  { %12909 = vst [vmem:[#allocation60_spill] sm:$0xff] %v12042_v41  ;;  %v12045_v8 = vadd.f32 %v5818_v18, %v5466_v55  ;;  %v5470_v44 = vadd.f32 %v5469_v14, %v12911_v0  ;;  %6103 = vmatprep.mubr.bf16.mxu1 %v8927_v4  ;;  %7814 = vmatprep.mubr.msk.bf16.mxu0 %vm3979_vm0, %v8928_v1  ;;  %v8930_v39 = vld [vmem:[%s12503_s0 + $0xa40] ss:$56 sps:$4 sm:$0xff]   ;;  %v8933_v1 = vld [vmem:[%s12503_s0 + $0xaac] ss:$56 sps:$4 sm:$0xff]  }
 0x374   :  { %v5471_v26 = vpop.f32.mrf.mxu1  ;;  %v5824_v63 = vpop.f32.mrf.mxu0 }
 0x375   :  { %v12049_v61 = vadd.f32 %v5822_v53, %v5470_v44  ;;  %v5472_v7 = vadd.f32 %v5471_v26, %v12912_v20  ;;  %v8934_v20 = vld [vmem:[%s12503_s0 + $0xab4] ss:$56 sps:$4 sm:$0xff]  }
 0x376   :  { %v5473_v62 = vpop.f32.mrf.mxu1  ;;  %v5826_v41 = vpop.f32.mrf.mxu0 }
 0x377   :  { %v12058_v38 = vadd.f32 %v5824_v63, %v5472_v7  ;;  %v5474_v4 = vadd.f32 %v5473_v62, %v11274_v23  ;;  %v12915_v23 = vld [vmem:[#allocation74_spill] sm:$0xff] }
 0x378   :  { %v5475_v18 = vpop.f32.mrf.mxu1  ;;  %v5828_v16 = vpop.f32.mrf.mxu0 }
 0x379   :  { %12913 = vst [vmem:[#allocation62_spill] sm:$0xff] %v12058_v38  ;;  %v12067_v55 = vadd.f32 %v5826_v41, %v5474_v4  ;;  %v5476_v14 = vadd.f32 %v5475_v18, %v11278_v50  ;;  %v12916_v38 = vld [vmem:[#allocation76_spill] sm:$0xff]  ;;  %v8931_v50 = vld [vmem:[%s12503_s0 + $0xaa8] ss:$56 sps:$4 sm:$0xff]  }
 0x37a   :  { %v5479_v53 = vpop.f32.mrf.mxu1  ;;  %v5832_v0 = vpop.f32.mrf.mxu0  ;;  %6104 = vmatmul.mubr.bf16.gmra.mxu1 %v8925_v59  ;;  %6457 = vmatmul.mubr.bf16.gmra.mxu0 %v8930_v39  ;;  %v8936_v59 = vld [vmem:[%s12503_s0 + $0xab0] ss:$56 sps:$4 sm:$0xff]  }
 0x37b   :  { %12914 = vst [vmem:[#allocation64_spill] sm:$0xff] %v12067_v55  ;;  %v12070_v63 = vadd.f32 %v5828_v16, %v5476_v14  ;;  %v5480_v44 = vadd.f32 %v5479_v53, %v12915_v23  ;;  %6113 = vmatprep.mubr.bf16.mxu1 %v8933_v1  ;;  %7815 = vmatprep.mubr.msk.bf16.mxu0 %vm3979_vm0, %v8934_v20  ;;  %v8939_v20 = vld [vmem:[%s12503_s0 + $0xb1c] ss:$56 sps:$4 sm:$0xff]  }
 0x37c   :  { %v5481_v26 = vpop.f32.mrf.mxu1  ;;  %v5834_v7 = vpop.f32.mrf.mxu0 }
 0x37d   :  { %v12074_v62 = vadd.f32 %v5832_v0, %v5480_v44  ;;  %v5482_v41 = vadd.f32 %v5481_v26, %v12916_v38  ;;  %v8940_v38 = vld [vmem:[%s12503_s0 + $0xb24] ss:$56 sps:$4 sm:$0xff]  }
 0x37e   :  { %v5483_v4 = vpop.f32.mrf.mxu1  ;;  %v5836_v55 = vpop.f32.mrf.mxu0 }
 0x37f   :  { %v12083_v39 = vadd.f32 %v5834_v7, %v5482_v41  ;;  %v5484_v1 = vadd.f32 %v5483_v4, %v11300_v12 }
 0x380   :  { %v5485_v18 = vpop.f32.mrf.mxu1  ;;  %v5838_v16 = vpop.f32.mrf.mxu0 }
 0x381   :  { %v12092_v14 = vadd.f32 %v5836_v55, %v5484_v1  ;;  %v5486_v53 = vadd.f32 %v5485_v18, %v11302_v32  ;;  %v8937_v32 = vld [vmem:[%s12503_s0 + $0xb18] ss:$56 sps:$4 sm:$0xff]  }
 0x382   :  { %v5875_v0 = vpop.f32.mrf.mxu1  ;;  %6114 = vmatmul.mubr.bf16.gmra.mxu1 %v8931_v50  ;;  %v6228_v23 = vpop.f32.mrf.mxu0  ;;  %6467 = vmatmul.mubr.bf16.gmra.mxu0 %v8936_v59  ;;  %v8942_v50 = vld [vmem:[%s12503_s0 + $0xb20] ss:$56 sps:$4 sm:$0xff]  }
 0x383   :  { %v12095_v44 = vadd.f32 %v5838_v16, %v5486_v53  ;;  %v5876_v12 = vadd.f32 %v5875_v0, %v11305_v42  ;;  %6123 = vmatprep.mubr.bf16.mxu1 %v8939_v20  ;;  %7816 = vmatprep.mubr.msk.bf16.mxu0 %vm3979_vm0, %v8940_v38  ;;  %v8945_v20 = vld [vmem:[%s12503_s0 + $0xb8c] ss:$56 sps:$4 sm:$0xff]  }
 0x384   :  { %v5877_v26 = vpop.f32.mrf.mxu1  ;;  %v6230_v7 = vpop.f32.mrf.mxu0 }
 0x385   :  { %12917 = vst [vmem:[#allocation66_spill] sm:$0xff] %v12095_v44  ;;  %v6229_v41 = vadd.f32 %v6228_v23, %v5876_v12  ;;  %v5878_v4 = vadd.f32 %v5877_v26, %v11314_v58  ;;  %v8946_v58 = vld [vmem:[%s12503_s0 + $0xb94] ss:$56 sps:$4 sm:$0xff]  }
 0x386   :  { %v5879_v55 = vpop.f32.mrf.mxu1  ;;  %v6232_v1 = vpop.f32.mrf.mxu0 }
 0x387   :  { %v6231_v59 = vadd.f32 %v6230_v7, %v5878_v4  ;;  %v5880_v42 = vadd.f32 %v5879_v55, %v11323_v11  ;;  %v6547_v16 = vmax.f32 %v6229_v41, 0.0 }
 0x388   :  { %v5881_v38 = vpop.f32.mrf.mxu1  ;;  %v6234_v18 = vpop.f32.mrf.mxu0 }
 0x389   :  { %v6548_v53 = vmax.f32 %v6231_v59, 0.0  ;;  %v6233_v0 = vadd.f32 %v6232_v1, %v5880_v42  ;;  %v5882_v23 = vadd.f32 %v5881_v38, %v11326_v35  ;;  %v8948_v42 = vld [vmem:[%s12503_s0 + $0xb90] ss:$56 sps:$4 sm:$0xff]  }
 0x38a   :  { %v5885_v12 = vpop.f32.mrf.mxu1  ;;  %6124 = vmatmul.mubr.bf16.gmra.mxu1 %v8937_v32  ;;  %v6238_v26 = vpop.f32.mrf.mxu0  ;;  %6477 = vmatmul.mubr.bf16.gmra.mxu0 %v8942_v50 }
 0x38b   :  { %v7887_v11 = vpack.c.bf16 %v6548_v53, %v6547_v16  ;;  %v6235_v7 = vadd.f32 %v6234_v18, %v5882_v23  ;;  %v5886_v4 = vadd.f32 %v5885_v12, %v11329_v52  ;;  %6133 = vmatprep.mubr.bf16.mxu1 %v8945_v20  ;;  %7817 = vmatprep.mubr.msk.bf16.mxu0 %vm3979_vm0, %v8946_v58  ;;  %v6549_v41 = vmax.f32 %v6233_v0, 0.0  ;;  %v8943_v52 = vld [vmem:[%s12503_s0 + $0xb88] ss:$56 sps:$4 sm:$0xff]   ;;  %v8951_v18 = vld [vmem:[%s12503_s0 + $0xbfc] ss:$56 sps:$4 sm:$0xff]  }
 0x38c   :  { %v5887_v55 = vpop.f32.mrf.mxu1  ;;  %v6240_v44 = vpop.f32.mrf.mxu0 }
 0x38d   :  { %7059 = vst [vmem:[%s12505_s3] sm:$0xff] %v7887_v11  ;;  %v6550_v1 = vmax.f32 %v6235_v7, 0.0  ;;  %v6239_v35 = vadd.f32 %v6238_v26, %v5886_v4  ;;  %v5888_v32 = vadd.f32 %v5887_v55, %v11338_v2  ;;  %v8952_v2 = vld [vmem:[%s12503_s0 + $0xc04] ss:$56 sps:$4 sm:$0xff]  }
 0x38e   :  { %v5889_v59 = vpop.f32.mrf.mxu1  ;;  %v6242_v50 = vpop.f32.mrf.mxu0 }
 0x38f   :  { %v7888_v20 = vpack.c.bf16 %v6550_v1, %v6549_v41  ;;  %v6241_v58 = vadd.f32 %v6240_v44, %v5888_v32  ;;  %v5890_v38 = vadd.f32 %v5889_v59, %v11347_v10  ;;  %v6551_v0 = vmax.f32 %v6239_v35, 0.0 }
 0x390   :  { %v5891_v16 = vpop.f32.mrf.mxu1  ;;  %v6244_v53 = vpop.f32.mrf.mxu0 }
 0x391   :  { %7060 = vst [vmem:[%s12505_s3 + $0x8] sm:$0xff] %v7888_v20  ;;  %v6552_v23 = vmax.f32 %v6241_v58, 0.0  ;;  %v6243_v12 = vadd.f32 %v6242_v50, %v5890_v38  ;;  %v5892_v44 = vadd.f32 %v5891_v16, %v11350_v47  ;;  %v8957_v38 = vld [vmem:[%s12503_s0 + $0xc6c] ss:$56 sps:$4 sm:$0xff]  }
 0x392   :  { %v5895_v10 = vpop.f32.mrf.mxu1  ;;  %6134 = vmatmul.mubr.bf16.gmra.mxu1 %v8943_v52  ;;  %v6248_v26 = vpop.f32.mrf.mxu0  ;;  %6487 = vmatmul.mubr.bf16.gmra.mxu0 %v8948_v42  ;;  %v8954_v52 = vld [vmem:[%s12503_s0 + $0xc00] ss:$56 sps:$4 sm:$0xff]  }
 0x393   :  { %v7889_v11 = vpack.c.bf16 %v6552_v23, %v6551_v0  ;;  %v6245_v7 = vadd.f32 %v6244_v53, %v5892_v44  ;;  %v5896_v4 = vadd.f32 %v5895_v10, %v11353_v37  ;;  %6143 = vmatprep.mubr.bf16.mxu1 %v8951_v18  ;;  %7818 = vmatprep.mubr.msk.bf16.mxu0 %vm3979_vm0, %v8952_v2  ;;  %v6553_v1 = vmax.f32 %v6243_v12, 0.0  ;;  %v8949_v37 = vld [vmem:[%s12503_s0 + $0xbf8] ss:$56 sps:$4 sm:$0xff]  }
 0x394   :  { %v5897_v55 = vpop.f32.mrf.mxu1  ;;  %v6250_v41 = vpop.f32.mrf.mxu0 }
 0x395   :  { %7061 = vst [vmem:[%s12505_s3 + $0x10] sm:$0xff] %v7889_v11  ;;  %v6554_v35 = vmax.f32 %v6245_v7, 0.0  ;;  %v6249_v47 = vadd.f32 %v6248_v26, %v5896_v4  ;;  %v5898_v32 = vadd.f32 %v5897_v55, %v11362_v29  ;;  %v8958_v29 = vld [vmem:[%s12503_s0 + $0xc74] ss:$56 sps:$4 sm:$0xff]  }
 0x396   :  { %v5899_v59 = vpop.f32.mrf.mxu1  ;;  %v6252_v50 = vpop.f32.mrf.mxu0 }
 0x397   :  { %v7890_v42 = vpack.c.bf16 %v6554_v35, %v6553_v1  ;;  %v6251_v20 = vadd.f32 %v6250_v41, %v5898_v32  ;;  %v5900_v58 = vadd.f32 %v5899_v59, %v11371_v17  ;;  %v6555_v16 = vmax.f32 %v6249_v47, 0.0  ;;  %v8960_v47 = vld [vmem:[%s12503_s0 + $0xc70] ss:$56 sps:$4 sm:$0xff]  }
 0x398   :  { %v5901_v18 = vpop.f32.mrf.mxu1  ;;  %v6254_v2 = vpop.f32.mrf.mxu0 }
 0x399   :  { %7062 = vst [vmem:[%s12505_s3 + $0x18] sm:$0xff] %v7890_v42  ;;  %v6556_v53 = vmax.f32 %v6251_v20, 0.0  ;;  %v6253_v0 = vadd.f32 %v6252_v50, %v5900_v58  ;;  %v5902_v23 = vadd.f32 %v5901_v18, %v11374_v60 }
 0x39a   :  { %v5905_v17 = vpop.f32.mrf.mxu1  ;;  %6144 = vmatmul.mubr.bf16.gmra.mxu1 %v8949_v37  ;;  %v6258_v12 = vpop.f32.mrf.mxu0  ;;  %6497 = vmatmul.mubr.bf16.gmra.mxu0 %v8954_v52  ;;  %v8963_v37 = vld [vmem:[%s12503_s0 + $0xcdc] ss:$56 sps:$4 sm:$0xff]  }
 0x39b   :  { %v7891_v44 = vpack.c.bf16 %v6556_v53, %v6555_v16  ;;  %v6255_v10 = vadd.f32 %v6254_v2, %v5902_v23  ;;  %v5906_v26 = vadd.f32 %v5905_v17, %v11377_v33  ;;  %6153 = vmatprep.mubr.bf16.mxu1 %v8957_v38  ;;  %7819 = vmatprep.mubr.msk.bf16.mxu0 %vm3979_vm0, %v8958_v29  ;;  %v6557_v4 = vmax.f32 %v6253_v0, 0.0  ;;  %v8955_v33 = vld [vmem:[%s12503_s0 + $0xc68] ss:$56 sps:$4 sm:$0xff]  }
 0x39c   :  { %v5907_v11 = vpop.f32.mrf.mxu1  ;;  %v6260_v7 = vpop.f32.mrf.mxu0 }
 0x39d   :  { %7063 = vst [vmem:[%s12505_s3 + $0x20] sm:$0xff] %v7891_v44  ;;  %v6558_v55 = vmax.f32 %v6255_v10, 0.0  ;;  %v6259_v60 = vadd.f32 %v6258_v12, %v5906_v26  ;;  %v5908_v41 = vadd.f32 %v5907_v11, %v11386_v19  ;;  %v8964_v19 = vld [vmem:[%s12503_s0 + $0xce4] ss:$56 sps:$4 sm:$0xff]   ;;  %v8966_v11 = vld [vmem:[%s12503_s0 + $0xce0] ss:$56 sps:$4 sm:$0xff]  }
 0x39e   :  { %v5909_v1 = vpop.f32.mrf.mxu1  ;;  %v6262_v35 = vpop.f32.mrf.mxu0 }
 0x39f   :  { %v7892_v32 = vpack.c.bf16 %v6558_v55, %v6557_v4  ;;  %v6261_v59 = vadd.f32 %v6260_v7, %v5908_v41  ;;  %v5910_v50 = vadd.f32 %v5909_v1, %v11395_v25  ;;  %v6559_v20 = vmax.f32 %v6259_v60, 0.0  ;;  %v8969_v60 = vld [vmem:[%s12503_s0 + $0xd4c] ss:$56 sps:$4 sm:$0xff]  }
 0x3a0   :  { %v5911_v52 = vpop.f32.mrf.mxu1  ;;  %v6264_v42 = vpop.f32.mrf.mxu0 }
 0x3a1   :  { %7064 = vst [vmem:[%s12505_s3 + $0x28] sm:$0xff] %v7892_v32  ;;  %v6560_v58 = vmax.f32 %v6261_v59, 0.0  ;;  %v6263_v38 = vadd.f32 %v6262_v35, %v5910_v50  ;;  %v5912_v29 = vadd.f32 %v5911_v52, %v11398_v15 }
 0x3a2   :  { %v5915_v25 = vpop.f32.mrf.mxu1  ;;  %6154 = vmatmul.mubr.bf16.gmra.mxu1 %v8955_v33  ;;  %v6268_v18 = vpop.f32.mrf.mxu0  ;;  %6507 = vmatmul.mubr.bf16.gmra.mxu0 %v8960_v47 }
 0x3a3   :  { %v7893_v2 = vpack.c.bf16 %v6560_v58, %v6559_v20  ;;  %v6265_v16 = vadd.f32 %v6264_v42, %v5912_v29  ;;  %v5916_v53 = vadd.f32 %v5915_v25, %v11401_v57  ;;  %6163 = vmatprep.mubr.bf16.mxu1 %v8963_v37  ;;  %7820 = vmatprep.mubr.msk.bf16.mxu0 %vm3979_vm0, %v8964_v19  ;;  %v6561_v17 = vmax.f32 %v6263_v38, 0.0  ;;  %v8961_v57 = vld [vmem:[%s12503_s0 + $0xcd8] ss:$56 sps:$4 sm:$0xff]  }
 0x3a4   :  { %v5917_v0 = vpop.f32.mrf.mxu1  ;;  %v6270_v23 = vpop.f32.mrf.mxu0 }
 0x3a5   :  { %7065 = vst [vmem:[%s12505_s3 + $0x30] sm:$0xff] %v7893_v2  ;;  %v6562_v12 = vmax.f32 %v6265_v16, 0.0  ;;  %v6269_v15 = vadd.f32 %v6268_v18, %v5916_v53  ;;  %v5918_v44 = vadd.f32 %v5917_v0, %v11410_v49  ;;  %v8970_v49 = vld [vmem:[%s12503_s0 + $0xd54] ss:$56 sps:$4 sm:$0xff]   ;;  %v8972_v18 = vld [vmem:[%s12503_s0 + $0xd50] ss:$56 sps:$4 sm:$0xff]  }
 0x3a6   :  { %v5919_v10 = vpop.f32.mrf.mxu1  ;;  %v6272_v26 = vpop.f32.mrf.mxu0  ;;  %v8975_v0 = vld [vmem:[%s12503_s0 + $0xdbc] ss:$56 sps:$4 sm:$0xff]  }
 0x3a7   :  { %v7894_v7 = vpack.c.bf16 %v6562_v12, %v6561_v17  ;;  %v6271_v4 = vadd.f32 %v6270_v23, %v5918_v44  ;;  %v5920_v55 = vadd.f32 %v5919_v10, %v11419_v54  ;;  %v6563_v35 = vmax.f32 %v6269_v15, 0.0 }
 0x3a8   :  { %v5921_v41 = vpop.f32.mrf.mxu1  ;;  %v6274_v1 = vpop.f32.mrf.mxu0 }
 0x3a9   :  { %7066 = vst [vmem:[%s12505_s3 + $0x38] sm:$0xff] %v7894_v7  ;;  %v6564_v33 = vmax.f32 %v6271_v4, 0.0  ;;  %v6273_v47 = vadd.f32 %v6272_v26, %v5920_v55  ;;  %v5922_v32 = vadd.f32 %v5921_v41, %v11422_v45 }
 0x3aa   :  { %v5925_v54 = vpop.f32.mrf.mxu1  ;;  %6164 = vmatmul.mubr.bf16.gmra.mxu1 %v8961_v57  ;;  %v6278_v59 = vpop.f32.mrf.mxu0  ;;  %6517 = vmatmul.mubr.bf16.gmra.mxu0 %v8966_v11 }
 0x3ab   :  { %v7895_v50 = vpack.c.bf16 %v6564_v33, %v6563_v35  ;;  %v6275_v37 = vadd.f32 %v6274_v1, %v5922_v32  ;;  %v5926_v19 = vadd.f32 %v5925_v54, %v11425_v3  ;;  %6173 = vmatprep.mubr.bf16.mxu1 %v8969_v60  ;;  %7821 = vmatprep.mubr.msk.bf16.mxu0 %vm3979_vm0, %v8970_v49  ;;  %v6565_v20 = vmax.f32 %v6273_v47, 0.0  ;;  %v8967_v3 = vld [vmem:[%s12503_s0 + $0xd48] ss:$56 sps:$4 sm:$0xff]  }
 0x3ac   :  { %v5927_v52 = vpop.f32.mrf.mxu1  ;;  %v6280_v42 = vpop.f32.mrf.mxu0  ;;  %v8978_v33 = vld [vmem:[%s12503_s0 + $0xdc0] ss:$56 sps:$4 sm:$0xff]  }
 0x3ad   :  { %7067 = vst [vmem:[%s12505_s3 + $0x40] sm:$0xff] %v7895_v50  ;;  %v6566_v58 = vmax.f32 %v6275_v37, 0.0  ;;  %v6279_v45 = vadd.f32 %v6278_v59, %v5926_v19  ;;  %v5928_v38 = vadd.f32 %v5927_v52, %v11434_v22  ;;  %v8976_v22 = vld [vmem:[%s12503_s0 + $0xdc4] ss:$56 sps:$4 sm:$0xff]  }
 0x3ae   :  { %v5929_v29 = vpop.f32.mrf.mxu1  ;;  %v6282_v25 = vpop.f32.mrf.mxu0 }
 0x3af   :  { %v7896_v2 = vpack.c.bf16 %v6566_v58, %v6565_v20  ;;  %v6281_v16 = vadd.f32 %v6280_v42, %v5928_v38  ;;  %v5930_v53 = vadd.f32 %v5929_v29, %v11443_v5  ;;  %v6567_v12 = vmax.f32 %v6279_v45, 0.0 }
 0x3b0   :  { %v5931_v23 = vpop.f32.mrf.mxu1  ;;  %v6284_v17 = vpop.f32.mrf.mxu0 }
 0x3b1   :  { %7068 = vst [vmem:[%s12505_s3 + $0x48] sm:$0xff] %v7896_v2  ;;  %v6568_v15 = vmax.f32 %v6281_v16, 0.0  ;;  %v6283_v44 = vadd.f32 %v6282_v25, %v5930_v53  ;;  %v5932_v10 = vadd.f32 %v5931_v23, %v11446_v27 }
 0x3b2   :  { %v5935_v5 = vpop.f32.mrf.mxu1  ;;  %6174 = vmatmul.mubr.bf16.gmra.mxu1 %v8967_v3  ;;  %v6288_v26 = vpop.f32.mrf.mxu0  ;;  %6527 = vmatmul.mubr.bf16.gmra.mxu0 %v8972_v18 }
 0x3b3   :  { %v7897_v57 = vpack.c.bf16 %v6568_v15, %v6567_v12  ;;  %v6285_v11 = vadd.f32 %v6284_v17, %v5932_v10  ;;  %v5936_v7 = vadd.f32 %v5935_v5, %v11449_v21  ;;  %6183 = vmatprep.mubr.bf16.mxu1 %v8975_v0  ;;  %7822 = vmatprep.mubr.msk.bf16.mxu0 %vm3979_vm0, %v8976_v22  ;;  %v6569_v60 = vmax.f32 %v6283_v44, 0.0  ;;  %v8973_v21 = vld [vmem:[%s12503_s0 + $0xdb8] ss:$56 sps:$4 sm:$0xff]  }
 0x3b4   :  { %v5937_v4 = vpop.f32.mrf.mxu1  ;;  %v6290_v55 = vpop.f32.mrf.mxu0 }
 0x3b5   :  { %7069 = vst [vmem:[%s12505_s3 + $0x50] sm:$0xff] %v7897_v57  ;;  %v6570_v49 = vmax.f32 %v6285_v11, 0.0  ;;  %v6289_v27 = vadd.f32 %v6288_v26, %v5936_v7  ;;  %v5938_v41 = vadd.f32 %v5937_v4, %v11458_v51 }
 0x3b6   :  { %v5939_v1 = vpop.f32.mrf.mxu1  ;;  %v6292_v35 = vpop.f32.mrf.mxu0 }
 0x3b7   :  { %v7898_v47 = vpack.c.bf16 %v6570_v49, %v6569_v60  ;;  %v6291_v32 = vadd.f32 %v6290_v55, %v5938_v41  ;;  %v5940_v54 = vadd.f32 %v5939_v1, %v11467_v56  ;;  %v6571_v51 = vmax.f32 %v6289_v27, 0.0 }
 0x3b8   :  { %v5941_v59 = vpop.f32.mrf.mxu1  ;;  %v6294_v50 = vpop.f32.mrf.mxu0 }
 0x3b9   :  { %7070 = vst [vmem:[%s12505_s3 + $0x58] sm:$0xff] %v7898_v47  ;;  %v6572_v37 = vmax.f32 %v6291_v32, 0.0  ;;  %v6293_v19 = vadd.f32 %v6292_v35, %v5940_v54  ;;  %v5942_v52 = vadd.f32 %v5941_v59, %v11470_v46 }
 0x3ba   :  { %v5945_v42 = vpop.f32.mrf.mxu1  ;;  %6184 = vmatmul.mubr.bf16.gmra.mxu1 %v8973_v21  ;;  %v6298_v20 = vpop.f32.mrf.mxu0  ;;  %6537 = vmatmul.mubr.bf16.gmra.mxu0 %v8978_v33 }
 0x3bb   :  { %v7899_v58 = vpack.c.bf16 %v6572_v37, %v6571_v51  ;;  %v6295_v45 = vadd.f32 %v6294_v50, %v5942_v52  ;;  %v5946_v38 = vadd.f32 %v5945_v42, %v11474_v6  ;;  %v6573_v25 = vmax.f32 %v6293_v19, 0.0 }
 0x3bc   :  { %v5947_v56 = vpop.f32.mrf.mxu1  ;;  %v6300_v29 = vpop.f32.mrf.mxu0 }
 0x3bd   :  { %7071 = vst [vmem:[%s12505_s3 + $0x60] sm:$0xff] %v7899_v58  ;;  %v6574_v3 = vmax.f32 %v6295_v45, 0.0  ;;  %v6299_v18 = vadd.f32 %v6298_v20, %v5946_v38  ;;  %v5948_v2 = vadd.f32 %v5947_v56, %v11483_v48  ;;  %v12918_v20 = vld [vmem:[#allocation78_spill] sm:$0xff] }
 0x3be   :  { %v5949_v46 = vpop.f32.mrf.mxu1  ;;  %v6302_v16 = vpop.f32.mrf.mxu0 }
 0x3bf   :  { %v7900_v53 = vpack.c.bf16 %v6574_v3, %v6573_v25  ;;  %v6301_v0 = vadd.f32 %v6300_v29, %v5948_v2  ;;  %v5950_v22 = vadd.f32 %v5949_v46, %v11492_v9  ;;  %v6575_v6 = vmax.f32 %v6299_v18, 0.0  ;;  %v12919_v29 = vld [vmem:[#allocation80_spill] sm:$0xff] }
 0x3c0   :  { %v5951_v23 = vpop.f32.mrf.mxu1  ;;  %v6304_v17 = vpop.f32.mrf.mxu0 }
 0x3c1   :  { %7072 = vst [vmem:[%s12505_s3 + $0x68] sm:$0xff] %v7900_v53  ;;  %v6576_v12 = vmax.f32 %v6301_v0, 0.0  ;;  %v6303_v15 = vadd.f32 %v6302_v16, %v5950_v22  ;;  %v5952_v44 = vadd.f32 %v5951_v23, %v11495_v34 }
 0x3c2   :  { %v5955_v10 = vpop.f32.mrf.mxu1  ;;  %v6308_v5 = vpop.f32.mrf.mxu0 }
 0x3c3   :  { %v7901_v48 = vpack.c.bf16 %v6576_v12, %v6575_v6  ;;  %v6305_v26 = vadd.f32 %v6304_v17, %v5952_v44  ;;  %v5956_v57 = vadd.f32 %v5955_v10, %v11499_v31  ;;  %v6577_v9 = vmax.f32 %v6303_v15, 0.0 }
 0x3c4   :  { %v5957_v11 = vpop.f32.mrf.mxu1  ;;  %v6310_v7 = vpop.f32.mrf.mxu0 }
 0x3c5   :  { %7073 = vst [vmem:[%s12505_s3 + $0x70] sm:$0xff] %v7901_v48  ;;  %v6578_v4 = vmax.f32 %v6305_v26, 0.0  ;;  %v6309_v55 = vadd.f32 %v6308_v5, %v5956_v57  ;;  %v5958_v60 = vadd.f32 %v5957_v11, %v11508_v28  ;;  %v12920_v5 = vld [vmem:[#allocation82_spill] sm:$0xff] }
 0x3c6   :  { %v5959_v49 = vpop.f32.mrf.mxu1  ;;  %v6312_v27 = vpop.f32.mrf.mxu0 }
 0x3c7   :  { %v7902_v34 = vpack.c.bf16 %v6578_v4, %v6577_v9  ;;  %v6311_v41 = vadd.f32 %v6310_v7, %v5958_v60  ;;  %v5960_v1 = vadd.f32 %v5959_v49, %v11517_v13  ;;  %v6579_v31 = vmax.f32 %v6309_v55, 0.0  ;;  %v12921_v7 = vld [vmem:[#allocation83_spill] sm:$0xff] }
 0x3c8   :  { %v5961_v35 = vpop.f32.mrf.mxu1  ;;  %v6314_v21 = vpop.f32.mrf.mxu0 }
 0x3c9   :  { %7074 = vst [vmem:[%s12505_s3 + $0x78] sm:$0xff] %v7902_v34  ;;  %v6580_v33 = vmax.f32 %v6311_v41, 0.0  ;;  %v6313_v47 = vadd.f32 %v6312_v27, %v5960_v1  ;;  %v5962_v32 = vadd.f32 %v5961_v35, %v11520_v40  ;;  %v12922_v27 = vld [vmem:[#allocation84_spill] sm:$0xff] }
 0x3ca   :  { %v5965_v54 = vpop.f32.mrf.mxu1  ;;  %v6318_v59 = vpop.f32.mrf.mxu0 }
 0x3cb   :  { %v7903_v28 = vpack.c.bf16 %v6580_v33, %v6579_v31  ;;  %v6315_v50 = vadd.f32 %v6314_v21, %v5962_v32  ;;  %v5966_v51 = vadd.f32 %v5965_v54, %v11524_v24  ;;  %v6581_v13 = vmax.f32 %v6313_v47, 0.0  ;;  %v12923_v31 = vld [vmem:[#allocation85_spill] sm:$0xff] }
 0x3cc   :  { %v5967_v37 = vpop.f32.mrf.mxu1  ;;  %v6320_v19 = vpop.f32.mrf.mxu0 }
 0x3cd   :  { %7075 = vst [vmem:[%s12505_s3 + $0x80] sm:$0xff] %v7903_v28  ;;  %v6582_v52 = vmax.f32 %v6315_v50, 0.0  ;;  %v6319_v42 = vadd.f32 %v6318_v59, %v5966_v51  ;;  %v5968_v58 = vadd.f32 %v5967_v37, %v12918_v20  ;;  %v12924_v50 = vld [vmem:[#allocation86_spill] sm:$0xff] }
 0x3ce   :  { %v5969_v45 = vpop.f32.mrf.mxu1  ;;  %v6322_v38 = vpop.f32.mrf.mxu0 }
 0x3cf   :  { %v7904_v40 = vpack.c.bf16 %v6582_v52, %v6581_v13  ;;  %v6321_v56 = vadd.f32 %v6320_v19, %v5968_v58  ;;  %v5970_v25 = vadd.f32 %v5969_v45, %v12919_v29  ;;  %v6583_v24 = vmax.f32 %v6319_v42, 0.0  ;;  %v12925_v42 = vld [vmem:[#allocation87_spill] sm:$0xff]  ;;  %v12926_v29 = vld [vmem:[#allocation88_spill] sm:$0xff] }
 0x3d0   :  { %v5971_v3 = vpop.f32.mrf.mxu1  ;;  %v6324_v18 = vpop.f32.mrf.mxu0 }
 0x3d1   :  { %7076 = vst [vmem:[%s12505_s3 + $0x88] sm:$0xff] %v7904_v40  ;;  %v6584_v2 = vmax.f32 %v6321_v56, 0.0  ;;  %v6323_v46 = vadd.f32 %v6322_v38, %v5970_v25  ;;  %v5972_v16 = vadd.f32 %v5971_v3, %v11545_v30 }
 0x3d2   :  { %v5975_v53 = vpop.f32.mrf.mxu1  ;;  %v6328_v0 = vpop.f32.mrf.mxu0 }
 0x3d3   :  { %v7905_v22 = vpack.c.bf16 %v6584_v2, %v6583_v24  ;;  %v6325_v23 = vadd.f32 %v6324_v18, %v5972_v16  ;;  %v5976_v17 = vadd.f32 %v5975_v53, %v11549_v43  ;;  %v6585_v15 = vmax.f32 %v6323_v46, 0.0  ;;  %v12927_v46 = vld [vmem:[#allocation49_spill] sm:$0xff] }
 0x3d4   :  { %v5977_v6 = vpop.f32.mrf.mxu1  ;;  %v6330_v12 = vpop.f32.mrf.mxu0 }
 0x3d5   :  { %7077 = vst [vmem:[%s12505_s3 + $0x90] sm:$0xff] %v7905_v22  ;;  %v6586_v44 = vmax.f32 %v6325_v23, 0.0  ;;  %v6329_v10 = vadd.f32 %v6328_v0, %v5976_v17  ;;  %v5978_v48 = vadd.f32 %v5977_v6, %v12920_v5  ;;  %v12928_v6 = vld [vmem:[#allocation51_spill] sm:$0xff] }
 0x3d6   :  { %v5979_v26 = vpop.f32.mrf.mxu1  ;;  %v6332_v57 = vpop.f32.mrf.mxu0 }
 0x3d7   :  { %v7906_v30 = vpack.c.bf16 %v6586_v44, %v6585_v15  ;;  %v6331_v11 = vadd.f32 %v6330_v12, %v5978_v48  ;;  %v5980_v9 = vadd.f32 %v5979_v26, %v12921_v7  ;;  %v6587_v43 = vmax.f32 %v6329_v10, 0.0  ;;  %v12929_v48 = vld [vmem:[#allocation53_spill] sm:$0xff] }
 0x3d8   :  { %v5981_v4 = vpop.f32.mrf.mxu1  ;;  %v6334_v55 = vpop.f32.mrf.mxu0 }
 0x3d9   :  { %7078 = vst [vmem:[%s12505_s3 + $0x98] sm:$0xff] %v7906_v30  ;;  %v6588_v60 = vmax.f32 %v6331_v11, 0.0  ;;  %v6333_v49 = vadd.f32 %v6332_v57, %v5980_v9  ;;  %v5982_v34 = vadd.f32 %v5981_v4, %v12922_v27  ;;  %v12930_v4 = vld [vmem:[#allocation55_spill] sm:$0xff] }
 0x3da   :  { %v5985_v41 = vpop.f32.mrf.mxu1  ;;  %v6338_v1 = vpop.f32.mrf.mxu0 }
 0x3db   :  { %v7907_v35 = vpack.c.bf16 %v6588_v60, %v6587_v43  ;;  %v6335_v21 = vadd.f32 %v6334_v55, %v5982_v34  ;;  %v5986_v33 = vadd.f32 %v5985_v41, %v12923_v31  ;;  %v6589_v54 = vmax.f32 %v6333_v49, 0.0  ;;  %v12931_v34 = vld [vmem:[#allocation57_spill] sm:$0xff] }
 0x3dc   :  { %v5987_v47 = vpop.f32.mrf.mxu1  ;;  %v6340_v32 = vpop.f32.mrf.mxu0 }
 0x3dd   :  { %7079 = vst [vmem:[%s12505_s3 + $0xa0] sm:$0xff] %v7907_v35  ;;  %v6590_v59 = vmax.f32 %v6335_v21, 0.0  ;;  %v6339_v28 = vadd.f32 %v6338_v1, %v5986_v33  ;;  %v5988_v51 = vadd.f32 %v5987_v47, %v12924_v50  ;;  %v12932_v47 = vld [vmem:[#allocation59_spill] sm:$0xff] }
 0x3de   :  { %v5989_v37 = vpop.f32.mrf.mxu1  ;;  %v6342_v19 = vpop.f32.mrf.mxu0 }
 0x3df   :  { %v7908_v13 = vpack.c.bf16 %v6590_v59, %v6589_v54  ;;  %v6341_v52 = vadd.f32 %v6340_v32, %v5988_v51  ;;  %v5990_v20 = vadd.f32 %v5989_v37, %v12925_v42  ;;  %v6591_v38 = vmax.f32 %v6339_v28, 0.0  ;;  %v12933_v51 = vld [vmem:[#allocation61_spill] sm:$0xff] }
 0x3e0   :  { %v5991_v58 = vpop.f32.mrf.mxu1  ;;  %v6344_v45 = vpop.f32.mrf.mxu0 }
 0x3e1   :  { %7080 = vst [vmem:[%s12505_s3 + $0xa8] sm:$0xff] %v7908_v13  ;;  %v6592_v40 = vmax.f32 %v6341_v52, 0.0  ;;  %v6343_v56 = vadd.f32 %v6342_v19, %v5990_v20  ;;  %v5992_v25 = vadd.f32 %v5991_v58, %v12926_v29  ;;  %v12934_v58 = vld [vmem:[#allocation63_spill] sm:$0xff] }
 0x3e2   :  { %v5995_v3 = vpop.f32.mrf.mxu1  ;;  %v6348_v18 = vpop.f32.mrf.mxu0 }
 0x3e3   :  { %v7909_v24 = vpack.c.bf16 %v6592_v40, %v6591_v38  ;;  %v6345_v2 = vadd.f32 %v6344_v45, %v5992_v25  ;;  %v5996_v16 = vadd.f32 %v5995_v3, %v12927_v46  ;;  %v6593_v22 = vmax.f32 %v6343_v56, 0.0  ;;  %v12935_v25 = vld [vmem:[#allocation65_spill] sm:$0xff] }
 0x3e4   :  { %v5997_v53 = vpop.f32.mrf.mxu1  ;;  %v6350_v0 = vpop.f32.mrf.mxu0 }
 0x3e5   :  { %7081 = vst [vmem:[%s12505_s3 + $0xb0] sm:$0xff] %v7909_v24  ;;  %v6594_v23 = vmax.f32 %v6345_v2, 0.0  ;;  %v6349_v17 = vadd.f32 %v6348_v18, %v5996_v16  ;;  %v5998_v12 = vadd.f32 %v5997_v53, %v12928_v6  ;;  %v12936_v53 = vld [vmem:[#allocation67_spill] sm:$0xff] }
 0x3e6   :  { %v5999_v15 = vpop.f32.mrf.mxu1  ;;  %v6352_v44 = vpop.f32.mrf.mxu0 }
 0x3e7   :  { %v7910_v10 = vpack.c.bf16 %v6594_v23, %v6593_v22  ;;  %v6351_v5 = vadd.f32 %v6350_v0, %v5998_v12  ;;  %v6000_v26 = vadd.f32 %v5999_v15, %v12929_v48  ;;  %v6595_v11 = vmax.f32 %v6349_v17, 0.0  ;;  %v12937_v12 = vld [vmem:[#allocation69_spill] sm:$0xff] }
 0x3e8   :  { %v6001_v57 = vpop.f32.mrf.mxu1  ;;  %v6354_v30 = vpop.f32.mrf.mxu0 }
 0x3e9   :  { %7082 = vst [vmem:[%s12505_s3 + $0xb8] sm:$0xff] %v7910_v10  ;;  %v6596_v7 = vmax.f32 %v6351_v5, 0.0  ;;  %v6353_v9 = vadd.f32 %v6352_v44, %v6000_v26  ;;  %v6002_v55 = vadd.f32 %v6001_v57, %v12930_v4  ;;  %v12938_v57 = vld [vmem:[#allocation71_spill] sm:$0xff] }
 0x3ea   :  { %v6005_v43 = vpop.f32.mrf.mxu1  ;;  %v6358_v60 = vpop.f32.mrf.mxu0 }
 0x3eb   :  { %v7911_v49 = vpack.c.bf16 %v6596_v7, %v6595_v11  ;;  %v6355_v27 = vadd.f32 %v6354_v30, %v6002_v55  ;;  %v6006_v41 = vadd.f32 %v6005_v43, %v12931_v34  ;;  %v6597_v21 = vmax.f32 %v6353_v9, 0.0  ;;  %v12939_v55 = vld [vmem:[#allocation73_spill] sm:$0xff] }
 0x3ec   :  { %v6007_v1 = vpop.f32.mrf.mxu1  ;;  %v6360_v35 = vpop.f32.mrf.mxu0 }
 0x3ed   :  { %7083 = vst [vmem:[%s12505_s3 + $0xc0] sm:$0xff] %v7911_v49  ;;  %v6598_v31 = vmax.f32 %v6355_v27, 0.0  ;;  %v6359_v33 = vadd.f32 %v6358_v60, %v6006_v41  ;;  %v6008_v32 = vadd.f32 %v6007_v1, %v12932_v47  ;;  %v12940_v1 = vld [vmem:[#allocation75_spill] sm:$0xff] }
 0x3ee   :  { %v6009_v54 = vpop.f32.mrf.mxu1  ;;  %v6362_v59 = vpop.f32.mrf.mxu0 }
 0x3ef   :  { %v7912_v28 = vpack.c.bf16 %v6598_v31, %v6597_v21  ;;  %v6361_v50 = vadd.f32 %v6360_v35, %v6008_v32  ;;  %v6010_v37 = vadd.f32 %v6009_v54, %v12933_v51  ;;  %v6599_v52 = vmax.f32 %v6359_v33, 0.0  ;;  %v12941_v32 = vld [vmem:[#allocation77_spill] sm:$0xff] }
 0x3f0   :  { %v6011_v19 = vpop.f32.mrf.mxu1  ;;  %v6364_v13 = vpop.f32.mrf.mxu0 }
 0x3f1   :  { %7084 = vst [vmem:[%s12505_s3 + $0xc8] sm:$0xff] %v7912_v28  ;;  %v6600_v42 = vmax.f32 %v6361_v50, 0.0  ;;  %v6363_v20 = vadd.f32 %v6362_v59, %v6010_v37  ;;  %v6012_v45 = vadd.f32 %v6011_v19, %v12934_v58  ;;  %v12942_v58 = vld [vmem:[#allocation79_spill] sm:$0xff] }
 0x3f2   :  { %v6015_v38 = vpop.f32.mrf.mxu1  ;;  %v6368_v40 = vpop.f32.mrf.mxu0 }
 0x3f3   :  { %v7913_v56 = vpack.c.bf16 %v6600_v42, %v6599_v52  ;;  %v6365_v29 = vadd.f32 %v6364_v13, %v6012_v45  ;;  %v6016_v3 = vadd.f32 %v6015_v38, %v12935_v25  ;;  %v6601_v2 = vmax.f32 %v6363_v20, 0.0 }
 0x3f4   :  { %v6017_v18 = vpop.f32.mrf.mxu1  ;;  %v6370_v24 = vpop.f32.mrf.mxu0 }
 0x3f5   :  { %7085 = vst [vmem:[%s12505_s3 + $0xd0] sm:$0xff] %v7913_v56  ;;  %v6602_v46 = vmax.f32 %v6365_v29, 0.0  ;;  %v6369_v16 = vadd.f32 %v6368_v40, %v6016_v3  ;;  %v6018_v0 = vadd.f32 %v6017_v18, %v12936_v53  ;;  %v12943_v3 = vld [vmem:[#allocation81_spill] sm:$0xff] }
 0x3f6   :  { %v6019_v22 = vpop.f32.mrf.mxu1  ;;  %v6372_v23 = vpop.f32.mrf.mxu0 }
 0x3f7   :  { %v7914_v17 = vpack.c.bf16 %v6602_v46, %v6601_v2  ;;  %v6371_v6 = vadd.f32 %v6370_v24, %v6018_v0  ;;  %v6020_v15 = vadd.f32 %v6019_v22, %v12937_v12  ;;  %v6603_v5 = vmax.f32 %v6369_v16, 0.0  ;;  %v12944_v16 = vld [vmem:[#allocation2_spill] sm:$0xff]  ;;  %v12945_v12 = vld [vmem:[#allocation3_spill] sm:$0xff] }
 0x3f8   :  { %v6021_v44 = vpop.f32.mrf.mxu1  ;;  %v6374_v10 = vpop.f32.mrf.mxu0 }
 0x3f9   :  { %7086 = vst [vmem:[%s12505_s3 + $0xd8] sm:$0xff] %v7914_v17  ;;  %v6604_v48 = vmax.f32 %v6371_v6, 0.0  ;;  %v6373_v26 = vadd.f32 %v6372_v23, %v6020_v15  ;;  %v6022_v30 = vadd.f32 %v6021_v44, %v12938_v57 }
 0x3fa   :  { %v6025_v11 = vpop.f32.mrf.mxu1  ;;  %v6378_v7 = vpop.f32.mrf.mxu0 }
 0x3fb   :  { %v7915_v9 = vpack.c.bf16 %v6604_v48, %v6603_v5  ;;  %v6375_v4 = vadd.f32 %v6374_v10, %v6022_v30  ;;  %v6026_v43 = vadd.f32 %v6025_v11, %v12939_v55  ;;  %v6605_v27 = vmax.f32 %v6373_v26, 0.0  ;;  %v12946_v26 = vld [vmem:[#allocation4_spill] sm:$0xff]  ;;  %v12947_v55 = vld [vmem:[#allocation5_spill] sm:$0xff] }
 0x3fc   :  { %v6027_v60 = vpop.f32.mrf.mxu1  ;;  %v6380_v49 = vpop.f32.mrf.mxu0 }
 0x3fd   :  { %7087 = vst [vmem:[%s12505_s3 + $0xe0] sm:$0xff] %v7915_v9  ;;  %v6606_v34 = vmax.f32 %v6375_v4, 0.0  ;;  %v6379_v41 = vadd.f32 %v6378_v7, %v6026_v43  ;;  %v6028_v35 = vadd.f32 %v6027_v60, %v12940_v1 }
 0x3fe   :  { %v6029_v21 = vpop.f32.mrf.mxu1  ;;  %v6382_v31 = vpop.f32.mrf.mxu0 }
 0x3ff   :  { %v7916_v33 = vpack.c.bf16 %v6606_v34, %v6605_v27  ;;  %v6381_v47 = vadd.f32 %v6380_v49, %v6028_v35  ;;  %v6030_v54 = vadd.f32 %v6029_v21, %v12941_v32  ;;  %v6607_v50 = vmax.f32 %v6379_v41, 0.0  ;;  %v12948_v41 = vld [vmem:[#allocation6_spill] sm:$0xff]  ;;  %v12949_v32 = vld [vmem:[#allocation7_spill] sm:$0xff] }
 0x400   :  { %v6031_v59 = vpop.f32.mrf.mxu1  ;;  %v6384_v28 = vpop.f32.mrf.mxu0 }
 0x401   :  { %7088 = vst [vmem:[%s12505_s3 + $0xe8] sm:$0xff] %v7916_v33  ;;  %v6608_v51 = vmax.f32 %v6381_v47, 0.0  ;;  %v6383_v37 = vadd.f32 %v6382_v31, %v6030_v54  ;;  %v6032_v19 = vadd.f32 %v6031_v59, %v11695_v36 }
 0x402   :  { %v6035_v13 = vpop.f32.mrf.mxu1  ;;  %v6388_v52 = vpop.f32.mrf.mxu0 }
 0x403   :  { %v7917_v42 = vpack.c.bf16 %v6608_v51, %v6607_v50  ;;  %v6385_v20 = vadd.f32 %v6384_v28, %v6032_v19  ;;  %v6036_v45 = vadd.f32 %v6035_v13, %v12942_v58  ;;  %v6609_v56 = vmax.f32 %v6383_v37, 0.0  ;;  %v12950_v37 = vld [vmem:[#allocation8_spill] sm:$0xff] }
 0x404   :  { %v6037_v38 = vpop.f32.mrf.mxu1  ;;  %v6390_v40 = vpop.f32.mrf.mxu0 }
 0x405   :  { %7089 = vst [vmem:[%s12505_s3 + $0xf0] sm:$0xff] %v7917_v42  ;;  %v6610_v29 = vmax.f32 %v6385_v20, 0.0  ;;  %v6389_v25 = vadd.f32 %v6388_v52, %v6036_v45  ;;  %v6038_v18 = vadd.f32 %v6037_v38, %v12943_v3  ;;  %v12951_v45 = vld [vmem:[#allocation9_spill] sm:$0xff]  ;;  %v12952_v3 = vld [vmem:[#allocation10_spill] sm:$0xff] }
 0x406   :  { %v6039_v24 = vpop.f32.mrf.mxu1  ;;  %v6392_v2 = vpop.f32.mrf.mxu0 }
 0x407   :  { %v7918_v36 = vpack.c.bf16 %v6610_v29, %v6609_v56  ;;  %v6391_v46 = vadd.f32 %v6390_v40, %v6038_v18  ;;  %v6040_v53 = vadd.f32 %v6039_v24, %v12944_v16  ;;  %v6611_v23 = vmax.f32 %v6389_v25, 0.0 }
 0x408   :  { %v6041_v0 = vpop.f32.mrf.mxu1  ;;  %v6394_v22 = vpop.f32.mrf.mxu0 }
 0x409   :  { %7090 = vst [vmem:[%s12505_s3 + $0xf8] sm:$0xff] %v7918_v36  ;;  %v6612_v17 = vmax.f32 %v6391_v46, 0.0  ;;  %v6393_v6 = vadd.f32 %v6392_v2, %v6040_v53  ;;  %v6042_v15 = vadd.f32 %v6041_v0, %v12945_v12  ;;  %v12953_v53 = vld [vmem:[#allocation11_spill] sm:$0xff]  ;;  %v12954_v12 = vld [vmem:[#allocation12_spill] sm:$0xff] }
 0x40a   :  { %v6045_v44 = vpop.f32.mrf.mxu1  ;;  %v6398_v10 = vpop.f32.mrf.mxu0 }
 0x40b   :  { %v7919_v5 = vpack.c.bf16 %v6612_v17, %v6611_v23  ;;  %v6395_v48 = vadd.f32 %v6394_v22, %v6042_v15  ;;  %v6046_v57 = vadd.f32 %v6045_v44, %v12946_v26  ;;  %v6613_v7 = vmax.f32 %v6393_v6, 0.0 }
 0x40c   :  { %v6047_v30 = vpop.f32.mrf.mxu1  ;;  %v6400_v11 = vpop.f32.mrf.mxu0 }
 0x40d   :  { %7091 = vst [vmem:[%s12505_s3 + $0x100] sm:$0xff] %v7919_v5  ;;  %v6614_v9 = vmax.f32 %v6395_v48, 0.0  ;;  %v6399_v4 = vadd.f32 %v6398_v10, %v6046_v57  ;;  %v6048_v43 = vadd.f32 %v6047_v30, %v12947_v55  ;;  %v12955_v57 = vld [vmem:[#allocation13_spill] sm:$0xff]  ;;  %v12956_v55 = vld [vmem:[#allocation14_spill] sm:$0xff] }
 0x40e   :  { %v6049_v60 = vpop.f32.mrf.mxu1  ;;  %v6402_v49 = vpop.f32.mrf.mxu0 }
 0x40f   :  { %v7920_v27 = vpack.c.bf16 %v6614_v9, %v6613_v7  ;;  %v6401_v34 = vadd.f32 %v6400_v11, %v6048_v43  ;;  %v6050_v1 = vadd.f32 %v6049_v60, %v12948_v41  ;;  %v6615_v31 = vmax.f32 %v6399_v4, 0.0 }
 0x410   :  { %v6051_v35 = vpop.f32.mrf.mxu1  ;;  %v6404_v21 = vpop.f32.mrf.mxu0 }
 0x411   :  { %7092 = vst [vmem:[%s12505_s3 + $0x108] sm:$0xff] %v7920_v27  ;;  %v6616_v33 = vmax.f32 %v6401_v34, 0.0  ;;  %v6403_v47 = vadd.f32 %v6402_v49, %v6050_v1  ;;  %v6052_v54 = vadd.f32 %v6051_v35, %v12949_v32  ;;  %v12957_v1 = vld [vmem:[#allocation15_spill] sm:$0xff]  ;;  %v12958_v32 = vld [vmem:[#allocation16_spill] sm:$0xff] }
 0x412   :  { %v6055_v59 = vpop.f32.mrf.mxu1  ;;  %v6408_v28 = vpop.f32.mrf.mxu0 }
 0x413   :  { %v7921_v50 = vpack.c.bf16 %v6616_v33, %v6615_v31  ;;  %v6405_v51 = vadd.f32 %v6404_v21, %v6052_v54  ;;  %v6056_v19 = vadd.f32 %v6055_v59, %v12950_v37  ;;  %v6617_v42 = vmax.f32 %v6403_v47, 0.0 }
 0x414   :  { %v6057_v13 = vpop.f32.mrf.mxu1  ;;  %v6410_v52 = vpop.f32.mrf.mxu0 }
 0x415   :  { %7093 = vst [vmem:[%s12505_s3 + $0x110] sm:$0xff] %v7921_v50  ;;  %v6618_v20 = vmax.f32 %v6405_v51, 0.0  ;;  %v6409_v58 = vadd.f32 %v6408_v28, %v6056_v19  ;;  %v6058_v38 = vadd.f32 %v6057_v13, %v12951_v45  ;;  %v12959_v19 = vld [vmem:[#allocation17_spill] sm:$0xff]  ;;  %v12960_v45 = vld [vmem:[#allocation18_spill] sm:$0xff] }
 0x416   :  { %v6059_v40 = vpop.f32.mrf.mxu1  ;;  %v6412_v56 = vpop.f32.mrf.mxu0 }
 0x417   :  { %v7922_v29 = vpack.c.bf16 %v6618_v20, %v6617_v42  ;;  %v6411_v25 = vadd.f32 %v6410_v52, %v6058_v38  ;;  %v6060_v18 = vadd.f32 %v6059_v40, %v12952_v3  ;;  %v6619_v36 = vmax.f32 %v6409_v58, 0.0 }
 0x418   :  { %v6061_v24 = vpop.f32.mrf.mxu1  ;;  %v6414_v2 = vpop.f32.mrf.mxu0 }
 0x419   :  { %7094 = vst [vmem:[%s12505_s3 + $0x118] sm:$0xff] %v7922_v29  ;;  %v6620_v46 = vmax.f32 %v6411_v25, 0.0  ;;  %v6413_v16 = vadd.f32 %v6412_v56, %v6060_v18  ;;  %v6062_v0 = vadd.f32 %v6061_v24, %v12953_v53  ;;  %v12961_v18 = vld [vmem:[#allocation19_spill] sm:$0xff]  ;;  %v12962_v53 = vld [vmem:[#allocation20_spill] sm:$0xff] }
 0x41a   :  { %v6065_v22 = vpop.f32.mrf.mxu1  ;;  %v6418_v23 = vpop.f32.mrf.mxu0 }
 0x41b   :  { %v7923_v17 = vpack.c.bf16 %v6620_v46, %v6619_v36  ;;  %v6415_v6 = vadd.f32 %v6414_v2, %v6062_v0  ;;  %v6066_v15 = vadd.f32 %v6065_v22, %v12954_v12  ;;  %v6621_v5 = vmax.f32 %v6413_v16, 0.0 }
 0x41c   :  { %v6067_v44 = vpop.f32.mrf.mxu1  ;;  %v6420_v10 = vpop.f32.mrf.mxu0 }
 0x41d   :  { %7095 = vst [vmem:[%s12505_s3 + $0x120] sm:$0xff] %v7923_v17  ;;  %v6622_v48 = vmax.f32 %v6415_v6, 0.0  ;;  %v6419_v26 = vadd.f32 %v6418_v23, %v6066_v15  ;;  %v6068_v30 = vadd.f32 %v6067_v44, %v12955_v57  ;;  %v12963_v15 = vld [vmem:[#allocation21_spill] sm:$0xff]  ;;  %v12964_v57 = vld [vmem:[#allocation22_spill] sm:$0xff] }
 0x41e   :  { %v6069_v11 = vpop.f32.mrf.mxu1  ;;  %v6422_v7 = vpop.f32.mrf.mxu0 }
 0x41f   :  { %v7924_v9 = vpack.c.bf16 %v6622_v48, %v6621_v5  ;;  %v6421_v4 = vadd.f32 %v6420_v10, %v6068_v30  ;;  %v6070_v43 = vadd.f32 %v6069_v11, %v12956_v55  ;;  %v6623_v27 = vmax.f32 %v6419_v26, 0.0 }
 0x420   :  { %v6071_v60 = vpop.f32.mrf.mxu1  ;;  %v6424_v49 = vpop.f32.mrf.mxu0 }
 0x421   :  { %7096 = vst [vmem:[%s12505_s3 + $0x128] sm:$0xff] %v7924_v9  ;;  %v6624_v34 = vmax.f32 %v6421_v4, 0.0  ;;  %v6423_v41 = vadd.f32 %v6422_v7, %v6070_v43  ;;  %v6072_v35 = vadd.f32 %v6071_v60, %v12957_v1  ;;  %v12965_v43 = vld [vmem:[#allocation23_spill] sm:$0xff]  ;;  %v12966_v1 = vld [vmem:[#allocation24_spill] sm:$0xff] }
 0x422   :  { %v6075_v21 = vpop.f32.mrf.mxu1  ;;  %v6428_v31 = vpop.f32.mrf.mxu0 }
 0x423   :  { %v7925_v33 = vpack.c.bf16 %v6624_v34, %v6623_v27  ;;  %v6425_v47 = vadd.f32 %v6424_v49, %v6072_v35  ;;  %v6076_v54 = vadd.f32 %v6075_v21, %v12958_v32  ;;  %v6625_v50 = vmax.f32 %v6423_v41, 0.0 }
 0x424   :  { %v6077_v59 = vpop.f32.mrf.mxu1  ;;  %v6430_v28 = vpop.f32.mrf.mxu0 }
 0x425   :  { %7097 = vst [vmem:[%s12505_s3 + $0x130] sm:$0xff] %v7925_v33  ;;  %v6626_v51 = vmax.f32 %v6425_v47, 0.0  ;;  %v6429_v37 = vadd.f32 %v6428_v31, %v6076_v54  ;;  %v6078_v13 = vadd.f32 %v6077_v59, %v12959_v19  ;;  %v12967_v54 = vld [vmem:[#allocation25_spill] sm:$0xff]  ;;  %v12968_v19 = vld [vmem:[#allocation26_spill] sm:$0xff] }
 0x426   :  { %v6079_v52 = vpop.f32.mrf.mxu1  ;;  %v6432_v42 = vpop.f32.mrf.mxu0 }
 0x427   :  { %v7926_v20 = vpack.c.bf16 %v6626_v51, %v6625_v50  ;;  %v6431_v58 = vadd.f32 %v6430_v28, %v6078_v13  ;;  %v6080_v38 = vadd.f32 %v6079_v52, %v12960_v45  ;;  %v6627_v29 = vmax.f32 %v6429_v37, 0.0 }
 0x428   :  { %v6081_v40 = vpop.f32.mrf.mxu1  ;;  %v6434_v56 = vpop.f32.mrf.mxu0 }
 0x429   :  { %7098 = vst [vmem:[%s12505_s3 + $0x138] sm:$0xff] %v7926_v20  ;;  %v6628_v25 = vmax.f32 %v6431_v58, 0.0  ;;  %v6433_v3 = vadd.f32 %v6432_v42, %v6080_v38  ;;  %v6082_v24 = vadd.f32 %v6081_v40, %v12961_v18  ;;  %v12969_v38 = vld [vmem:[#allocation27_spill] sm:$0xff]  ;;  %v12970_v18 = vld [vmem:[#allocation28_spill] sm:$0xff] }
 0x42a   :  { %v6085_v2 = vpop.f32.mrf.mxu1  ;;  %v6438_v36 = vpop.f32.mrf.mxu0 }
 0x42b   :  { %v7927_v46 = vpack.c.bf16 %v6628_v25, %v6627_v29  ;;  %v6435_v16 = vadd.f32 %v6434_v56, %v6082_v24  ;;  %v6086_v0 = vadd.f32 %v6085_v2, %v12962_v53  ;;  %v6629_v17 = vmax.f32 %v6433_v3, 0.0 }
 0x42c   :  { %v6087_v22 = vpop.f32.mrf.mxu1  ;;  %v6440_v23 = vpop.f32.mrf.mxu0 }
 0x42d   :  { %7099 = vst [vmem:[%s12505_s3 + $0x140] sm:$0xff] %v7927_v46  ;;  %v6630_v6 = vmax.f32 %v6435_v16, 0.0  ;;  %v6439_v12 = vadd.f32 %v6438_v36, %v6086_v0  ;;  %v6088_v44 = vadd.f32 %v6087_v22, %v12963_v15  ;;  %v12971_v0 = vld [vmem:[#allocation29_spill] sm:$0xff]  ;;  %v12972_v15 = vld [vmem:[#allocation30_spill] sm:$0xff] }
 0x42e   :  { %v6089_v10 = vpop.f32.mrf.mxu1  ;;  %v6442_v5 = vpop.f32.mrf.mxu0 }
 0x42f   :  { %v7928_v48 = vpack.c.bf16 %v6630_v6, %v6629_v17  ;;  %v6441_v26 = vadd.f32 %v6440_v23, %v6088_v44  ;;  %v6090_v30 = vadd.f32 %v6089_v10, %v12964_v57  ;;  %v6631_v9 = vmax.f32 %v6439_v12, 0.0 }
 0x430   :  { %v6091_v11 = vpop.f32.mrf.mxu1  ;;  %v6444_v7 = vpop.f32.mrf.mxu0 }
 0x431   :  { %7100 = vst [vmem:[%s12505_s3 + $0x148] sm:$0xff] %v7928_v48  ;;  %v6632_v4 = vmax.f32 %v6441_v26, 0.0  ;;  %v6443_v55 = vadd.f32 %v6442_v5, %v6090_v30  ;;  %v6092_v60 = vadd.f32 %v6091_v11, %v12965_v43  ;;  %v12973_v30 = vld [vmem:[#allocation31_spill] sm:$0xff]  ;;  %v12974_v43 = vld [vmem:[#allocation32_spill] sm:$0xff] }
 0x432   :  { %v6095_v49 = vpop.f32.mrf.mxu1  ;;  %v6448_v27 = vpop.f32.mrf.mxu0 }
 0x433   :  { %v7929_v34 = vpack.c.bf16 %v6632_v4, %v6631_v9  ;;  %v6445_v41 = vadd.f32 %v6444_v7, %v6092_v60  ;;  %v6096_v35 = vadd.f32 %v6095_v49, %v12966_v1  ;;  %v6633_v33 = vmax.f32 %v6443_v55, 0.0 }
 0x434   :  { %v6097_v21 = vpop.f32.mrf.mxu1  ;;  %v6450_v31 = vpop.f32.mrf.mxu0 }
 0x435   :  { %7101 = vst [vmem:[%s12505_s3 + $0x150] sm:$0xff] %v7929_v34  ;;  %v6634_v47 = vmax.f32 %v6445_v41, 0.0  ;;  %v6449_v32 = vadd.f32 %v6448_v27, %v6096_v35  ;;  %v6098_v59 = vadd.f32 %v6097_v21, %v12967_v54  ;;  %v12975_v35 = vld [vmem:[#allocation33_spill] sm:$0xff]  ;;  %v12976_v54 = vld [vmem:[#allocation34_spill] sm:$0xff] }
 0x436   :  { %v6099_v28 = vpop.f32.mrf.mxu1  ;;  %v6452_v50 = vpop.f32.mrf.mxu0 }
 0x437   :  { %v7930_v51 = vpack.c.bf16 %v6634_v47, %v6633_v33  ;;  %v6451_v37 = vadd.f32 %v6450_v31, %v6098_v59  ;;  %v6100_v13 = vadd.f32 %v6099_v28, %v12968_v19  ;;  %v6635_v20 = vmax.f32 %v6449_v32, 0.0 }
 0x438   :  { %v6101_v52 = vpop.f32.mrf.mxu1  ;;  %v6454_v42 = vpop.f32.mrf.mxu0 }
 0x439   :  { %7102 = vst [vmem:[%s12505_s3 + $0x158] sm:$0xff] %v7930_v51  ;;  %v6636_v58 = vmax.f32 %v6451_v37, 0.0  ;;  %v6453_v45 = vadd.f32 %v6452_v50, %v6100_v13  ;;  %v6102_v40 = vadd.f32 %v6101_v52, %v12969_v38  ;;  %v12977_v13 = vld [vmem:[#allocation35_spill] sm:$0xff]  ;;  %v12978_v38 = vld [vmem:[#allocation36_spill] sm:$0xff] }
 0x43a   :  { %v6105_v56 = vpop.f32.mrf.mxu1  ;;  %v6458_v29 = vpop.f32.mrf.mxu0 }
 0x43b   :  { %v7931_v25 = vpack.c.bf16 %v6636_v58, %v6635_v20  ;;  %v6455_v3 = vadd.f32 %v6454_v42, %v6102_v40  ;;  %v6106_v24 = vadd.f32 %v6105_v56, %v12970_v18  ;;  %v6637_v46 = vmax.f32 %v6453_v45, 0.0 }
 0x43c   :  { %v6107_v2 = vpop.f32.mrf.mxu1  ;;  %v6460_v36 = vpop.f32.mrf.mxu0 }
 0x43d   :  { %7103 = vst [vmem:[%s12505_s3 + $0x160] sm:$0xff] %v7931_v25  ;;  %v6638_v16 = vmax.f32 %v6455_v3, 0.0  ;;  %v6459_v53 = vadd.f32 %v6458_v29, %v6106_v24  ;;  %v6108_v22 = vadd.f32 %v6107_v2, %v12971_v0  ;;  %v12979_v24 = vld [vmem:[#allocation37_spill] sm:$0xff]  ;;  %v12980_v0 = vld [vmem:[#allocation38_spill] sm:$0xff] }
 0x43e   :  { %v6109_v23 = vpop.f32.mrf.mxu1  ;;  %v6462_v17 = vpop.f32.mrf.mxu0 }
 0x43f   :  { %v7932_v6 = vpack.c.bf16 %v6638_v16, %v6637_v46  ;;  %v6461_v12 = vadd.f32 %v6460_v36, %v6108_v22  ;;  %v6110_v44 = vadd.f32 %v6109_v23, %v12972_v15  ;;  %v6639_v48 = vmax.f32 %v6459_v53, 0.0 }
 0x440   :  { %v6111_v10 = vpop.f32.mrf.mxu1  ;;  %v6464_v5 = vpop.f32.mrf.mxu0 }
 0x441   :  { %7104 = vst [vmem:[%s12505_s3 + $0x168] sm:$0xff] %v7932_v6  ;;  %v6640_v26 = vmax.f32 %v6461_v12, 0.0  ;;  %v6463_v57 = vadd.f32 %v6462_v17, %v6110_v44  ;;  %v6112_v11 = vadd.f32 %v6111_v10, %v12973_v30  ;;  %v12981_v44 = vld [vmem:[#allocation39_spill] sm:$0xff]  ;;  %v12982_v30 = vld [vmem:[#allocation40_spill] sm:$0xff] }
 0x442   :  { %v6115_v7 = vpop.f32.mrf.mxu1  ;;  %v6468_v9 = vpop.f32.mrf.mxu0 }
 0x443   :  { %v7933_v4 = vpack.c.bf16 %v6640_v26, %v6639_v48  ;;  %v6465_v55 = vadd.f32 %v6464_v5, %v6112_v11  ;;  %v6116_v60 = vadd.f32 %v6115_v7, %v12974_v43  ;;  %v6641_v34 = vmax.f32 %v6463_v57, 0.0 }
 0x444   :  { %v6117_v49 = vpop.f32.mrf.mxu1  ;;  %v6470_v27 = vpop.f32.mrf.mxu0 }
 0x445   :  { %7105 = vst [vmem:[%s12505_s3 + $0x170] sm:$0xff] %v7933_v4  ;;  %v6642_v41 = vmax.f32 %v6465_v55, 0.0  ;;  %v6469_v1 = vadd.f32 %v6468_v9, %v6116_v60  ;;  %v6118_v21 = vadd.f32 %v6117_v49, %v12975_v35  ;;  %v12983_v60 = vld [vmem:[#allocation41_spill] sm:$0xff]  ;;  %v12984_v35 = vld [vmem:[#allocation42_spill] sm:$0xff] }
 0x446   :  { %v6119_v31 = vpop.f32.mrf.mxu1  ;;  %v6472_v33 = vpop.f32.mrf.mxu0 }
 0x447   :  { %v7934_v47 = vpack.c.bf16 %v6642_v41, %v6641_v34  ;;  %v6471_v32 = vadd.f32 %v6470_v27, %v6118_v21  ;;  %v6120_v59 = vadd.f32 %v6119_v31, %v12976_v54  ;;  %v6643_v51 = vmax.f32 %v6469_v1, 0.0 }
 0x448   :  { %v6121_v28 = vpop.f32.mrf.mxu1  ;;  %v6474_v50 = vpop.f32.mrf.mxu0 }
 0x449   :  { %7106 = vst [vmem:[%s12505_s3 + $0x178] sm:$0xff] %v7934_v47  ;;  %v6644_v37 = vmax.f32 %v6471_v32, 0.0  ;;  %v6473_v19 = vadd.f32 %v6472_v33, %v6120_v59  ;;  %v6122_v52 = vadd.f32 %v6121_v28, %v12977_v13  ;;  %v12985_v59 = vld [vmem:[#allocation43_spill] sm:$0xff]  ;;  %v12986_v13 = vld [vmem:[#allocation44_spill] sm:$0xff] }
 0x44a   :  { %v6125_v42 = vpop.f32.mrf.mxu1  ;;  %v6478_v20 = vpop.f32.mrf.mxu0 }
 0x44b   :  { %v7935_v58 = vpack.c.bf16 %v6644_v37, %v6643_v51  ;;  %v6475_v45 = vadd.f32 %v6474_v50, %v6122_v52  ;;  %v6126_v40 = vadd.f32 %v6125_v42, %v12978_v38  ;;  %v6645_v25 = vmax.f32 %v6473_v19, 0.0 }
 0x44c   :  { %v6127_v56 = vpop.f32.mrf.mxu1  ;;  %v6480_v29 = vpop.f32.mrf.mxu0 }
 0x44d   :  { %7107 = vst [vmem:[%s12505_s3 + $0x180] sm:$0xff] %v7935_v58  ;;  %v6646_v3 = vmax.f32 %v6475_v45, 0.0  ;;  %v6479_v18 = vadd.f32 %v6478_v20, %v6126_v40  ;;  %v6128_v2 = vadd.f32 %v6127_v56, %v12979_v24  ;;  %v12987_v40 = vld [vmem:[#allocation45_spill] sm:$0xff]  ;;  %v12988_v24 = vld [vmem:[#allocation46_spill] sm:$0xff] }
 0x44e   :  { %v6129_v36 = vpop.f32.mrf.mxu1  ;;  %v6482_v46 = vpop.f32.mrf.mxu0 }
 0x44f   :  { %v7936_v16 = vpack.c.bf16 %v6646_v3, %v6645_v25  ;;  %v6481_v53 = vadd.f32 %v6480_v29, %v6128_v2  ;;  %v6130_v22 = vadd.f32 %v6129_v36, %v12980_v0  ;;  %v6647_v6 = vmax.f32 %v6479_v18, 0.0 }
 0x450   :  { %v6131_v23 = vpop.f32.mrf.mxu1  ;;  %v6484_v17 = vpop.f32.mrf.mxu0 }
 0x451   :  { %7108 = vst [vmem:[%s12505_s3 + $0x188] sm:$0xff] %v7936_v16  ;;  %v6648_v12 = vmax.f32 %v6481_v53, 0.0  ;;  %v6483_v15 = vadd.f32 %v6482_v46, %v6130_v22  ;;  %v6132_v10 = vadd.f32 %v6131_v23, %v12981_v44  ;;  %v12989_v22 = vld [vmem:[#allocation47_spill] sm:$0xff]  ;;  %v12990_v44 = vld [vmem:[#allocation48_spill] sm:$0xff] }
 0x452   :  { %v6135_v5 = vpop.f32.mrf.mxu1  ;;  %v6488_v48 = vpop.f32.mrf.mxu0 }
 0x453   :  { %v7937_v26 = vpack.c.bf16 %v6648_v12, %v6647_v6  ;;  %v6485_v57 = vadd.f32 %v6484_v17, %v6132_v10  ;;  %v6136_v11 = vadd.f32 %v6135_v5, %v12982_v30  ;;  %v6649_v4 = vmax.f32 %v6483_v15, 0.0 }
 0x454   :  { %v6137_v7 = vpop.f32.mrf.mxu1  ;;  %v6490_v9 = vpop.f32.mrf.mxu0 }
 0x455   :  { %7109 = vst [vmem:[%s12505_s3 + $0x190] sm:$0xff] %v7937_v26  ;;  %v6650_v55 = vmax.f32 %v6485_v57, 0.0  ;;  %v6489_v43 = vadd.f32 %v6488_v48, %v6136_v11  ;;  %v6138_v49 = vadd.f32 %v6137_v7, %v12983_v60  ;;  %v12991_v11 = vld [vmem:[#allocation50_spill] sm:$0xff]  ;;  %v12992_v60 = vld [vmem:[#allocation52_spill] sm:$0xff] }
 0x456   :  { %v6139_v27 = vpop.f32.mrf.mxu1  ;;  %v6492_v34 = vpop.f32.mrf.mxu0 }
 0x457   :  { %v7938_v41 = vpack.c.bf16 %v6650_v55, %v6649_v4  ;;  %v6491_v1 = vadd.f32 %v6490_v9, %v6138_v49  ;;  %v6140_v21 = vadd.f32 %v6139_v27, %v12984_v35  ;;  %v6651_v47 = vmax.f32 %v6489_v43, 0.0 }
 0x458   :  { %v6141_v31 = vpop.f32.mrf.mxu1  ;;  %v6494_v33 = vpop.f32.mrf.mxu0 }
 0x459   :  { %7110 = vst [vmem:[%s12505_s3 + $0x198] sm:$0xff] %v7938_v41  ;;  %v6652_v32 = vmax.f32 %v6491_v1, 0.0  ;;  %v6493_v54 = vadd.f32 %v6492_v34, %v6140_v21  ;;  %v6142_v28 = vadd.f32 %v6141_v31, %v12985_v59  ;;  %v12993_v21 = vld [vmem:[#allocation54_spill] sm:$0xff]  ;;  %v12994_v59 = vld [vmem:[#allocation56_spill] sm:$0xff] }
 0x45a   :  { %v6145_v50 = vpop.f32.mrf.mxu1  ;;  %v6498_v51 = vpop.f32.mrf.mxu0 }
 0x45b   :  { %v7939_v37 = vpack.c.bf16 %v6652_v32, %v6651_v47  ;;  %v6495_v19 = vadd.f32 %v6494_v33, %v6142_v28  ;;  %v6146_v52 = vadd.f32 %v6145_v50, %v12986_v13  ;;  %v6653_v58 = vmax.f32 %v6493_v54, 0.0 }
 0x45c   :  { %v6147_v42 = vpop.f32.mrf.mxu1  ;;  %v6500_v20 = vpop.f32.mrf.mxu0 }
 0x45d   :  { %7111 = vst [vmem:[%s12505_s3 + $0x1a0] sm:$0xff] %v7939_v37  ;;  %v6654_v45 = vmax.f32 %v6495_v19, 0.0  ;;  %v6499_v38 = vadd.f32 %v6498_v51, %v6146_v52  ;;  %v6148_v56 = vadd.f32 %v6147_v42, %v12987_v40  ;;  %v12995_v52 = vld [vmem:[#allocation58_spill] sm:$0xff]  ;;  %v12996_v40 = vld [vmem:[#allocation60_spill] sm:$0xff] }
 0x45e   :  { %v6149_v29 = vpop.f32.mrf.mxu1  ;;  %v6502_v25 = vpop.f32.mrf.mxu0 }
 0x45f   :  { %v7940_v3 = vpack.c.bf16 %v6654_v45, %v6653_v58  ;;  %v6501_v18 = vadd.f32 %v6500_v20, %v6148_v56  ;;  %v6150_v2 = vadd.f32 %v6149_v29, %v12988_v24  ;;  %v6655_v16 = vmax.f32 %v6499_v38, 0.0 }
 0x460   :  { %v6151_v36 = vpop.f32.mrf.mxu1  ;;  %v6504_v46 = vpop.f32.mrf.mxu0 }
 0x461   :  { %7112 = vst [vmem:[%s12505_s3 + $0x1a8] sm:$0xff] %v7940_v3  ;;  %v6656_v53 = vmax.f32 %v6501_v18, 0.0  ;;  %v6503_v0 = vadd.f32 %v6502_v25, %v6150_v2  ;;  %v6152_v23 = vadd.f32 %v6151_v36, %v12989_v22 }
 0x462   :  { %v6155_v17 = vpop.f32.mrf.mxu1  ;;  %v6508_v6 = vpop.f32.mrf.mxu0 }
 0x463   :  { %v7941_v12 = vpack.c.bf16 %v6656_v53, %v6655_v16  ;;  %v6505_v15 = vadd.f32 %v6504_v46, %v6152_v23  ;;  %v6156_v10 = vadd.f32 %v6155_v17, %v12990_v44  ;;  %v6657_v26 = vmax.f32 %v6503_v0, 0.0 }
 0x464   :  { %v6157_v5 = vpop.f32.mrf.mxu1  ;;  %v6510_v48 = vpop.f32.mrf.mxu0 }
 0x465   :  { %7113 = vst [vmem:[%s12505_s3 + $0x1b0] sm:$0xff] %v7941_v12  ;;  %v6658_v57 = vmax.f32 %v6505_v15, 0.0  ;;  %v6509_v30 = vadd.f32 %v6508_v6, %v6156_v10  ;;  %v6158_v7 = vadd.f32 %v6157_v5, %v12991_v11  ;;  %v12997_v15 = vld [vmem:[#allocation62_spill] sm:$0xff] }
 0x466   :  { %v6159_v9 = vpop.f32.mrf.mxu1  ;;  %v6512_v4 = vpop.f32.mrf.mxu0 }
 0x467   :  { %v7942_v55 = vpack.c.bf16 %v6658_v57, %v6657_v26  ;;  %v6511_v43 = vadd.f32 %v6510_v48, %v6158_v7  ;;  %v6160_v49 = vadd.f32 %v6159_v9, %v12992_v60  ;;  %v6659_v41 = vmax.f32 %v6509_v30, 0.0  ;;  %v12998_v26 = vld [vmem:[#allocation64_spill] sm:$0xff] }
 0x468   :  { %v6161_v27 = vpop.f32.mrf.mxu1  ;;  %v6514_v34 = vpop.f32.mrf.mxu0 }
 0x469   :  { %7114 = vst [vmem:[%s12505_s3 + $0x1b8] sm:$0xff] %v7942_v55  ;;  %v6660_v1 = vmax.f32 %v6511_v43, 0.0  ;;  %v6513_v35 = vadd.f32 %v6512_v4, %v6160_v49  ;;  %v6162_v31 = vadd.f32 %v6161_v27, %v12993_v21 }
 0x46a   :  { %v6165_v33 = vpop.f32.mrf.mxu1  ;;  %v6518_v47 = vpop.f32.mrf.mxu0 }
 0x46b   :  { %v7943_v32 = vpack.c.bf16 %v6660_v1, %v6659_v41  ;;  %v6515_v54 = vadd.f32 %v6514_v34, %v6162_v31  ;;  %v6166_v28 = vadd.f32 %v6165_v33, %v12994_v59  ;;  %v6661_v37 = vmax.f32 %v6513_v35, 0.0 }
 0x46c   :  { %v6167_v50 = vpop.f32.mrf.mxu1  ;;  %v6520_v51 = vpop.f32.mrf.mxu0 }
 0x46d   :  { %7115 = vst [vmem:[%s12505_s3 + $0x1c0] sm:$0xff] %v7943_v32  ;;  %v6662_v19 = vmax.f32 %v6515_v54, 0.0  ;;  %v6519_v13 = vadd.f32 %v6518_v47, %v6166_v28  ;;  %v6168_v42 = vadd.f32 %v6167_v50, %v12995_v52 }
 0x46e   :  { %v6169_v20 = vpop.f32.mrf.mxu1  ;;  %v6522_v58 = vpop.f32.mrf.mxu0 }
 0x46f   :  { %v7944_v45 = vpack.c.bf16 %v6662_v19, %v6661_v37  ;;  %v6521_v38 = vadd.f32 %v6520_v51, %v6168_v42  ;;  %v6170_v56 = vadd.f32 %v6169_v20, %v12996_v40  ;;  %v6663_v3 = vmax.f32 %v6519_v13, 0.0  ;;  %v12999_v51 = vld [vmem:[#allocation66_spill] sm:$0xff] }
 0x470   :  { %v6171_v29 = vpop.f32.mrf.mxu1  ;;  %v6524_v25 = vpop.f32.mrf.mxu0 }
 0x471   :  { %7116 = vst [vmem:[%s12505_s3 + $0x1c8] sm:$0xff] %v7944_v45  ;;  %v6664_v18 = vmax.f32 %v6521_v38, 0.0  ;;  %v6523_v24 = vadd.f32 %v6522_v58, %v6170_v56  ;;  %v6172_v2 = vadd.f32 %v6171_v29, %v12045_v8 }
 0x472   :  { %v6175_v36 = vpop.f32.mrf.mxu1  ;;  %v6528_v46 = vpop.f32.mrf.mxu0 }
 0x473   :  { %v7945_v16 = vpack.c.bf16 %v6664_v18, %v6663_v3  ;;  %v6525_v53 = vadd.f32 %v6524_v25, %v6172_v2  ;;  %v6176_v0 = vadd.f32 %v6175_v36, %v12049_v61  ;;  %v6665_v17 = vmax.f32 %v6523_v24, 0.0 }
 0x474   :  { %v6177_v22 = vpop.f32.mrf.mxu1  ;;  %v6530_v23 = vpop.f32.mrf.mxu0 }
 0x475   :  { %7117 = vst [vmem:[%s12505_s3 + $0x1d0] sm:$0xff] %v7945_v16  ;;  %v6666_v6 = vmax.f32 %v6525_v53, 0.0  ;;  %v6529_v12 = vadd.f32 %v6528_v46, %v6176_v0  ;;  %v6178_v44 = vadd.f32 %v6177_v22, %v12997_v15 }
 0x476   :  { %v6179_v10 = vpop.f32.mrf.mxu1  ;;  %v6532_v5 = vpop.f32.mrf.mxu0 }
 0x477   :  { %v7946_v8 = vpack.c.bf16 %v6666_v6, %v6665_v17  ;;  %v6531_v48 = vadd.f32 %v6530_v23, %v6178_v44  ;;  %v6180_v57 = vadd.f32 %v6179_v10, %v12998_v26  ;;  %v6667_v61 = vmax.f32 %v6529_v12, 0.0 }
 0x478   :  { %v6181_v30 = vpop.f32.mrf.mxu1  ;;  %v6534_v11 = vpop.f32.mrf.mxu0 }
 0x479   :  { %7118 = vst [vmem:[%s12505_s3 + $0x1d8] sm:$0xff] %v7946_v8  ;;  %v6668_v7 = vmax.f32 %v6531_v48, 0.0  ;;  %v6533_v9 = vadd.f32 %v6532_v5, %v6180_v57  ;;  %v6182_v4 = vadd.f32 %v6181_v30, %v12070_v63 }
 0x47a   :  { %v6185_v55 = vpop.f32.mrf.mxu1  ;;  %v6538_v43 = vpop.f32.mrf.mxu0 }
 0x47b   :  { %v7947_v60 = vpack.c.bf16 %v6668_v7, %v6667_v61  ;;  %v6535_v49 = vadd.f32 %v6534_v11, %v6182_v4  ;;  %v6186_v27 = vadd.f32 %v6185_v55, %v12074_v62  ;;  %v6669_v1 = vmax.f32 %v6533_v9, 0.0 }
 0x47c   :  { %v6187_v34 = vpop.f32.mrf.mxu1  ;;  %v6540_v41 = vpop.f32.mrf.mxu0 }
 0x47d   :  { %7119 = vst [vmem:[%s12505_s3 + $0x1e0] sm:$0xff] %v7947_v60  ;;  %v6670_v35 = vmax.f32 %v6535_v49, 0.0  ;;  %v6539_v21 = vadd.f32 %v6538_v43, %v6186_v27  ;;  %v6188_v31 = vadd.f32 %v6187_v34, %v12083_v39 }
 0x47e   :  { %v6189_v33 = vpop.f32.mrf.mxu1  ;;  %v6542_v47 = vpop.f32.mrf.mxu0 }
 0x47f   :  { %v7948_v63 = vpack.c.bf16 %v6670_v35, %v6669_v1  ;;  %v6541_v32 = vadd.f32 %v6540_v41, %v6188_v31  ;;  %v6190_v54 = vadd.f32 %v6189_v33, %v12092_v14  ;;  %v6671_v62 = vmax.f32 %v6539_v21, 0.0 }
 0x480   :  { %v6191_v59 = vpop.f32.mrf.mxu1  ;;  %v6544_v19 = vpop.f32.mrf.mxu0 }
 0x481   :  { %7120 = vst [vmem:[%s12505_s3 + $0x1e8] sm:$0xff] %v7948_v63  ;;  %v6672_v28 = vmax.f32 %v6541_v32, 0.0  ;;  %v6543_v50 = vadd.f32 %v6542_v47, %v6190_v54  ;;  %v6192_v37 = vadd.f32 %v6191_v59, %v12999_v51 }
 0x483   :  { %v7949_v13 = vpack.c.bf16 %v6672_v28, %v6671_v62  ;;  %v6545_v52 = vadd.f32 %v6544_v19, %v6192_v37  ;;  %v6673_v39 = vmax.f32 %v6543_v50, 0.0 }
 0x485   :  { %7121 = vst [vmem:[%s12505_s3 + $0x1f0] sm:$0xff] %v7949_v13  ;;  %v6674_v42 = vmax.f32 %v6545_v52, 0.0 }
 0x487   :  { %v7950_v14 = vpack.c.bf16 %v6674_v42, %v6673_v39 }
 0x489   :  { %7122 = vst [vmem:[%s12505_s3 + $0x1f8] sm:$0xff] %v7950_v14 }

// kernel: reduction_a_forward.8
= control target key start
LH: loop header
LB: loop body
LE: loop exit
PB: predicated region body
PF: predicated region fallthrough
CT: control target
= control target key end

     0   :  { %vm2204_vm0 = vcmask 785408   ;;  %s5432_s1 = inlined_call_operand.vmem [shape: bf16[2016,256], index: 1, kind: input, shape index: {}]   ;;  %s5433_s0 = inlined_call_operand.vmem [shape: bf16[112,2016], index: 0, kind: input, shape index: {}]   ;;  %s5434_s2 = inlined_call_operand.vmem [shape: f32[1,256], index: 2, kind: input, shape index: {}]   ;;  %s5435_s3 = inlined_call_operand.vmem [shape: f32[112,256], index: 3, kind: output, shape index: {}]  }
   0x1   :  { %v3481_v0 = vld [vmem:[%s5432_s1 + $0x74] ss:$8 sps:$4 sm:$0xff]   ;;  %v3483_v1 = vld [vmem:[%s5432_s1 + $0x70] ss:$8 sps:$4 sm:$0xff]   ;;  %v3487_v4 = vld [vmem:[%s5432_s1 + $0x64] ss:$8 sps:$4 sm:$0xff]  }
   0x2   :  { %2226 = vmatprep.subr.bf16.mxu0 %v3481_v0  ;;  %v3484_v2 = vld [vmem:[%s5432_s1 + $0x174] ss:$8 sps:$4 sm:$0xff]   ;;  %v3486_v3 = vld [vmem:[%s5432_s1 + $0x170] ss:$8 sps:$4 sm:$0xff]   ;;  %v3489_v5 = vld [vmem:[%s5432_s1 + $0x60] ss:$8 sps:$4 sm:$0xff]  }
   0x3   :  { %2227 = vmatpush1.bf16.msra.mxu0 %v3483_v1  ;;  %2329 = vmatprep.subr.bf16.mxu1 %v3484_v2  ;;  %v3490_v6 = vld [vmem:[%s5432_s1 + $0x164] ss:$8 sps:$4 sm:$0xff]   ;;  %v3492_v7 = vld [vmem:[%s5432_s1 + $0x160] ss:$8 sps:$4 sm:$0xff]   ;;  %v3493_v8 = vld [vmem:[%s5432_s1 + $0x54] ss:$8 sps:$4 sm:$0xff]  }
   0x4   :  { %2330 = vmatpush1.bf16.msra.mxu1 %v3486_v3  ;;  %2228 = vmatprep.subr.bf16.mxu0 %v3487_v4  ;;  %v3495_v9 = vld [vmem:[%s5432_s1 + $0x50] ss:$8 sps:$4 sm:$0xff]   ;;  %v3496_v10 = vld [vmem:[%s5432_s1 + $0x154] ss:$8 sps:$4 sm:$0xff]   ;;  %v3499_v11 = vld [vmem:[%s5432_s1 + $0x44] ss:$8 sps:$4 sm:$0xff]  }
   0x5   :  { %2331 = vmatprep.subr.bf16.mxu1 %v3490_v6  ;;  %v3498_v12 = vld [vmem:[%s5432_s1 + $0x150] ss:$8 sps:$4 sm:$0xff]   ;;  %v3502_v13 = vld [vmem:[%s5432_s1 + $0x144] ss:$8 sps:$4 sm:$0xff]   ;;  %v3501_v14 = vld [vmem:[%s5432_s1 + $0x40] ss:$8 sps:$4 sm:$0xff]  }
   0x6   :  { %v3505_v15 = vld [vmem:[%s5432_s1 + $0x34] ss:$8 sps:$4 sm:$0xff]   ;;  %v3504_v16 = vld [vmem:[%s5432_s1 + $0x140] ss:$8 sps:$4 sm:$0xff]   ;;  %v3507_v18 = vld [vmem:[%s5432_s1 + $0x30] ss:$8 sps:$4 sm:$0xff]  }
   0x7   :  { %2229 = vmatpush1.bf16.msra.mxu0 %v3489_v5  ;;  %v3508_v17 = vld [vmem:[%s5432_s1 + $0x134] ss:$8 sps:$4 sm:$0xff]   ;;  %v3511_v19 = vld [vmem:[%s5432_s1 + $0x24] ss:$8 sps:$4 sm:$0xff]   ;;  %v3510_v20 = vld [vmem:[%s5432_s1 + $0x130] ss:$8 sps:$4 sm:$0xff]  }
   0x8   :  { %2230 = vmatprep.subr.bf16.mxu0 %v3493_v8  ;;  %2332 = vmatpush1.bf16.msra.mxu1 %v3492_v7  ;;  %v3514_v21 = vld [vmem:[%s5432_s1 + $0x124] ss:$8 sps:$4 sm:$0xff]   ;;  %v3513_v22 = vld [vmem:[%s5432_s1 + $0x20] ss:$8 sps:$4 sm:$0xff]   ;;  %v3517_v23 = vld [vmem:[%s5432_s1 + $0x14] ss:$8 sps:$4 sm:$0xff]  }
   0x9   :  { %2333 = vmatprep.subr.bf16.mxu1 %v3496_v10  ;;  %v3516_v24 = vld [vmem:[%s5432_s1 + $0x120] ss:$8 sps:$4 sm:$0xff]   ;;  %v3520_v25 = vld [vmem:[%s5432_s1 + $0x114] ss:$8 sps:$4 sm:$0xff]   ;;  %v3519_v26 = vld [vmem:[%s5432_s1 + $0x10] ss:$8 sps:$4 sm:$0xff]  }
   0xa   :  { %v3523_v27 = vld [vmem:[%s5432_s1 + $0x4] ss:$8 sps:$4 sm:$0xff]   ;;  %v3522_v28 = vld [vmem:[%s5432_s1 + $0x110] ss:$8 sps:$4 sm:$0xff]   ;;  %v3525_v30 = vld [vmem:[%s5432_s1] ss:$8 sps:$4 sm:$0xff]  }
   0xb   :  { %2231 = vmatpush1.bf16.msra.mxu0 %v3495_v9  ;;  %v3526_v29 = vld [vmem:[%s5432_s1 + $0x104] ss:$8 sps:$4 sm:$0xff]   ;;  %v3529_v31 = vld [vmem:[%s5432_s1 + $0xf4] ss:$8 sps:$4 sm:$0xff]   ;;  %v3528_v32 = vld [vmem:[%s5432_s1 + $0x100] ss:$8 sps:$4 sm:$0xff]  }
   0xc   :  { %2232 = vmatprep.subr.bf16.mxu0 %v3499_v11  ;;  %2334 = vmatpush1.bf16.msra.mxu1 %v3498_v12  ;;  %v3532_v33 = vld [vmem:[%s5432_s1 + $0x1f4] ss:$8 sps:$4 sm:$0xff]   ;;  %v3531_v34 = vld [vmem:[%s5432_s1 + $0xf0] ss:$8 sps:$4 sm:$0xff]   ;;  %v3535_v35 = vld [vmem:[%s5432_s1 + $0xe4] ss:$8 sps:$4 sm:$0xff]  }
   0xd   :  { %2335 = vmatprep.subr.bf16.mxu1 %v3502_v13  ;;  %v3534_v36 = vld [vmem:[%s5432_s1 + $0x1f0] ss:$8 sps:$4 sm:$0xff]   ;;  %v3538_v37 = vld [vmem:[%s5432_s1 + $0x1e4] ss:$8 sps:$4 sm:$0xff]   ;;  %v3537_v38 = vld [vmem:[%s5432_s1 + $0xe0] ss:$8 sps:$4 sm:$0xff]  }
   0xe   :  { %v3541_v39 = vld [vmem:[%s5432_s1 + $0xd4] ss:$8 sps:$4 sm:$0xff]   ;;  %v3540_v40 = vld [vmem:[%s5432_s1 + $0x1e0] ss:$8 sps:$4 sm:$0xff]   ;;  %v3543_v42 = vld [vmem:[%s5432_s1 + $0xd0] ss:$8 sps:$4 sm:$0xff]  }
   0xf   :  { %2233 = vmatpush1.bf16.msra.mxu0 %v3501_v14  ;;  %v3544_v41 = vld [vmem:[%s5432_s1 + $0x1d4] ss:$8 sps:$4 sm:$0xff]   ;;  %v3547_v43 = vld [vmem:[%s5432_s1 + $0xc4] ss:$8 sps:$4 sm:$0xff]   ;;  %v3546_v44 = vld [vmem:[%s5432_s1 + $0x1d0] ss:$8 sps:$4 sm:$0xff]  }
  0x10   :  { %2234 = vmatprep.subr.bf16.mxu0 %v3505_v15  ;;  %2336 = vmatpush1.bf16.msra.mxu1 %v3504_v16  ;;  %v3550_v45 = vld [vmem:[%s5432_s1 + $0x1c4] ss:$8 sps:$4 sm:$0xff]   ;;  %v3549_v48 = vld [vmem:[%s5432_s1 + $0xc0] ss:$8 sps:$4 sm:$0xff]   ;;  %v3553_v51 = vld [vmem:[%s5432_s1 + $0xb4] ss:$8 sps:$4 sm:$0xff]  }
  0x11   :  { %2337 = vmatprep.subr.bf16.mxu1 %v3508_v17  ;;  %v15_v46 = vld [vmem:[%s5433_s0] sm:$0xff]  ;;  %v16_v52 = vld [vmem:[%s5433_s0 + $0x8] sm:$0xff]  ;;  %v3556_v54 = vld [vmem:[%s5432_s1 + $0x1b4] ss:$8 sps:$4 sm:$0xff]  }
  0x12   :  { %v23_v47 = vld [vmem:[%s5433_s0 + $0x40] sm:$0xff]  ;;  %v24_v53 = vld [vmem:[%s5433_s0 + $0x48] sm:$0xff]  ;;  %v3555_v56 = vld [vmem:[%s5432_s1 + $0xb0] ss:$8 sps:$4 sm:$0xff]  }
  0x13   :  { %2235 = vmatpush1.bf16.msra.mxu0 %v3507_v18  ;;  %v3111_v49 = vcombine.high %v15_v46, %v23_v47  ;;  %v3552_v50 = vld [vmem:[%s5432_s1 + $0x1c0] ss:$8 sps:$4 sm:$0xff]   ;;  %v3113_v55 = vcombine.high %v16_v52, %v24_v53  ;;  %v3559_v57 = vld [vmem:[%s5432_s1 + $0xa4] ss:$8 sps:$4 sm:$0xff]   ;;  %v3558_v58 = vld [vmem:[%s5432_s1 + $0x1b0] ss:$8 sps:$4 sm:$0xff]   ;;  %v3110_v10 = vcombine.low %v15_v46, %v23_v47  ;;  %v3112_v15 = vcombine.low %v16_v52, %v24_v53 }
  0x14   :  { %2236 = vmatprep.subr.bf16.mxu0 %v3511_v19  ;;  %2338 = vmatpush1.bf16.msra.mxu1 %v3510_v20  ;;  %v3562_v59 = vld [vmem:[%s5432_s1 + $0x1a4] ss:$8 sps:$4 sm:$0xff]   ;;  %v3561_v60 = vld [vmem:[%s5432_s1 + $0xa0] ss:$8 sps:$4 sm:$0xff]   ;;  %v3565_v61 = vld [vmem:[%s5432_s1 + $0x94] ss:$8 sps:$4 sm:$0xff]  }
  0x15   :  { %2339 = vmatprep.subr.bf16.mxu1 %v3514_v21  ;;  %2258 = vmatprep.mubr.bf16.mxu0 %v3111_v49  ;;  %v3564_v62 = vld [vmem:[%s5432_s1 + $0x1a0] ss:$8 sps:$4 sm:$0xff]   ;;  %v3568_v63 = vld [vmem:[%s5432_s1 + $0x194] ss:$8 sps:$4 sm:$0xff]   ;;  %v3567_v0 = vld [vmem:[%s5432_s1 + $0x90] ss:$8 sps:$4 sm:$0xff]  }
  0x16   :  { %2361 = vmatprep.mubr.bf16.mxu1 %v3113_v55  ;;  %v3571_v1 = vld [vmem:[%s5432_s1 + $0x84] ss:$8 sps:$4 sm:$0xff]   ;;  %v3570_v2 = vld [vmem:[%s5432_s1 + $0x190] ss:$8 sps:$4 sm:$0xff]   ;;  %v3573_v3 = vld [vmem:[%s5432_s1 + $0x80] ss:$8 sps:$4 sm:$0xff]  }
  0x17   :  { %2237 = vmatpush1.bf16.msra.mxu0 %v3513_v22  ;;  %v3574_v4 = vld [vmem:[%s5432_s1 + $0x184] ss:$8 sps:$4 sm:$0xff]   ;;  %v3576_v5 = vld [vmem:[%s5432_s1 + $0x180] ss:$8 sps:$4 sm:$0xff]   ;;  %v3579_v6 = vld [vmem:[%s5432_s1 + $0x274] ss:$8 sps:$4 sm:$0xff]  }
  0x18   :  { %2238 = vmatprep.subr.bf16.mxu0 %v3517_v23  ;;  %2340 = vmatpush1.bf16.msra.mxu1 %v3516_v24  ;;  %v31_v7 = vld [vmem:[%s5433_s0 + $0x80] sm:$0xff]  ;;  %v3582_v9 = vld [vmem:[%s5432_s1 + $0x374] ss:$8 sps:$4 sm:$0xff]   ;;  %v32_v11 = vld [vmem:[%s5433_s0 + $0x88] sm:$0xff] }
  0x19   :  { %2341 = vmatprep.subr.bf16.mxu1 %v3520_v25  ;;  %v39_v8 = vld [vmem:[%s5433_s0 + $0xc0] sm:$0xff]  ;;  %v40_v12 = vld [vmem:[%s5433_s0 + $0xc8] sm:$0xff]  ;;  %v3577_v13 = vld [vmem:[%s5432_s1 + $0x270] ss:$8 sps:$4 sm:$0xff]  }
  0x1a   :  { %v3127_v14 = vcombine.high %v31_v7, %v39_v8  ;;  %v3585_v16 = vld [vmem:[%s5432_s1 + $0x264] ss:$8 sps:$4 sm:$0xff]   ;;  %v3580_v17 = vld [vmem:[%s5432_s1 + $0x370] ss:$8 sps:$4 sm:$0xff]   ;;  %v3129_v18 = vcombine.high %v32_v11, %v40_v12  ;;  %v3583_v19 = vld [vmem:[%s5432_s1 + $0x260] ss:$8 sps:$4 sm:$0xff]  }
  0x1b   :  { %2239 = vmatpush1.bf16.msra.mxu0 %v3519_v26  ;;  %v3588_v20 = vld [vmem:[%s5432_s1 + $0x364] ss:$8 sps:$4 sm:$0xff]   ;;  %v3591_v21 = vld [vmem:[%s5432_s1 + $0x254] ss:$8 sps:$4 sm:$0xff]   ;;  %v3586_v24 = vld [vmem:[%s5432_s1 + $0x360] ss:$8 sps:$4 sm:$0xff]   ;;  %v3126_v26 = vcombine.low %v31_v7, %v39_v8 }
  0x1c   :  { %2240 = vmatprep.subr.bf16.mxu0 %v3523_v27  ;;  %2342 = vmatpush1.bf16.msra.mxu1 %v3522_v28  ;;  %v47_v22 = vld [vmem:[%s5433_s0 + $0x100] sm:$0xff]  ;;  %v3594_v25 = vld [vmem:[%s5432_s1 + $0x354] ss:$8 sps:$4 sm:$0xff]   ;;  %v48_v27 = vld [vmem:[%s5433_s0 + $0x108] sm:$0xff] }
  0x1d   :  { %2343 = vmatprep.subr.bf16.mxu1 %v3526_v29  ;;  %v55_v23 = vld [vmem:[%s5433_s0 + $0x140] sm:$0xff]  ;;  %v56_v28 = vld [vmem:[%s5433_s0 + $0x148] sm:$0xff]  ;;  %v3589_v29 = vld [vmem:[%s5432_s1 + $0x250] ss:$8 sps:$4 sm:$0xff]  }
  0x1e   :  { %v3609_v47 = vld [vmem:[%s5432_s1 + $0x224] ss:$8 sps:$4 sm:$0xff]   ;;  %v3604_v49 = vld [vmem:[%s5432_s1 + $0x330] ss:$8 sps:$4 sm:$0xff]   ;;  %v3607_v52 = vld [vmem:[%s5432_s1 + $0x220] ss:$8 sps:$4 sm:$0xff]  }
  0x1f   :  { %2241 = vmatpush1.bf16.msra.mxu0 %v3525_v30  ;;  %v3143_v30 = vcombine.high %v47_v22, %v55_v23  ;;  %v3615_v53 = vld [vmem:[%s5432_s1 + $0x214] ss:$8 sps:$4 sm:$0xff]   ;;  %v87_v55 = vld [vmem:[%s5433_s0 + $0x240] sm:$0xff] }
  0x20   :  { %2242 = vmatprep.subr.bf16.mxu0 %v3529_v31  ;;  %2344 = vmatpush1.bf16.msra.mxu1 %v3528_v32  ;;  %v3597_v31 = vld [vmem:[%s5432_s1 + $0x244] ss:$8 sps:$4 sm:$0xff]   ;;  %v3128_v32 = vcombine.low %v32_v11, %v40_v12  ;;  %v3622_v8 = vld [vmem:[%s5432_s1 + $0x300] ss:$8 sps:$4 sm:$0xff]  }
  0x21   :  { %2345 = vmatprep.subr.bf16.mxu1 %v3532_v33  ;;  %v3592_v33 = vld [vmem:[%s5432_s1 + $0x350] ss:$8 sps:$4 sm:$0xff]   ;;  %v103_v7 = vld [vmem:[%s5433_s0 + $0x2c0] sm:$0xff]  ;;  %v96_v11 = vld [vmem:[%s5433_s0 + $0x288] sm:$0xff] }
  0x22   :  { %v104_v12 = vld [vmem:[%s5433_s0 + $0x2c8] sm:$0xff] }
  0x23   :  { %2243 = vmatpush2.bf16.msra.mxu0 %v3531_v34  ;;  %v3145_v34 = vcombine.high %v48_v27, %v56_v28 }
  0x24   :  { %2244 = vmatprep.subr.bf16.mxu0 %v3535_v35  ;;  %2346 = vmatpush2.bf16.msra.mxu1 %v3534_v36  ;;  %v3595_v35 = vld [vmem:[%s5432_s1 + $0x240] ss:$8 sps:$4 sm:$0xff]   ;;  %v3600_v36 = vld [vmem:[%s5432_s1 + $0x344] ss:$8 sps:$4 sm:$0xff]  }
  0x25   :  { %2347 = vmatprep.subr.bf16.mxu1 %v3538_v37  ;;  %v3603_v37 = vld [vmem:[%s5432_s1 + $0x234] ss:$8 sps:$4 sm:$0xff]  }
  0x27   :  { %2245 = vmatpush2.bf16.msra.mxu0 %v3537_v38  ;;  %v63_v38 = vld [vmem:[%s5433_s0 + $0x180] sm:$0xff] }
  0x28   :  { %2246 = vmatprep.subr.bf16.mxu0 %v3541_v39  ;;  %2348 = vmatpush2.bf16.msra.mxu1 %v3540_v40  ;;  %v71_v39 = vld [vmem:[%s5433_s0 + $0x1c0] sm:$0xff] }
  0x29   :  { %2349 = vmatprep.subr.bf16.mxu1 %v3544_v41  ;;  %v3598_v40 = vld [vmem:[%s5432_s1 + $0x340] ss:$8 sps:$4 sm:$0xff]   ;;  %v3606_v41 = vld [vmem:[%s5432_s1 + $0x334] ss:$8 sps:$4 sm:$0xff]   ;;  %v3159_v46 = vcombine.high %v63_v38, %v71_v39 }
  0x2b   :  { %2247 = vmatpush2.bf16.msra.mxu0 %v3543_v42  ;;  %v64_v42 = vld [vmem:[%s5433_s0 + $0x188] sm:$0xff] }
  0x2c   :  { %2248 = vmatprep.subr.bf16.mxu0 %v3547_v43  ;;  %2350 = vmatpush2.bf16.msra.mxu1 %v3546_v44  ;;  %v3142_v43 = vcombine.low %v47_v22, %v55_v23  ;;  %v72_v44 = vld [vmem:[%s5433_s0 + $0x1c8] sm:$0xff]  ;;  %v111_v22 = vld [vmem:[%s5433_s0 + $0x300] sm:$0xff] }
  0x2d   :  { %2351 = vmatprep.subr.bf16.mxu1 %v3550_v45  ;;  %v3601_v45 = vld [vmem:[%s5432_s1 + $0x230] ss:$8 sps:$4 sm:$0xff]   ;;  %v119_v23 = vld [vmem:[%s5433_s0 + $0x340] sm:$0xff] }
  0x2f   :  { %2249 = vmatpush2.bf16.msra.mxu0 %v3549_v48  ;;  %v3144_v48 = vcombine.low %v48_v27, %v56_v28  ;;  %v120_v28 = vld [vmem:[%s5433_s0 + $0x348] sm:$0xff] }
  0x30   :  { %2250 = vmatprep.subr.bf16.mxu0 %v3553_v51  ;;  %2352 = vmatpush2.bf16.msra.mxu1 %v3552_v50  ;;  %v3161_v50 = vcombine.high %v64_v42, %v72_v44  ;;  %v3612_v51 = vld [vmem:[%s5432_s1 + $0x324] ss:$8 sps:$4 sm:$0xff]  }
  0x31   :  { %2353 = vmatprep.subr.bf16.mxu1 %v3556_v54  ;;  %v79_v54 = vld [vmem:[%s5433_s0 + $0x200] sm:$0xff] }
  0x33   :  { %2251 = vmatpush2.bf16.msra.mxu0 %v3555_v56  ;;  %v3610_v56 = vld [vmem:[%s5432_s1 + $0x320] ss:$8 sps:$4 sm:$0xff]  }
  0x34   :  { %2252 = vmatprep.subr.bf16.mxu0 %v3559_v57  ;;  %2354 = vmatpush2.bf16.msra.mxu1 %v3558_v58  ;;  %v3618_v57 = vld [vmem:[%s5432_s1 + $0x314] ss:$8 sps:$4 sm:$0xff]   ;;  %v3158_v58 = vcombine.low %v63_v38, %v71_v39 }
  0x35   :  { %2355 = vmatprep.subr.bf16.mxu1 %v3562_v59  ;;  %v80_v59 = vld [vmem:[%s5433_s0 + $0x208] sm:$0xff]  ;;  %v4302_v38 = vld [vmem:[%s5433_s0 + $0x10] sm:$0xff] }
  0x36   :  { %v25_v39 = vld [vmem:[%s5433_s0 + $0x50] sm:$0xff] }
  0x37   :  { %2253 = vmatpush2.bf16.msra.mxu0 %v3561_v60  ;;  %v88_v60 = vld [vmem:[%s5433_s0 + $0x248] sm:$0xff] }
  0x38   :  { %2254 = vmatprep.subr.bf16.mxu0 %v3565_v61  ;;  %2356 = vmatpush2.bf16.msra.mxu1 %v3564_v62  ;;  %v3613_v61 = vld [vmem:[%s5432_s1 + $0x210] ss:$8 sps:$4 sm:$0xff]   ;;  %v3175_v62 = vcombine.high %v79_v54, %v87_v55 }
  0x39   :  { %2357 = vmatprep.subr.bf16.mxu1 %v3568_v63  ;;  %v3621_v63 = vld [vmem:[%s5432_s1 + $0x204] ss:$8 sps:$4 sm:$0xff]  }
  0x3b   :  { %2255 = vmatpush2.bf16.msra.mxu0 %v3567_v0  ;;  %v3160_v0 = vcombine.low %v64_v42, %v72_v44  ;;  %v3206_v42 = vcombine.low %v111_v22, %v119_v23  ;;  %v26_v44 = vld [vmem:[%s5433_s0 + $0x58] sm:$0xff] }
  0x3c   :  { %2256 = vmatprep.subr.bf16.mxu0 %v3571_v1  ;;  %2358 = vmatpush2.bf16.msra.mxu1 %v3570_v2  ;;  %v3616_v1 = vld [vmem:[%s5432_s1 + $0x310] ss:$8 sps:$4 sm:$0xff]   ;;  %v3177_v2 = vcombine.high %v80_v59, %v88_v60 }
  0x3d   :  { %2359 = vmatprep.subr.bf16.mxu1 %v3574_v4  ;;  %v3624_v4 = vld [vmem:[%s5432_s1 + $0x304] ss:$8 sps:$4 sm:$0xff]  }
  0x3f   :  { %2257 = vmatpush2.bf16.msra.mxu0 %v3573_v3  ;;  %v3619_v3 = vld [vmem:[%s5432_s1 + $0x200] ss:$8 sps:$4 sm:$0xff]  }
  0x40   :  { %2432 = vmatprep.subr.bf16.mxu0 %v3579_v6  ;;  %2360 = vmatpush2.bf16.msra.mxu1 %v3576_v5  ;;  %v3627_v5 = vld [vmem:[%s5432_s1 + $0x2f4] ss:$8 sps:$4 sm:$0xff]   ;;  %v95_v6 = vld [vmem:[%s5433_s0 + $0x280] sm:$0xff] }
  0x41   :  { %2535 = vmatprep.subr.bf16.mxu1 %v3582_v9  ;;  %v3630_v9 = vld [vmem:[%s5432_s1 + $0x3f4] ss:$8 sps:$4 sm:$0xff]   ;;  %v3190_v27 = vcombine.low %v95_v6, %v103_v7 }
  0x42   :  { %2259 = vmatmul.mubr.bf16.vlgmr.msra.gmra.mxu0 %v3110_v10  ;;  %v3174_v10 = vcombine.low %v79_v54, %v87_v55  ;;  %v3658_v54 = vld [vmem:[%s5432_s1 + $0x3a0] ss:$8 sps:$4 sm:$0xff]   ;;  %v3666_v55 = vld [vmem:[%s5432_s1 + $0x394] ss:$8 sps:$4 sm:$0xff]  }
  0x43   :  { %2433 = vmatpush1.bf16.msra.mxu0 %v3577_v13  ;;  %2268 = vmatprep.mubr.bf16.mxu0 %v3127_v14  ;;  %v3625_v13 = vld [vmem:[%s5432_s1 + $0x2f0] ss:$8 sps:$4 sm:$0xff]   ;;  %v3191_v14 = vcombine.high %v95_v6, %v103_v7 }
  0x44   :  { %2362 = vmatmul.mubr.bf16.vlgmr.msra.gmra.mxu1 %v3112_v15  ;;  %2434 = vmatprep.subr.bf16.mxu0 %v3585_v16  ;;  %v3633_v15 = vld [vmem:[%s5432_s1 + $0x2e4] ss:$8 sps:$4 sm:$0xff]   ;;  %v3176_v16 = vcombine.low %v80_v59, %v88_v60  ;;  %v3667_v59 = vld [vmem:[%s5432_s1 + $0x280] ss:$8 sps:$4 sm:$0xff]  }
  0x45   :  { %2536 = vmatpush1.bf16.msra.mxu1 %v3580_v17  ;;  %2371 = vmatprep.mubr.bf16.mxu1 %v3129_v18  ;;  %v3628_v17 = vld [vmem:[%s5432_s1 + $0x3f0] ss:$8 sps:$4 sm:$0xff]   ;;  %v3193_v18 = vcombine.high %v96_v11, %v104_v12  ;;  %v3672_v60 = vld [vmem:[%s5432_s1 + $0x384] ss:$8 sps:$4 sm:$0xff]  }
  0x46   :  { %2537 = vmatprep.subr.bf16.mxu1 %v3588_v20  ;;  %v3636_v20 = vld [vmem:[%s5432_s1 + $0x3e4] ss:$8 sps:$4 sm:$0xff]  }
  0x47   :  { %2435 = vmatpush1.bf16.msra.mxu0 %v3583_v19  ;;  %v3631_v19 = vld [vmem:[%s5432_s1 + $0x2e0] ss:$8 sps:$4 sm:$0xff]  }
  0x48   :  { %2436 = vmatprep.subr.bf16.mxu0 %v3591_v21  ;;  %v3639_v21 = vld [vmem:[%s5432_s1 + $0x2d4] ss:$8 sps:$4 sm:$0xff]  }
  0x49   :  { %2538 = vmatpush1.bf16.msra.mxu1 %v3586_v24  ;;  %v3634_v24 = vld [vmem:[%s5432_s1 + $0x3e0] ss:$8 sps:$4 sm:$0xff]  }
  0x4a   :  { %2539 = vmatprep.subr.bf16.mxu1 %v3594_v25  ;;  %2269 = vmatmul.mubr.bf16.gmra.mxu0 %v3126_v26  ;;  %v3642_v25 = vld [vmem:[%s5432_s1 + $0x3d4] ss:$8 sps:$4 sm:$0xff]   ;;  %v112_v26 = vld [vmem:[%s5433_s0 + $0x308] sm:$0xff] }
  0x4b   :  { %2437 = vmatpush1.bf16.msra.mxu0 %v3589_v29  ;;  %2278 = vmatprep.mubr.bf16.mxu0 %v3143_v30  ;;  %v3637_v29 = vld [vmem:[%s5432_s1 + $0x2d0] ss:$8 sps:$4 sm:$0xff]   ;;  %v3207_v30 = vcombine.high %v111_v22, %v119_v23 }
  0x4c   :  { %2438 = vmatprep.subr.bf16.mxu0 %v3597_v31  ;;  %2372 = vmatmul.mubr.bf16.gmra.mxu1 %v3128_v32  ;;  %v3645_v31 = vld [vmem:[%s5432_s1 + $0x2c4] ss:$8 sps:$4 sm:$0xff]   ;;  %v3192_v32 = vcombine.low %v96_v11, %v104_v12  ;;  %v3679_v11 = vld [vmem:[%s5432_s1 + $0x460] ss:$8 sps:$4 sm:$0xff]  }
  0x4d   :  { %2540 = vmatpush1.bf16.msra.mxu1 %v3592_v33  ;;  %2381 = vmatprep.mubr.bf16.mxu1 %v3145_v34  ;;  %v3640_v33 = vld [vmem:[%s5432_s1 + $0x3d0] ss:$8 sps:$4 sm:$0xff]   ;;  %v3209_v34 = vcombine.high %v112_v26, %v120_v28  ;;  %v3684_v12 = vld [vmem:[%s5432_s1 + $0x564] ss:$8 sps:$4 sm:$0xff]  }
  0x4e   :  { %2541 = vmatprep.subr.bf16.mxu1 %v3600_v36  ;;  %v3643_v36 = vld [vmem:[%s5432_s1 + $0x2c0] ss:$8 sps:$4 sm:$0xff]  }
  0x4f   :  { %2439 = vmatpush1.bf16.msra.mxu0 %v3595_v35  ;;  %v3648_v35 = vld [vmem:[%s5432_s1 + $0x3c4] ss:$8 sps:$4 sm:$0xff]  }
  0x50   :  { %2440 = vmatprep.subr.bf16.mxu0 %v3603_v37  ;;  %v3651_v37 = vld [vmem:[%s5432_s1 + $0x2b4] ss:$8 sps:$4 sm:$0xff]  }
  0x51   :  { %2542 = vmatpush1.bf16.msra.mxu1 %v3598_v40  ;;  %v3646_v40 = vld [vmem:[%s5432_s1 + $0x3c0] ss:$8 sps:$4 sm:$0xff]  }
  0x52   :  { %2543 = vmatprep.subr.bf16.mxu1 %v3606_v41  ;;  %2279 = vmatmul.mubr.bf16.gmra.mxu0 %v3142_v43  ;;  %v3654_v41 = vld [vmem:[%s5432_s1 + $0x3b4] ss:$8 sps:$4 sm:$0xff]  }
  0x53   :  { %2441 = vmatpush1.bf16.msra.mxu0 %v3601_v45  ;;  %2288 = vmatprep.mubr.bf16.mxu0 %v3159_v46  ;;  %v4316_v43 = vld [vmem:[%s5433_s0 + $0x18] sm:$0xff]  ;;  %v3115_v46 = vcombine.high %v4302_v38, %v25_v39 }
  0x54   :  { %2442 = vmatprep.subr.bf16.mxu0 %v3609_v47  ;;  %2382 = vmatmul.mubr.bf16.gmra.mxu1 %v3144_v48  ;;  %v3649_v45 = vld [vmem:[%s5432_s1 + $0x2b0] ss:$8 sps:$4 sm:$0xff]   ;;  %v3657_v47 = vld [vmem:[%s5432_s1 + $0x2a4] ss:$8 sps:$4 sm:$0xff]   ;;  %v3208_v48 = vcombine.low %v112_v26, %v120_v28  ;;  %v3116_v7 = vcombine.low %v4316_v43, %v26_v44 }
  0x55   :  { %2544 = vmatpush1.bf16.msra.mxu1 %v3604_v49  ;;  %2391 = vmatprep.mubr.bf16.mxu1 %v3161_v50  ;;  %v3652_v49 = vld [vmem:[%s5432_s1 + $0x3b0] ss:$8 sps:$4 sm:$0xff]   ;;  %v3117_v50 = vcombine.high %v4316_v43, %v26_v44  ;;  %v3696_v28 = vld [vmem:[%s5432_s1 + $0x544] ss:$8 sps:$4 sm:$0xff]   ;;  %v3703_v43 = vld [vmem:[%s5432_s1 + $0x420] ss:$8 sps:$4 sm:$0xff]  }
  0x56   :  { %2545 = vmatprep.subr.bf16.mxu1 %v3612_v51  ;;  %v3660_v51 = vld [vmem:[%s5432_s1 + $0x3a4] ss:$8 sps:$4 sm:$0xff]  }
  0x57   :  { %2443 = vmatpush1.bf16.msra.mxu0 %v3607_v52  ;;  %v3655_v52 = vld [vmem:[%s5432_s1 + $0x2a0] ss:$8 sps:$4 sm:$0xff]   ;;  %v3708_v44 = vld [vmem:[%s5432_s1 + $0x524] ss:$8 sps:$4 sm:$0xff]  }
  0x58   :  { %2444 = vmatprep.subr.bf16.mxu0 %v3615_v53  ;;  %v3663_v53 = vld [vmem:[%s5432_s1 + $0x294] ss:$8 sps:$4 sm:$0xff]  }
  0x59   :  { %2546 = vmatpush1.bf16.msra.mxu1 %v3610_v56  ;;  %v3661_v56 = vld [vmem:[%s5432_s1 + $0x290] ss:$8 sps:$4 sm:$0xff]  }
  0x5a   :  { %2547 = vmatprep.subr.bf16.mxu1 %v3618_v57  ;;  %2289 = vmatmul.mubr.bf16.gmra.mxu0 %v3158_v58  ;;  %v3669_v57 = vld [vmem:[%s5432_s1 + $0x284] ss:$8 sps:$4 sm:$0xff]   ;;  %v3664_v58 = vld [vmem:[%s5432_s1 + $0x390] ss:$8 sps:$4 sm:$0xff]  }
  0x5b   :  { %2445 = vmatpush1.bf16.msra.mxu0 %v3613_v61  ;;  %2298 = vmatprep.mubr.bf16.mxu0 %v3175_v62  ;;  %v3670_v61 = vld [vmem:[%s5432_s1 + $0x380] ss:$8 sps:$4 sm:$0xff]   ;;  %v3675_v62 = vld [vmem:[%s5432_s1 + $0x474] ss:$8 sps:$4 sm:$0xff]  }
  0x5c   :  { %2446 = vmatprep.subr.bf16.mxu0 %v3621_v63  ;;  %2392 = vmatmul.mubr.bf16.gmra.mxu1 %v3160_v0  ;;  %v33_v63 = vld [vmem:[%s5433_s0 + $0x90] sm:$0xff] }
  0x5d   :  { %2548 = vmatpush1.bf16.msra.mxu1 %v3616_v1  ;;  %2401 = vmatprep.mubr.bf16.mxu1 %v3177_v2  ;;  %v41_v0 = vld [vmem:[%s5433_s0 + $0xd0] sm:$0xff]  ;;  %v3114_v2 = vcombine.low %v4302_v38, %v25_v39 }
  0x5e   :  { %2549 = vmatprep.subr.bf16.mxu1 %v3624_v4  ;;  %v3678_v1 = vld [vmem:[%s5432_s1 + $0x574] ss:$8 sps:$4 sm:$0xff]   ;;  %v3131_v6 = vcombine.high %v33_v63, %v41_v0 }
  0x5f   :  { %2447 = vmatpush1.bf16.msra.mxu0 %v3619_v3  ;;  %v34_v3 = vld [vmem:[%s5433_s0 + $0x98] sm:$0xff] }
  0x60   :  { %2448 = vmatprep.subr.bf16.mxu0 %v3627_v5  ;;  %v42_v4 = vld [vmem:[%s5433_s0 + $0xd8] sm:$0xff] }
  0x61   :  { %2550 = vmatpush1.bf16.msra.mxu1 %v3622_v8  ;;  %v3673_v5 = vld [vmem:[%s5432_s1 + $0x470] ss:$8 sps:$4 sm:$0xff]   ;;  %v3681_v8 = vld [vmem:[%s5432_s1 + $0x464] ss:$8 sps:$4 sm:$0xff]   ;;  %v3132_v23 = vcombine.low %v34_v3, %v42_v4 }
  0x62   :  { %2551 = vmatprep.subr.bf16.mxu1 %v3630_v9  ;;  %2299 = vmatmul.mubr.bf16.gmra.mxu0 %v3174_v10  ;;  %v3676_v9 = vld [vmem:[%s5432_s1 + $0x570] ss:$8 sps:$4 sm:$0xff]   ;;  %v3133_v10 = vcombine.high %v34_v3, %v42_v4 }
  0x63   :  { %2449 = vmatpush2.bf16.msra.mxu0 %v3625_v13  ;;  %2308 = vmatprep.mubr.bf16.mxu0 %v3191_v14  ;;  %v3687_v13 = vld [vmem:[%s5432_s1 + $0x454] ss:$8 sps:$4 sm:$0xff]  }
  0x64   :  { %2450 = vmatprep.subr.bf16.mxu0 %v3633_v15  ;;  %2402 = vmatmul.mubr.bf16.gmra.mxu1 %v3176_v16  ;;  %v49_v14 = vld [vmem:[%s5433_s0 + $0x110] sm:$0xff]  ;;  %v3682_v16 = vld [vmem:[%s5432_s1 + $0x560] ss:$8 sps:$4 sm:$0xff]   ;;  %v98_v3 = vld [vmem:[%s5433_s0 + $0x298] sm:$0xff] }
  0x65   :  { %2552 = vmatpush2.bf16.msra.mxu1 %v3628_v17  ;;  %2411 = vmatprep.mubr.bf16.mxu1 %v3193_v18  ;;  %v57_v15 = vld [vmem:[%s5433_s0 + $0x150] sm:$0xff]  ;;  %v3130_v17 = vcombine.low %v33_v63, %v41_v0  ;;  %v3718_v0 = vld [vmem:[%s5432_s1 + $0x500] ss:$8 sps:$4 sm:$0xff]   ;;  %v106_v4 = vld [vmem:[%s5433_s0 + $0x2d8] sm:$0xff] }
  0x66   :  { %2553 = vmatprep.subr.bf16.mxu1 %v3636_v20  ;;  %v3690_v18 = vld [vmem:[%s5432_s1 + $0x554] ss:$8 sps:$4 sm:$0xff]   ;;  %v3147_v22 = vcombine.high %v49_v14, %v57_v15 }
  0x67   :  { %2451 = vmatpush2.bf16.msra.mxu0 %v3631_v19  ;;  %v50_v19 = vld [vmem:[%s5433_s0 + $0x118] sm:$0xff]  ;;  %v105_v63 = vld [vmem:[%s5433_s0 + $0x2d0] sm:$0xff] }
  0x68   :  { %2452 = vmatprep.subr.bf16.mxu0 %v3639_v21  ;;  %v58_v20 = vld [vmem:[%s5433_s0 + $0x158] sm:$0xff] }
  0x69   :  { %2554 = vmatpush2.bf16.msra.mxu1 %v3634_v24  ;;  %v3685_v21 = vld [vmem:[%s5432_s1 + $0x450] ss:$8 sps:$4 sm:$0xff]   ;;  %v3693_v24 = vld [vmem:[%s5432_s1 + $0x444] ss:$8 sps:$4 sm:$0xff]   ;;  %v3149_v26 = vcombine.high %v50_v19, %v58_v20  ;;  %v3148_v39 = vcombine.low %v50_v19, %v58_v20 }
  0x6a   :  { %2555 = vmatprep.subr.bf16.mxu1 %v3642_v25  ;;  %2309 = vmatmul.mubr.bf16.gmra.mxu0 %v3190_v27  ;;  %v3688_v25 = vld [vmem:[%s5432_s1 + $0x550] ss:$8 sps:$4 sm:$0xff]   ;;  %v3691_v27 = vld [vmem:[%s5432_s1 + $0x440] ss:$8 sps:$4 sm:$0xff]  }
  0x6b   :  { %2453 = vmatpush2.bf16.msra.mxu0 %v3637_v29  ;;  %2318 = vmatprep.mubr.bf16.mxu0 %v3207_v30  ;;  %v3694_v29 = vld [vmem:[%s5432_s1 + $0x540] ss:$8 sps:$4 sm:$0xff]   ;;  %v3699_v30 = vld [vmem:[%s5432_s1 + $0x434] ss:$8 sps:$4 sm:$0xff]  }
  0x6c   :  { %2454 = vmatprep.subr.bf16.mxu0 %v3645_v31  ;;  %2412 = vmatmul.mubr.bf16.gmra.mxu1 %v3192_v32  ;;  %v65_v31 = vld [vmem:[%s5433_s0 + $0x190] sm:$0xff]  ;;  %v122_v20 = vld [vmem:[%s5433_s0 + $0x358] sm:$0xff] }
  0x6d   :  { %2556 = vmatpush2.bf16.msra.mxu1 %v3640_v33  ;;  %2421 = vmatprep.mubr.bf16.mxu1 %v3209_v34  ;;  %v73_v32 = vld [vmem:[%s5433_s0 + $0x1d0] sm:$0xff]  ;;  %v3146_v34 = vcombine.low %v49_v14, %v57_v15 }
  0x6e   :  { %2557 = vmatprep.subr.bf16.mxu1 %v3648_v35  ;;  %v3702_v33 = vld [vmem:[%s5432_s1 + $0x534] ss:$8 sps:$4 sm:$0xff]   ;;  %v3163_v38 = vcombine.high %v65_v31, %v73_v32 }
  0x6f   :  { %2455 = vmatpush2.bf16.msra.mxu0 %v3643_v36  ;;  %v66_v35 = vld [vmem:[%s5433_s0 + $0x198] sm:$0xff]  ;;  %v113_v14 = vld [vmem:[%s5433_s0 + $0x310] sm:$0xff] }
  0x70   :  { %2456 = vmatprep.subr.bf16.mxu0 %v3651_v37  ;;  %v74_v36 = vld [vmem:[%s5433_s0 + $0x1d8] sm:$0xff]  ;;  %v121_v15 = vld [vmem:[%s5433_s0 + $0x350] sm:$0xff] }
  0x71   :  { %2558 = vmatpush2.bf16.msra.mxu1 %v3646_v40  ;;  %v3697_v37 = vld [vmem:[%s5432_s1 + $0x430] ss:$8 sps:$4 sm:$0xff]   ;;  %v3705_v40 = vld [vmem:[%s5432_s1 + $0x424] ss:$8 sps:$4 sm:$0xff]  }
  0x72   :  { %2559 = vmatprep.subr.bf16.mxu1 %v3654_v41  ;;  %2319 = vmatmul.mubr.bf16.gmra.mxu0 %v3206_v42  ;;  %v3700_v41 = vld [vmem:[%s5432_s1 + $0x530] ss:$8 sps:$4 sm:$0xff]   ;;  %v3165_v42 = vcombine.high %v66_v35, %v74_v36 }
  0x73   :  { %2457 = vmatpush2.bf16.msra.mxu0 %v3649_v45  ;;  %2464 = vmatprep.mubr.bf16.mxu0 %v3115_v46  ;;  %v3706_v45 = vld [vmem:[%s5432_s1 + $0x520] ss:$8 sps:$4 sm:$0xff]   ;;  %v3711_v46 = vld [vmem:[%s5432_s1 + $0x414] ss:$8 sps:$4 sm:$0xff]  }
  0x74   :  { %2458 = vmatprep.subr.bf16.mxu0 %v3657_v47  ;;  %2422 = vmatmul.mubr.bf16.gmra.mxu1 %v3208_v48  ;;  %v81_v47 = vld [vmem:[%s5433_s0 + $0x210] sm:$0xff] }
  0x75   :  { %2560 = vmatpush2.bf16.msra.mxu1 %v3652_v49  ;;  %2567 = vmatprep.mubr.bf16.mxu1 %v3117_v50  ;;  %v89_v48 = vld [vmem:[%s5433_s0 + $0x250] sm:$0xff]  ;;  %v3162_v50 = vcombine.low %v65_v31, %v73_v32  ;;  %v19_v31 = vld [vmem:[%s5433_s0 + $0x20] sm:$0xff] }
  0x76   :  { %2561 = vmatprep.subr.bf16.mxu1 %v3660_v51  ;;  %v3714_v49 = vld [vmem:[%s5432_s1 + $0x514] ss:$8 sps:$4 sm:$0xff]   ;;  %v27_v32 = vld [vmem:[%s5433_s0 + $0x60] sm:$0xff] }
  0x77   :  { %2459 = vmatpush2.bf16.msra.mxu0 %v3655_v52  ;;  %v82_v51 = vld [vmem:[%s5433_s0 + $0x218] sm:$0xff] }
  0x78   :  { %2460 = vmatprep.subr.bf16.mxu0 %v3663_v53  ;;  %v90_v52 = vld [vmem:[%s5433_s0 + $0x258] sm:$0xff] }
  0x79   :  { %2562 = vmatpush2.bf16.msra.mxu1 %v3658_v54  ;;  %v3709_v53 = vld [vmem:[%s5432_s1 + $0x410] ss:$8 sps:$4 sm:$0xff]   ;;  %v3179_v54 = vcombine.high %v81_v47, %v89_v48 }
  0x7a   :  { %2563 = vmatprep.subr.bf16.mxu1 %v3666_v55  ;;  %v3164_v55 = vcombine.low %v66_v35, %v74_v36  ;;  %v3210_v35 = vcombine.low %v113_v14, %v121_v15  ;;  %v28_v36 = vld [vmem:[%s5433_s0 + $0x68] sm:$0xff] }
  0x7b   :  { %2461 = vmatpush2.bf16.msra.mxu0 %v3661_v56  ;;  %v3717_v56 = vld [vmem:[%s5432_s1 + $0x404] ss:$8 sps:$4 sm:$0xff]  }
  0x7c   :  { %2462 = vmatprep.subr.bf16.mxu0 %v3669_v57  ;;  %v3712_v57 = vld [vmem:[%s5432_s1 + $0x510] ss:$8 sps:$4 sm:$0xff]  }
  0x7d   :  { %2564 = vmatpush2.bf16.msra.mxu1 %v3664_v58  ;;  %v3181_v58 = vcombine.high %v82_v51, %v90_v52 }
  0x7e   :  { %2565 = vmatprep.subr.bf16.mxu1 %v3672_v60  ;;  %v3715_v60 = vld [vmem:[%s5432_s1 + $0x400] ss:$8 sps:$4 sm:$0xff]  }
  0x7f   :  { %2463 = vmatpush2.bf16.msra.mxu0 %v3667_v59  ;;  %v3720_v59 = vld [vmem:[%s5432_s1 + $0x504] ss:$8 sps:$4 sm:$0xff]  }
  0x80   :  { %2638 = vmatprep.subr.bf16.mxu0 %v3675_v62  ;;  %v97_v62 = vld [vmem:[%s5433_s0 + $0x290] sm:$0xff] }
  0x81   :  { %2566 = vmatpush2.bf16.msra.mxu1 %v3670_v61  ;;  %v3723_v61 = vld [vmem:[%s5432_s1 + $0x4f4] ss:$8 sps:$4 sm:$0xff]   ;;  %v3194_v19 = vcombine.low %v97_v62, %v105_v63 }
  0x82   :  { %2465 = vmatmul.mubr.bf16.vlgmr.msra.gmra.mxu0 %v3114_v2  ;;  %2741 = vmatprep.subr.bf16.mxu1 %v3678_v1  ;;  %v3178_v1 = vcombine.low %v81_v47, %v89_v48  ;;  %v3726_v2 = vld [vmem:[%s5432_s1 + $0x5f4] ss:$8 sps:$4 sm:$0xff]   ;;  %v3757_v48 = vld [vmem:[%s5432_s1 + $0x490] ss:$8 sps:$4 sm:$0xff]  }
  0x83   :  { %2639 = vmatpush1.bf16.msra.mxu0 %v3673_v5  ;;  %2474 = vmatprep.mubr.bf16.mxu0 %v3131_v6  ;;  %v3721_v5 = vld [vmem:[%s5432_s1 + $0x4f0] ss:$8 sps:$4 sm:$0xff]   ;;  %v3195_v6 = vcombine.high %v97_v62, %v105_v63  ;;  %v3762_v47 = vld [vmem:[%s5432_s1 + $0x594] ss:$8 sps:$4 sm:$0xff]  }
  0x84   :  { %2568 = vmatmul.mubr.bf16.vlgmr.msra.gmra.mxu1 %v3116_v7  ;;  %2640 = vmatprep.subr.bf16.mxu0 %v3681_v8  ;;  %v3180_v7 = vcombine.low %v82_v51, %v90_v52  ;;  %v3729_v8 = vld [vmem:[%s5432_s1 + $0x4e4] ss:$8 sps:$4 sm:$0xff]   ;;  %v3763_v51 = vld [vmem:[%s5432_s1 + $0x480] ss:$8 sps:$4 sm:$0xff]  }
  0x85   :  { %2742 = vmatpush1.bf16.msra.mxu1 %v3676_v9  ;;  %2577 = vmatprep.mubr.bf16.mxu1 %v3133_v10  ;;  %v3724_v9 = vld [vmem:[%s5432_s1 + $0x5f0] ss:$8 sps:$4 sm:$0xff]   ;;  %v3197_v10 = vcombine.high %v98_v3, %v106_v4  ;;  %v3768_v52 = vld [vmem:[%s5432_s1 + $0x584] ss:$8 sps:$4 sm:$0xff]  }
  0x86   :  { %2743 = vmatprep.subr.bf16.mxu1 %v3684_v12  ;;  %v3732_v12 = vld [vmem:[%s5432_s1 + $0x5e4] ss:$8 sps:$4 sm:$0xff]  }
  0x87   :  { %2641 = vmatpush1.bf16.msra.mxu0 %v3679_v11  ;;  %v3727_v11 = vld [vmem:[%s5432_s1 + $0x4e0] ss:$8 sps:$4 sm:$0xff]  }
  0x88   :  { %2642 = vmatprep.subr.bf16.mxu0 %v3687_v13  ;;  %v3735_v13 = vld [vmem:[%s5432_s1 + $0x4d4] ss:$8 sps:$4 sm:$0xff]  }
  0x89   :  { %2744 = vmatpush1.bf16.msra.mxu1 %v3682_v16  ;;  %v3730_v16 = vld [vmem:[%s5432_s1 + $0x5e0] ss:$8 sps:$4 sm:$0xff]  }
  0x8a   :  { %2475 = vmatmul.mubr.bf16.gmra.mxu0 %v3130_v17  ;;  %2745 = vmatprep.subr.bf16.mxu1 %v3690_v18  ;;  %v3738_v17 = vld [vmem:[%s5432_s1 + $0x5d4] ss:$8 sps:$4 sm:$0xff]  }
  0x8b   :  { %2643 = vmatpush1.bf16.msra.mxu0 %v3685_v21  ;;  %2484 = vmatprep.mubr.bf16.mxu0 %v3147_v22  ;;  %v114_v18 = vld [vmem:[%s5433_s0 + $0x318] sm:$0xff]  ;;  %v3211_v22 = vcombine.high %v113_v14, %v121_v15 }
  0x8c   :  { %2578 = vmatmul.mubr.bf16.gmra.mxu1 %v3132_v23  ;;  %2644 = vmatprep.subr.bf16.mxu0 %v3693_v24  ;;  %v3733_v21 = vld [vmem:[%s5432_s1 + $0x4d0] ss:$8 sps:$4 sm:$0xff]   ;;  %v3196_v23 = vcombine.low %v98_v3, %v106_v4  ;;  %v3741_v24 = vld [vmem:[%s5432_s1 + $0x4c4] ss:$8 sps:$4 sm:$0xff]   ;;  %v3772_v4 = vld [vmem:[%s5432_s1 + $0x660] ss:$8 sps:$4 sm:$0xff]  }
  0x8d   :  { %2746 = vmatpush1.bf16.msra.mxu1 %v3688_v25  ;;  %2587 = vmatprep.mubr.bf16.mxu1 %v3149_v26  ;;  %v3736_v25 = vld [vmem:[%s5432_s1 + $0x5d0] ss:$8 sps:$4 sm:$0xff]   ;;  %v3213_v26 = vcombine.high %v114_v18, %v122_v20  ;;  %v3783_v3 = vld [vmem:[%s5432_s1 + $0x764] ss:$8 sps:$4 sm:$0xff]  }
  0x8e   :  { %2747 = vmatprep.subr.bf16.mxu1 %v3696_v28  ;;  %v3744_v28 = vld [vmem:[%s5432_s1 + $0x5c4] ss:$8 sps:$4 sm:$0xff]  }
  0x8f   :  { %2645 = vmatpush1.bf16.msra.mxu0 %v3691_v27  ;;  %v3739_v27 = vld [vmem:[%s5432_s1 + $0x4c0] ss:$8 sps:$4 sm:$0xff]  }
  0x90   :  { %2646 = vmatprep.subr.bf16.mxu0 %v3699_v30  ;;  %v3747_v30 = vld [vmem:[%s5432_s1 + $0x4b4] ss:$8 sps:$4 sm:$0xff]  }
  0x91   :  { %2748 = vmatpush1.bf16.msra.mxu1 %v3694_v29  ;;  %v3742_v29 = vld [vmem:[%s5432_s1 + $0x5c0] ss:$8 sps:$4 sm:$0xff]  }
  0x92   :  { %2485 = vmatmul.mubr.bf16.gmra.mxu0 %v3146_v34  ;;  %2749 = vmatprep.subr.bf16.mxu1 %v3702_v33  ;;  %v3750_v33 = vld [vmem:[%s5432_s1 + $0x5b4] ss:$8 sps:$4 sm:$0xff]   ;;  %v4598_v34 = vld [vmem:[%s5433_s0 + $0x28] sm:$0xff] }
  0x93   :  { %2647 = vmatpush1.bf16.msra.mxu0 %v3697_v37  ;;  %2494 = vmatprep.mubr.bf16.mxu0 %v3163_v38  ;;  %v3745_v37 = vld [vmem:[%s5432_s1 + $0x4b0] ss:$8 sps:$4 sm:$0xff]   ;;  %v3119_v38 = vcombine.high %v19_v31, %v27_v32  ;;  %v3120_v63 = vcombine.low %v4598_v34, %v28_v36 }
  0x94   :  { %2588 = vmatmul.mubr.bf16.gmra.mxu1 %v3148_v39  ;;  %2648 = vmatprep.subr.bf16.mxu0 %v3705_v40  ;;  %v3212_v39 = vcombine.low %v114_v18, %v122_v20  ;;  %v3753_v40 = vld [vmem:[%s5432_s1 + $0x4a4] ss:$8 sps:$4 sm:$0xff]   ;;  %v3784_v20 = vld [vmem:[%s5432_s1 + $0x640] ss:$8 sps:$4 sm:$0xff]  }
  0x95   :  { %2750 = vmatpush1.bf16.msra.mxu1 %v3700_v41  ;;  %2597 = vmatprep.mubr.bf16.mxu1 %v3165_v42  ;;  %v3748_v41 = vld [vmem:[%s5432_s1 + $0x5b0] ss:$8 sps:$4 sm:$0xff]   ;;  %v3121_v42 = vcombine.high %v4598_v34, %v28_v36  ;;  %v3796_v36 = vld [vmem:[%s5432_s1 + $0x620] ss:$8 sps:$4 sm:$0xff]  }
  0x96   :  { %2751 = vmatprep.subr.bf16.mxu1 %v3708_v44  ;;  %v3751_v44 = vld [vmem:[%s5432_s1 + $0x4a0] ss:$8 sps:$4 sm:$0xff]  }
  0x97   :  { %2649 = vmatpush1.bf16.msra.mxu0 %v3703_v43  ;;  %v3756_v43 = vld [vmem:[%s5432_s1 + $0x5a4] ss:$8 sps:$4 sm:$0xff]  }
  0x98   :  { %2650 = vmatprep.subr.bf16.mxu0 %v3711_v46  ;;  %v3754_v46 = vld [vmem:[%s5432_s1 + $0x5a0] ss:$8 sps:$4 sm:$0xff]  }
  0x99   :  { %2752 = vmatpush1.bf16.msra.mxu1 %v3706_v45  ;;  %v3759_v45 = vld [vmem:[%s5432_s1 + $0x494] ss:$8 sps:$4 sm:$0xff]  }
  0x9a   :  { %2495 = vmatmul.mubr.bf16.gmra.mxu0 %v3162_v50  ;;  %2753 = vmatprep.subr.bf16.mxu1 %v3714_v49  ;;  %v3765_v49 = vld [vmem:[%s5432_s1 + $0x484] ss:$8 sps:$4 sm:$0xff]   ;;  %v3760_v50 = vld [vmem:[%s5432_s1 + $0x590] ss:$8 sps:$4 sm:$0xff]  }
  0x9b   :  { %2651 = vmatpush1.bf16.msra.mxu0 %v3709_v53  ;;  %2504 = vmatprep.mubr.bf16.mxu0 %v3179_v54  ;;  %v3766_v53 = vld [vmem:[%s5432_s1 + $0x580] ss:$8 sps:$4 sm:$0xff]   ;;  %v3771_v54 = vld [vmem:[%s5432_s1 + $0x674] ss:$8 sps:$4 sm:$0xff]  }
  0x9c   :  { %2598 = vmatmul.mubr.bf16.gmra.mxu1 %v3164_v55  ;;  %2652 = vmatprep.subr.bf16.mxu0 %v3717_v56  ;;  %v35_v55 = vld [vmem:[%s5433_s0 + $0xa0] sm:$0xff] }
  0x9d   :  { %2754 = vmatpush1.bf16.msra.mxu1 %v3712_v57  ;;  %2607 = vmatprep.mubr.bf16.mxu1 %v3181_v58  ;;  %v43_v56 = vld [vmem:[%s5433_s0 + $0xe0] sm:$0xff]  ;;  %v3777_v57 = vld [vmem:[%s5432_s1 + $0x774] ss:$8 sps:$4 sm:$0xff]   ;;  %v3118_v58 = vcombine.low %v19_v31, %v27_v32 }
  0x9e   :  { %2755 = vmatprep.subr.bf16.mxu1 %v3720_v59  ;;  %v36_v59 = vld [vmem:[%s5433_s0 + $0xa8] sm:$0xff]  ;;  %v3135_v62 = vcombine.high %v35_v55, %v43_v56 }
  0x9f   :  { %2653 = vmatpush1.bf16.msra.mxu0 %v3715_v60  ;;  %v44_v60 = vld [vmem:[%s5433_s0 + $0xe8] sm:$0xff] }
  0xa0   :  { %2654 = vmatprep.subr.bf16.mxu0 %v3723_v61  ;;  %v3769_v61 = vld [vmem:[%s5432_s1 + $0x670] ss:$8 sps:$4 sm:$0xff]   ;;  %v3136_v15 = vcombine.low %v36_v59, %v44_v60  ;;  %v3798_v32 = vld [vmem:[%s5432_s1 + $0x624] ss:$8 sps:$4 sm:$0xff]  }
  0xa1   :  { %2756 = vmatpush1.bf16.msra.mxu1 %v3718_v0  ;;  %v3774_v0 = vld [vmem:[%s5432_s1 + $0x664] ss:$8 sps:$4 sm:$0xff]  }
  0xa2   :  { %2505 = vmatmul.mubr.bf16.gmra.mxu0 %v3178_v1  ;;  %2757 = vmatprep.subr.bf16.mxu1 %v3726_v2  ;;  %v3775_v1 = vld [vmem:[%s5432_s1 + $0x770] ss:$8 sps:$4 sm:$0xff]   ;;  %v3137_v2 = vcombine.high %v36_v59, %v44_v60  ;;  %v100_v59 = vld [vmem:[%s5433_s0 + $0x2a8] sm:$0xff] }
  0xa3   :  { %2655 = vmatpush2.bf16.msra.mxu0 %v3721_v5  ;;  %2514 = vmatprep.mubr.bf16.mxu0 %v3195_v6  ;;  %v3780_v5 = vld [vmem:[%s5432_s1 + $0x654] ss:$8 sps:$4 sm:$0xff]   ;;  %v51_v6 = vld [vmem:[%s5433_s0 + $0x120] sm:$0xff]  ;;  %v108_v60 = vld [vmem:[%s5433_s0 + $0x2e8] sm:$0xff] }
  0xa4   :  { %2608 = vmatmul.mubr.bf16.gmra.mxu1 %v3180_v7  ;;  %2656 = vmatprep.subr.bf16.mxu0 %v3729_v8  ;;  %v59_v7 = vld [vmem:[%s5433_s0 + $0x160] sm:$0xff] }
  0xa5   :  { %2758 = vmatpush2.bf16.msra.mxu1 %v3724_v9  ;;  %2617 = vmatprep.mubr.bf16.mxu1 %v3197_v10  ;;  %v3781_v8 = vld [vmem:[%s5432_s1 + $0x760] ss:$8 sps:$4 sm:$0xff]   ;;  %v3134_v9 = vcombine.low %v35_v55, %v43_v56  ;;  %v3789_v10 = vld [vmem:[%s5432_s1 + $0x754] ss:$8 sps:$4 sm:$0xff]   ;;  %v3151_v14 = vcombine.high %v51_v6, %v59_v7 }
  0xa6   :  { %2759 = vmatprep.subr.bf16.mxu1 %v3732_v12  ;;  %v60_v12 = vld [vmem:[%s5433_s0 + $0x168] sm:$0xff]  ;;  %v107_v55 = vld [vmem:[%s5433_s0 + $0x2e0] sm:$0xff] }
  0xa7   :  { %2657 = vmatpush2.bf16.msra.mxu0 %v3727_v11  ;;  %v52_v11 = vld [vmem:[%s5433_s0 + $0x128] sm:$0xff] }
  0xa8   :  { %2658 = vmatprep.subr.bf16.mxu0 %v3735_v13  ;;  %v3778_v13 = vld [vmem:[%s5432_s1 + $0x650] ss:$8 sps:$4 sm:$0xff]   ;;  %v3153_v18 = vcombine.high %v52_v11, %v60_v12  ;;  %v3152_v31 = vcombine.low %v52_v11, %v60_v12  ;;  %v3817_v56 = vld [vmem:[%s5432_s1 + $0x700] ss:$8 sps:$4 sm:$0xff]  }
  0xa9   :  { %2760 = vmatpush2.bf16.msra.mxu1 %v3730_v16  ;;  %v3786_v16 = vld [vmem:[%s5432_s1 + $0x644] ss:$8 sps:$4 sm:$0xff]  }
  0xaa   :  { %2515 = vmatmul.mubr.bf16.gmra.mxu0 %v3194_v19  ;;  %2761 = vmatprep.subr.bf16.mxu1 %v3738_v17  ;;  %v3787_v17 = vld [vmem:[%s5432_s1 + $0x750] ss:$8 sps:$4 sm:$0xff]   ;;  %v3795_v19 = vld [vmem:[%s5432_s1 + $0x744] ss:$8 sps:$4 sm:$0xff]  }
  0xab   :  { %2659 = vmatpush2.bf16.msra.mxu0 %v3733_v21  ;;  %2524 = vmatprep.mubr.bf16.mxu0 %v3211_v22  ;;  %v3792_v21 = vld [vmem:[%s5432_s1 + $0x634] ss:$8 sps:$4 sm:$0xff]   ;;  %v67_v22 = vld [vmem:[%s5433_s0 + $0x1a0] sm:$0xff]  ;;  %v116_v11 = vld [vmem:[%s5433_s0 + $0x328] sm:$0xff] }
  0xac   :  { %2618 = vmatmul.mubr.bf16.gmra.mxu1 %v3196_v23  ;;  %2660 = vmatprep.subr.bf16.mxu0 %v3741_v24  ;;  %v75_v23 = vld [vmem:[%s5433_s0 + $0x1e0] sm:$0xff]  ;;  %v124_v12 = vld [vmem:[%s5433_s0 + $0x368] sm:$0xff] }
  0xad   :  { %2762 = vmatpush2.bf16.msra.mxu1 %v3736_v25  ;;  %2627 = vmatprep.mubr.bf16.mxu1 %v3213_v26  ;;  %v3793_v24 = vld [vmem:[%s5432_s1 + $0x740] ss:$8 sps:$4 sm:$0xff]   ;;  %v3150_v25 = vcombine.low %v51_v6, %v59_v7  ;;  %v3801_v26 = vld [vmem:[%s5432_s1 + $0x734] ss:$8 sps:$4 sm:$0xff]  }
  0xae   :  { %2763 = vmatprep.subr.bf16.mxu1 %v3744_v28  ;;  %v76_v28 = vld [vmem:[%s5433_s0 + $0x1e8] sm:$0xff]  ;;  %v115_v6 = vld [vmem:[%s5433_s0 + $0x320] sm:$0xff] }
  0xaf   :  { %2661 = vmatpush2.bf16.msra.mxu0 %v3739_v27  ;;  %v68_v27 = vld [vmem:[%s5433_s0 + $0x1a8] sm:$0xff]  ;;  %v123_v7 = vld [vmem:[%s5433_s0 + $0x360] sm:$0xff] }
  0xb0   :  { %2662 = vmatprep.subr.bf16.mxu0 %v3747_v30  ;;  %v3167_v30 = vcombine.high %v67_v22, %v75_v23  ;;  %v3169_v34 = vcombine.high %v68_v27, %v76_v28 }
  0xb1   :  { %2764 = vmatpush2.bf16.msra.mxu1 %v3742_v29  ;;  %v3790_v29 = vld [vmem:[%s5432_s1 + $0x630] ss:$8 sps:$4 sm:$0xff]  }
  0xb2   :  { %2525 = vmatmul.mubr.bf16.gmra.mxu0 %v3210_v35  ;;  %2765 = vmatprep.subr.bf16.mxu1 %v3750_v33  ;;  %v3799_v33 = vld [vmem:[%s5432_s1 + $0x730] ss:$8 sps:$4 sm:$0xff]   ;;  %v3807_v35 = vld [vmem:[%s5432_s1 + $0x724] ss:$8 sps:$4 sm:$0xff]  }
  0xb3   :  { %2663 = vmatpush2.bf16.msra.mxu0 %v3745_v37  ;;  %2670 = vmatprep.mubr.bf16.mxu0 %v3119_v38  ;;  %v3804_v37 = vld [vmem:[%s5432_s1 + $0x614] ss:$8 sps:$4 sm:$0xff]   ;;  %v83_v38 = vld [vmem:[%s5433_s0 + $0x220] sm:$0xff] }
  0xb4   :  { %2628 = vmatmul.mubr.bf16.gmra.mxu1 %v3212_v39  ;;  %2664 = vmatprep.subr.bf16.mxu0 %v3753_v40  ;;  %v91_v39 = vld [vmem:[%s5433_s0 + $0x260] sm:$0xff] }
  0xb5   :  { %2766 = vmatpush2.bf16.msra.mxu1 %v3748_v41  ;;  %2773 = vmatprep.mubr.bf16.mxu1 %v3121_v42  ;;  %v3805_v40 = vld [vmem:[%s5432_s1 + $0x720] ss:$8 sps:$4 sm:$0xff]   ;;  %v3166_v41 = vcombine.low %v67_v22, %v75_v23  ;;  %v3813_v42 = vld [vmem:[%s5432_s1 + $0x714] ss:$8 sps:$4 sm:$0xff]  }
  0xb6   :  { %2767 = vmatprep.subr.bf16.mxu1 %v3756_v43  ;;  %v84_v43 = vld [vmem:[%s5433_s0 + $0x228] sm:$0xff]  ;;  %v4866_v22 = vld [vmem:[%s5433_s0 + $0x30] sm:$0xff] }
  0xb7   :  { %2665 = vmatpush2.bf16.msra.mxu0 %v3751_v44  ;;  %v92_v44 = vld [vmem:[%s5433_s0 + $0x268] sm:$0xff]  ;;  %v4871_v23 = vld [vmem:[%s5433_s0 + $0x70] sm:$0xff] }
  0xb8   :  { %2666 = vmatprep.subr.bf16.mxu0 %v3759_v45  ;;  %v3802_v45 = vld [vmem:[%s5432_s1 + $0x610] ss:$8 sps:$4 sm:$0xff]  }
  0xb9   :  { %2768 = vmatpush2.bf16.msra.mxu1 %v3754_v46  ;;  %v3183_v46 = vcombine.high %v83_v38, %v91_v39 }
  0xba   :  { %2769 = vmatprep.subr.bf16.mxu1 %v3762_v47  ;;  %v3168_v47 = vcombine.low %v68_v27, %v76_v28  ;;  %v22_v27 = vld [vmem:[%s5433_s0 + $0x38] sm:$0xff] }
  0xbb   :  { %2667 = vmatpush2.bf16.msra.mxu0 %v3757_v48  ;;  %v3810_v48 = vld [vmem:[%s5432_s1 + $0x604] ss:$8 sps:$4 sm:$0xff]   ;;  %v30_v28 = vld [vmem:[%s5433_s0 + $0x78] sm:$0xff] }
  0xbc   :  { %2668 = vmatprep.subr.bf16.mxu0 %v3765_v49  ;;  %v3811_v49 = vld [vmem:[%s5432_s1 + $0x710] ss:$8 sps:$4 sm:$0xff]  }
  0xbd   :  { %2770 = vmatpush2.bf16.msra.mxu1 %v3760_v50  ;;  %v3185_v50 = vcombine.high %v84_v43, %v92_v44 }
  0xbe   :  { %2771 = vmatprep.subr.bf16.mxu1 %v3768_v52  ;;  %v3808_v52 = vld [vmem:[%s5432_s1 + $0x600] ss:$8 sps:$4 sm:$0xff]  }
  0xbf   :  { %2669 = vmatpush2.bf16.msra.mxu0 %v3763_v51  ;;  %v3819_v51 = vld [vmem:[%s5432_s1 + $0x704] ss:$8 sps:$4 sm:$0xff]  }
  0xc0   :  { %2844 = vmatprep.subr.bf16.mxu0 %v3771_v54  ;;  %v99_v54 = vld [vmem:[%s5433_s0 + $0x2a0] sm:$0xff] }
  0xc1   :  { %2772 = vmatpush2.bf16.msra.mxu1 %v3766_v53  ;;  %v3816_v53 = vld [vmem:[%s5432_s1 + $0x6f4] ss:$8 sps:$4 sm:$0xff]  }
  0xc2   :  { %2671 = vmatmul.mubr.bf16.vlgmr.msra.gmra.mxu0 %v3118_v58  ;;  %2947 = vmatprep.subr.bf16.mxu1 %v3777_v57  ;;  %v3182_v57 = vcombine.low %v83_v38, %v91_v39  ;;  %v3825_v58 = vld [vmem:[%s5432_s1 + $0x7d4] ss:$8 sps:$4 sm:$0xff]   ;;  %v3853_v39 = vld [vmem:[%s5432_s1 + $0x780] ss:$8 sps:$4 sm:$0xff]  }
  0xc3   :  { %2845 = vmatpush1.bf16.msra.mxu0 %v3769_v61  ;;  %2680 = vmatprep.mubr.bf16.mxu0 %v3135_v62  ;;  %v3814_v61 = vld [vmem:[%s5432_s1 + $0x6f0] ss:$8 sps:$4 sm:$0xff]   ;;  %v3199_v62 = vcombine.high %v99_v54, %v107_v55  ;;  %v3852_v38 = vld [vmem:[%s5432_s1 + $0x694] ss:$8 sps:$4 sm:$0xff]  }
  0xc4   :  { %2774 = vmatmul.mubr.bf16.vlgmr.msra.gmra.mxu1 %v3120_v63  ;;  %2846 = vmatprep.subr.bf16.mxu0 %v3774_v0  ;;  %v3184_v63 = vcombine.low %v84_v43, %v92_v44  ;;  %v3822_v0 = vld [vmem:[%s5432_s1 + $0x6e4] ss:$8 sps:$4 sm:$0xff]   ;;  %v3124_v44 = vcombine.low %v22_v27, %v30_v28 }
  0xc5   :  { %2948 = vmatpush1.bf16.msra.mxu1 %v3775_v1  ;;  %2783 = vmatprep.mubr.bf16.mxu1 %v3137_v2  ;;  %v3823_v1 = vld [vmem:[%s5432_s1 + $0x7d0] ss:$8 sps:$4 sm:$0xff]   ;;  %v3201_v2 = vcombine.high %v100_v59, %v108_v60 }
  0xc6   :  { %2949 = vmatprep.subr.bf16.mxu1 %v3783_v3  ;;  %v3831_v3 = vld [vmem:[%s5432_s1 + $0x7c4] ss:$8 sps:$4 sm:$0xff]  }
  0xc7   :  { %2847 = vmatpush1.bf16.msra.mxu0 %v3772_v4  ;;  %v3820_v4 = vld [vmem:[%s5432_s1 + $0x6e0] ss:$8 sps:$4 sm:$0xff]  }
  0xc8   :  { %2848 = vmatprep.subr.bf16.mxu0 %v3780_v5  ;;  %v3828_v5 = vld [vmem:[%s5432_s1 + $0x6d4] ss:$8 sps:$4 sm:$0xff]  }
  0xc9   :  { %2950 = vmatpush1.bf16.msra.mxu1 %v3781_v8  ;;  %v3829_v8 = vld [vmem:[%s5432_s1 + $0x7c0] ss:$8 sps:$4 sm:$0xff]  }
  0xca   :  { %2681 = vmatmul.mubr.bf16.gmra.mxu0 %v3134_v9  ;;  %2951 = vmatprep.subr.bf16.mxu1 %v3789_v10  ;;  %v3198_v9 = vcombine.low %v99_v54, %v107_v55  ;;  %v3837_v10 = vld [vmem:[%s5432_s1 + $0x7b4] ss:$8 sps:$4 sm:$0xff]  }
  0xcb   :  { %2849 = vmatpush1.bf16.msra.mxu0 %v3778_v13  ;;  %2690 = vmatprep.mubr.bf16.mxu0 %v3151_v14  ;;  %v3826_v13 = vld [vmem:[%s5432_s1 + $0x6d0] ss:$8 sps:$4 sm:$0xff]   ;;  %v3215_v14 = vcombine.high %v115_v6, %v123_v7 }
  0xcc   :  { %2784 = vmatmul.mubr.bf16.gmra.mxu1 %v3136_v15  ;;  %2850 = vmatprep.subr.bf16.mxu0 %v3786_v16  ;;  %v3200_v15 = vcombine.low %v100_v59, %v108_v60  ;;  %v3834_v16 = vld [vmem:[%s5432_s1 + $0x6c4] ss:$8 sps:$4 sm:$0xff]   ;;  %v54_v54 = vld [vmem:[%s5433_s0 + $0x138] sm:$0xff] }
  0xcd   :  { %2952 = vmatpush1.bf16.msra.mxu1 %v3787_v17  ;;  %2793 = vmatprep.mubr.bf16.mxu1 %v3153_v18  ;;  %v3835_v17 = vld [vmem:[%s5432_s1 + $0x7b0] ss:$8 sps:$4 sm:$0xff]   ;;  %v3217_v18 = vcombine.high %v116_v11, %v124_v12 }
  0xce   :  { %2953 = vmatprep.subr.bf16.mxu1 %v3795_v19  ;;  %v3843_v19 = vld [vmem:[%s5432_s1 + $0x7a4] ss:$8 sps:$4 sm:$0xff]   ;;  %v62_v55 = vld [vmem:[%s5433_s0 + $0x178] sm:$0xff] }
  0xcf   :  { %2851 = vmatpush1.bf16.msra.mxu0 %v3784_v20  ;;  %v3832_v20 = vld [vmem:[%s5432_s1 + $0x6c0] ss:$8 sps:$4 sm:$0xff]   ;;  %v3157_v60 = vcombine.high %v54_v54, %v62_v55 }
  0xd0   :  { %2852 = vmatprep.subr.bf16.mxu0 %v3792_v21  ;;  %v3840_v21 = vld [vmem:[%s5432_s1 + $0x6b4] ss:$8 sps:$4 sm:$0xff]  }
  0xd1   :  { %2954 = vmatpush1.bf16.msra.mxu1 %v3793_v24  ;;  %v3841_v24 = vld [vmem:[%s5432_s1 + $0x7a0] ss:$8 sps:$4 sm:$0xff]  }
  0xd2   :  { %2691 = vmatmul.mubr.bf16.gmra.mxu0 %v3150_v25  ;;  %2955 = vmatprep.subr.bf16.mxu1 %v3801_v26  ;;  %v3214_v25 = vcombine.low %v115_v6, %v123_v7  ;;  %v3849_v26 = vld [vmem:[%s5432_s1 + $0x794] ss:$8 sps:$4 sm:$0xff]  }
  0xd3   :  { %2853 = vmatpush1.bf16.msra.mxu0 %v3790_v29  ;;  %2700 = vmatprep.mubr.bf16.mxu0 %v3167_v30  ;;  %v3838_v29 = vld [vmem:[%s5432_s1 + $0x6b0] ss:$8 sps:$4 sm:$0xff]   ;;  %v3123_v30 = vcombine.high %v4866_v22, %v4871_v23 }
  0xd4   :  { %2794 = vmatmul.mubr.bf16.gmra.mxu1 %v3152_v31  ;;  %2854 = vmatprep.subr.bf16.mxu0 %v3798_v32  ;;  %v3216_v31 = vcombine.low %v116_v11, %v124_v12  ;;  %v3846_v32 = vld [vmem:[%s5432_s1 + $0x6a4] ss:$8 sps:$4 sm:$0xff]  }
  0xd5   :  { %2956 = vmatpush1.bf16.msra.mxu1 %v3799_v33  ;;  %2803 = vmatprep.mubr.bf16.mxu1 %v3169_v34  ;;  %v3847_v33 = vld [vmem:[%s5432_s1 + $0x790] ss:$8 sps:$4 sm:$0xff]   ;;  %v3125_v34 = vcombine.high %v22_v27, %v30_v28 }
  0xd6   :  { %2957 = vmatprep.subr.bf16.mxu1 %v3807_v35  ;;  %v3855_v35 = vld [vmem:[%s5432_s1 + $0x784] ss:$8 sps:$4 sm:$0xff]  }
  0xd7   :  { %2855 = vmatpush1.bf16.msra.mxu0 %v3796_v36  ;;  %v3844_v36 = vld [vmem:[%s5432_s1 + $0x6a0] ss:$8 sps:$4 sm:$0xff]  }
  0xd8   :  { %2856 = vmatprep.subr.bf16.mxu0 %v3804_v37  ;;  %v381_v37 = vlaneseq }
  0xd9   :  { %2958 = vmatpush1.bf16.msra.mxu1 %v3805_v40  ;;  %v38_v40 = vld [vmem:[%s5433_s0 + $0xb8] sm:$0xff] }
  0xda   :  { %2701 = vmatmul.mubr.bf16.gmra.mxu0 %v3166_v41  ;;  %2959 = vmatprep.subr.bf16.mxu1 %v3813_v42  ;;  %v46_v41 = vld [vmem:[%s5433_s0 + $0xf8] sm:$0xff]  ;;  %v382_v43 = vshrl.u32 %v381_v37, 7 }
  0xdb   :  { %2857 = vmatpush1.bf16.msra.mxu0 %v3802_v45  ;;  %2710 = vmatprep.mubr.bf16.mxu0 %v3183_v46  ;;  %v3850_v42 = vld [vmem:[%s5432_s1 + $0x690] ss:$8 sps:$4 sm:$0xff]   ;;  %v3858_v45 = vld [vmem:[%s5432_s1 + $0x684] ss:$8 sps:$4 sm:$0xff]   ;;  %v3141_v46 = vcombine.high %v38_v40, %v46_v41 }
  0xdc   :  { %2804 = vmatmul.mubr.bf16.gmra.mxu1 %v3168_v47  ;;  %2858 = vmatprep.subr.bf16.mxu0 %v3810_v48  ;;  %v3856_v47 = vld [vmem:[%s5432_s1 + $0x680] ss:$8 sps:$4 sm:$0xff]   ;;  %v383_v48 = vsub.s32 0, %v382_v43 }
  0xdd   :  { %2960 = vmatpush1.bf16.msra.mxu1 %v3811_v49  ;;  %2813 = vmatprep.mubr.bf16.mxu1 %v3185_v50  ;;  %v379_v49 = vld [vmem:[%s5434_s2] sm:$0x3]  ;;  %v37_v50 = vld [vmem:[%s5433_s0 + $0xb0] sm:$0xff] }
  0xde   :  { %2961 = vmatprep.subr.bf16.mxu1 %v3819_v51  ;;  %v45_v51 = vld [vmem:[%s5433_s0 + $0xf0] sm:$0xff] }
  0xdf   :  { %2859 = vmatpush1.bf16.msra.mxu0 %v3808_v52  ;;  %v387_v52 = vsub.s32 1, %v382_v43  ;;  %v3138_v7 = vcombine.low %v37_v50, %v45_v51 }
  0xe0   :  { %2860 = vmatprep.subr.bf16.mxu0 %v3816_v53  ;;  %v3122_v53 = vcombine.low %v4866_v22, %v4871_v23 }
  0xe1   :  { %2962 = vmatpush1.bf16.msra.mxu1 %v3817_v56  ;;  %v4942_v56 = vrot.slane %v379_v49, %v383_v48  ;;  %v4944_v59 = vrot.slane %v379_v49, %v387_v52  ;;  %v85_v49 = vld [vmem:[%s5433_s0 + $0x230] sm:$0xff] }
  0xe2   :  { %2711 = vmatmul.mubr.bf16.gmra.mxu0 %v3182_v57  ;;  %2967 = vmatprep.subr.bf16.mxu1 %v3825_v58  ;;  %v3139_v57 = vcombine.high %v37_v50, %v45_v51  ;;  %v3140_v58 = vcombine.low %v38_v40, %v46_v41  ;;  %v93_v50 = vld [vmem:[%s5433_s0 + $0x270] sm:$0xff] }
  0xe3   :  { %2861 = vmatpush2.bf16.msra.mxu0 %v3814_v61  ;;  %2720 = vmatprep.mubr.bf16.mxu0 %v3199_v62 }
  0xe4   :  { %2814 = vmatmul.mubr.bf16.gmra.mxu1 %v3184_v63  ;;  %2862 = vmatprep.subr.bf16.mxu0 %v3822_v0 }
  0xe5   :  { %2968 = vmatpush2.bf16.msra.mxu1 %v3823_v1  ;;  %2823 = vmatprep.mubr.bf16.mxu1 %v3201_v2  ;;  %v53_v1 = vld [vmem:[%s5433_s0 + $0x130] sm:$0xff] }
  0xe6   :  { %2969 = vmatprep.subr.bf16.mxu1 %v3831_v3  ;;  %v61_v2 = vld [vmem:[%s5433_s0 + $0x170] sm:$0xff] }
  0xe7   :  { %2863 = vmatpush2.bf16.msra.mxu0 %v3820_v4  ;;  %v3155_v12 = vcombine.high %v53_v1, %v61_v2 }
  0xe8   :  { %2864 = vmatprep.subr.bf16.mxu0 %v3828_v5 }
  0xe9   :  { %2970 = vmatpush2.bf16.msra.mxu1 %v3829_v8  ;;  %v70_v8 = vld [vmem:[%s5433_s0 + $0x1b8] sm:$0xff] }
  0xea   :  { %2721 = vmatmul.mubr.bf16.gmra.mxu0 %v3198_v9  ;;  %2971 = vmatprep.subr.bf16.mxu1 %v3837_v10  ;;  %v78_v9 = vld [vmem:[%s5433_s0 + $0x1f8] sm:$0xff] }
  0xeb   :  { %2865 = vmatpush2.bf16.msra.mxu0 %v3826_v13  ;;  %2730 = vmatprep.mubr.bf16.mxu0 %v3215_v14 }
  0xec   :  { %2824 = vmatmul.mubr.bf16.gmra.mxu1 %v3200_v15  ;;  %2866 = vmatprep.subr.bf16.mxu0 %v3834_v16  ;;  %v3156_v15 = vcombine.low %v54_v54, %v62_v55 }
  0xed   :  { %2972 = vmatpush2.bf16.msra.mxu1 %v3835_v17  ;;  %2833 = vmatprep.mubr.bf16.mxu1 %v3217_v18  ;;  %v3173_v18 = vcombine.high %v70_v8, %v78_v9 }
  0xee   :  { %2973 = vmatprep.subr.bf16.mxu1 %v3843_v19 }
  0xef   :  { %2867 = vmatpush2.bf16.msra.mxu0 %v3832_v20 }
  0xf0   :  { %2868 = vmatprep.subr.bf16.mxu0 %v3840_v21 }
  0xf1   :  { %2974 = vmatpush2.bf16.msra.mxu1 %v3841_v24 }
  0xf2   :  { %2731 = vmatmul.mubr.bf16.gmra.mxu0 %v3214_v25  ;;  %2975 = vmatprep.subr.bf16.mxu1 %v3849_v26  ;;  %v69_v25 = vld [vmem:[%s5433_s0 + $0x1b0] sm:$0xff] }
  0xf3   :  { %2869 = vmatpush2.bf16.msra.mxu0 %v3838_v29  ;;  %2876 = vmatprep.mubr.bf16.mxu0 %v3123_v30  ;;  %v77_v26 = vld [vmem:[%s5433_s0 + $0x1f0] sm:$0xff] }
  0xf4   :  { %2834 = vmatmul.mubr.bf16.gmra.mxu1 %v3216_v31  ;;  %2870 = vmatprep.subr.bf16.mxu0 %v3846_v32  ;;  %v3154_v31 = vcombine.low %v53_v1, %v61_v2  ;;  %v86_v32 = vld [vmem:[%s5433_s0 + $0x238] sm:$0xff]  ;;  %v3170_v55 = vcombine.low %v69_v25, %v77_v26 }
  0xf5   :  { %2976 = vmatpush2.bf16.msra.mxu1 %v3847_v33  ;;  %3474 = vmatprep.mubr.msk.bf16.mxu1 %vm2204_vm0, %v3125_v34  ;;  %v94_v33 = vld [vmem:[%s5433_s0 + $0x278] sm:$0xff] }
  0xf6   :  { %2977 = vmatprep.subr.bf16.mxu1 %v3855_v35  ;;  %v3188_v1 = vcombine.low %v86_v32, %v94_v33 }
  0xf7   :  { %2871 = vmatpush2.bf16.msra.mxu0 %v3844_v36  ;;  %v3171_v36 = vcombine.high %v69_v25, %v77_v26 }
  0xf8   :  { %2872 = vmatprep.subr.bf16.mxu0 %v3852_v38 }
  0xf9   :  { %2978 = vmatpush2.bf16.msra.mxu1 %v3853_v39  ;;  %v3172_v39 = vcombine.low %v70_v8, %v78_v9 }
  0xfb   :  { %2873 = vmatpush2.bf16.msra.mxu0 %v3850_v42  ;;  %v3189_v42 = vcombine.high %v86_v32, %v94_v33 }
  0xfc   :  { %2874 = vmatprep.subr.bf16.mxu0 %v3858_v45  ;;  %2980 = vmatmul.mubr.bf16.vlgmr.msra.gmra.mxu1 %v3124_v44 }
  0xfd   :  { %3475 = vmatprep.mubr.msk.bf16.mxu1 %vm2204_vm0, %v3141_v46 }
  0xff   :  { %2875 = vmatpush2.bf16.msra.mxu0 %v3856_v47 }
 0x102   :  { %v2260_v61 = vpop.f32.mrf.mxu0  ;;  %2877 = vmatmul.mubr.bf16.vlgmr.msra.gmra.mxu0 %v3122_v53 }
 0x103   :  { %v2261_v62 = vadd.f32 %v2260_v61, %v4942_v56  ;;  %2886 = vmatprep.mubr.bf16.mxu0 %v3139_v57  ;;  %v102_v57 = vld [vmem:[%s5433_s0 + $0x2b8] sm:$0xff] }
 0x104   :  { %v2262_v63 = vpop.f32.mrf.mxu0  ;;  %v2363_v0 = vpop.f32.mrf.mxu1  ;;  %2990 = vmatmul.mubr.bf16.gmra.mxu1 %v3140_v58  ;;  %v110_v58 = vld [vmem:[%s5433_s0 + $0x2f8] sm:$0xff] }
 0x105   :  { %v2263_v3 = vadd.f32 %v2262_v63, %v4944_v59  ;;  %v4954_v4 = vadd.f32 %v2363_v0, %v2261_v62  ;;  %3476 = vmatprep.mubr.msk.bf16.mxu1 %vm2204_vm0, %v3157_v60  ;;  %v3187_v62 = vcombine.high %v85_v49, %v93_v50 }
 0x106   :  { %v2264_v5 = vpop.f32.mrf.mxu0  ;;  %v2365_v6 = vpop.f32.mrf.mxu1 }
 0x107   :  { %v2265_v10 = vadd.f32 %v2264_v5, %v4942_v56  ;;  %v4964_v11 = vadd.f32 %v2365_v6, %v2263_v3  ;;  %v3205_v5 = vcombine.high %v102_v57, %v110_v58 }
 0x108   :  { %v2266_v13 = vpop.f32.mrf.mxu0  ;;  %v2367_v14 = vpop.f32.mrf.mxu1 }
 0x109   :  { %v2267_v16 = vadd.f32 %v2266_v13, %v4944_v59  ;;  %v4967_v17 = vadd.f32 %v2367_v14, %v2265_v10  ;;  %v101_v13 = vld [vmem:[%s5433_s0 + $0x2b0] sm:$0xff] }
 0x10a   :  { %v2369_v19 = vpop.f32.mrf.mxu1  ;;  %2887 = vmatmul.mubr.bf16.gmra.mxu0 %v3138_v7  ;;  %v2270_v20 = vpop.f32.mrf.mxu0  ;;  %v109_v14 = vld [vmem:[%s5433_s0 + $0x2f0] sm:$0xff] }
 0x10b   :  { %v4969_v21 = vadd.f32 %v2369_v19, %v2267_v16  ;;  %v2271_v22 = vadd.f32 %v2270_v20, %v4942_v56  ;;  %2896 = vmatprep.mubr.bf16.mxu0 %v3155_v12  ;;  %v3186_v20 = vcombine.low %v85_v49, %v93_v50  ;;  %v3203_v26 = vcombine.high %v101_v13, %v109_v14 }
 0x10c   :  { %3000 = vmatmul.mubr.bf16.gmra.mxu1 %v3156_v15  ;;  %v2272_v23 = vpop.f32.mrf.mxu0  ;;  %v2373_v24 = vpop.f32.mrf.mxu1  ;;  %v3202_v49 = vcombine.low %v101_v13, %v109_v14 }
 0x10d   :  { %v2273_v27 = vadd.f32 %v2272_v23, %v4944_v59  ;;  %v4979_v28 = vadd.f32 %v2373_v24, %v2271_v22  ;;  %3477 = vmatprep.mubr.msk.bf16.mxu1 %vm2204_vm0, %v3173_v18  ;;  %v118_v22 = vld [vmem:[%s5433_s0 + $0x338] sm:$0xff] }
 0x10e   :  { %v2274_v29 = vpop.f32.mrf.mxu0  ;;  %v2375_v30 = vpop.f32.mrf.mxu1  ;;  %v126_v23 = vld [vmem:[%s5433_s0 + $0x378] sm:$0xff] }
 0x10f   :  { %v2275_v34 = vadd.f32 %v2274_v29, %v4942_v56  ;;  %v4989_v35 = vadd.f32 %v2375_v30, %v2273_v27  ;;  %v3204_v30 = vcombine.low %v102_v57, %v110_v58  ;;  %v3221_v33 = vcombine.high %v118_v22, %v126_v23 }
 0x110   :  { %v2276_v37 = vpop.f32.mrf.mxu0  ;;  %v2377_v38 = vpop.f32.mrf.mxu1  ;;  %v3220_v57 = vcombine.low %v118_v22, %v126_v23 }
 0x111   :  { %v2277_v40 = vadd.f32 %v2276_v37, %v4944_v59  ;;  %v4992_v41 = vadd.f32 %v2377_v38, %v2275_v34 }
 0x112   :  { %2897 = vmatmul.mubr.bf16.gmra.mxu0 %v3154_v31  ;;  %v2280_v43 = vpop.f32.mrf.mxu0  ;;  %v2379_v44 = vpop.f32.mrf.mxu1 }
 0x113   :  { %v2281_v45 = vadd.f32 %v2280_v43, %v4942_v56  ;;  %v4995_v46 = vadd.f32 %v2379_v44, %v2277_v40  ;;  %2906 = vmatprep.mubr.bf16.mxu0 %v3171_v36  ;;  %v125_v43 = vld [vmem:[%s5433_s0 + $0x370] sm:$0xff] }
 0x114   :  { %3010 = vmatmul.mubr.bf16.gmra.mxu1 %v3172_v39  ;;  %v2282_v47 = vpop.f32.mrf.mxu0  ;;  %v2383_v48 = vpop.f32.mrf.mxu1 }
 0x115   :  { %v2283_v51 = vadd.f32 %v2282_v47, %v4944_v59  ;;  %v5004_v52 = vadd.f32 %v2383_v48, %v2281_v45  ;;  %3478 = vmatprep.mubr.msk.bf16.mxu1 %vm2204_vm0, %v3189_v42  ;;  %v117_v42 = vld [vmem:[%s5433_s0 + $0x330] sm:$0xff] }
 0x116   :  { %v2284_v53 = vpop.f32.mrf.mxu0  ;;  %v2385_v54 = vpop.f32.mrf.mxu1 }
 0x117   :  { %v2285_v60 = vadd.f32 %v2284_v53, %v4942_v56  ;;  %v5014_v61 = vadd.f32 %v2385_v54, %v2283_v51  ;;  %v3219_v53 = vcombine.high %v117_v42, %v125_v43 }
 0x118   :  { %v2286_v63 = vpop.f32.mrf.mxu0  ;;  %v2387_v0 = vpop.f32.mrf.mxu1 }
 0x119   :  { %v2287_v2 = vadd.f32 %v2286_v63, %v4944_v59  ;;  %v5017_v3 = vadd.f32 %v2387_v0, %v2285_v60 }
 0x11a   :  { %2907 = vmatmul.mubr.bf16.gmra.mxu0 %v3170_v55  ;;  %v2290_v6 = vpop.f32.mrf.mxu0  ;;  %v2389_v7 = vpop.f32.mrf.mxu1 }
 0x11b   :  { %v2291_v8 = vadd.f32 %v2290_v6, %v4942_v56  ;;  %v5020_v9 = vadd.f32 %v2389_v7, %v2287_v2  ;;  %2916 = vmatprep.mubr.bf16.mxu0 %v3187_v62 }
 0x11c   :  { %3020 = vmatmul.mubr.bf16.gmra.mxu1 %v3188_v1  ;;  %v2292_v10 = vpop.f32.mrf.mxu0  ;;  %v2393_v12 = vpop.f32.mrf.mxu1 }
 0x11d   :  { %v2293_v15 = vadd.f32 %v2292_v10, %v4944_v59  ;;  %v5029_v16 = vadd.f32 %v2393_v12, %v2291_v8  ;;  %3479 = vmatprep.mubr.msk.bf16.mxu1 %vm2204_vm0, %v3205_v5  ;;  %v3218_v12 = vcombine.low %v117_v42, %v125_v43 }
 0x11e   :  { %v2294_v18 = vpop.f32.mrf.mxu0  ;;  %v2395_v19 = vpop.f32.mrf.mxu1 }
 0x11f   :  { %v2295_v24 = vadd.f32 %v2294_v18, %v4942_v56  ;;  %v5039_v25 = vadd.f32 %v2395_v19, %v2293_v15 }
 0x120   :  { %v2296_v27 = vpop.f32.mrf.mxu0  ;;  %v2397_v29 = vpop.f32.mrf.mxu1 }
 0x121   :  { %v2297_v31 = vadd.f32 %v2296_v27, %v4944_v59  ;;  %v5042_v32 = vadd.f32 %v2397_v29, %v2295_v24 }
 0x122   :  { %2917 = vmatmul.mubr.bf16.gmra.mxu0 %v3186_v20  ;;  %v2300_v34 = vpop.f32.mrf.mxu0  ;;  %v2399_v36 = vpop.f32.mrf.mxu1 }
 0x123   :  { %v2301_v37 = vadd.f32 %v2300_v34, %v4942_v56  ;;  %v5045_v38 = vadd.f32 %v2399_v36, %v2297_v31  ;;  %2926 = vmatprep.mubr.bf16.mxu0 %v3203_v26 }
 0x124   :  { %3030 = vmatmul.mubr.bf16.gmra.mxu1 %v3204_v30  ;;  %v2302_v39 = vpop.f32.mrf.mxu0  ;;  %v2403_v40 = vpop.f32.mrf.mxu1 }
 0x125   :  { %v2303_v44 = vadd.f32 %v2302_v39, %v4944_v59  ;;  %v5054_v45 = vadd.f32 %v2403_v40, %v2301_v37  ;;  %3480 = vmatprep.mubr.msk.bf16.mxu1 %vm2204_vm0, %v3221_v33 }
 0x126   :  { %v2304_v47 = vpop.f32.mrf.mxu0  ;;  %v2405_v48 = vpop.f32.mrf.mxu1 }
 0x127   :  { %v2305_v50 = vadd.f32 %v2304_v47, %v4942_v56  ;;  %v5058_v51 = vadd.f32 %v2405_v48, %v2303_v44 }
 0x128   :  { %v2306_v54 = vpop.f32.mrf.mxu0  ;;  %v2407_v55 = vpop.f32.mrf.mxu1 }
 0x129   :  { %v2307_v58 = vadd.f32 %v2306_v54, %v4944_v59  ;;  %v5061_v60 = vadd.f32 %v2407_v55, %v2305_v50 }
 0x12a   :  { %2927 = vmatmul.mubr.bf16.gmra.mxu0 %v3202_v49  ;;  %v2310_v62 = vpop.f32.mrf.mxu0  ;;  %v2409_v63 = vpop.f32.mrf.mxu1 }
 0x12b   :  { %v2311_v0 = vadd.f32 %v2310_v62, %v4942_v56  ;;  %v5064_v1 = vadd.f32 %v2409_v63, %v2307_v58  ;;  %2936 = vmatprep.mubr.bf16.mxu0 %v3219_v53 }
 0x12c   :  { %3040 = vmatmul.mubr.bf16.gmra.mxu1 %v3220_v57  ;;  %v2312_v2 = vpop.f32.mrf.mxu0  ;;  %v2413_v5 = vpop.f32.mrf.mxu1 }
 0x12d   :  { %v2313_v6 = vadd.f32 %v2312_v2, %v4944_v59  ;;  %v5067_v7 = vadd.f32 %v2413_v5, %v2311_v0 }
 0x12e   :  { %v2314_v8 = vpop.f32.mrf.mxu0  ;;  %v2415_v10 = vpop.f32.mrf.mxu1 }
 0x12f   :  { %v2315_v13 = vadd.f32 %v2314_v8, %v4942_v56  ;;  %v5070_v14 = vadd.f32 %v2415_v10, %v2313_v6 }
 0x130   :  { %v2316_v15 = vpop.f32.mrf.mxu0  ;;  %v2417_v18 = vpop.f32.mrf.mxu1 }
 0x131   :  { %v2317_v19 = vadd.f32 %v2316_v15, %v4944_v59  ;;  %v5073_v20 = vadd.f32 %v2417_v18, %v2315_v13 }
 0x132   :  { %2937 = vmatmul.mubr.bf16.gmra.mxu0 %v3218_v12  ;;  %v2320_v22 = vpop.f32.mrf.mxu0  ;;  %v2419_v23 = vpop.f32.mrf.mxu1 }
 0x133   :  { %v2321_v24 = vadd.f32 %v2320_v22, %v4942_v56  ;;  %v5076_v26 = vadd.f32 %v2419_v23, %v2317_v19 }
 0x134   :  { %v2322_v27 = vpop.f32.mrf.mxu0  ;;  %v2423_v29 = vpop.f32.mrf.mxu1 }
 0x135   :  { %v2323_v30 = vadd.f32 %v2322_v27, %v4944_v59  ;;  %v5079_v31 = vadd.f32 %v2423_v29, %v2321_v24 }
 0x136   :  { %v2324_v33 = vpop.f32.mrf.mxu0  ;;  %v2425_v34 = vpop.f32.mrf.mxu1 }
 0x137   :  { %v2325_v36 = vadd.f32 %v2324_v33, %v4942_v56  ;;  %v5082_v37 = vadd.f32 %v2425_v34, %v2323_v30 }
 0x138   :  { %v2326_v39 = vpop.f32.mrf.mxu0  ;;  %v2427_v40 = vpop.f32.mrf.mxu1 }
 0x139   :  { %v2327_v42 = vadd.f32 %v2326_v39, %v4944_v59  ;;  %v5085_v43 = vadd.f32 %v2427_v40, %v2325_v36 }
 0x13a   :  { %v2429_v44 = vpop.f32.mrf.mxu1 }
 0x13b   :  { %v5087_v47 = vadd.f32 %v2429_v44, %v2327_v42 }
 0x142   :  { %v2466_v48 = vpop.f32.mrf.mxu0 }
 0x143   :  { %v2467_v49 = vadd.f32 %v2466_v48, %v4954_v4 }
 0x144   :  { %v2468_v50 = vpop.f32.mrf.mxu0  ;;  %v2569_v53 = vpop.f32.mrf.mxu1 }
 0x145   :  { %v2469_v54 = vadd.f32 %v2468_v50, %v4964_v11  ;;  %v5091_v55 = vadd.f32 %v2569_v53, %v2467_v49 }
 0x146   :  { %v2470_v56 = vpop.f32.mrf.mxu0  ;;  %v2571_v57 = vpop.f32.mrf.mxu1 }
 0x147   :  { %v2471_v58 = vadd.f32 %v2470_v56, %v4967_v17  ;;  %v5094_v62 = vadd.f32 %v2571_v57, %v2469_v54 }
 0x148   :  { %v2472_v59 = vpop.f32.mrf.mxu0  ;;  %v2573_v63 = vpop.f32.mrf.mxu1 }
 0x149   :  { %v2473_v0 = vadd.f32 %v2472_v59, %v4969_v21  ;;  %v5097_v2 = vadd.f32 %v2573_v63, %v2471_v58 }
 0x14a   :  { %v2476_v5 = vpop.f32.mrf.mxu0  ;;  %v2575_v4 = vpop.f32.mrf.mxu1 }
 0x14b   :  { %v2477_v6 = vadd.f32 %v2476_v5, %v4979_v28  ;;  %v5100_v8 = vadd.f32 %v2575_v4, %v2473_v0 }
 0x14c   :  { %v2478_v11 = vpop.f32.mrf.mxu0  ;;  %v2579_v10 = vpop.f32.mrf.mxu1 }
 0x14d   :  { %v2479_v12 = vadd.f32 %v2478_v11, %v4989_v35  ;;  %v5103_v13 = vadd.f32 %v2579_v10, %v2477_v6 }
 0x14e   :  { %v2480_v17 = vpop.f32.mrf.mxu0  ;;  %v2581_v15 = vpop.f32.mrf.mxu1 }
 0x14f   :  { %v2481_v18 = vadd.f32 %v2480_v17, %v4992_v41  ;;  %v5106_v19 = vadd.f32 %v2581_v15, %v2479_v12 }
 0x150   :  { %v2482_v21 = vpop.f32.mrf.mxu0  ;;  %v2583_v22 = vpop.f32.mrf.mxu1 }
 0x151   :  { %v2483_v23 = vadd.f32 %v2482_v21, %v4995_v46  ;;  %v5109_v24 = vadd.f32 %v2583_v22, %v2481_v18 }
 0x152   :  { %v2486_v28 = vpop.f32.mrf.mxu0  ;;  %v2585_v27 = vpop.f32.mrf.mxu1 }
 0x153   :  { %v2487_v29 = vadd.f32 %v2486_v28, %v5004_v52  ;;  %v5112_v30 = vadd.f32 %v2585_v27, %v2483_v23 }
 0x154   :  { %v2488_v35 = vpop.f32.mrf.mxu0  ;;  %v2589_v33 = vpop.f32.mrf.mxu1 }
 0x155   :  { %v2489_v34 = vadd.f32 %v2488_v35, %v5014_v61  ;;  %v5115_v36 = vadd.f32 %v2589_v33, %v2487_v29 }
 0x156   :  { %v2490_v41 = vpop.f32.mrf.mxu0  ;;  %v2591_v39 = vpop.f32.mrf.mxu1 }
 0x157   :  { %v2491_v40 = vadd.f32 %v2490_v41, %v5017_v3  ;;  %v5118_v42 = vadd.f32 %v2591_v39, %v2489_v34 }
 0x158   :  { %v2492_v46 = vpop.f32.mrf.mxu0  ;;  %v2593_v44 = vpop.f32.mrf.mxu1 }
 0x159   :  { %v2493_v48 = vadd.f32 %v2492_v46, %v5020_v9  ;;  %v5121_v49 = vadd.f32 %v2593_v44, %v2491_v40 }
 0x15a   :  { %v2496_v52 = vpop.f32.mrf.mxu0  ;;  %v2595_v50 = vpop.f32.mrf.mxu1 }
 0x15b   :  { %v2497_v53 = vadd.f32 %v2496_v52, %v5029_v16  ;;  %v5124_v54 = vadd.f32 %v2595_v50, %v2493_v48 }
 0x15c   :  { %v2498_v61 = vpop.f32.mrf.mxu0  ;;  %v2599_v56 = vpop.f32.mrf.mxu1 }
 0x15d   :  { %v2499_v57 = vadd.f32 %v2498_v61, %v5039_v25  ;;  %v5127_v58 = vadd.f32 %v2599_v56, %v2497_v53 }
 0x15e   :  { %v2500_v3 = vpop.f32.mrf.mxu0  ;;  %v2601_v59 = vpop.f32.mrf.mxu1 }
 0x15f   :  { %v2501_v63 = vadd.f32 %v2500_v3, %v5042_v32  ;;  %v5130_v0 = vadd.f32 %v2601_v59, %v2499_v57 }
 0x160   :  { %v2502_v9 = vpop.f32.mrf.mxu0  ;;  %v2603_v5 = vpop.f32.mrf.mxu1 }
 0x161   :  { %v2503_v4 = vadd.f32 %v2502_v9, %v5045_v38  ;;  %v5133_v6 = vadd.f32 %v2603_v5, %v2501_v63 }
 0x162   :  { %v2506_v16 = vpop.f32.mrf.mxu0  ;;  %v2605_v11 = vpop.f32.mrf.mxu1 }
 0x163   :  { %v2507_v10 = vadd.f32 %v2506_v16, %v5054_v45  ;;  %v5136_v12 = vadd.f32 %v2605_v11, %v2503_v4 }
 0x164   :  { %v2508_v25 = vpop.f32.mrf.mxu0  ;;  %v2609_v17 = vpop.f32.mrf.mxu1 }
 0x165   :  { %v2509_v15 = vadd.f32 %v2508_v25, %v5058_v51  ;;  %v5139_v18 = vadd.f32 %v2609_v17, %v2507_v10 }
 0x166   :  { %v2510_v32 = vpop.f32.mrf.mxu0  ;;  %v2611_v21 = vpop.f32.mrf.mxu1 }
 0x167   :  { %v2511_v22 = vadd.f32 %v2510_v32, %v5061_v60  ;;  %v5142_v23 = vadd.f32 %v2611_v21, %v2509_v15 }
 0x168   :  { %v2512_v38 = vpop.f32.mrf.mxu0  ;;  %v2613_v28 = vpop.f32.mrf.mxu1 }
 0x169   :  { %5436 = vst [vmem:[#allocation2_spill] sm:$0xff] %v5142_v23  ;;  %v2513_v27 = vadd.f32 %v2512_v38, %v5064_v1  ;;  %v5145_v29 = vadd.f32 %v2613_v28, %v2511_v22 }
 0x16a   :  { %v2516_v45 = vpop.f32.mrf.mxu0  ;;  %v2615_v35 = vpop.f32.mrf.mxu1 }
 0x16b   :  { %5437 = vst [vmem:[#allocation3_spill] sm:$0xff] %v5145_v29  ;;  %v2517_v33 = vadd.f32 %v2516_v45, %v5067_v7  ;;  %v5148_v34 = vadd.f32 %v2615_v35, %v2513_v27 }
 0x16c   :  { %v2518_v51 = vpop.f32.mrf.mxu0  ;;  %v2619_v41 = vpop.f32.mrf.mxu1 }
 0x16d   :  { %5438 = vst [vmem:[#allocation4_spill] sm:$0xff] %v5148_v34  ;;  %v2519_v39 = vadd.f32 %v2518_v51, %v5070_v14  ;;  %v5151_v40 = vadd.f32 %v2619_v41, %v2517_v33 }
 0x16e   :  { %v2520_v60 = vpop.f32.mrf.mxu0  ;;  %v2621_v46 = vpop.f32.mrf.mxu1 }
 0x16f   :  { %5439 = vst [vmem:[#allocation5_spill] sm:$0xff] %v5151_v40  ;;  %v2521_v44 = vadd.f32 %v2520_v60, %v5073_v20  ;;  %v5154_v48 = vadd.f32 %v2621_v46, %v2519_v39 }
 0x170   :  { %v2522_v1 = vpop.f32.mrf.mxu0  ;;  %v2623_v52 = vpop.f32.mrf.mxu1 }
 0x171   :  { %5440 = vst [vmem:[#allocation6_spill] sm:$0xff] %v5154_v48  ;;  %v2523_v50 = vadd.f32 %v2522_v1, %v5076_v26  ;;  %v5157_v53 = vadd.f32 %v2623_v52, %v2521_v44 }
 0x172   :  { %v2526_v7 = vpop.f32.mrf.mxu0  ;;  %v2625_v61 = vpop.f32.mrf.mxu1 }
 0x173   :  { %5441 = vst [vmem:[#allocation7_spill] sm:$0xff] %v5157_v53  ;;  %v2527_v56 = vadd.f32 %v2526_v7, %v5079_v31  ;;  %v5160_v57 = vadd.f32 %v2625_v61, %v2523_v50 }
 0x174   :  { %v2528_v14 = vpop.f32.mrf.mxu0  ;;  %v2629_v3 = vpop.f32.mrf.mxu1 }
 0x175   :  { %5442 = vst [vmem:[#allocation8_spill] sm:$0xff] %v5160_v57  ;;  %v2529_v59 = vadd.f32 %v2528_v14, %v5082_v37  ;;  %v5163_v63 = vadd.f32 %v2629_v3, %v2527_v56 }
 0x176   :  { %v2530_v20 = vpop.f32.mrf.mxu0  ;;  %v2631_v9 = vpop.f32.mrf.mxu1 }
 0x177   :  { %5443 = vst [vmem:[#allocation9_spill] sm:$0xff] %v5163_v63  ;;  %v2531_v5 = vadd.f32 %v2530_v20, %v5085_v43  ;;  %v5166_v4 = vadd.f32 %v2631_v9, %v2529_v59 }
 0x178   :  { %v2532_v26 = vpop.f32.mrf.mxu0  ;;  %v2633_v16 = vpop.f32.mrf.mxu1 }
 0x179   :  { %5444 = vst [vmem:[#allocation10_spill] sm:$0xff] %v5166_v4  ;;  %v2533_v11 = vadd.f32 %v2532_v26, %v5087_v47  ;;  %v5169_v10 = vadd.f32 %v2633_v16, %v2531_v5 }
 0x17a   :  { %v2635_v31 = vpop.f32.mrf.mxu1 }
 0x17b   :  { %5445 = vst [vmem:[#allocation11_spill] sm:$0xff] %v5169_v10  ;;  %v5171_v25 = vadd.f32 %v2635_v31, %v2533_v11 }
 0x17d   :  { %5446 = vst [vmem:[#allocation12_spill] sm:$0xff] %v5171_v25 }
 0x182   :  { %v2672_v17 = vpop.f32.mrf.mxu0 }
 0x184   :  { %v2674_v15 = vpop.f32.mrf.mxu0  ;;  %v2775_v37 = vpop.f32.mrf.mxu1 }
 0x186   :  { %v2676_v32 = vpop.f32.mrf.mxu0  ;;  %v2777_v21 = vpop.f32.mrf.mxu1 }
 0x188   :  { %v2678_v22 = vpop.f32.mrf.mxu0  ;;  %v5173_v38 = vpop.f32.mrf.mxu1 }
 0x18a   :  { %v2682_v43 = vpop.f32.mrf.mxu0  ;;  %v5175_v28 = vpop.f32.mrf.mxu1 }
 0x18c   :  { %v5177_v27 = vpop.f32.mrf.mxu0  ;;  %v5179_v45 = vpop.f32.mrf.mxu1 }
 0x18e   :  { %v5181_v47 = vpop.f32.mrf.mxu0  ;;  %v5183_v35 = vpop.f32.mrf.mxu1 }
 0x190   :  { %v5185_v33 = vpop.f32.mrf.mxu0  ;;  %v5187_v51 = vpop.f32.mrf.mxu1 }
 0x192   :  { %v5189_v41 = vpop.f32.mrf.mxu0  ;;  %v5191_v39 = vpop.f32.mrf.mxu1 }
 0x194   :  { %v5193_v60 = vpop.f32.mrf.mxu0  ;;  %v5195_v46 = vpop.f32.mrf.mxu1 }
 0x196   :  { %v5197_v44 = vpop.f32.mrf.mxu0  ;;  %v5199_v1 = vpop.f32.mrf.mxu1 }
 0x198   :  { %v5201_v52 = vpop.f32.mrf.mxu0  ;;  %v5203_v50 = vpop.f32.mrf.mxu1 }
 0x19a   :  { %v5205_v7 = vpop.f32.mrf.mxu0  ;;  %v5207_v61 = vpop.f32.mrf.mxu1 }
 0x19c   :  { %v5209_v56 = vpop.f32.mrf.mxu0  ;;  %v5211_v14 = vpop.f32.mrf.mxu1 }
 0x19e   :  { %v5213_v3 = vpop.f32.mrf.mxu0  ;;  %v5215_v59 = vpop.f32.mrf.mxu1 }
 0x1a0   :  { %v5217_v20 = vpop.f32.mrf.mxu0  ;;  %v5219_v9 = vpop.f32.mrf.mxu1 }
 0x1a1   :  { %5447 = vst [vmem:[#allocation13_spill] sm:$0xff] %v5219_v9 }
 0x1a2   :  { %v5221_v5 = vpop.f32.mrf.mxu0  ;;  %v5223_v26 = vpop.f32.mrf.mxu1 }
 0x1a3   :  { %5448 = vst [vmem:[#allocation14_spill] sm:$0xff] %v5223_v26 }
 0x1a4   :  { %v5225_v16 = vpop.f32.mrf.mxu0  ;;  %v5227_v11 = vpop.f32.mrf.mxu1 }
 0x1a5   :  { %5449 = vst [vmem:[#allocation15_spill] sm:$0xff] %v5225_v16  ;;  %5450 = vst [vmem:[#allocation16_spill] sm:$0xff] %v5227_v11 }
 0x1a6   :  { %v5229_v31 = vpop.f32.mrf.mxu0  ;;  %v5231_v25 = vpop.f32.mrf.mxu1 }
 0x1a7   :  { %5451 = vst [vmem:[#allocation17_spill] sm:$0xff] %v5229_v31  ;;  %5452 = vst [vmem:[#allocation18_spill] sm:$0xff] %v5231_v25 }
 0x1a8   :  { %v5233_v10 = vpop.f32.mrf.mxu0  ;;  %v5235_v4 = vpop.f32.mrf.mxu1 }
 0x1a9   :  { %5453 = vst [vmem:[#allocation19_spill] sm:$0xff] %v5233_v10  ;;  %5454 = vst [vmem:[#allocation20_spill] sm:$0xff] %v5235_v4 }
 0x1aa   :  { %v5237_v63 = vpop.f32.mrf.mxu0  ;;  %v5239_v57 = vpop.f32.mrf.mxu1 }
 0x1ab   :  { %5455 = vst [vmem:[#allocation21_spill] sm:$0xff] %v5237_v63  ;;  %5456 = vst [vmem:[#allocation22_spill] sm:$0xff] %v5239_v57 }
 0x1ac   :  { %v5241_v53 = vpop.f32.mrf.mxu0  ;;  %v5243_v48 = vpop.f32.mrf.mxu1 }
 0x1ad   :  { %5457 = vst [vmem:[#allocation23_spill] sm:$0xff] %v5241_v53  ;;  %5458 = vst [vmem:[#allocation24_spill] sm:$0xff] %v5243_v48 }
 0x1ae   :  { %v5245_v40 = vpop.f32.mrf.mxu0  ;;  %v5247_v34 = vpop.f32.mrf.mxu1 }
 0x1af   :  { %5459 = vst [vmem:[#allocation25_spill] sm:$0xff] %v5245_v40  ;;  %5460 = vst [vmem:[#allocation26_spill] sm:$0xff] %v5247_v34 }
 0x1b0   :  { %v5249_v29 = vpop.f32.mrf.mxu0  ;;  %v5251_v31 = vpop.f32.mrf.mxu1 }
 0x1b1   :  { %5461 = vst [vmem:[#allocation27_spill] sm:$0xff] %v5249_v29  ;;  %5462 = vst [vmem:[#allocation28_spill] sm:$0xff] %v5251_v31  ;;  %v2673_v29 = vadd.f32 %v2672_v17, %v5091_v55 }
 0x1b2   :  { %v5253_v25 = vpop.f32.mrf.mxu1  ;;  %v5255_v10 = vpop.f32.mrf.mxu0 }
 0x1b3   :  { %5463 = vst [vmem:[#allocation29_spill] sm:$0xff] %v5253_v25  ;;  %5464 = vst [vmem:[#allocation30_spill] sm:$0xff] %v5255_v10  ;;  %v2675_v25 = vadd.f32 %v2674_v15, %v5094_v62  ;;  %v2685_v15 = vadd.f32 %v5177_v27, %v5106_v19 }
 0x1b4   :  { %v5257_v4 = vpop.f32.mrf.mxu1  ;;  %v5261_v57 = vpop.f32.mrf.mxu0 }
 0x1b5   :  { %5465 = vst [vmem:[#allocation31_spill] sm:$0xff] %v5257_v4  ;;  %5467 = vst [vmem:[#allocation33_spill] sm:$0xff] %v5261_v57  ;;  %v2776_v4 = vadd.f32 %v2775_v37, %v2673_v29  ;;  %v2778_v16 = vadd.f32 %v2777_v21, %v2675_v25 }
 0x1b6   :  { %v5259_v63 = vpop.f32.mrf.mxu1  ;;  %v5267_v40 = vpop.f32.mrf.mxu0 }
 0x1b7   :  { %5466 = vst [vmem:[#allocation32_spill] sm:$0xff] %v5259_v63  ;;  %5470 = vst [vmem:[#allocation36_spill] sm:$0xff] %v5267_v40  ;;  %v2677_v63 = vadd.f32 %v2676_v32, %v5097_v2  ;;  %v2683_v40 = vadd.f32 %v2682_v43, %v5103_v13 }
 0x1b8   :  { %v5263_v53 = vpop.f32.mrf.mxu1  ;;  %v5271_v11 = vpop.f32.mrf.mxu0 }
 0x1b9   :  { %5468 = vst [vmem:[#allocation34_spill] sm:$0xff] %v5263_v53  ;;  %v2679_v53 = vadd.f32 %v2678_v22, %v5100_v8  ;;  %v2780_v55 = vadd.f32 %v5173_v38, %v2677_v63  ;;  %v2786_v8 = vadd.f32 %v5179_v45, %v2683_v40  ;;  %v2687_v22 = vadd.f32 %v5181_v47, %v5109_v24 }
 0x1ba   :  { %v5265_v48 = vpop.f32.mrf.mxu1  ;;  %v2689_v38 = vadd.f32 %v5185_v33, %v5112_v30  ;;  %v2695_v33 = vadd.f32 %v5193_v60, %v5118_v42 }
 0x1bb   :  { %5469 = vst [vmem:[#allocation35_spill] sm:$0xff] %v5265_v48  ;;  %v2782_v2 = vadd.f32 %v5175_v28, %v2679_v53  ;;  %v2693_v28 = vadd.f32 %v5189_v41, %v5115_v36  ;;  %v2790_v45 = vadd.f32 %v5187_v51, %v2687_v22 }
 0x1bc   :  { %v2981_v34 = vpop.f32.mrf.mxu1 }
 0x1be   :  { %v2983_v31 = vpop.f32.mrf.mxu1 }
 0x1c0   :  { %v2985_v10 = vpop.f32.mrf.mxu1 }
 0x1c2   :  { %v2878_v26 = vpop.f32.mrf.mxu0  ;;  %v2987_v57 = vpop.f32.mrf.mxu1 }
 0x1c3   :  { %v2879_v48 = vadd.f32 %v2878_v26, %v2776_v4 }
 0x1c4   :  { %v2880_v23 = vpop.f32.mrf.mxu0  ;;  %v2991_v9 = vpop.f32.mrf.mxu1 }
 0x1c5   :  { %v2982_v17 = vadd.f32 %v2981_v34, %v2879_v48  ;;  %v2881_v62 = vadd.f32 %v2880_v23, %v2778_v16  ;;  %v2788_v48 = vadd.f32 %v5183_v35, %v2685_v15  ;;  %v2792_v16 = vadd.f32 %v5191_v39, %v2689_v38 }
 0x1c6   :  { %v2882_v29 = vpop.f32.mrf.mxu0  ;;  %v2993_v37 = vpop.f32.mrf.mxu1 }
 0x1c7   :  { %v3050_v32 = vmax.f32 %v2982_v17, 0.0  ;;  %v2984_v25 = vadd.f32 %v2983_v31, %v2881_v62  ;;  %v2883_v21 = vadd.f32 %v2882_v29, %v2780_v55  ;;  %v2796_v31 = vadd.f32 %v5195_v46, %v2693_v28 }
 0x1c8   :  { %v2884_v4 = vpop.f32.mrf.mxu0  ;;  %v2995_v13 = vpop.f32.mrf.mxu1  ;;  %v2798_v62 = vadd.f32 %v5199_v1, %v2695_v33 }
 0x1c9   :  { %3078 = vst [vmem:[%s5435_s3] sm:$0xff] %v3050_v32  ;;  %v3051_v23 = vmax.f32 %v2984_v25, 0.0  ;;  %v2986_v19 = vadd.f32 %v2985_v10, %v2883_v21  ;;  %v2885_v34 = vadd.f32 %v2884_v4, %v2782_v2  ;;  %v2703_v2 = vadd.f32 %v5205_v7, %v5127_v58 }
 0x1ca   :  { %v2888_v53 = vpop.f32.mrf.mxu0  ;;  %v2997_v63 = vpop.f32.mrf.mxu1 }
 0x1cb   :  { %3079 = vst [vmem:[%s5435_s3 + $0x8] sm:$0xff] %v3051_v23  ;;  %v3052_v40 = vmax.f32 %v2986_v19, 0.0  ;;  %v2988_v24 = vadd.f32 %v2987_v57, %v2885_v34  ;;  %v2889_v43 = vadd.f32 %v2888_v53, %v2786_v8  ;;  %v2705_v8 = vadd.f32 %v5209_v56, %v5130_v0 }
 0x1cc   :  { %v2890_v27 = vpop.f32.mrf.mxu0  ;;  %v3001_v10 = vpop.f32.mrf.mxu1  ;;  %v2806_v23 = vadd.f32 %v5211_v14, %v2703_v2 }
 0x1cd   :  { %3080 = vst [vmem:[%s5435_s3 + $0x10] sm:$0xff] %v3052_v40  ;;  %v3053_v47 = vmax.f32 %v2988_v24, 0.0  ;;  %v2992_v30 = vadd.f32 %v2991_v9, %v2889_v43  ;;  %v2891_v35 = vadd.f32 %v2890_v27, %v2788_v48  ;;  %v2697_v9 = vadd.f32 %v5197_v44, %v5121_v49  ;;  %v5471_v27 = vld [vmem:[#allocation13_spill] sm:$0xff] }
 0x1ce   :  { %v2892_v26 = vpop.f32.mrf.mxu0  ;;  %v3003_v57 = vpop.f32.mrf.mxu1  ;;  %v2707_v48 = vadd.f32 %v5213_v3, %v5133_v6  ;;  %v2808_v53 = vadd.f32 %v5215_v59, %v2705_v8  ;;  %v2709_v40 = vadd.f32 %v5217_v20, %v5136_v12  ;;  %v2713_v24 = vadd.f32 %v5221_v5, %v5139_v18 }
 0x1cf   :  { %3081 = vst [vmem:[%s5435_s3 + $0x18] sm:$0xff] %v3053_v47  ;;  %v3054_v36 = vmax.f32 %v2992_v30, 0.0  ;;  %v2994_v51 = vadd.f32 %v2993_v37, %v2891_v35  ;;  %v2893_v41 = vadd.f32 %v2892_v26, %v2790_v45  ;;  %v2699_v37 = vadd.f32 %v5201_v52, %v5124_v54  ;;  %v5472_v45 = vld [vmem:[#allocation2_spill] sm:$0xff]  ;;  %v5473_v47 = vld [vmem:[#allocation15_spill] sm:$0xff] }
 0x1d0   :  { %v2894_v55 = vpop.f32.mrf.mxu0  ;;  %v3005_v17 = vpop.f32.mrf.mxu1  ;;  %v2800_v21 = vadd.f32 %v5203_v50, %v2697_v9  ;;  %v2715_v30 = vadd.f32 %v5473_v47, %v5472_v45  ;;  %v5474_v26 = vld [vmem:[#allocation14_spill] sm:$0xff]  ;;  %v5491_v47 = vld [vmem:[#allocation8_spill] sm:$0xff] }
 0x1d1   :  { %3082 = vst [vmem:[%s5435_s3 + $0x20] sm:$0xff] %v3054_v36  ;;  %v3055_v42 = vmax.f32 %v2994_v51, 0.0  ;;  %v2996_v39 = vadd.f32 %v2995_v13, %v2893_v41  ;;  %v2895_v60 = vadd.f32 %v2894_v55, %v2792_v16  ;;  %v2802_v22 = vadd.f32 %v5207_v61, %v2699_v37  ;;  %v5475_v36 = vld [vmem:[#allocation16_spill] sm:$0xff]  ;;  %v5476_v55 = vld [vmem:[#allocation3_spill] sm:$0xff] }
 0x1d2   :  { %v2898_v15 = vpop.f32.mrf.mxu0  ;;  %v3007_v29 = vpop.f32.mrf.mxu1  ;;  %v2816_v51 = vadd.f32 %v5475_v36, %v2713_v24  ;;  %v5489_v24 = vld [vmem:[#allocation25_spill] sm:$0xff] }
 0x1d3   :  { %3083 = vst [vmem:[%s5435_s3 + $0x28] sm:$0xff] %v3055_v42  ;;  %v3056_v46 = vmax.f32 %v2996_v39, 0.0  ;;  %v2998_v49 = vadd.f32 %v2997_v63, %v2895_v60  ;;  %v2899_v44 = vadd.f32 %v2898_v15, %v2796_v31 }
 0x1d4   :  { %v2900_v32 = vpop.f32.mrf.mxu0  ;;  %v3011_v25 = vpop.f32.mrf.mxu1 }
 0x1d5   :  { %3084 = vst [vmem:[%s5435_s3 + $0x30] sm:$0xff] %v3056_v46  ;;  %v3057_v1 = vmax.f32 %v2998_v49, 0.0  ;;  %v3002_v54 = vadd.f32 %v3001_v10, %v2899_v44  ;;  %v2901_v52 = vadd.f32 %v2900_v32, %v2798_v62  ;;  %v2810_v10 = vadd.f32 %v5471_v27, %v2707_v48  ;;  %v5478_v62 = vld [vmem:[#allocation18_spill] sm:$0xff]  ;;  %v5479_v46 = vld [vmem:[#allocation4_spill] sm:$0xff]  ;;  %v5480_v49 = vld [vmem:[#allocation19_spill] sm:$0xff] }
 0x1d6   :  { %v2902_v4 = vpop.f32.mrf.mxu0  ;;  %v3013_v13 = vpop.f32.mrf.mxu1  ;;  %v2818_v15 = vadd.f32 %v5478_v62, %v2715_v30  ;;  %v2719_v44 = vadd.f32 %v5480_v49, %v5479_v46  ;;  %v5492_v30 = vld [vmem:[#allocation27_spill] sm:$0xff] }
 0x1d7   :  { %3085 = vst [vmem:[%s5435_s3 + $0x38] sm:$0xff] %v3057_v1  ;;  %v3058_v58 = vmax.f32 %v3002_v54, 0.0  ;;  %v3004_v50 = vadd.f32 %v3003_v57, %v2901_v52  ;;  %v2903_v7 = vadd.f32 %v2902_v4, %v2800_v21  ;;  %v2812_v57 = vadd.f32 %v5474_v26, %v2709_v40  ;;  %v5481_v21 = vld [vmem:[#allocation5_spill] sm:$0xff]  ;;  %v5483_v4 = vld [vmem:[#allocation20_spill] sm:$0xff] }
 0x1d8   :  { %v2904_v19 = vpop.f32.mrf.mxu0  ;;  %v3015_v34 = vpop.f32.mrf.mxu1  ;;  %v5482_v1 = vld [vmem:[#allocation21_spill] sm:$0xff] }
 0x1d9   :  { %3086 = vst [vmem:[%s5435_s3 + $0x40] sm:$0xff] %v3058_v58  ;;  %v3059_v0 = vmax.f32 %v3004_v50, 0.0  ;;  %v3006_v61 = vadd.f32 %v3005_v17, %v2903_v7  ;;  %v2905_v56 = vadd.f32 %v2904_v19, %v2802_v22  ;;  %v5477_v17 = vld [vmem:[#allocation17_spill] sm:$0xff]  ;;  %v2723_v54 = vadd.f32 %v5482_v1, %v5481_v21  ;;  %v5484_v7 = vld [vmem:[#allocation6_spill] sm:$0xff]  ;;  %v5501_v21 = vld [vmem:[#allocation36_spill] sm:$0xff] }
 0x1da   :  { %v2908_v63 = vpop.f32.mrf.mxu0  ;;  %v3017_v38 = vpop.f32.mrf.mxu1  ;;  %v2717_v9 = vadd.f32 %v5477_v17, %v5476_v55 }
 0x1db   :  { %3087 = vst [vmem:[%s5435_s3 + $0x48] sm:$0xff] %v3059_v0  ;;  %v3060_v14 = vmax.f32 %v3006_v61, 0.0  ;;  %v3008_v6 = vadd.f32 %v3007_v29, %v2905_v56  ;;  %v2909_v3 = vadd.f32 %v2908_v63, %v2806_v23  ;;  %v5485_v23 = vld [vmem:[#allocation23_spill] sm:$0xff]  ;;  %v5486_v0 = vld [vmem:[#allocation22_spill] sm:$0xff] }
 0x1dc   :  { %v2910_v43 = vpop.f32.mrf.mxu0  ;;  %v3021_v28 = vpop.f32.mrf.mxu1  ;;  %v2725_v19 = vadd.f32 %v5485_v23, %v5484_v7  ;;  %v2822_v61 = vadd.f32 %v5486_v0, %v2719_v44  ;;  %v5499_v44 = vld [vmem:[#allocation31_spill] sm:$0xff]  ;;  %v5504_v0 = vld [vmem:[#allocation34_spill] sm:$0xff] }
 0x1dd   :  { %3088 = vst [vmem:[%s5435_s3 + $0x50] sm:$0xff] %v3060_v14  ;;  %v3061_v59 = vmax.f32 %v3008_v6, 0.0  ;;  %v3012_v12 = vadd.f32 %v3011_v25, %v2909_v3  ;;  %v2911_v20 = vadd.f32 %v2910_v43, %v2808_v53  ;;  %v5488_v3 = vld [vmem:[#allocation7_spill] sm:$0xff] }
 0x1de   :  { %v2912_v35 = vpop.f32.mrf.mxu0  ;;  %v3023_v33 = vpop.f32.mrf.mxu1  ;;  %v2727_v43 = vadd.f32 %v5489_v24, %v5488_v3 }
 0x1df   :  { %3089 = vst [vmem:[%s5435_s3 + $0x58] sm:$0xff] %v3061_v59  ;;  %v3062_v18 = vmax.f32 %v3012_v12, 0.0  ;;  %v3014_v5 = vadd.f32 %v3013_v13, %v2911_v20  ;;  %v2913_v16 = vadd.f32 %v2912_v35, %v2810_v10  ;;  %v2820_v13 = vadd.f32 %v5483_v4, %v2717_v9  ;;  %v5490_v59 = vld [vmem:[#allocation26_spill] sm:$0xff]  ;;  %v5502_v4 = vld [vmem:[#allocation32_spill] sm:$0xff] }
 0x1e0   :  { %v2914_v41 = vpop.f32.mrf.mxu0  ;;  %v3025_v31 = vpop.f32.mrf.mxu1  ;;  %v2828_v12 = vadd.f32 %v5490_v59, %v2725_v19  ;;  %v2729_v35 = vadd.f32 %v5492_v30, %v5491_v47  ;;  %v5496_v9 = vld [vmem:[#allocation10_spill] sm:$0xff] }
 0x1e1   :  { %3090 = vst [vmem:[%s5435_s3 + $0x60] sm:$0xff] %v3062_v18  ;;  %v3063_v42 = vmax.f32 %v3014_v5, 0.0  ;;  %v3016_v39 = vadd.f32 %v3015_v34, %v2913_v16  ;;  %v2915_v60 = vadd.f32 %v2914_v41, %v2812_v57  ;;  %v5493_v18 = vld [vmem:[#allocation9_spill] sm:$0xff]  ;;  %v5494_v5 = vld [vmem:[#allocation30_spill] sm:$0xff] }
 0x1e2   :  { %v2918_v29 = vpop.f32.mrf.mxu0  ;;  %v3027_v37 = vpop.f32.mrf.mxu1  ;;  %v2733_v16 = vadd.f32 %v5494_v5, %v5493_v18 }
 0x1e3   :  { %3091 = vst [vmem:[%s5435_s3 + $0x68] sm:$0xff] %v3063_v42  ;;  %v3064_v2 = vmax.f32 %v3016_v39, 0.0  ;;  %v3018_v32 = vadd.f32 %v3017_v38, %v2915_v60  ;;  %v2919_v25 = vadd.f32 %v2918_v29, %v2816_v51  ;;  %v5487_v38 = vld [vmem:[#allocation24_spill] sm:$0xff]  ;;  %v5497_v42 = vld [vmem:[#allocation33_spill] sm:$0xff] }
 0x1e4   :  { %v2920_v52 = vpop.f32.mrf.mxu0  ;;  %v3031_v8 = vpop.f32.mrf.mxu1  ;;  %v2826_v40 = vadd.f32 %v5487_v38, %v2723_v54  ;;  %v5495_v51 = vld [vmem:[#allocation28_spill] sm:$0xff]  ;;  %v2735_v39 = vadd.f32 %v5497_v42, %v5496_v9 }
 0x1e5   :  { %3092 = vst [vmem:[%s5435_s3 + $0x70] sm:$0xff] %v3064_v2  ;;  %v3065_v22 = vmax.f32 %v3018_v32, 0.0  ;;  %v3022_v58 = vadd.f32 %v3021_v28, %v2919_v25  ;;  %v2921_v50 = vadd.f32 %v2920_v52, %v2818_v15  ;;  %v2830_v41 = vadd.f32 %v5495_v51, %v2727_v43  ;;  %v5498_v15 = vld [vmem:[#allocation29_spill] sm:$0xff]  ;;  %v5500_v25 = vld [vmem:[#allocation11_spill] sm:$0xff] }
 0x1e6   :  { %v2922_v34 = vpop.f32.mrf.mxu0  ;;  %v3033_v48 = vpop.f32.mrf.mxu1  ;;  %v2832_v29 = vadd.f32 %v5498_v15, %v2729_v35  ;;  %v2836_v2 = vadd.f32 %v5499_v44, %v2733_v16  ;;  %v2737_v1 = vadd.f32 %v5501_v21, %v5500_v25 }
 0x1e7   :  { %3093 = vst [vmem:[%s5435_s3 + $0x78] sm:$0xff] %v3065_v22  ;;  %v3066_v56 = vmax.f32 %v3022_v58, 0.0  ;;  %v3024_v53 = vadd.f32 %v3023_v33, %v2921_v50  ;;  %v2923_v63 = vadd.f32 %v2922_v34, %v2820_v13  ;;  %v2838_v13 = vadd.f32 %v5502_v4, %v2735_v39  ;;  %v5503_v50 = vld [vmem:[#allocation12_spill] sm:$0xff] }
 0x1e8   :  { %v2924_v14 = vpop.f32.mrf.mxu0  ;;  %v3035_v6 = vpop.f32.mrf.mxu1  ;;  %v2739_v7 = vadd.f32 %v5271_v11, %v5503_v50  ;;  %v5505_v11 = vld [vmem:[#allocation35_spill] sm:$0xff] }
 0x1e9   :  { %3094 = vst [vmem:[%s5435_s3 + $0x80] sm:$0xff] %v3066_v56  ;;  %v3067_v28 = vmax.f32 %v3024_v53, 0.0  ;;  %v3026_v27 = vadd.f32 %v3025_v31, %v2923_v63  ;;  %v2925_v10 = vadd.f32 %v2924_v14, %v2822_v61  ;;  %v2840_v61 = vadd.f32 %v5504_v0, %v2737_v1 }
 0x1ea   :  { %v2928_v20 = vpop.f32.mrf.mxu0  ;;  %v3037_v45 = vpop.f32.mrf.mxu1  ;;  %v2842_v14 = vadd.f32 %v5505_v11, %v2739_v7 }
 0x1eb   :  { %3095 = vst [vmem:[%s5435_s3 + $0x88] sm:$0xff] %v3067_v28  ;;  %v3068_v33 = vmax.f32 %v3026_v27, 0.0  ;;  %v3028_v26 = vadd.f32 %v3027_v37, %v2925_v10  ;;  %v2929_v57 = vadd.f32 %v2928_v20, %v2826_v40 }
 0x1ec   :  { %v2930_v36 = vpop.f32.mrf.mxu0  ;;  %v3041_v62 = vpop.f32.mrf.mxu1 }
 0x1ed   :  { %3096 = vst [vmem:[%s5435_s3 + $0x90] sm:$0xff] %v3068_v33  ;;  %v3069_v31 = vmax.f32 %v3028_v26, 0.0  ;;  %v3032_v55 = vadd.f32 %v3031_v8, %v2929_v57  ;;  %v2931_v17 = vadd.f32 %v2930_v36, %v2828_v12 }
 0x1ee   :  { %v2932_v60 = vpop.f32.mrf.mxu0  ;;  %v3043_v22 = vpop.f32.mrf.mxu1 }
 0x1ef   :  { %3097 = vst [vmem:[%s5435_s3 + $0x98] sm:$0xff] %v3069_v31  ;;  %v3070_v37 = vmax.f32 %v3032_v55, 0.0  ;;  %v3034_v46 = vadd.f32 %v3033_v48, %v2931_v17  ;;  %v2933_v49 = vadd.f32 %v2932_v60, %v2830_v41 }
 0x1f0   :  { %v2934_v32 = vpop.f32.mrf.mxu0  ;;  %v3045_v38 = vpop.f32.mrf.mxu1 }
 0x1f1   :  { %3098 = vst [vmem:[%s5435_s3 + $0xa0] sm:$0xff] %v3070_v37  ;;  %v3071_v54 = vmax.f32 %v3034_v46, 0.0  ;;  %v3036_v52 = vadd.f32 %v3035_v6, %v2933_v49  ;;  %v2935_v8 = vadd.f32 %v2934_v32, %v2832_v29 }
 0x1f2   :  { %v2938_v58 = vpop.f32.mrf.mxu0  ;;  %v3047_v59 = vpop.f32.mrf.mxu1 }
 0x1f3   :  { %3099 = vst [vmem:[%s5435_s3 + $0xa8] sm:$0xff] %v3071_v54  ;;  %v3072_v23 = vmax.f32 %v3036_v52, 0.0  ;;  %v3038_v19 = vadd.f32 %v3037_v45, %v2935_v8  ;;  %v2939_v34 = vadd.f32 %v2938_v58, %v2836_v2 }
 0x1f4   :  { %v2940_v48 = vpop.f32.mrf.mxu0 }
 0x1f5   :  { %3100 = vst [vmem:[%s5435_s3 + $0xb0] sm:$0xff] %v3072_v23  ;;  %v3073_v56 = vmax.f32 %v3038_v19, 0.0  ;;  %v3042_v53 = vadd.f32 %v3041_v62, %v2939_v34  ;;  %v2941_v63 = vadd.f32 %v2940_v48, %v2838_v13 }
 0x1f6   :  { %v2942_v40 = vpop.f32.mrf.mxu0 }
 0x1f7   :  { %3101 = vst [vmem:[%s5435_s3 + $0xb8] sm:$0xff] %v3073_v56  ;;  %v3074_v6 = vmax.f32 %v3042_v53, 0.0  ;;  %v3044_v3 = vadd.f32 %v3043_v22, %v2941_v63  ;;  %v2943_v24 = vadd.f32 %v2942_v40, %v2840_v61 }
 0x1f8   :  { %v2944_v43 = vpop.f32.mrf.mxu0 }
 0x1f9   :  { %3102 = vst [vmem:[%s5435_s3 + $0xc0] sm:$0xff] %v3074_v6  ;;  %v3075_v28 = vmax.f32 %v3044_v3, 0.0  ;;  %v3046_v27 = vadd.f32 %v3045_v38, %v2943_v24  ;;  %v2945_v10 = vadd.f32 %v2944_v43, %v2842_v14 }
 0x1fb   :  { %3103 = vst [vmem:[%s5435_s3 + $0xc8] sm:$0xff] %v3075_v28  ;;  %v3076_v12 = vmax.f32 %v3046_v27, 0.0  ;;  %v3048_v20 = vadd.f32 %v3047_v59, %v2945_v10 }
 0x1fd   :  { %3104 = vst [vmem:[%s5435_s3 + $0xd0] sm:$0xff] %v3076_v12  ;;  %v3077_v45 = vmax.f32 %v3048_v20, 0.0 }
 0x1ff   :  { %3105 = vst [vmem:[%s5435_s3 + $0xd8] sm:$0xff] %v3077_v45 }

// kernel: reduction_a_forward.5
= control target key start
LH: loop header
LB: loop body
LE: loop exit
PB: predicated region body
PF: predicated region fallthrough
CT: control target
= control target key end

     0   :  { %v469_v5 = vmov 0   ;;  %vm179_vm0 = vcmask 1041408   ;;  %vm157_vm1 = vcmask 293888   ;;  %v87_v21 = vlaneseq  ;;  %s652_s0 = inlined_call_operand.vmem [shape: bf16[112,36], index: 0, kind: input, shape index: {}]   ;;  %s653_s1 = inlined_call_operand.vmem [shape: bf16[36,384], index: 1, kind: input, shape index: {}]   ;;  %s654_s2 = inlined_call_operand.vmem [shape: f32[1,384], index: 2, kind: input, shape index: {}]   ;;  %s655_s3 = inlined_call_operand.vmem [shape: f32[112,384], index: 3, kind: output, shape index: {}]  }
   0x1   :  { %v56_v0 = vld [vmem:[%s653_s1 + $0x30] sm:$0xff]  ;;  %v52_v1 = vld [vmem:[%s653_s1 + $0x18] sm:$0xff]  ;;  %v54_v2 = vld [vmem:[%s653_s1 + $0x24] sm:$0xff]  ;;  %218 = vmatprep.mubr.bf16.mxu0 %v469_v5  ;;  %258 = vmatprep.mubr.bf16.mxu1 %v469_v5 }
   0x2   :  { %57 = vst [vmem:[#allocation2 + $0x18] sm:$0xff] %v56_v0  ;;  %v48_v3 = vld [vmem:[%s653_s1] sm:$0xff]  ;;  %v50_v4 = vld [vmem:[%s653_s1 + $0xc] sm:$0xff]  ;;  %v438_v9 = vcombine.high %v52_v1, %v54_v2  ;;  %v437_v11 = vcombine.low %v52_v1, %v54_v2  ;;  %v468_v20 = vld [vmem:[%s652_s0 + $0x18] sm:$0xff]   ;;  %v88_v22 = vshrl.u32 %v87_v21, 7 }
   0x3   :  { %v436_v12 = vcombine.high %v48_v3, %v50_v4  ;;  %v435_v13 = vcombine.low %v48_v3, %v50_v4  ;;  %v462_v14 = vld [vmem:[%s652_s0] sm:$0xff]   ;;  %v464_v16 = vld [vmem:[%s652_s0 + $0x8] sm:$0xff]   ;;  %v466_v18 = vld [vmem:[%s652_s0 + $0x10] sm:$0xff]  }
   0x4   :  { %v463_v15 = vld [vmem:[%s652_s0 + $0x20] sm:$0xff]   ;;  %v465_v17 = vld [vmem:[%s652_s0 + $0x28] sm:$0xff]   ;;  %v467_v19 = vld [vmem:[%s652_s0 + $0x30] sm:$0xff]   ;;  %v89_v23 = vsub.s32 0, %v88_v22  ;;  %v93_v25 = vsub.s32 1, %v88_v22 }
   0x5   :  { %v85_v24 = vld [vmem:[%s654_s2] sm:$0x3] }
   0x6   :  { %v536_v26 = vrot.slane %v85_v24, %v89_v23  ;;  %v538_v27 = vrot.slane %v85_v24, %v93_v25 }
   0x9   :  { %v84_v6 = vld [vmem:[#allocation2 + $0x18] sm:$0x33] }
   0xa   :  { %v440_v7 = vcombine.high %v84_v6, %v84_v6  ;;  %v439_v8 = vcombine.low %v84_v6, %v84_v6 }
   0xc   :  { %441 = vmatprep.subr.msk.bf16.mxu0 %vm179_vm0, %v440_v7  ;;  %v181_v10 = vsel %vm179_vm0, %v439_v8, 0  ;;  %449 = vmatprep.subr.msk.bf16.mxu1 %vm179_vm0, %v440_v7 }
   0xd   :  { %197 = vmatpush1.bf16.msra.mxu0 %v181_v10  ;;  %452 = vmatpush1.bf16.msra.mxu1 %v181_v10 }
   0xe   :  { %198 = vmatprep.subr.bf16.mxu0 %v438_v9  ;;  %450 = vmatprep.subr.bf16.mxu1 %v438_v9 }
  0x11   :  { %199 = vmatpush1.bf16.msra.mxu0 %v437_v11  ;;  %453 = vmatpush1.bf16.msra.mxu1 %v437_v11 }
  0x12   :  { %200 = vmatprep.subr.bf16.mxu0 %v436_v12  ;;  %451 = vmatprep.subr.bf16.mxu1 %v436_v12 }
  0x15   :  { %201 = vmatpush1.bf16.msra.mxu0 %v435_v13  ;;  %454 = vmatpush1.bf16.msra.mxu1 %v435_v13 }
  0x18   :  { %442 = vmatmul.mubr.msk.bf16.vlgmr.msra.gmra.mxu0 %vm157_vm1, %v462_v14  ;;  %446 = vmatmul.mubr.msk.bf16.vlgmr.msra.gmra.mxu1 %vm157_vm1, %v463_v15 }
  0x19   :  { %228 = vmatprep.mubr.bf16.mxu0 %v469_v5  ;;  %268 = vmatprep.mubr.bf16.mxu1 %v469_v5 }
  0x20   :  { %443 = vmatmul.mubr.msk.bf16.gmra.mxu0 %vm157_vm1, %v464_v16  ;;  %447 = vmatmul.mubr.msk.bf16.gmra.mxu1 %vm157_vm1, %v465_v17 }
  0x21   :  { %238 = vmatprep.mubr.bf16.mxu0 %v469_v5  ;;  %278 = vmatprep.mubr.bf16.mxu1 %v469_v5 }
  0x28   :  { %444 = vmatmul.mubr.msk.bf16.gmra.mxu0 %vm157_vm1, %v466_v18  ;;  %448 = vmatmul.mubr.msk.bf16.gmra.mxu1 %vm157_vm1, %v467_v19 }
  0x29   :  { %248 = vmatprep.mubr.bf16.mxu0 %v469_v5 }
  0x30   :  { %445 = vmatmul.mubr.msk.bf16.gmra.mxu0 %vm157_vm1, %v468_v20 }
  0xd8   :  { %v220_v28 = vpop.f32.mrf.mxu0  ;;  %v260_v29 = vpop.f32.mrf.mxu1 }
  0xd9   :  { %v221_v30 = vadd.f32 %v220_v28, %v536_v26  ;;  %v261_v31 = vadd.f32 %v260_v29, %v536_v26 }
  0xda   :  { %v222_v32 = vpop.f32.mrf.mxu0  ;;  %v262_v33 = vpop.f32.mrf.mxu1 }
  0xdb   :  { %v289_v34 = vmax.f32 %v221_v30, 0.0  ;;  %v223_v35 = vadd.f32 %v222_v32, %v538_v27  ;;  %v305_v36 = vmax.f32 %v261_v31, 0.0  ;;  %v263_v37 = vadd.f32 %v262_v33, %v538_v27 }
  0xdc   :  { %v224_v38 = vpop.f32.mrf.mxu0  ;;  %v264_v39 = vpop.f32.mrf.mxu1 }
  0xdd   :  { %360 = vst [vmem:[%s655_s3] sm:$0xff] %v289_v34  ;;  %v290_v40 = vmax.f32 %v223_v35, 0.0  ;;  %392 = vst [vmem:[%s655_s3 + $0xc0] sm:$0xff] %v305_v36  ;;  %v225_v41 = vadd.f32 %v224_v38, %v536_v26  ;;  %v306_v42 = vmax.f32 %v263_v37, 0.0  ;;  %v265_v43 = vadd.f32 %v264_v39, %v536_v26 }
  0xde   :  { %v226_v44 = vpop.f32.mrf.mxu0  ;;  %v266_v45 = vpop.f32.mrf.mxu1 }
  0xdf   :  { %362 = vst [vmem:[%s655_s3 + $0x8] sm:$0xff] %v290_v40  ;;  %v291_v46 = vmax.f32 %v225_v41, 0.0  ;;  %394 = vst [vmem:[%s655_s3 + $0xc8] sm:$0xff] %v306_v42  ;;  %v227_v47 = vadd.f32 %v226_v44, %v538_v27  ;;  %v307_v48 = vmax.f32 %v265_v43, 0.0  ;;  %v267_v49 = vadd.f32 %v266_v45, %v538_v27 }
  0xe0   :  { %v230_v50 = vpop.f32.mrf.mxu0  ;;  %v270_v51 = vpop.f32.mrf.mxu1 }
  0xe1   :  { %364 = vst [vmem:[%s655_s3 + $0x18] sm:$0xff] %v291_v46  ;;  %v292_v52 = vmax.f32 %v227_v47, 0.0  ;;  %396 = vst [vmem:[%s655_s3 + $0xd8] sm:$0xff] %v307_v48  ;;  %v231_v53 = vadd.f32 %v230_v50, %v536_v26  ;;  %v308_v54 = vmax.f32 %v267_v49, 0.0  ;;  %v271_v55 = vadd.f32 %v270_v51, %v536_v26 }
  0xe2   :  { %v232_v56 = vpop.f32.mrf.mxu0  ;;  %v272_v57 = vpop.f32.mrf.mxu1 }
  0xe3   :  { %366 = vst [vmem:[%s655_s3 + $0x20] sm:$0xff] %v292_v52  ;;  %v293_v58 = vmax.f32 %v231_v53, 0.0  ;;  %398 = vst [vmem:[%s655_s3 + $0xe0] sm:$0xff] %v308_v54  ;;  %v233_v59 = vadd.f32 %v232_v56, %v538_v27  ;;  %v309_v60 = vmax.f32 %v271_v55, 0.0  ;;  %v273_v61 = vadd.f32 %v272_v57, %v538_v27 }
  0xe4   :  { %v234_v62 = vpop.f32.mrf.mxu0  ;;  %v274_v63 = vpop.f32.mrf.mxu1 }
  0xe5   :  { %368 = vst [vmem:[%s655_s3 + $0x30] sm:$0xff] %v293_v58  ;;  %v294_v0 = vmax.f32 %v233_v59, 0.0  ;;  %400 = vst [vmem:[%s655_s3 + $0xf0] sm:$0xff] %v309_v60  ;;  %v235_v1 = vadd.f32 %v234_v62, %v536_v26  ;;  %v310_v2 = vmax.f32 %v273_v61, 0.0  ;;  %v275_v3 = vadd.f32 %v274_v63, %v536_v26 }
  0xe6   :  { %v236_v4 = vpop.f32.mrf.mxu0  ;;  %v276_v5 = vpop.f32.mrf.mxu1 }
  0xe7   :  { %370 = vst [vmem:[%s655_s3 + $0x38] sm:$0xff] %v294_v0  ;;  %v295_v6 = vmax.f32 %v235_v1, 0.0  ;;  %402 = vst [vmem:[%s655_s3 + $0xf8] sm:$0xff] %v310_v2  ;;  %v237_v7 = vadd.f32 %v236_v4, %v538_v27  ;;  %v311_v8 = vmax.f32 %v275_v3, 0.0  ;;  %v277_v9 = vadd.f32 %v276_v5, %v538_v27 }
  0xe8   :  { %v240_v10 = vpop.f32.mrf.mxu0  ;;  %v280_v11 = vpop.f32.mrf.mxu1 }
  0xe9   :  { %372 = vst [vmem:[%s655_s3 + $0x48] sm:$0xff] %v295_v6  ;;  %v296_v12 = vmax.f32 %v237_v7, 0.0  ;;  %404 = vst [vmem:[%s655_s3 + $0x108] sm:$0xff] %v311_v8  ;;  %v241_v13 = vadd.f32 %v240_v10, %v536_v26  ;;  %v312_v14 = vmax.f32 %v277_v9, 0.0  ;;  %v281_v15 = vadd.f32 %v280_v11, %v536_v26 }
  0xea   :  { %v242_v16 = vpop.f32.mrf.mxu0  ;;  %v282_v17 = vpop.f32.mrf.mxu1 }
  0xeb   :  { %374 = vst [vmem:[%s655_s3 + $0x50] sm:$0xff] %v296_v12  ;;  %v297_v18 = vmax.f32 %v241_v13, 0.0  ;;  %406 = vst [vmem:[%s655_s3 + $0x110] sm:$0xff] %v312_v14  ;;  %v243_v19 = vadd.f32 %v242_v16, %v538_v27  ;;  %v313_v20 = vmax.f32 %v281_v15, 0.0  ;;  %v283_v21 = vadd.f32 %v282_v17, %v538_v27 }
  0xec   :  { %v244_v22 = vpop.f32.mrf.mxu0  ;;  %v284_v23 = vpop.f32.mrf.mxu1 }
  0xed   :  { %376 = vst [vmem:[%s655_s3 + $0x60] sm:$0xff] %v297_v18  ;;  %v298_v24 = vmax.f32 %v243_v19, 0.0  ;;  %408 = vst [vmem:[%s655_s3 + $0x120] sm:$0xff] %v313_v20  ;;  %v245_v25 = vadd.f32 %v244_v22, %v536_v26  ;;  %v314_v28 = vmax.f32 %v283_v21, 0.0  ;;  %v285_v29 = vadd.f32 %v284_v23, %v536_v26 }
  0xee   :  { %v246_v30 = vpop.f32.mrf.mxu0  ;;  %v286_v31 = vpop.f32.mrf.mxu1 }
  0xef   :  { %378 = vst [vmem:[%s655_s3 + $0x68] sm:$0xff] %v298_v24  ;;  %v299_v32 = vmax.f32 %v245_v25, 0.0  ;;  %410 = vst [vmem:[%s655_s3 + $0x128] sm:$0xff] %v314_v28  ;;  %v247_v33 = vadd.f32 %v246_v30, %v538_v27  ;;  %v315_v34 = vmax.f32 %v285_v29, 0.0  ;;  %v287_v35 = vadd.f32 %v286_v31, %v538_v27 }
  0xf0   :  { %v250_v36 = vpop.f32.mrf.mxu0 }
  0xf1   :  { %380 = vst [vmem:[%s655_s3 + $0x78] sm:$0xff] %v299_v32  ;;  %v300_v37 = vmax.f32 %v247_v33, 0.0  ;;  %412 = vst [vmem:[%s655_s3 + $0x138] sm:$0xff] %v315_v34  ;;  %v251_v38 = vadd.f32 %v250_v36, %v536_v26  ;;  %v316_v39 = vmax.f32 %v287_v35, 0.0 }
  0xf2   :  { %v252_v40 = vpop.f32.mrf.mxu0 }
  0xf3   :  { %382 = vst [vmem:[%s655_s3 + $0x80] sm:$0xff] %v300_v37  ;;  %v301_v41 = vmax.f32 %v251_v38, 0.0  ;;  %414 = vst [vmem:[%s655_s3 + $0x140] sm:$0xff] %v316_v39  ;;  %v253_v42 = vadd.f32 %v252_v40, %v538_v27 }
  0xf4   :  { %v254_v43 = vpop.f32.mrf.mxu0 }
  0xf5   :  { %384 = vst [vmem:[%s655_s3 + $0x90] sm:$0xff] %v301_v41  ;;  %v302_v44 = vmax.f32 %v253_v42, 0.0  ;;  %v255_v45 = vadd.f32 %v254_v43, %v536_v26 }
  0xf6   :  { %v256_v46 = vpop.f32.mrf.mxu0 }
  0xf7   :  { %386 = vst [vmem:[%s655_s3 + $0x98] sm:$0xff] %v302_v44  ;;  %v303_v47 = vmax.f32 %v255_v45, 0.0  ;;  %v257_v48 = vadd.f32 %v256_v46, %v538_v27 }
  0xf9   :  { %388 = vst [vmem:[%s655_s3 + $0xa8] sm:$0xff] %v303_v47  ;;  %v304_v49 = vmax.f32 %v257_v48, 0.0 }
  0xfb   :  { %390 = vst [vmem:[%s655_s3 + $0xb0] sm:$0xff] %v304_v49 }

</bundles_post_ra>
